<compile_context>
chip_gen: v7x
topology: tpu7x:2x2x1
jax: 0.10.0
libtpu: 0.0.40
codegen_flags: <defaults>
</compile_context>

<pallas_src>
import jax
import jax.numpy as jnp
import numpy as np
from jax.experimental import pallas as pl
from jax.experimental.pallas import tpu as pltpu

EPS = 1e-5  # BatchNorm2d default eps


# --------------------------- fused Pallas kernel ------------------------------

def _conv_block(a, sel_ref, wt_ref, bss_ref):
    """One conv layer as implicit GEMM over kernel taps (all in VMEM/vregs).

    a:       (H_in*W_in, Cin) f32 activation for one sample.
    sel_ref: (T, OH*OW, H_in*W_in) 0/1 gather matrices (one per surviving tap).
    wt_ref:  (T, Cin, Cout) conv weight per tap.
    bss_ref: (4, Cout) rows = [conv bias, bn scale, bn shift, prelu alpha].
    """
    taps = sel_ref.shape[0]
    m_out = sel_ref.shape[1]
    m_in = sel_ref.shape[2]
    cout = wt_ref.shape[2]

    acc = jnp.zeros((m_out, cout), jnp.float32)
    for t in range(taps):                                   # static unroll
        sel_t = sel_ref[t]                                  # (m_out, m_in)
        if m_in == 1:
            # K == 1 contraction is just an outer product -> VPU broadcast-mul.
            g = sel_t * a                                   # (m_out, Cin)
        else:
            g = jnp.dot(sel_t, a, preferred_element_type=jnp.float32)
        acc = acc + jnp.dot(g, wt_ref[t], preferred_element_type=jnp.float32)

    bias = bss_ref[0:1, :]
    scale = bss_ref[1:2, :]
    shift = bss_ref[2:3, :]
    alpha = bss_ref[3:4, :]
    y = acc + bias
    y = jnp.where(y >= 0.0, y, alpha * y)                   # PReLU
    return y * scale + shift                                # BatchNorm (eval), pre-folded


def fused_kernel(x_ref, add_ref,
                 s1, w1, p1, s2, w2, p2, s3, w3, p3, s4, w4, p4, s5, w5, p5,
                 wcf_ref, bcf_ref, wadd_ref, badd_ref, wfca_ref, wfcb_ref, bfc_ref,
                 o_ref):
    a = x_ref[0]                                            # (H*W, Cin), one sample
    for sel_ref, wt_ref, bss_ref in ((s1, w1, p1), (s2, w2, p2), (s3, w3, p3),
                                     (s4, w4, p4), (s5, w5, p5)):
        a = _conv_block(a, sel_ref, wt_ref, bss_ref)

    # Dropout2d(p=0.5): identity at inference.
    # TODO(synk): training-mode channel dropout masking is not implemented.
    pooled = jnp.mean(a, axis=0, keepdims=True)             # AdaptiveAvgPool2d(1) -> (1,128)

    h1 = jnp.dot(pooled, wcf_ref[...], preferred_element_type=jnp.float32) + bcf_ref[...]
    h1 = jnp.maximum(h1, 0.0)
    h2 = jnp.dot(add_ref[0], wadd_ref[...], preferred_element_type=jnp.float32) + badd_ref[...]
    h2 = jnp.maximum(h2, 0.0)
    # concat([h1, h2], axis=1) @ Wfc == h1 @ Wfc[:128] + h2 @ Wfc[128:]
    out = (jnp.dot(h1, wfca_ref[...], preferred_element_type=jnp.float32)
           + jnp.dot(h2, wfcb_ref[...], preferred_element_type=jnp.float32)
           + bfc_ref[...])
    o_ref[0] = out                                          # (1, 2)


# --------------------------- wrapper / parameter prep -------------------------

def _build_sel(H, W, KH, KW, stride, pad):
    """Per-tap 0/1 gather matrices mapping flat (H*W) input rows -> (OH*OW) output rows."""
    OH = (H + 2 * pad - KH) // stride + 1
    OW = (W + 2 * pad - KW) // stride + 1
    sels, keep = [], []
    for i in range(KH):
        for j in range(KW):
            S = np.zeros((OH * OW, H * W), np.float32)
            valid = False
            for oh in range(OH):
                ih = oh * stride + i - pad
                if not (0 <= ih < H):
                    continue
                for ow in range(OW):
                    iw = ow * stride + j - pad
                    if 0 <= iw < W:
                        S[oh * OW + ow, ih * W + iw] = 1.0
                        valid = True
            if valid:                                        # prune taps that only see padding
                sels.append(S)
                keep.append(i * KW + j)
    return np.stack(sels, axis=0), np.array(keep, np.int32), OH, OW


def _prep_conv(layer, H, W, stride, pad):
    w, b, alpha, gamma, beta, mean, var = layer
    Cout, Cin, KH, KW = w.shape
    sel_np, keep, OH, OW = _build_sel(H, W, KH, KW, stride, pad)
    # PyTorch (Cout, Cin, KH, KW) -> per-tap (Cin, Cout), keeping only surviving taps.
    w_taps = jnp.transpose(w, (2, 3, 1, 0)).reshape(KH * KW, Cin, Cout)[keep]
    # BatchNorm(eval): y = z * scale + shift, pre-computed here (no in-kernel rsqrt).
    scale = gamma * jax.lax.rsqrt(var + EPS)
    shift = beta - mean * scale
    alpha_vec = jnp.zeros((Cout,), jnp.float32) + alpha
    bss = jnp.stack([b, scale, shift, alpha_vec], axis=0)    # (4, Cout)
    return jnp.asarray(sel_np), w_taps, bss, OH, OW


def forward(params, x_nchw, additional_info):
    N, C, H, W = x_nchw.shape
    x = jnp.transpose(x_nchw, (0, 2, 3, 1)).reshape(N, H * W, C).astype(jnp.float32)
    add = additional_info.astype(jnp.float32).reshape(N, 1, -1)
    F = add.shape[-1]

    strides = (2, 2, 2, 2, 2)
    pads = (2, 1, 1, 1, 1)
    conv_args = []
    h, w = H, W
    for layer, s, p in zip(params["convs"], strides, pads):
        sel, wt, bss, h, w = _prep_conv(layer, h, w, s, p)
        conv_args += [sel, wt, bss]

    wcf, bcf = params["conv_fc"]
    wadd, badd = params["fc_add"]
    wfc, bfc = params["fc"]
    wfc_t = wfc.T                                            # (192, 2)
    split = wcf.shape[0]                                     # 128
    head_args = [wcf.T, bcf.reshape(1, -1), wadd.T, badd.reshape(1, -1),
                 wfc_t[:split], wfc_t[split:], bfc.reshape(1, -1)]

    def const_spec(a):
        zeros = (0,) * a.ndim
        return pl.BlockSpec(a.shape, lambda n, _z=zeros: _z)

    in_specs = ([pl.BlockSpec((1, H * W, C), lambda n: (n, 0, 0)),
                 pl.BlockSpec((1, 1, F), lambda n: (n, 0, 0))]
                + [const_spec(a) for a in conv_args]
                + [const_spec(a) for a in head_args])

    out = pl.pallas_call(
        fused_kernel,
        out_shape=jax.ShapeDtypeStruct((N, 1, 2), jnp.float32),
        grid_spec=pltpu.PrefetchScalarGridSpec(
            num_scalar_prefetch=0,
            grid=(N,),
            in_specs=in_specs,
            out_specs=pl.BlockSpec((1, 1, 2), lambda n: (n, 0, 0)),
        ),
        compiler_params=pltpu.CompilerParams(
            dimension_semantics=("parallel",),
            vmem_limit_bytes=32 * 1024 * 1024,
        ),
    )(x, add, *conv_args, *head_args)
    return out.reshape(N, 2)


# --------------------------- parameter init ------------------------------------

def init_params(key, cin, num_additional):
    conv_specs = [(8, cin, 5, 5), (16, 8, 3, 3), (32, 16, 3, 3),
                  (64, 32, 3, 3), (128, 64, 3, 3)]
    keys = jax.random.split(key, 8)
    a = 0.1  # kaiming_normal_(..., a=0.1)
    convs = []
    for i, (co, ci, kh, kw) in enumerate(conv_specs):
        fan_in = ci * kh * kw
        std = float(np.sqrt(2.0 / (1.0 + a * a)) / np.sqrt(fan_in))
        w = jax.random.normal(keys[i], (co, ci, kh, kw), jnp.float32) * std
        b = jnp.zeros((co,), jnp.float32)                    # bias init constant 0
        alpha = jnp.float32(0.25)                            # nn.PReLU() default
        gamma = jnp.ones((co,), jnp.float32)                 # BN weight
        beta = jnp.zeros((co,), jnp.float32)                 # BN bias
        mean = jnp.zeros((co,), jnp.float32)                 # BN running_mean
        var = jnp.ones((co,), jnp.float32)                   # BN running_var
        convs.append((w, b, alpha, gamma, beta, mean, var))

    def linear(k, fin, fout):
        k1, k2 = jax.random.split(k)
        bound = 1.0 / np.sqrt(fin)
        w = jax.random.uniform(k1, (fout, fin), jnp.float32, -bound, bound)
        b = jax.random.uniform(k2, (fout,), jnp.float32, -bound, bound)
        return w, b

    return {
        "convs": convs,
        "conv_fc": linear(keys[5], 128, 128),
        "fc_add": linear(keys[6], num_additional, 64),
        "fc": linear(keys[7], 128 + 64, 2),
    }


# --------------------------- pure-JAX reference --------------------------------

def reference(params, x_nchw, add):
    x = x_nchw.astype(jnp.float32)
    strides = (2, 2, 2, 2, 2)
    pads = (2, 1, 1, 1, 1)
    for (w, b, alpha, gamma, beta, mean, var), s, p in zip(params["convs"], strides, pads):
        x = jax.lax.conv_general_dilated(
            x, w, (s, s), [(p, p), (p, p)],
            dimension_numbers=("NCHW", "OIHW", "NCHW"),
            precision=jax.lax.Precision.HIGHEST)
        x = x + b[None, :, None, None]
        x = jnp.where(x >= 0, x, alpha * x)
        x = ((x - mean[None, :, None, None])
             * jax.lax.rsqrt(var + EPS)[None, :, None, None]
             * gamma[None, :, None, None] + beta[None, :, None, None])
    x = jnp.mean(x, axis=(2, 3))
    wcf, bcf = params["conv_fc"]
    wadd, badd = params["fc_add"]
    wfc, bfc = params["fc"]
    h1 = jnp.maximum(x @ wcf.T + bcf, 0.0)
    h2 = jnp.maximum(add @ wadd.T + badd, 0.0)
    cat = jnp.concatenate([h1, h2], axis=1)
    return cat @ wfc.T + bfc


# --------------------------- main ------------------------------------------------

if __name__ == "__main__":
    key = jax.random.PRNGKey(0)
    kx, ka, kp = jax.random.split(key, 3)

    N, C, H, W = 2, 4, 16, 16          # x: NCHW (PyTorch convention)
    F = 8                              # num_additional_features
    x = jax.random.normal(kx, (N, C, H, W), jnp.float32)
    add = jax.random.normal(ka, (N, F), jnp.float32)
    params = init_params(kp, C, F)

    fwd = jax.jit(forward)
    out = jax.block_until_ready(fwd(params, x, add))

    ref = reference(params, x, add)
    np.testing.assert_allclose(np.asarray(out), np.asarray(ref), rtol=1e-2, atol=1e-2)

    print("KERNEL_OK")
</pallas_src>

<mosaic_0001>
module attributes {stable_mosaic.version = 11 : i64} {
  func.func @fused_kernel(%arg0: i32, %arg1: memref<1x256x4xf32, #tpu.memory_space<vmem>>, %arg2: memref<1x1x8xf32, #tpu.memory_space<vmem>>, %arg3: memref<25x64x256xf32, #tpu.memory_space<vmem>>, %arg4: memref<25x4x8xf32, #tpu.memory_space<vmem>>, %arg5: memref<4x8xf32, #tpu.memory_space<vmem>>, %arg6: memref<9x16x64xf32, #tpu.memory_space<vmem>>, %arg7: memref<9x8x16xf32, #tpu.memory_space<vmem>>, %arg8: memref<4x16xf32, #tpu.memory_space<vmem>>, %arg9: memref<9x4x16xf32, #tpu.memory_space<vmem>>, %arg10: memref<9x16x32xf32, #tpu.memory_space<vmem>>, %arg11: memref<4x32xf32, #tpu.memory_space<vmem>>, %arg12: memref<4x1x4xf32, #tpu.memory_space<vmem>>, %arg13: memref<4x32x64xf32, #tpu.memory_space<vmem>>, %arg14: memref<4x64xf32, #tpu.memory_space<vmem>>, %arg15: memref<1x1x1xf32, #tpu.memory_space<vmem>>, %arg16: memref<1x64x128xf32, #tpu.memory_space<vmem>>, %arg17: memref<4x128xf32, #tpu.memory_space<vmem>>, %arg18: memref<128x128xf32, #tpu.memory_space<vmem>>, %arg19: memref<1x128xf32, #tpu.memory_space<vmem>>, %arg20: memref<8x64xf32, #tpu.memory_space<vmem>>, %arg21: memref<1x64xf32, #tpu.memory_space<vmem>>, %arg22: memref<128x2xf32, #tpu.memory_space<vmem>>, %arg23: memref<64x2xf32, #tpu.memory_space<vmem>>, %arg24: memref<1x2xf32, #tpu.memory_space<vmem>>, %arg25: memref<1x1x2xf32, #tpu.memory_space<vmem>>) attributes {dimension_semantics = [#tpu.dimension_semantics<parallel>], iteration_bounds = array<i64: 2>, scalar_prefetch = 0 : i64, scratch_operands = 0 : i64, tpu.core_type = #tpu.core_type<tc>, window_params = [{transform_indices = @transform_0, window_bounds = array<i64: 1, 256, 4>}, {transform_indices = @transform_1, window_bounds = array<i64: 1, 1, 8>}, {pipeline_mode = #tpu.pipeline_mode<synchronous>, transform_indices = @transform_2, window_bounds = array<i64: 25, 64, 256>}, {pipeline_mode = #tpu.pipeline_mode<synchronous>, transform_indices = @transform_3, window_bounds = array<i64: 25, 4, 8>}, {pipeline_mode = #tpu.pipeline_mode<synchronous>, transform_indices = @transform_4, window_bounds = array<i64: 4, 8>}, {pipeline_mode = #tpu.pipeline_mode<synchronous>, transform_indices = @transform_5, window_bounds = array<i64: 9, 16, 64>}, {pipeline_mode = #tpu.pipeline_mode<synchronous>, transform_indices = @transform_6, window_bounds = array<i64: 9, 8, 16>}, {pipeline_mode = #tpu.pipeline_mode<synchronous>, transform_indices = @transform_7, window_bounds = array<i64: 4, 16>}, {pipeline_mode = #tpu.pipeline_mode<synchronous>, transform_indices = @transform_8, window_bounds = array<i64: 9, 4, 16>}, {pipeline_mode = #tpu.pipeline_mode<synchronous>, transform_indices = @transform_9, window_bounds = array<i64: 9, 16, 32>}, {pipeline_mode = #tpu.pipeline_mode<synchronous>, transform_indices = @transform_10, window_bounds = array<i64: 4, 32>}, {pipeline_mode = #tpu.pipeline_mode<synchronous>, transform_indices = @transform_11, window_bounds = array<i64: 4, 1, 4>}, {pipeline_mode = #tpu.pipeline_mode<synchronous>, transform_indices = @transform_12, window_bounds = array<i64: 4, 32, 64>}, {pipeline_mode = #tpu.pipeline_mode<synchronous>, transform_indices = @transform_13, window_bounds = array<i64: 4, 64>}, {pipeline_mode = #tpu.pipeline_mode<synchronous>, transform_indices = @transform_14, window_bounds = array<i64: 1, 1, 1>}, {pipeline_mode = #tpu.pipeline_mode<synchronous>, transform_indices = @transform_15, window_bounds = array<i64: 1, 64, 128>}, {pipeline_mode = #tpu.pipeline_mode<synchronous>, transform_indices = @transform_16, window_bounds = array<i64: 4, 128>}, {pipeline_mode = #tpu.pipeline_mode<synchronous>, transform_indices = @transform_17, window_bounds = array<i64: 128, 128>}, {pipeline_mode = #tpu.pipeline_mode<synchronous>, transform_indices = @transform_18, window_bounds = array<i64: 1, 128>}, {pipeline_mode = #tpu.pipeline_mode<synchronous>, transform_indices = @transform_19, window_bounds = array<i64: 8, 64>}, {pipeline_mode = #tpu.pipeline_mode<synchronous>, transform_indices = @transform_20, window_bounds = array<i64: 1, 64>}, {pipeline_mode = #tpu.pipeline_mode<synchronous>, transform_indices = @transform_21, window_bounds = array<i64: 128, 2>}, {pipeline_mode = #tpu.pipeline_mode<synchronous>, transform_indices = @transform_22, window_bounds = array<i64: 64, 2>}, {pipeline_mode = #tpu.pipeline_mode<synchronous>, transform_indices = @transform_23, window_bounds = array<i64: 1, 2>}, {transform_indices = @transform_24, window_bounds = array<i64: 1, 1, 2>}]} {
    %c0 = arith.constant 0 : index
    %c0_0 = arith.constant 0 : index
    %c0_1 = arith.constant 0 : index
    %0 = vector.load %arg1[%c0, %c0_0, %c0_1] : memref<1x256x4xf32, #tpu.memory_space<vmem>>, vector<1x256x4xf32>
    %1 = vector.shape_cast %0 : vector<1x256x4xf32> to vector<256x4xf32>
    %cst = arith.constant 0.000000e+00 : f32
    %2 = vector.broadcast %cst : f32 to vector<64x8xf32>
    %c0_2 = arith.constant 0 : index
    %c0_3 = arith.constant 0 : index
    %c0_4 = arith.constant 0 : index
    %3 = vector.load %arg3[%c0_2, %c0_3, %c0_4] : memref<25x64x256xf32, #tpu.memory_space<vmem>>, vector<1x64x256xf32>
    %4 = vector.shape_cast %3 : vector<1x64x256xf32> to vector<64x256xf32>
    %cst_5 = arith.constant dense<0.000000e+00> : vector<64x4xf32>
    %5 = tpu.matmul %4, %1, %cst_5 {dimension_numbers = #tpu.dot_dimension_numbers<[1], [0], [0], [1], [0, 0, 1, 1], [], []>} : vector<64x256xf32>, vector<256x4xf32>, vector<64x4xf32> -> vector<64x4xf32>
    %c0_6 = arith.constant 0 : index
    %c0_7 = arith.constant 0 : index
    %c0_8 = arith.constant 0 : index
    %6 = vector.load %arg4[%c0_6, %c0_7, %c0_8] : memref<25x4x8xf32, #tpu.memory_space<vmem>>, vector<1x4x8xf32>
    %7 = vector.shape_cast %6 : vector<1x4x8xf32> to vector<4x8xf32>
    %cst_9 = arith.constant dense<0.000000e+00> : vector<64x8xf32>
    %8 = tpu.matmul %5, %7, %cst_9 {dimension_numbers = #tpu.dot_dimension_numbers<[1], [0], [0], [1], [0, 0, 1, 1], [], []>} : vector<64x4xf32>, vector<4x8xf32>, vector<64x8xf32> -> vector<64x8xf32>
    %9 = arith.addf %2, %8 : vector<64x8xf32>
    %c1 = arith.constant 1 : index
    %c0_10 = arith.constant 0 : index
    %c0_11 = arith.constant 0 : index
    %10 = vector.load %arg3[%c1, %c0_10, %c0_11] : memref<25x64x256xf32, #tpu.memory_space<vmem>>, vector<1x64x256xf32>
    %11 = vector.shape_cast %10 : vector<1x64x256xf32> to vector<64x256xf32>
    %cst_12 = arith.constant dense<0.000000e+00> : vector<64x4xf32>
    %12 = tpu.matmul %11, %1, %cst_12 {dimension_numbers = #tpu.dot_dimension_numbers<[1], [0], [0], [1], [0, 0, 1, 1], [], []>} : vector<64x256xf32>, vector<256x4xf32>, vector<64x4xf32> -> vector<64x4xf32>
    %c1_13 = arith.constant 1 : index
    %c0_14 = arith.constant 0 : index
    %c0_15 = arith.constant 0 : index
    %13 = vector.load %arg4[%c1_13, %c0_14, %c0_15] : memref<25x4x8xf32, #tpu.memory_space<vmem>>, vector<1x4x8xf32>
    %14 = vector.shape_cast %13 : vector<1x4x8xf32> to vector<4x8xf32>
    %cst_16 = arith.constant dense<0.000000e+00> : vector<64x8xf32>
    %15 = tpu.matmul %12, %14, %cst_16 {dimension_numbers = #tpu.dot_dimension_numbers<[1], [0], [0], [1], [0, 0, 1, 1], [], []>} : vector<64x4xf32>, vector<4x8xf32>, vector<64x8xf32> -> vector<64x8xf32>
    %16 = arith.addf %9, %15 : vector<64x8xf32>
    %c2 = arith.constant 2 : index
    %c0_17 = arith.constant 0 : index
    %c0_18 = arith.constant 0 : index
    %17 = vector.load %arg3[%c2, %c0_17, %c0_18] : memref<25x64x256xf32, #tpu.memory_space<vmem>>, vector<1x64x256xf32>
    %18 = vector.shape_cast %17 : vector<1x64x256xf32> to vector<64x256xf32>
    %cst_19 = arith.constant dense<0.000000e+00> : vector<64x4xf32>
    %19 = tpu.matmul %18, %1, %cst_19 {dimension_numbers = #tpu.dot_dimension_numbers<[1], [0], [0], [1], [0, 0, 1, 1], [], []>} : vector<64x256xf32>, vector<256x4xf32>, vector<64x4xf32> -> vector<64x4xf32>
    %c2_20 = arith.constant 2 : index
    %c0_21 = arith.constant 0 : index
    %c0_22 = arith.constant 0 : index
    %20 = vector.load %arg4[%c2_20, %c0_21, %c0_22] : memref<25x4x8xf32, #tpu.memory_space<vmem>>, vector<1x4x8xf32>
    %21 = vector.shape_cast %20 : vector<1x4x8xf32> to vector<4x8xf32>
    %cst_23 = arith.constant dense<0.000000e+00> : vector<64x8xf32>
    %22 = tpu.matmul %19, %21, %cst_23 {dimension_numbers = #tpu.dot_dimension_numbers<[1], [0], [0], [1], [0, 0, 1, 1], [], []>} : vector<64x4xf32>, vector<4x8xf32>, vector<64x8xf32> -> vector<64x8xf32>
    %23 = arith.addf %16, %22 : vector<64x8xf32>
    %c3 = arith.constant 3 : index
    %c0_24 = arith.constant 0 : index
    %c0_25 = arith.constant 0 : index
    %24 = vector.load %arg3[%c3, %c0_24, %c0_25] : memref<25x64x256xf32, #tpu.memory_space<vmem>>, vector<1x64x256xf32>
    %25 = vector.shape_cast %24 : vector<1x64x256xf32> to vector<64x256xf32>
    %cst_26 = arith.constant dense<0.000000e+00> : vector<64x4xf32>
    %26 = tpu.matmul %25, %1, %cst_26 {dimension_numbers = #tpu.dot_dimension_numbers<[1], [0], [0], [1], [0, 0, 1, 1], [], []>} : vector<64x256xf32>, vector<256x4xf32>, vector<64x4xf32> -> vector<64x4xf32>
    %c3_27 = arith.constant 3 : index
    %c0_28 = arith.constant 0 : index
    %c0_29 = arith.constant 0 : index
    %27 = vector.load %arg4[%c3_27, %c0_28, %c0_29] : memref<25x4x8xf32, #tpu.memory_space<vmem>>, vector<1x4x8xf32>
    %28 = vector.shape_cast %27 : vector<1x4x8xf32> to vector<4x8xf32>
    %cst_30 = arith.constant dense<0.000000e+00> : vector<64x8xf32>
    %29 = tpu.matmul %26, %28, %cst_30 {dimension_numbers = #tpu.dot_dimension_numbers<[1], [0], [0], [1], [0, 0, 1, 1], [], []>} : vector<64x4xf32>, vector<4x8xf32>, vector<64x8xf32> -> vector<64x8xf32>
    %30 = arith.addf %23, %29 : vector<64x8xf32>
    %c4 = arith.constant 4 : index
    %c0_31 = arith.constant 0 : index
    %c0_32 = arith.constant 0 : index
    %31 = vector.load %arg3[%c4, %c0_31, %c0_32] : memref<25x64x256xf32, #tpu.memory_space<vmem>>, vector<1x64x256xf32>
    %32 = vector.shape_cast %31 : vector<1x64x256xf32> to vector<64x256xf32>
    %cst_33 = arith.constant dense<0.000000e+00> : vector<64x4xf32>
    %33 = tpu.matmul %32, %1, %cst_33 {dimension_numbers = #tpu.dot_dimension_numbers<[1], [0], [0], [1], [0, 0, 1, 1], [], []>} : vector<64x256xf32>, vector<256x4xf32>, vector<64x4xf32> -> vector<64x4xf32>
    %c4_34 = arith.constant 4 : index
    %c0_35 = arith.constant 0 : index
    %c0_36 = arith.constant 0 : index
    %34 = vector.load %arg4[%c4_34, %c0_35, %c0_36] : memref<25x4x8xf32, #tpu.memory_space<vmem>>, vector<1x4x8xf32>
    %35 = vector.shape_cast %34 : vector<1x4x8xf32> to vector<4x8xf32>
    %cst_37 = arith.constant dense<0.000000e+00> : vector<64x8xf32>
    %36 = tpu.matmul %33, %35, %cst_37 {dimension_numbers = #tpu.dot_dimension_numbers<[1], [0], [0], [1], [0, 0, 1, 1], [], []>} : vector<64x4xf32>, vector<4x8xf32>, vector<64x8xf32> -> vector<64x8xf32>
    %37 = arith.addf %30, %36 : vector<64x8xf32>
    %c5 = arith.constant 5 : index
    %c0_38 = arith.constant 0 : index
    %c0_39 = arith.constant 0 : index
    %38 = vector.load %arg3[%c5, %c0_38, %c0_39] : memref<25x64x256xf32, #tpu.memory_space<vmem>>, vector<1x64x256xf32>
    %39 = vector.shape_cast %38 : vector<1x64x256xf32> to vector<64x256xf32>
    %cst_40 = arith.constant dense<0.000000e+00> : vector<64x4xf32>
    %40 = tpu.matmul %39, %1, %cst_40 {dimension_numbers = #tpu.dot_dimension_numbers<[1], [0], [0], [1], [0, 0, 1, 1], [], []>} : vector<64x256xf32>, vector<256x4xf32>, vector<64x4xf32> -> vector<64x4xf32>
    %c5_41 = arith.constant 5 : index
    %c0_42 = arith.constant 0 : index
    %c0_43 = arith.constant 0 : index
    %41 = vector.load %arg4[%c5_41, %c0_42, %c0_43] : memref<25x4x8xf32, #tpu.memory_space<vmem>>, vector<1x4x8xf32>
    %42 = vector.shape_cast %41 : vector<1x4x8xf32> to vector<4x8xf32>
    %cst_44 = arith.constant dense<0.000000e+00> : vector<64x8xf32>
    %43 = tpu.matmul %40, %42, %cst_44 {dimension_numbers = #tpu.dot_dimension_numbers<[1], [0], [0], [1], [0, 0, 1, 1], [], []>} : vector<64x4xf32>, vector<4x8xf32>, vector<64x8xf32> -> vector<64x8xf32>
    %44 = arith.addf %37, %43 : vector<64x8xf32>
    %c6 = arith.constant 6 : index
    %c0_45 = arith.constant 0 : index
    %c0_46 = arith.constant 0 : index
    %45 = vector.load %arg3[%c6, %c0_45, %c0_46] : memref<25x64x256xf32, #tpu.memory_space<vmem>>, vector<1x64x256xf32>
    %46 = vector.shape_cast %45 : vector<1x64x256xf32> to vector<64x256xf32>
    %cst_47 = arith.constant dense<0.000000e+00> : vector<64x4xf32>
    %47 = tpu.matmul %46, %1, %cst_47 {dimension_numbers = #tpu.dot_dimension_numbers<[1], [0], [0], [1], [0, 0, 1, 1], [], []>} : vector<64x256xf32>, vector<256x4xf32>, vector<64x4xf32> -> vector<64x4xf32>
    %c6_48 = arith.constant 6 : index
    %c0_49 = arith.constant 0 : index
    %c0_50 = arith.constant 0 : index
    %48 = vector.load %arg4[%c6_48, %c0_49, %c0_50] : memref<25x4x8xf32, #tpu.memory_space<vmem>>, vector<1x4x8xf32>
    %49 = vector.shape_cast %48 : vector<1x4x8xf32> to vector<4x8xf32>
    %cst_51 = arith.constant dense<0.000000e+00> : vector<64x8xf32>
    %50 = tpu.matmul %47, %49, %cst_51 {dimension_numbers = #tpu.dot_dimension_numbers<[1], [0], [0], [1], [0, 0, 1, 1], [], []>} : vector<64x4xf32>, vector<4x8xf32>, vector<64x8xf32> -> vector<64x8xf32>
    %51 = arith.addf %44, %50 : vector<64x8xf32>
    %c7 = arith.constant 7 : index
    %c0_52 = arith.constant 0 : index
    %c0_53 = arith.constant 0 : index
    %52 = vector.load %arg3[%c7, %c0_52, %c0_53] : memref<25x64x256xf32, #tpu.memory_space<vmem>>, vector<1x64x256xf32>
    %53 = vector.shape_cast %52 : vector<1x64x256xf32> to vector<64x256xf32>
    %cst_54 = arith.constant dense<0.000000e+00> : vector<64x4xf32>
    %54 = tpu.matmul %53, %1, %cst_54 {dimension_numbers = #tpu.dot_dimension_numbers<[1], [0], [0], [1], [0, 0, 1, 1], [], []>} : vector<64x256xf32>, vector<256x4xf32>, vector<64x4xf32> -> vector<64x4xf32>
    %c7_55 = arith.constant 7 : index
    %c0_56 = arith.constant 0 : index
    %c0_57 = arith.constant 0 : index
    %55 = vector.load %arg4[%c7_55, %c0_56, %c0_57] : memref<25x4x8xf32, #tpu.memory_space<vmem>>, vector<1x4x8xf32>
    %56 = vector.shape_cast %55 : vector<1x4x8xf32> to vector<4x8xf32>
    %cst_58 = arith.constant dense<0.000000e+00> : vector<64x8xf32>
    %57 = tpu.matmul %54, %56, %cst_58 {dimension_numbers = #tpu.dot_dimension_numbers<[1], [0], [0], [1], [0, 0, 1, 1], [], []>} : vector<64x4xf32>, vector<4x8xf32>, vector<64x8xf32> -> vector<64x8xf32>
    %58 = arith.addf %51, %57 : vector<64x8xf32>
    %c8 = arith.constant 8 : index
    %c0_59 = arith.constant 0 : index
    %c0_60 = arith.constant 0 : index
    %59 = vector.load %arg3[%c8, %c0_59, %c0_60] : memref<25x64x256xf32, #tpu.memory_space<vmem>>, vector<1x64x256xf32>
    %60 = vector.shape_cast %59 : vector<1x64x256xf32> to vector<64x256xf32>
    %cst_61 = arith.constant dense<0.000000e+00> : vector<64x4xf32>
    %61 = tpu.matmul %60, %1, %cst_61 {dimension_numbers = #tpu.dot_dimension_numbers<[1], [0], [0], [1], [0, 0, 1, 1], [], []>} : vector<64x256xf32>, vector<256x4xf32>, vector<64x4xf32> -> vector<64x4xf32>
    %c8_62 = arith.constant 8 : index
    %c0_63 = arith.constant 0 : index
    %c0_64 = arith.constant 0 : index
    %62 = vector.load %arg4[%c8_62, %c0_63, %c0_64] : memref<25x4x8xf32, #tpu.memory_space<vmem>>, vector<1x4x8xf32>
    %63 = vector.shape_cast %62 : vector<1x4x8xf32> to vector<4x8xf32>
    %cst_65 = arith.constant dense<0.000000e+00> : vector<64x8xf32>
    %64 = tpu.matmul %61, %63, %cst_65 {dimension_numbers = #tpu.dot_dimension_numbers<[1], [0], [0], [1], [0, 0, 1, 1], [], []>} : vector<64x4xf32>, vector<4x8xf32>, vector<64x8xf32> -> vector<64x8xf32>
    %65 = arith.addf %58, %64 : vector<64x8xf32>
    %c9 = arith.constant 9 : index
    %c0_66 = arith.constant 0 : index
    %c0_67 = arith.constant 0 : index
    %66 = vector.load %arg3[%c9, %c0_66, %c0_67] : memref<25x64x256xf32, #tpu.memory_space<vmem>>, vector<1x64x256xf32>
    %67 = vector.shape_cast %66 : vector<1x64x256xf32> to vector<64x256xf32>
    %cst_68 = arith.constant dense<0.000000e+00> : vector<64x4xf32>
    %68 = tpu.matmul %67, %1, %cst_68 {dimension_numbers = #tpu.dot_dimension_numbers<[1], [0], [0], [1], [0, 0, 1, 1], [], []>} : vector<64x256xf32>, vector<256x4xf32>, vector<64x4xf32> -> vector<64x4xf32>
    %c9_69 = arith.constant 9 : index
    %c0_70 = arith.constant 0 : index
    %c0_71 = arith.constant 0 : index
    %69 = vector.load %arg4[%c9_69, %c0_70, %c0_71] : memref<25x4x8xf32, #tpu.memory_space<vmem>>, vector<1x4x8xf32>
    %70 = vector.shape_cast %69 : vector<1x4x8xf32> to vector<4x8xf32>
    %cst_72 = arith.constant dense<0.000000e+00> : vector<64x8xf32>
    %71 = tpu.matmul %68, %70, %cst_72 {dimension_numbers = #tpu.dot_dimension_numbers<[1], [0], [0], [1], [0, 0, 1, 1], [], []>} : vector<64x4xf32>, vector<4x8xf32>, vector<64x8xf32> -> vector<64x8xf32>
    %72 = arith.addf %65, %71 : vector<64x8xf32>
    %c10 = arith.constant 10 : index
    %c0_73 = arith.constant 0 : index
    %c0_74 = arith.constant 0 : index
    %73 = vector.load %arg3[%c10, %c0_73, %c0_74] : memref<25x64x256xf32, #tpu.memory_space<vmem>>, vector<1x64x256xf32>
    %74 = vector.shape_cast %73 : vector<1x64x256xf32> to vector<64x256xf32>
    %cst_75 = arith.constant dense<0.000000e+00> : vector<64x4xf32>
    %75 = tpu.matmul %74, %1, %cst_75 {dimension_numbers = #tpu.dot_dimension_numbers<[1], [0], [0], [1], [0, 0, 1, 1], [], []>} : vector<64x256xf32>, vector<256x4xf32>, vector<64x4xf32> -> vector<64x4xf32>
    %c10_76 = arith.constant 10 : index
    %c0_77 = arith.constant 0 : index
    %c0_78 = arith.constant 0 : index
    %76 = vector.load %arg4[%c10_76, %c0_77, %c0_78] : memref<25x4x8xf32, #tpu.memory_space<vmem>>, vector<1x4x8xf32>
    %77 = vector.shape_cast %76 : vector<1x4x8xf32> to vector<4x8xf32>
    %cst_79 = arith.constant dense<0.000000e+00> : vector<64x8xf32>
    %78 = tpu.matmul %75, %77, %cst_79 {dimension_numbers = #tpu.dot_dimension_numbers<[1], [0], [0], [1], [0, 0, 1, 1], [], []>} : vector<64x4xf32>, vector<4x8xf32>, vector<64x8xf32> -> vector<64x8xf32>
    %79 = arith.addf %72, %78 : vector<64x8xf32>
    %c11 = arith.constant 11 : index
    %c0_80 = arith.constant 0 : index
    %c0_81 = arith.constant 0 : index
    %80 = vector.load %arg3[%c11, %c0_80, %c0_81] : memref<25x64x256xf32, #tpu.memory_space<vmem>>, vector<1x64x256xf32>
    %81 = vector.shape_cast %80 : vector<1x64x256xf32> to vector<64x256xf32>
    %cst_82 = arith.constant dense<0.000000e+00> : vector<64x4xf32>
    %82 = tpu.matmul %81, %1, %cst_82 {dimension_numbers = #tpu.dot_dimension_numbers<[1], [0], [0], [1], [0, 0, 1, 1], [], []>} : vector<64x256xf32>, vector<256x4xf32>, vector<64x4xf32> -> vector<64x4xf32>
    %c11_83 = arith.constant 11 : index
    %c0_84 = arith.constant 0 : index
    %c0_85 = arith.constant 0 : index
    %83 = vector.load %arg4[%c11_83, %c0_84, %c0_85] : memref<25x4x8xf32, #tpu.memory_space<vmem>>, vector<1x4x8xf32>
    %84 = vector.shape_cast %83 : vector<1x4x8xf32> to vector<4x8xf32>
    %cst_86 = arith.constant dense<0.000000e+00> : vector<64x8xf32>
    %85 = tpu.matmul %82, %84, %cst_86 {dimension_numbers = #tpu.dot_dimension_numbers<[1], [0], [0], [1], [0, 0, 1, 1], [], []>} : vector<64x4xf32>, vector<4x8xf32>, vector<64x8xf32> -> vector<64x8xf32>
    %86 = arith.addf %79, %85 : vector<64x8xf32>
    %c12 = arith.constant 12 : index
    %c0_87 = arith.constant 0 : index
    %c0_88 = arith.constant 0 : index
    %87 = vector.load %arg3[%c12, %c0_87, %c0_88] : memref<25x64x256xf32, #tpu.memory_space<vmem>>, vector<1x64x256xf32>
    %88 = vector.shape_cast %87 : vector<1x64x256xf32> to vector<64x256xf32>
    %cst_89 = arith.constant dense<0.000000e+00> : vector<64x4xf32>
    %89 = tpu.matmul %88, %1, %cst_89 {dimension_numbers = #tpu.dot_dimension_numbers<[1], [0], [0], [1], [0, 0, 1, 1], [], []>} : vector<64x256xf32>, vector<256x4xf32>, vector<64x4xf32> -> vector<64x4xf32>
    %c12_90 = arith.constant 12 : index
    %c0_91 = arith.constant 0 : index
    %c0_92 = arith.constant 0 : index
    %90 = vector.load %arg4[%c12_90, %c0_91, %c0_92] : memref<25x4x8xf32, #tpu.memory_space<vmem>>, vector<1x4x8xf32>
    %91 = vector.shape_cast %90 : vector<1x4x8xf32> to vector<4x8xf32>
    %cst_93 = arith.constant dense<0.000000e+00> : vector<64x8xf32>
    %92 = tpu.matmul %89, %91, %cst_93 {dimension_numbers = #tpu.dot_dimension_numbers<[1], [0], [0], [1], [0, 0, 1, 1], [], []>} : vector<64x4xf32>, vector<4x8xf32>, vector<64x8xf32> -> vector<64x8xf32>
    %93 = arith.addf %86, %92 : vector<64x8xf32>
    %c13 = arith.constant 13 : index
    %c0_94 = arith.constant 0 : index
    %c0_95 = arith.constant 0 : index
    %94 = vector.load %arg3[%c13, %c0_94, %c0_95] : memref<25x64x256xf32, #tpu.memory_space<vmem>>, vector<1x64x256xf32>
    %95 = vector.shape_cast %94 : vector<1x64x256xf32> to vector<64x256xf32>
    %cst_96 = arith.constant dense<0.000000e+00> : vector<64x4xf32>
    %96 = tpu.matmul %95, %1, %cst_96 {dimension_numbers = #tpu.dot_dimension_numbers<[1], [0], [0], [1], [0, 0, 1, 1], [], []>} : vector<64x256xf32>, vector<256x4xf32>, vector<64x4xf32> -> vector<64x4xf32>
    %c13_97 = arith.constant 13 : index
    %c0_98 = arith.constant 0 : index
    %c0_99 = arith.constant 0 : index
    %97 = vector.load %arg4[%c13_97, %c0_98, %c0_99] : memref<25x4x8xf32, #tpu.memory_space<vmem>>, vector<1x4x8xf32>
    %98 = vector.shape_cast %97 : vector<1x4x8xf32> to vector<4x8xf32>
    %cst_100 = arith.constant dense<0.000000e+00> : vector<64x8xf32>
    %99 = tpu.matmul %96, %98, %cst_100 {dimension_numbers = #tpu.dot_dimension_numbers<[1], [0], [0], [1], [0, 0, 1, 1], [], []>} : vector<64x4xf32>, vector<4x8xf32>, vector<64x8xf32> -> vector<64x8xf32>
    %100 = arith.addf %93, %99 : vector<64x8xf32>
    %c14 = arith.constant 14 : index
    %c0_101 = arith.constant 0 : index
    %c0_102 = arith.constant 0 : index
    %101 = vector.load %arg3[%c14, %c0_101, %c0_102] : memref<25x64x256xf32, #tpu.memory_space<vmem>>, vector<1x64x256xf32>
    %102 = vector.shape_cast %101 : vector<1x64x256xf32> to vector<64x256xf32>
    %cst_103 = arith.constant dense<0.000000e+00> : vector<64x4xf32>
    %103 = tpu.matmul %102, %1, %cst_103 {dimension_numbers = #tpu.dot_dimension_numbers<[1], [0], [0], [1], [0, 0, 1, 1], [], []>} : vector<64x256xf32>, vector<256x4xf32>, vector<64x4xf32> -> vector<64x4xf32>
    %c14_104 = arith.constant 14 : index
    %c0_105 = arith.constant 0 : index
    %c0_106 = arith.constant 0 : index
    %104 = vector.load %arg4[%c14_104, %c0_105, %c0_106] : memref<25x4x8xf32, #tpu.memory_space<vmem>>, vector<1x4x8xf32>
    %105 = vector.shape_cast %104 : vector<1x4x8xf32> to vector<4x8xf32>
    %cst_107 = arith.constant dense<0.000000e+00> : vector<64x8xf32>
    %106 = tpu.matmul %103, %105, %cst_107 {dimension_numbers = #tpu.dot_dimension_numbers<[1], [0], [0], [1], [0, 0, 1, 1], [], []>} : vector<64x4xf32>, vector<4x8xf32>, vector<64x8xf32> -> vector<64x8xf32>
    %107 = arith.addf %100, %106 : vector<64x8xf32>
    %c15 = arith.constant 15 : index
    %c0_108 = arith.constant 0 : index
    %c0_109 = arith.constant 0 : index
    %108 = vector.load %arg3[%c15, %c0_108, %c0_109] : memref<25x64x256xf32, #tpu.memory_space<vmem>>, vector<1x64x256xf32>
    %109 = vector.shape_cast %108 : vector<1x64x256xf32> to vector<64x256xf32>
    %cst_110 = arith.constant dense<0.000000e+00> : vector<64x4xf32>
    %110 = tpu.matmul %109, %1, %cst_110 {dimension_numbers = #tpu.dot_dimension_numbers<[1], [0], [0], [1], [0, 0, 1, 1], [], []>} : vector<64x256xf32>, vector<256x4xf32>, vector<64x4xf32> -> vector<64x4xf32>
    %c15_111 = arith.constant 15 : index
    %c0_112 = arith.constant 0 : index
    %c0_113 = arith.constant 0 : index
    %111 = vector.load %arg4[%c15_111, %c0_112, %c0_113] : memref<25x4x8xf32, #tpu.memory_space<vmem>>, vector<1x4x8xf32>
    %112 = vector.shape_cast %111 : vector<1x4x8xf32> to vector<4x8xf32>
    %cst_114 = arith.constant dense<0.000000e+00> : vector<64x8xf32>
    %113 = tpu.matmul %110, %112, %cst_114 {dimension_numbers = #tpu.dot_dimension_numbers<[1], [0], [0], [1], [0, 0, 1, 1], [], []>} : vector<64x4xf32>, vector<4x8xf32>, vector<64x8xf32> -> vector<64x8xf32>
    %114 = arith.addf %107, %113 : vector<64x8xf32>
    %c16 = arith.constant 16 : index
    %c0_115 = arith.constant 0 : index
    %c0_116 = arith.constant 0 : index
    %115 = vector.load %arg3[%c16, %c0_115, %c0_116] : memref<25x64x256xf32, #tpu.memory_space<vmem>>, vector<1x64x256xf32>
    %116 = vector.shape_cast %115 : vector<1x64x256xf32> to vector<64x256xf32>
    %cst_117 = arith.constant dense<0.000000e+00> : vector<64x4xf32>
    %117 = tpu.matmul %116, %1, %cst_117 {dimension_numbers = #tpu.dot_dimension_numbers<[1], [0], [0], [1], [0, 0, 1, 1], [], []>} : vector<64x256xf32>, vector<256x4xf32>, vector<64x4xf32> -> vector<64x4xf32>
    %c16_118 = arith.constant 16 : index
    %c0_119 = arith.constant 0 : index
    %c0_120 = arith.constant 0 : index
    %118 = vector.load %arg4[%c16_118, %c0_119, %c0_120] : memref<25x4x8xf32, #tpu.memory_space<vmem>>, vector<1x4x8xf32>
    %119 = vector.shape_cast %118 : vector<1x4x8xf32> to vector<4x8xf32>
    %cst_121 = arith.constant dense<0.000000e+00> : vector<64x8xf32>
    %120 = tpu.matmul %117, %119, %cst_121 {dimension_numbers = #tpu.dot_dimension_numbers<[1], [0], [0], [1], [0, 0, 1, 1], [], []>} : vector<64x4xf32>, vector<4x8xf32>, vector<64x8xf32> -> vector<64x8xf32>
    %121 = arith.addf %114, %120 : vector<64x8xf32>
    %c17 = arith.constant 17 : index
    %c0_122 = arith.constant 0 : index
    %c0_123 = arith.constant 0 : index
    %122 = vector.load %arg3[%c17, %c0_122, %c0_123] : memref<25x64x256xf32, #tpu.memory_space<vmem>>, vector<1x64x256xf32>
    %123 = vector.shape_cast %122 : vector<1x64x256xf32> to vector<64x256xf32>
    %cst_124 = arith.constant dense<0.000000e+00> : vector<64x4xf32>
    %124 = tpu.matmul %123, %1, %cst_124 {dimension_numbers = #tpu.dot_dimension_numbers<[1], [0], [0], [1], [0, 0, 1, 1], [], []>} : vector<64x256xf32>, vector<256x4xf32>, vector<64x4xf32> -> vector<64x4xf32>
    %c17_125 = arith.constant 17 : index
    %c0_126 = arith.constant 0 : index
    %c0_127 = arith.constant 0 : index
    %125 = vector.load %arg4[%c17_125, %c0_126, %c0_127] : memref<25x4x8xf32, #tpu.memory_space<vmem>>, vector<1x4x8xf32>
    %126 = vector.shape_cast %125 : vector<1x4x8xf32> to vector<4x8xf32>
    %cst_128 = arith.constant dense<0.000000e+00> : vector<64x8xf32>
    %127 = tpu.matmul %124, %126, %cst_128 {dimension_numbers = #tpu.dot_dimension_numbers<[1], [0], [0], [1], [0, 0, 1, 1], [], []>} : vector<64x4xf32>, vector<4x8xf32>, vector<64x8xf32> -> vector<64x8xf32>
    %128 = arith.addf %121, %127 : vector<64x8xf32>
    %c18 = arith.constant 18 : index
    %c0_129 = arith.constant 0 : index
    %c0_130 = arith.constant 0 : index
    %129 = vector.load %arg3[%c18, %c0_129, %c0_130] : memref<25x64x256xf32, #tpu.memory_space<vmem>>, vector<1x64x256xf32>
    %130 = vector.shape_cast %129 : vector<1x64x256xf32> to vector<64x256xf32>
    %cst_131 = arith.constant dense<0.000000e+00> : vector<64x4xf32>
    %131 = tpu.matmul %130, %1, %cst_131 {dimension_numbers = #tpu.dot_dimension_numbers<[1], [0], [0], [1], [0, 0, 1, 1], [], []>} : vector<64x256xf32>, vector<256x4xf32>, vector<64x4xf32> -> vector<64x4xf32>
    %c18_132 = arith.constant 18 : index
    %c0_133 = arith.constant 0 : index
    %c0_134 = arith.constant 0 : index
    %132 = vector.load %arg4[%c18_132, %c0_133, %c0_134] : memref<25x4x8xf32, #tpu.memory_space<vmem>>, vector<1x4x8xf32>
    %133 = vector.shape_cast %132 : vector<1x4x8xf32> to vector<4x8xf32>
    %cst_135 = arith.constant dense<0.000000e+00> : vector<64x8xf32>
    %134 = tpu.matmul %131, %133, %cst_135 {dimension_numbers = #tpu.dot_dimension_numbers<[1], [0], [0], [1], [0, 0, 1, 1], [], []>} : vector<64x4xf32>, vector<4x8xf32>, vector<64x8xf32> -> vector<64x8xf32>
    %135 = arith.addf %128, %134 : vector<64x8xf32>
    %c19 = arith.constant 19 : index
    %c0_136 = arith.constant 0 : index
    %c0_137 = arith.constant 0 : index
    %136 = vector.load %arg3[%c19, %c0_136, %c0_137] : memref<25x64x256xf32, #tpu.memory_space<vmem>>, vector<1x64x256xf32>
    %137 = vector.shape_cast %136 : vector<1x64x256xf32> to vector<64x256xf32>
    %cst_138 = arith.constant dense<0.000000e+00> : vector<64x4xf32>
    %138 = tpu.matmul %137, %1, %cst_138 {dimension_numbers = #tpu.dot_dimension_numbers<[1], [0], [0], [1], [0, 0, 1, 1], [], []>} : vector<64x256xf32>, vector<256x4xf32>, vector<64x4xf32> -> vector<64x4xf32>
    %c19_139 = arith.constant 19 : index
    %c0_140 = arith.constant 0 : index
    %c0_141 = arith.constant 0 : index
    %139 = vector.load %arg4[%c19_139, %c0_140, %c0_141] : memref<25x4x8xf32, #tpu.memory_space<vmem>>, vector<1x4x8xf32>
    %140 = vector.shape_cast %139 : vector<1x4x8xf32> to vector<4x8xf32>
    %cst_142 = arith.constant dense<0.000000e+00> : vector<64x8xf32>
    %141 = tpu.matmul %138, %140, %cst_142 {dimension_numbers = #tpu.dot_dimension_numbers<[1], [0], [0], [1], [0, 0, 1, 1], [], []>} : vector<64x4xf32>, vector<4x8xf32>, vector<64x8xf32> -> vector<64x8xf32>
    %142 = arith.addf %135, %141 : vector<64x8xf32>
    %c20 = arith.constant 20 : index
    %c0_143 = arith.constant 0 : index
    %c0_144 = arith.constant 0 : index
    %143 = vector.load %arg3[%c20, %c0_143, %c0_144] : memref<25x64x256xf32, #tpu.memory_space<vmem>>, vector<1x64x256xf32>
    %144 = vector.shape_cast %143 : vector<1x64x256xf32> to vector<64x256xf32>
    %cst_145 = arith.constant dense<0.000000e+00> : vector<64x4xf32>
    %145 = tpu.matmul %144, %1, %cst_145 {dimension_numbers = #tpu.dot_dimension_numbers<[1], [0], [0], [1], [0, 0, 1, 1], [], []>} : vector<64x256xf32>, vector<256x4xf32>, vector<64x4xf32> -> vector<64x4xf32>
    %c20_146 = arith.constant 20 : index
    %c0_147 = arith.constant 0 : index
    %c0_148 = arith.constant 0 : index
    %146 = vector.load %arg4[%c20_146, %c0_147, %c0_148] : memref<25x4x8xf32, #tpu.memory_space<vmem>>, vector<1x4x8xf32>
    %147 = vector.shape_cast %146 : vector<1x4x8xf32> to vector<4x8xf32>
    %cst_149 = arith.constant dense<0.000000e+00> : vector<64x8xf32>
    %148 = tpu.matmul %145, %147, %cst_149 {dimension_numbers = #tpu.dot_dimension_numbers<[1], [0], [0], [1], [0, 0, 1, 1], [], []>} : vector<64x4xf32>, vector<4x8xf32>, vector<64x8xf32> -> vector<64x8xf32>
    %149 = arith.addf %142, %148 : vector<64x8xf32>
    %c21 = arith.constant 21 : index
    %c0_150 = arith.constant 0 : index
    %c0_151 = arith.constant 0 : index
    %150 = vector.load %arg3[%c21, %c0_150, %c0_151] : memref<25x64x256xf32, #tpu.memory_space<vmem>>, vector<1x64x256xf32>
    %151 = vector.shape_cast %150 : vector<1x64x256xf32> to vector<64x256xf32>
    %cst_152 = arith.constant dense<0.000000e+00> : vector<64x4xf32>
    %152 = tpu.matmul %151, %1, %cst_152 {dimension_numbers = #tpu.dot_dimension_numbers<[1], [0], [0], [1], [0, 0, 1, 1], [], []>} : vector<64x256xf32>, vector<256x4xf32>, vector<64x4xf32> -> vector<64x4xf32>
    %c21_153 = arith.constant 21 : index
    %c0_154 = arith.constant 0 : index
    %c0_155 = arith.constant 0 : index
    %153 = vector.load %arg4[%c21_153, %c0_154, %c0_155] : memref<25x4x8xf32, #tpu.memory_space<vmem>>, vector<1x4x8xf32>
    %154 = vector.shape_cast %153 : vector<1x4x8xf32> to vector<4x8xf32>
    %cst_156 = arith.constant dense<0.000000e+00> : vector<64x8xf32>
    %155 = tpu.matmul %152, %154, %cst_156 {dimension_numbers = #tpu.dot_dimension_numbers<[1], [0], [0], [1], [0, 0, 1, 1], [], []>} : vector<64x4xf32>, vector<4x8xf32>, vector<64x8xf32> -> vector<64x8xf32>
    %156 = arith.addf %149, %155 : vector<64x8xf32>
    %c22 = arith.constant 22 : index
    %c0_157 = arith.constant 0 : index
    %c0_158 = arith.constant 0 : index
    %157 = vector.load %arg3[%c22, %c0_157, %c0_158] : memref<25x64x256xf32, #tpu.memory_space<vmem>>, vector<1x64x256xf32>
    %158 = vector.shape_cast %157 : vector<1x64x256xf32> to vector<64x256xf32>
    %cst_159 = arith.constant dense<0.000000e+00> : vector<64x4xf32>
    %159 = tpu.matmul %158, %1, %cst_159 {dimension_numbers = #tpu.dot_dimension_numbers<[1], [0], [0], [1], [0, 0, 1, 1], [], []>} : vector<64x256xf32>, vector<256x4xf32>, vector<64x4xf32> -> vector<64x4xf32>
    %c22_160 = arith.constant 22 : index
    %c0_161 = arith.constant 0 : index
    %c0_162 = arith.constant 0 : index
    %160 = vector.load %arg4[%c22_160, %c0_161, %c0_162] : memref<25x4x8xf32, #tpu.memory_space<vmem>>, vector<1x4x8xf32>
    %161 = vector.shape_cast %160 : vector<1x4x8xf32> to vector<4x8xf32>
    %cst_163 = arith.constant dense<0.000000e+00> : vector<64x8xf32>
    %162 = tpu.matmul %159, %161, %cst_163 {dimension_numbers = #tpu.dot_dimension_numbers<[1], [0], [0], [1], [0, 0, 1, 1], [], []>} : vector<64x4xf32>, vector<4x8xf32>, vector<64x8xf32> -> vector<64x8xf32>
    %163 = arith.addf %156, %162 : vector<64x8xf32>
    %c23 = arith.constant 23 : index
    %c0_164 = arith.constant 0 : index
    %c0_165 = arith.constant 0 : index
    %164 = vector.load %arg3[%c23, %c0_164, %c0_165] : memref<25x64x256xf32, #tpu.memory_space<vmem>>, vector<1x64x256xf32>
    %165 = vector.shape_cast %164 : vector<1x64x256xf32> to vector<64x256xf32>
    %cst_166 = arith.constant dense<0.000000e+00> : vector<64x4xf32>
    %166 = tpu.matmul %165, %1, %cst_166 {dimension_numbers = #tpu.dot_dimension_numbers<[1], [0], [0], [1], [0, 0, 1, 1], [], []>} : vector<64x256xf32>, vector<256x4xf32>, vector<64x4xf32> -> vector<64x4xf32>
    %c23_167 = arith.constant 23 : index
    %c0_168 = arith.constant 0 : index
    %c0_169 = arith.constant 0 : index
    %167 = vector.load %arg4[%c23_167, %c0_168, %c0_169] : memref<25x4x8xf32, #tpu.memory_space<vmem>>, vector<1x4x8xf32>
    %168 = vector.shape_cast %167 : vector<1x4x8xf32> to vector<4x8xf32>
    %cst_170 = arith.constant dense<0.000000e+00> : vector<64x8xf32>
    %169 = tpu.matmul %166, %168, %cst_170 {dimension_numbers = #tpu.dot_dimension_numbers<[1], [0], [0], [1], [0, 0, 1, 1], [], []>} : vector<64x4xf32>, vector<4x8xf32>, vector<64x8xf32> -> vector<64x8xf32>
    %170 = arith.addf %163, %169 : vector<64x8xf32>
    %c24 = arith.constant 24 : index
    %c0_171 = arith.constant 0 : index
    %c0_172 = arith.constant 0 : index
    %171 = vector.load %arg3[%c24, %c0_171, %c0_172] : memref<25x64x256xf32, #tpu.memory_space<vmem>>, vector<1x64x256xf32>
    %172 = vector.shape_cast %171 : vector<1x64x256xf32> to vector<64x256xf32>
    %cst_173 = arith.constant dense<0.000000e+00> : vector<64x4xf32>
    %173 = tpu.matmul %172, %1, %cst_173 {dimension_numbers = #tpu.dot_dimension_numbers<[1], [0], [0], [1], [0, 0, 1, 1], [], []>} : vector<64x256xf32>, vector<256x4xf32>, vector<64x4xf32> -> vector<64x4xf32>
    %c24_174 = arith.constant 24 : index
    %c0_175 = arith.constant 0 : index
    %c0_176 = arith.constant 0 : index
    %174 = vector.load %arg4[%c24_174, %c0_175, %c0_176] : memref<25x4x8xf32, #tpu.memory_space<vmem>>, vector<1x4x8xf32>
    %175 = vector.shape_cast %174 : vector<1x4x8xf32> to vector<4x8xf32>
    %cst_177 = arith.constant dense<0.000000e+00> : vector<64x8xf32>
    %176 = tpu.matmul %173, %175, %cst_177 {dimension_numbers = #tpu.dot_dimension_numbers<[1], [0], [0], [1], [0, 0, 1, 1], [], []>} : vector<64x4xf32>, vector<4x8xf32>, vector<64x8xf32> -> vector<64x8xf32>
    %177 = arith.addf %170, %176 : vector<64x8xf32>
    %c0_178 = arith.constant 0 : index
    %c0_179 = arith.constant 0 : index
    %178 = vector.load %arg5[%c0_178, %c0_179] : memref<4x8xf32, #tpu.memory_space<vmem>>, vector<1x8xf32>
    %c1_180 = arith.constant 1 : index
    %c0_181 = arith.constant 0 : index
    %179 = vector.load %arg5[%c1_180, %c0_181] : memref<4x8xf32, #tpu.memory_space<vmem>>, vector<1x8xf32>
    %c2_182 = arith.constant 2 : index
    %c0_183 = arith.constant 0 : index
    %180 = vector.load %arg5[%c2_182, %c0_183] : memref<4x8xf32, #tpu.memory_space<vmem>>, vector<1x8xf32>
    %c3_184 = arith.constant 3 : index
    %c0_185 = arith.constant 0 : index
    %181 = vector.load %arg5[%c3_184, %c0_185] : memref<4x8xf32, #tpu.memory_space<vmem>>, vector<1x8xf32>
    %182 = vector.broadcast %178 : vector<1x8xf32> to vector<64x8xf32>
    %183 = arith.addf %177, %182 : vector<64x8xf32>
    %cst_186 = arith.constant 0.000000e+00 : f32
    %184 = vector.broadcast %cst_186 : f32 to vector<64x8xf32>
    %185 = arith.cmpf oge, %183, %184 : vector<64x8xf32>
    %186 = vector.broadcast %181 : vector<1x8xf32> to vector<64x8xf32>
    %187 = arith.mulf %186, %183 : vector<64x8xf32>
    %188 = arith.select %185, %183, %187 : vector<64x8xi1>, vector<64x8xf32>
    %189 = vector.broadcast %179 : vector<1x8xf32> to vector<64x8xf32>
    %190 = arith.mulf %188, %189 : vector<64x8xf32>
    %191 = vector.broadcast %180 : vector<1x8xf32> to vector<64x8xf32>
    %192 = arith.addf %190, %191 : vector<64x8xf32>
    %cst_187 = arith.constant 0.000000e+00 : f32
    %193 = vector.broadcast %cst_187 : f32 to vector<16x16xf32>
    %c0_188 = arith.constant 0 : index
    %c0_189 = arith.constant 0 : index
    %c0_190 = arith.constant 0 : index
    %194 = vector.load %arg6[%c0_188, %c0_189, %c0_190] : memref<9x16x64xf32, #tpu.memory_space<vmem>>, vector<1x16x64xf32>
    %195 = vector.shape_cast %194 : vector<1x16x64xf32> to vector<16x64xf32>
    %cst_191 = arith.constant dense<0.000000e+00> : vector<16x8xf32>
    %196 = tpu.matmul %195, %192, %cst_191 {dimension_numbers = #tpu.dot_dimension_numbers<[1], [0], [0], [1], [0, 0, 1, 1], [], []>} : vector<16x64xf32>, vector<64x8xf32>, vector<16x8xf32> -> vector<16x8xf32>
    %c0_192 = arith.constant 0 : index
    %c0_193 = arith.constant 0 : index
    %c0_194 = arith.constant 0 : index
    %197 = vector.load %arg7[%c0_192, %c0_193, %c0_194] : memref<9x8x16xf32, #tpu.memory_space<vmem>>, vector<1x8x16xf32>
    %198 = vector.shape_cast %197 : vector<1x8x16xf32> to vector<8x16xf32>
    %cst_195 = arith.constant dense<0.000000e+00> : vector<16x16xf32>
    %199 = tpu.matmul %196, %198, %cst_195 {dimension_numbers = #tpu.dot_dimension_numbers<[1], [0], [0], [1], [0, 0, 1, 1], [], []>} : vector<16x8xf32>, vector<8x16xf32>, vector<16x16xf32> -> vector<16x16xf32>
    %200 = arith.addf %193, %199 : vector<16x16xf32>
    %c1_196 = arith.constant 1 : index
    %c0_197 = arith.constant 0 : index
    %c0_198 = arith.constant 0 : index
    %201 = vector.load %arg6[%c1_196, %c0_197, %c0_198] : memref<9x16x64xf32, #tpu.memory_space<vmem>>, vector<1x16x64xf32>
    %202 = vector.shape_cast %201 : vector<1x16x64xf32> to vector<16x64xf32>
    %cst_199 = arith.constant dense<0.000000e+00> : vector<16x8xf32>
    %203 = tpu.matmul %202, %192, %cst_199 {dimension_numbers = #tpu.dot_dimension_numbers<[1], [0], [0], [1], [0, 0, 1, 1], [], []>} : vector<16x64xf32>, vector<64x8xf32>, vector<16x8xf32> -> vector<16x8xf32>
    %c1_200 = arith.constant 1 : index
    %c0_201 = arith.constant 0 : index
    %c0_202 = arith.constant 0 : index
    %204 = vector.load %arg7[%c1_200, %c0_201, %c0_202] : memref<9x8x16xf32, #tpu.memory_space<vmem>>, vector<1x8x16xf32>
    %205 = vector.shape_cast %204 : vector<1x8x16xf32> to vector<8x16xf32>
    %cst_203 = arith.constant dense<0.000000e+00> : vector<16x16xf32>
    %206 = tpu.matmul %203, %205, %cst_203 {dimension_numbers = #tpu.dot_dimension_numbers<[1], [0], [0], [1], [0, 0, 1, 1], [], []>} : vector<16x8xf32>, vector<8x16xf32>, vector<16x16xf32> -> vector<16x16xf32>
    %207 = arith.addf %200, %206 : vector<16x16xf32>
    %c2_204 = arith.constant 2 : index
    %c0_205 = arith.constant 0 : index
    %c0_206 = arith.constant 0 : index
    %208 = vector.load %arg6[%c2_204, %c0_205, %c0_206] : memref<9x16x64xf32, #tpu.memory_space<vmem>>, vector<1x16x64xf32>
    %209 = vector.shape_cast %208 : vector<1x16x64xf32> to vector<16x64xf32>
    %cst_207 = arith.constant dense<0.000000e+00> : vector<16x8xf32>
    %210 = tpu.matmul %209, %192, %cst_207 {dimension_numbers = #tpu.dot_dimension_numbers<[1], [0], [0], [1], [0, 0, 1, 1], [], []>} : vector<16x64xf32>, vector<64x8xf32>, vector<16x8xf32> -> vector<16x8xf32>
    %c2_208 = arith.constant 2 : index
    %c0_209 = arith.constant 0 : index
    %c0_210 = arith.constant 0 : index
    %211 = vector.load %arg7[%c2_208, %c0_209, %c0_210] : memref<9x8x16xf32, #tpu.memory_space<vmem>>, vector<1x8x16xf32>
    %212 = vector.shape_cast %211 : vector<1x8x16xf32> to vector<8x16xf32>
    %cst_211 = arith.constant dense<0.000000e+00> : vector<16x16xf32>
    %213 = tpu.matmul %210, %212, %cst_211 {dimension_numbers = #tpu.dot_dimension_numbers<[1], [0], [0], [1], [0, 0, 1, 1], [], []>} : vector<16x8xf32>, vector<8x16xf32>, vector<16x16xf32> -> vector<16x16xf32>
    %214 = arith.addf %207, %213 : vector<16x16xf32>
    %c3_212 = arith.constant 3 : index
    %c0_213 = arith.constant 0 : index
    %c0_214 = arith.constant 0 : index
    %215 = vector.load %arg6[%c3_212, %c0_213, %c0_214] : memref<9x16x64xf32, #tpu.memory_space<vmem>>, vector<1x16x64xf32>
    %216 = vector.shape_cast %215 : vector<1x16x64xf32> to vector<16x64xf32>
    %cst_215 = arith.constant dense<0.000000e+00> : vector<16x8xf32>
    %217 = tpu.matmul %216, %192, %cst_215 {dimension_numbers = #tpu.dot_dimension_numbers<[1], [0], [0], [1], [0, 0, 1, 1], [], []>} : vector<16x64xf32>, vector<64x8xf32>, vector<16x8xf32> -> vector<16x8xf32>
    %c3_216 = arith.constant 3 : index
    %c0_217 = arith.constant 0 : index
    %c0_218 = arith.constant 0 : index
    %218 = vector.load %arg7[%c3_216, %c0_217, %c0_218] : memref<9x8x16xf32, #tpu.memory_space<vmem>>, vector<1x8x16xf32>
    %219 = vector.shape_cast %218 : vector<1x8x16xf32> to vector<8x16xf32>
    %cst_219 = arith.constant dense<0.000000e+00> : vector<16x16xf32>
    %220 = tpu.matmul %217, %219, %cst_219 {dimension_numbers = #tpu.dot_dimension_numbers<[1], [0], [0], [1], [0, 0, 1, 1], [], []>} : vector<16x8xf32>, vector<8x16xf32>, vector<16x16xf32> -> vector<16x16xf32>
    %221 = arith.addf %214, %220 : vector<16x16xf32>
    %c4_220 = arith.constant 4 : index
    %c0_221 = arith.constant 0 : index
    %c0_222 = arith.constant 0 : index
    %222 = vector.load %arg6[%c4_220, %c0_221, %c0_222] : memref<9x16x64xf32, #tpu.memory_space<vmem>>, vector<1x16x64xf32>
    %223 = vector.shape_cast %222 : vector<1x16x64xf32> to vector<16x64xf32>
    %cst_223 = arith.constant dense<0.000000e+00> : vector<16x8xf32>
    %224 = tpu.matmul %223, %192, %cst_223 {dimension_numbers = #tpu.dot_dimension_numbers<[1], [0], [0], [1], [0, 0, 1, 1], [], []>} : vector<16x64xf32>, vector<64x8xf32>, vector<16x8xf32> -> vector<16x8xf32>
    %c4_224 = arith.constant 4 : index
    %c0_225 = arith.constant 0 : index
    %c0_226 = arith.constant 0 : index
    %225 = vector.load %arg7[%c4_224, %c0_225, %c0_226] : memref<9x8x16xf32, #tpu.memory_space<vmem>>, vector<1x8x16xf32>
    %226 = vector.shape_cast %225 : vector<1x8x16xf32> to vector<8x16xf32>
    %cst_227 = arith.constant dense<0.000000e+00> : vector<16x16xf32>
    %227 = tpu.matmul %224, %226, %cst_227 {dimension_numbers = #tpu.dot_dimension_numbers<[1], [0], [0], [1], [0, 0, 1, 1], [], []>} : vector<16x8xf32>, vector<8x16xf32>, vector<16x16xf32> -> vector<16x16xf32>
    %228 = arith.addf %221, %227 : vector<16x16xf32>
    %c5_228 = arith.constant 5 : index
    %c0_229 = arith.constant 0 : index
    %c0_230 = arith.constant 0 : index
    %229 = vector.load %arg6[%c5_228, %c0_229, %c0_230] : memref<9x16x64xf32, #tpu.memory_space<vmem>>, vector<1x16x64xf32>
    %230 = vector.shape_cast %229 : vector<1x16x64xf32> to vector<16x64xf32>
    %cst_231 = arith.constant dense<0.000000e+00> : vector<16x8xf32>
    %231 = tpu.matmul %230, %192, %cst_231 {dimension_numbers = #tpu.dot_dimension_numbers<[1], [0], [0], [1], [0, 0, 1, 1], [], []>} : vector<16x64xf32>, vector<64x8xf32>, vector<16x8xf32> -> vector<16x8xf32>
    %c5_232 = arith.constant 5 : index
    %c0_233 = arith.constant 0 : index
    %c0_234 = arith.constant 0 : index
    %232 = vector.load %arg7[%c5_232, %c0_233, %c0_234] : memref<9x8x16xf32, #tpu.memory_space<vmem>>, vector<1x8x16xf32>
    %233 = vector.shape_cast %232 : vector<1x8x16xf32> to vector<8x16xf32>
    %cst_235 = arith.constant dense<0.000000e+00> : vector<16x16xf32>
    %234 = tpu.matmul %231, %233, %cst_235 {dimension_numbers = #tpu.dot_dimension_numbers<[1], [0], [0], [1], [0, 0, 1, 1], [], []>} : vector<16x8xf32>, vector<8x16xf32>, vector<16x16xf32> -> vector<16x16xf32>
    %235 = arith.addf %228, %234 : vector<16x16xf32>
    %c6_236 = arith.constant 6 : index
    %c0_237 = arith.constant 0 : index
    %c0_238 = arith.constant 0 : index
    %236 = vector.load %arg6[%c6_236, %c0_237, %c0_238] : memref<9x16x64xf32, #tpu.memory_space<vmem>>, vector<1x16x64xf32>
    %237 = vector.shape_cast %236 : vector<1x16x64xf32> to vector<16x64xf32>
    %cst_239 = arith.constant dense<0.000000e+00> : vector<16x8xf32>
    %238 = tpu.matmul %237, %192, %cst_239 {dimension_numbers = #tpu.dot_dimension_numbers<[1], [0], [0], [1], [0, 0, 1, 1], [], []>} : vector<16x64xf32>, vector<64x8xf32>, vector<16x8xf32> -> vector<16x8xf32>
    %c6_240 = arith.constant 6 : index
    %c0_241 = arith.constant 0 : index
    %c0_242 = arith.constant 0 : index
    %239 = vector.load %arg7[%c6_240, %c0_241, %c0_242] : memref<9x8x16xf32, #tpu.memory_space<vmem>>, vector<1x8x16xf32>
    %240 = vector.shape_cast %239 : vector<1x8x16xf32> to vector<8x16xf32>
    %cst_243 = arith.constant dense<0.000000e+00> : vector<16x16xf32>
    %241 = tpu.matmul %238, %240, %cst_243 {dimension_numbers = #tpu.dot_dimension_numbers<[1], [0], [0], [1], [0, 0, 1, 1], [], []>} : vector<16x8xf32>, vector<8x16xf32>, vector<16x16xf32> -> vector<16x16xf32>
    %242 = arith.addf %235, %241 : vector<16x16xf32>
    %c7_244 = arith.constant 7 : index
    %c0_245 = arith.constant 0 : index
    %c0_246 = arith.constant 0 : index
    %243 = vector.load %arg6[%c7_244, %c0_245, %c0_246] : memref<9x16x64xf32, #tpu.memory_space<vmem>>, vector<1x16x64xf32>
    %244 = vector.shape_cast %243 : vector<1x16x64xf32> to vector<16x64xf32>
    %cst_247 = arith.constant dense<0.000000e+00> : vector<16x8xf32>
    %245 = tpu.matmul %244, %192, %cst_247 {dimension_numbers = #tpu.dot_dimension_numbers<[1], [0], [0], [1], [0, 0, 1, 1], [], []>} : vector<16x64xf32>, vector<64x8xf32>, vector<16x8xf32> -> vector<16x8xf32>
    %c7_248 = arith.constant 7 : index
    %c0_249 = arith.constant 0 : index
    %c0_250 = arith.constant 0 : index
    %246 = vector.load %arg7[%c7_248, %c0_249, %c0_250] : memref<9x8x16xf32, #tpu.memory_space<vmem>>, vector<1x8x16xf32>
    %247 = vector.shape_cast %246 : vector<1x8x16xf32> to vector<8x16xf32>
    %cst_251 = arith.constant dense<0.000000e+00> : vector<16x16xf32>
    %248 = tpu.matmul %245, %247, %cst_251 {dimension_numbers = #tpu.dot_dimension_numbers<[1], [0], [0], [1], [0, 0, 1, 1], [], []>} : vector<16x8xf32>, vector<8x16xf32>, vector<16x16xf32> -> vector<16x16xf32>
    %249 = arith.addf %242, %248 : vector<16x16xf32>
    %c8_252 = arith.constant 8 : index
    %c0_253 = arith.constant 0 : index
    %c0_254 = arith.constant 0 : index
    %250 = vector.load %arg6[%c8_252, %c0_253, %c0_254] : memref<9x16x64xf32, #tpu.memory_space<vmem>>, vector<1x16x64xf32>
    %251 = vector.shape_cast %250 : vector<1x16x64xf32> to vector<16x64xf32>
    %cst_255 = arith.constant dense<0.000000e+00> : vector<16x8xf32>
    %252 = tpu.matmul %251, %192, %cst_255 {dimension_numbers = #tpu.dot_dimension_numbers<[1], [0], [0], [1], [0, 0, 1, 1], [], []>} : vector<16x64xf32>, vector<64x8xf32>, vector<16x8xf32> -> vector<16x8xf32>
    %c8_256 = arith.constant 8 : index
    %c0_257 = arith.constant 0 : index
    %c0_258 = arith.constant 0 : index
    %253 = vector.load %arg7[%c8_256, %c0_257, %c0_258] : memref<9x8x16xf32, #tpu.memory_space<vmem>>, vector<1x8x16xf32>
    %254 = vector.shape_cast %253 : vector<1x8x16xf32> to vector<8x16xf32>
    %cst_259 = arith.constant dense<0.000000e+00> : vector<16x16xf32>
    %255 = tpu.matmul %252, %254, %cst_259 {dimension_numbers = #tpu.dot_dimension_numbers<[1], [0], [0], [1], [0, 0, 1, 1], [], []>} : vector<16x8xf32>, vector<8x16xf32>, vector<16x16xf32> -> vector<16x16xf32>
    %256 = arith.addf %249, %255 : vector<16x16xf32>
    %c0_260 = arith.constant 0 : index
    %c0_261 = arith.constant 0 : index
    %257 = vector.load %arg8[%c0_260, %c0_261] : memref<4x16xf32, #tpu.memory_space<vmem>>, vector<1x16xf32>
    %c1_262 = arith.constant 1 : index
    %c0_263 = arith.constant 0 : index
    %258 = vector.load %arg8[%c1_262, %c0_263] : memref<4x16xf32, #tpu.memory_space<vmem>>, vector<1x16xf32>
    %c2_264 = arith.constant 2 : index
    %c0_265 = arith.constant 0 : index
    %259 = vector.load %arg8[%c2_264, %c0_265] : memref<4x16xf32, #tpu.memory_space<vmem>>, vector<1x16xf32>
    %c3_266 = arith.constant 3 : index
    %c0_267 = arith.constant 0 : index
    %260 = vector.load %arg8[%c3_266, %c0_267] : memref<4x16xf32, #tpu.memory_space<vmem>>, vector<1x16xf32>
    %261 = vector.broadcast %257 : vector<1x16xf32> to vector<16x16xf32>
    %262 = arith.addf %256, %261 : vector<16x16xf32>
    %cst_268 = arith.constant 0.000000e+00 : f32
    %263 = vector.broadcast %cst_268 : f32 to vector<16x16xf32>
    %264 = arith.cmpf oge, %262, %263 : vector<16x16xf32>
    %265 = vector.broadcast %260 : vector<1x16xf32> to vector<16x16xf32>
    %266 = arith.mulf %265, %262 : vector<16x16xf32>
    %267 = arith.select %264, %262, %266 : vector<16x16xi1>, vector<16x16xf32>
    %268 = vector.broadcast %258 : vector<1x16xf32> to vector<16x16xf32>
    %269 = arith.mulf %267, %268 : vector<16x16xf32>
    %270 = vector.broadcast %259 : vector<1x16xf32> to vector<16x16xf32>
    %271 = arith.addf %269, %270 : vector<16x16xf32>
    %cst_269 = arith.constant 0.000000e+00 : f32
    %272 = vector.broadcast %cst_269 : f32 to vector<4x32xf32>
    %c0_270 = arith.constant 0 : index
    %c0_271 = arith.constant 0 : index
    %c0_272 = arith.constant 0 : index
    %273 = vector.load %arg9[%c0_270, %c0_271, %c0_272] : memref<9x4x16xf32, #tpu.memory_space<vmem>>, vector<1x4x16xf32>
    %274 = vector.shape_cast %273 : vector<1x4x16xf32> to vector<4x16xf32>
    %cst_273 = arith.constant dense<0.000000e+00> : vector<4x16xf32>
    %275 = tpu.matmul %274, %271, %cst_273 {dimension_numbers = #tpu.dot_dimension_numbers<[1], [0], [0], [1], [0, 0, 1, 1], [], []>} : vector<4x16xf32>, vector<16x16xf32>, vector<4x16xf32> -> vector<4x16xf32>
    %c0_274 = arith.constant 0 : index
    %c0_275 = arith.constant 0 : index
    %c0_276 = arith.constant 0 : index
    %276 = vector.load %arg10[%c0_274, %c0_275, %c0_276] : memref<9x16x32xf32, #tpu.memory_space<vmem>>, vector<1x16x32xf32>
    %277 = vector.shape_cast %276 : vector<1x16x32xf32> to vector<16x32xf32>
    %cst_277 = arith.constant dense<0.000000e+00> : vector<4x32xf32>
    %278 = tpu.matmul %275, %277, %cst_277 {dimension_numbers = #tpu.dot_dimension_numbers<[1], [0], [0], [1], [0, 0, 1, 1], [], []>} : vector<4x16xf32>, vector<16x32xf32>, vector<4x32xf32> -> vector<4x32xf32>
    %279 = arith.addf %272, %278 : vector<4x32xf32>
    %c1_278 = arith.constant 1 : index
    %c0_279 = arith.constant 0 : index
    %c0_280 = arith.constant 0 : index
    %280 = vector.load %arg9[%c1_278, %c0_279, %c0_280] : memref<9x4x16xf32, #tpu.memory_space<vmem>>, vector<1x4x16xf32>
    %281 = vector.shape_cast %280 : vector<1x4x16xf32> to vector<4x16xf32>
    %cst_281 = arith.constant dense<0.000000e+00> : vector<4x16xf32>
    %282 = tpu.matmul %281, %271, %cst_281 {dimension_numbers = #tpu.dot_dimension_numbers<[1], [0], [0], [1], [0, 0, 1, 1], [], []>} : vector<4x16xf32>, vector<16x16xf32>, vector<4x16xf32> -> vector<4x16xf32>
    %c1_282 = arith.constant 1 : index
    %c0_283 = arith.constant 0 : index
    %c0_284 = arith.constant 0 : index
    %283 = vector.load %arg10[%c1_282, %c0_283, %c0_284] : memref<9x16x32xf32, #tpu.memory_space<vmem>>, vector<1x16x32xf32>
    %284 = vector.shape_cast %283 : vector<1x16x32xf32> to vector<16x32xf32>
    %cst_285 = arith.constant dense<0.000000e+00> : vector<4x32xf32>
    %285 = tpu.matmul %282, %284, %cst_285 {dimension_numbers = #tpu.dot_dimension_numbers<[1], [0], [0], [1], [0, 0, 1, 1], [], []>} : vector<4x16xf32>, vector<16x32xf32>, vector<4x32xf32> -> vector<4x32xf32>
    %286 = arith.addf %279, %285 : vector<4x32xf32>
    %c2_286 = arith.constant 2 : index
    %c0_287 = arith.constant 0 : index
    %c0_288 = arith.constant 0 : index
    %287 = vector.load %arg9[%c2_286, %c0_287, %c0_288] : memref<9x4x16xf32, #tpu.memory_space<vmem>>, vector<1x4x16xf32>
    %288 = vector.shape_cast %287 : vector<1x4x16xf32> to vector<4x16xf32>
    %cst_289 = arith.constant dense<0.000000e+00> : vector<4x16xf32>
    %289 = tpu.matmul %288, %271, %cst_289 {dimension_numbers = #tpu.dot_dimension_numbers<[1], [0], [0], [1], [0, 0, 1, 1], [], []>} : vector<4x16xf32>, vector<16x16xf32>, vector<4x16xf32> -> vector<4x16xf32>
    %c2_290 = arith.constant 2 : index
    %c0_291 = arith.constant 0 : index
    %c0_292 = arith.constant 0 : index
    %290 = vector.load %arg10[%c2_290, %c0_291, %c0_292] : memref<9x16x32xf32, #tpu.memory_space<vmem>>, vector<1x16x32xf32>
    %291 = vector.shape_cast %290 : vector<1x16x32xf32> to vector<16x32xf32>
    %cst_293 = arith.constant dense<0.000000e+00> : vector<4x32xf32>
    %292 = tpu.matmul %289, %291, %cst_293 {dimension_numbers = #tpu.dot_dimension_numbers<[1], [0], [0], [1], [0, 0, 1, 1], [], []>} : vector<4x16xf32>, vector<16x32xf32>, vector<4x32xf32> -> vector<4x32xf32>
    %293 = arith.addf %286, %292 : vector<4x32xf32>
    %c3_294 = arith.constant 3 : index
    %c0_295 = arith.constant 0 : index
    %c0_296 = arith.constant 0 : index
    %294 = vector.load %arg9[%c3_294, %c0_295, %c0_296] : memref<9x4x16xf32, #tpu.memory_space<vmem>>, vector<1x4x16xf32>
    %295 = vector.shape_cast %294 : vector<1x4x16xf32> to vector<4x16xf32>
    %cst_297 = arith.constant dense<0.000000e+00> : vector<4x16xf32>
    %296 = tpu.matmul %295, %271, %cst_297 {dimension_numbers = #tpu.dot_dimension_numbers<[1], [0], [0], [1], [0, 0, 1, 1], [], []>} : vector<4x16xf32>, vector<16x16xf32>, vector<4x16xf32> -> vector<4x16xf32>
    %c3_298 = arith.constant 3 : index
    %c0_299 = arith.constant 0 : index
    %c0_300 = arith.constant 0 : index
    %297 = vector.load %arg10[%c3_298, %c0_299, %c0_300] : memref<9x16x32xf32, #tpu.memory_space<vmem>>, vector<1x16x32xf32>
    %298 = vector.shape_cast %297 : vector<1x16x32xf32> to vector<16x32xf32>
    %cst_301 = arith.constant dense<0.000000e+00> : vector<4x32xf32>
    %299 = tpu.matmul %296, %298, %cst_301 {dimension_numbers = #tpu.dot_dimension_numbers<[1], [0], [0], [1], [0, 0, 1, 1], [], []>} : vector<4x16xf32>, vector<16x32xf32>, vector<4x32xf32> -> vector<4x32xf32>
    %300 = arith.addf %293, %299 : vector<4x32xf32>
    %c4_302 = arith.constant 4 : index
    %c0_303 = arith.constant 0 : index
    %c0_304 = arith.constant 0 : index
    %301 = vector.load %arg9[%c4_302, %c0_303, %c0_304] : memref<9x4x16xf32, #tpu.memory_space<vmem>>, vector<1x4x16xf32>
    %302 = vector.shape_cast %301 : vector<1x4x16xf32> to vector<4x16xf32>
    %cst_305 = arith.constant dense<0.000000e+00> : vector<4x16xf32>
    %303 = tpu.matmul %302, %271, %cst_305 {dimension_numbers = #tpu.dot_dimension_numbers<[1], [0], [0], [1], [0, 0, 1, 1], [], []>} : vector<4x16xf32>, vector<16x16xf32>, vector<4x16xf32> -> vector<4x16xf32>
    %c4_306 = arith.constant 4 : index
    %c0_307 = arith.constant 0 : index
    %c0_308 = arith.constant 0 : index
    %304 = vector.load %arg10[%c4_306, %c0_307, %c0_308] : memref<9x16x32xf32, #tpu.memory_space<vmem>>, vector<1x16x32xf32>
    %305 = vector.shape_cast %304 : vector<1x16x32xf32> to vector<16x32xf32>
    %cst_309 = arith.constant dense<0.000000e+00> : vector<4x32xf32>
    %306 = tpu.matmul %303, %305, %cst_309 {dimension_numbers = #tpu.dot_dimension_numbers<[1], [0], [0], [1], [0, 0, 1, 1], [], []>} : vector<4x16xf32>, vector<16x32xf32>, vector<4x32xf32> -> vector<4x32xf32>
    %307 = arith.addf %300, %306 : vector<4x32xf32>
    %c5_310 = arith.constant 5 : index
    %c0_311 = arith.constant 0 : index
    %c0_312 = arith.constant 0 : index
    %308 = vector.load %arg9[%c5_310, %c0_311, %c0_312] : memref<9x4x16xf32, #tpu.memory_space<vmem>>, vector<1x4x16xf32>
    %309 = vector.shape_cast %308 : vector<1x4x16xf32> to vector<4x16xf32>
    %cst_313 = arith.constant dense<0.000000e+00> : vector<4x16xf32>
    %310 = tpu.matmul %309, %271, %cst_313 {dimension_numbers = #tpu.dot_dimension_numbers<[1], [0], [0], [1], [0, 0, 1, 1], [], []>} : vector<4x16xf32>, vector<16x16xf32>, vector<4x16xf32> -> vector<4x16xf32>
    %c5_314 = arith.constant 5 : index
    %c0_315 = arith.constant 0 : index
    %c0_316 = arith.constant 0 : index
    %311 = vector.load %arg10[%c5_314, %c0_315, %c0_316] : memref<9x16x32xf32, #tpu.memory_space<vmem>>, vector<1x16x32xf32>
    %312 = vector.shape_cast %311 : vector<1x16x32xf32> to vector<16x32xf32>
    %cst_317 = arith.constant dense<0.000000e+00> : vector<4x32xf32>
    %313 = tpu.matmul %310, %312, %cst_317 {dimension_numbers = #tpu.dot_dimension_numbers<[1], [0], [0], [1], [0, 0, 1, 1], [], []>} : vector<4x16xf32>, vector<16x32xf32>, vector<4x32xf32> -> vector<4x32xf32>
    %314 = arith.addf %307, %313 : vector<4x32xf32>
    %c6_318 = arith.constant 6 : index
    %c0_319 = arith.constant 0 : index
    %c0_320 = arith.constant 0 : index
    %315 = vector.load %arg9[%c6_318, %c0_319, %c0_320] : memref<9x4x16xf32, #tpu.memory_space<vmem>>, vector<1x4x16xf32>
    %316 = vector.shape_cast %315 : vector<1x4x16xf32> to vector<4x16xf32>
    %cst_321 = arith.constant dense<0.000000e+00> : vector<4x16xf32>
    %317 = tpu.matmul %316, %271, %cst_321 {dimension_numbers = #tpu.dot_dimension_numbers<[1], [0], [0], [1], [0, 0, 1, 1], [], []>} : vector<4x16xf32>, vector<16x16xf32>, vector<4x16xf32> -> vector<4x16xf32>
    %c6_322 = arith.constant 6 : index
    %c0_323 = arith.constant 0 : index
    %c0_324 = arith.constant 0 : index
    %318 = vector.load %arg10[%c6_322, %c0_323, %c0_324] : memref<9x16x32xf32, #tpu.memory_space<vmem>>, vector<1x16x32xf32>
    %319 = vector.shape_cast %318 : vector<1x16x32xf32> to vector<16x32xf32>
    %cst_325 = arith.constant dense<0.000000e+00> : vector<4x32xf32>
    %320 = tpu.matmul %317, %319, %cst_325 {dimension_numbers = #tpu.dot_dimension_numbers<[1], [0], [0], [1], [0, 0, 1, 1], [], []>} : vector<4x16xf32>, vector<16x32xf32>, vector<4x32xf32> -> vector<4x32xf32>
    %321 = arith.addf %314, %320 : vector<4x32xf32>
    %c7_326 = arith.constant 7 : index
    %c0_327 = arith.constant 0 : index
    %c0_328 = arith.constant 0 : index
    %322 = vector.load %arg9[%c7_326, %c0_327, %c0_328] : memref<9x4x16xf32, #tpu.memory_space<vmem>>, vector<1x4x16xf32>
    %323 = vector.shape_cast %322 : vector<1x4x16xf32> to vector<4x16xf32>
    %cst_329 = arith.constant dense<0.000000e+00> : vector<4x16xf32>
    %324 = tpu.matmul %323, %271, %cst_329 {dimension_numbers = #tpu.dot_dimension_numbers<[1], [0], [0], [1], [0, 0, 1, 1], [], []>} : vector<4x16xf32>, vector<16x16xf32>, vector<4x16xf32> -> vector<4x16xf32>
    %c7_330 = arith.constant 7 : index
    %c0_331 = arith.constant 0 : index
    %c0_332 = arith.constant 0 : index
    %325 = vector.load %arg10[%c7_330, %c0_331, %c0_332] : memref<9x16x32xf32, #tpu.memory_space<vmem>>, vector<1x16x32xf32>
    %326 = vector.shape_cast %325 : vector<1x16x32xf32> to vector<16x32xf32>
    %cst_333 = arith.constant dense<0.000000e+00> : vector<4x32xf32>
    %327 = tpu.matmul %324, %326, %cst_333 {dimension_numbers = #tpu.dot_dimension_numbers<[1], [0], [0], [1], [0, 0, 1, 1], [], []>} : vector<4x16xf32>, vector<16x32xf32>, vector<4x32xf32> -> vector<4x32xf32>
    %328 = arith.addf %321, %327 : vector<4x32xf32>
    %c8_334 = arith.constant 8 : index
    %c0_335 = arith.constant 0 : index
    %c0_336 = arith.constant 0 : index
    %329 = vector.load %arg9[%c8_334, %c0_335, %c0_336] : memref<9x4x16xf32, #tpu.memory_space<vmem>>, vector<1x4x16xf32>
    %330 = vector.shape_cast %329 : vector<1x4x16xf32> to vector<4x16xf32>
    %cst_337 = arith.constant dense<0.000000e+00> : vector<4x16xf32>
    %331 = tpu.matmul %330, %271, %cst_337 {dimension_numbers = #tpu.dot_dimension_numbers<[1], [0], [0], [1], [0, 0, 1, 1], [], []>} : vector<4x16xf32>, vector<16x16xf32>, vector<4x16xf32> -> vector<4x16xf32>
    %c8_338 = arith.constant 8 : index
    %c0_339 = arith.constant 0 : index
    %c0_340 = arith.constant 0 : index
    %332 = vector.load %arg10[%c8_338, %c0_339, %c0_340] : memref<9x16x32xf32, #tpu.memory_space<vmem>>, vector<1x16x32xf32>
    %333 = vector.shape_cast %332 : vector<1x16x32xf32> to vector<16x32xf32>
    %cst_341 = arith.constant dense<0.000000e+00> : vector<4x32xf32>
    %334 = tpu.matmul %331, %333, %cst_341 {dimension_numbers = #tpu.dot_dimension_numbers<[1], [0], [0], [1], [0, 0, 1, 1], [], []>} : vector<4x16xf32>, vector<16x32xf32>, vector<4x32xf32> -> vector<4x32xf32>
    %335 = arith.addf %328, %334 : vector<4x32xf32>
    %c0_342 = arith.constant 0 : index
    %c0_343 = arith.constant 0 : index
    %336 = vector.load %arg11[%c0_342, %c0_343] : memref<4x32xf32, #tpu.memory_space<vmem>>, vector<1x32xf32>
    %c1_344 = arith.constant 1 : index
    %c0_345 = arith.constant 0 : index
    %337 = vector.load %arg11[%c1_344, %c0_345] : memref<4x32xf32, #tpu.memory_space<vmem>>, vector<1x32xf32>
    %c2_346 = arith.constant 2 : index
    %c0_347 = arith.constant 0 : index
    %338 = vector.load %arg11[%c2_346, %c0_347] : memref<4x32xf32, #tpu.memory_space<vmem>>, vector<1x32xf32>
    %c3_348 = arith.constant 3 : index
    %c0_349 = arith.constant 0 : index
    %339 = vector.load %arg11[%c3_348, %c0_349] : memref<4x32xf32, #tpu.memory_space<vmem>>, vector<1x32xf32>
    %340 = vector.broadcast %336 : vector<1x32xf32> to vector<4x32xf32>
    %341 = arith.addf %335, %340 : vector<4x32xf32>
    %cst_350 = arith.constant 0.000000e+00 : f32
    %342 = vector.broadcast %cst_350 : f32 to vector<4x32xf32>
    %343 = arith.cmpf oge, %341, %342 : vector<4x32xf32>
    %344 = vector.broadcast %339 : vector<1x32xf32> to vector<4x32xf32>
    %345 = arith.mulf %344, %341 : vector<4x32xf32>
    %346 = arith.select %343, %341, %345 : vector<4x32xi1>, vector<4x32xf32>
    %347 = vector.broadcast %337 : vector<1x32xf32> to vector<4x32xf32>
    %348 = arith.mulf %346, %347 : vector<4x32xf32>
    %349 = vector.broadcast %338 : vector<1x32xf32> to vector<4x32xf32>
    %350 = arith.addf %348, %349 : vector<4x32xf32>
    %cst_351 = arith.constant 0.000000e+00 : f32
    %351 = vector.broadcast %cst_351 : f32 to vector<1x64xf32>
    %c0_352 = arith.constant 0 : index
    %c0_353 = arith.constant 0 : index
    %c0_354 = arith.constant 0 : index
    %352 = vector.load %arg12[%c0_352, %c0_353, %c0_354] : memref<4x1x4xf32, #tpu.memory_space<vmem>>, vector<1x1x4xf32>
    %353 = vector.shape_cast %352 : vector<1x1x4xf32> to vector<1x4xf32>
    %cst_355 = arith.constant dense<0.000000e+00> : vector<1x32xf32>
    %354 = tpu.matmul %353, %350, %cst_355 {dimension_numbers = #tpu.dot_dimension_numbers<[1], [0], [0], [1], [0, 0, 1, 1], [], []>} : vector<1x4xf32>, vector<4x32xf32>, vector<1x32xf32> -> vector<1x32xf32>
    %c0_356 = arith.constant 0 : index
    %c0_357 = arith.constant 0 : index
    %c0_358 = arith.constant 0 : index
    %355 = vector.load %arg13[%c0_356, %c0_357, %c0_358] : memref<4x32x64xf32, #tpu.memory_space<vmem>>, vector<1x32x64xf32>
    %356 = vector.shape_cast %355 : vector<1x32x64xf32> to vector<32x64xf32>
    %cst_359 = arith.constant dense<0.000000e+00> : vector<1x64xf32>
    %357 = tpu.matmul %354, %356, %cst_359 {dimension_numbers = #tpu.dot_dimension_numbers<[1], [0], [0], [1], [0, 0, 1, 1], [], []>} : vector<1x32xf32>, vector<32x64xf32>, vector<1x64xf32> -> vector<1x64xf32>
    %358 = arith.addf %351, %357 : vector<1x64xf32>
    %c1_360 = arith.constant 1 : index
    %c0_361 = arith.constant 0 : index
    %c0_362 = arith.constant 0 : index
    %359 = vector.load %arg12[%c1_360, %c0_361, %c0_362] : memref<4x1x4xf32, #tpu.memory_space<vmem>>, vector<1x1x4xf32>
    %360 = vector.shape_cast %359 : vector<1x1x4xf32> to vector<1x4xf32>
    %cst_363 = arith.constant dense<0.000000e+00> : vector<1x32xf32>
    %361 = tpu.matmul %360, %350, %cst_363 {dimension_numbers = #tpu.dot_dimension_numbers<[1], [0], [0], [1], [0, 0, 1, 1], [], []>} : vector<1x4xf32>, vector<4x32xf32>, vector<1x32xf32> -> vector<1x32xf32>
    %c1_364 = arith.constant 1 : index
    %c0_365 = arith.constant 0 : index
    %c0_366 = arith.constant 0 : index
    %362 = vector.load %arg13[%c1_364, %c0_365, %c0_366] : memref<4x32x64xf32, #tpu.memory_space<vmem>>, vector<1x32x64xf32>
    %363 = vector.shape_cast %362 : vector<1x32x64xf32> to vector<32x64xf32>
    %cst_367 = arith.constant dense<0.000000e+00> : vector<1x64xf32>
    %364 = tpu.matmul %361, %363, %cst_367 {dimension_numbers = #tpu.dot_dimension_numbers<[1], [0], [0], [1], [0, 0, 1, 1], [], []>} : vector<1x32xf32>, vector<32x64xf32>, vector<1x64xf32> -> vector<1x64xf32>
    %365 = arith.addf %358, %364 : vector<1x64xf32>
    %c2_368 = arith.constant 2 : index
    %c0_369 = arith.constant 0 : index
    %c0_370 = arith.constant 0 : index
    %366 = vector.load %arg12[%c2_368, %c0_369, %c0_370] : memref<4x1x4xf32, #tpu.memory_space<vmem>>, vector<1x1x4xf32>
    %367 = vector.shape_cast %366 : vector<1x1x4xf32> to vector<1x4xf32>
    %cst_371 = arith.constant dense<0.000000e+00> : vector<1x32xf32>
    %368 = tpu.matmul %367, %350, %cst_371 {dimension_numbers = #tpu.dot_dimension_numbers<[1], [0], [0], [1], [0, 0, 1, 1], [], []>} : vector<1x4xf32>, vector<4x32xf32>, vector<1x32xf32> -> vector<1x32xf32>
    %c2_372 = arith.constant 2 : index
    %c0_373 = arith.constant 0 : index
    %c0_374 = arith.constant 0 : index
    %369 = vector.load %arg13[%c2_372, %c0_373, %c0_374] : memref<4x32x64xf32, #tpu.memory_space<vmem>>, vector<1x32x64xf32>
    %370 = vector.shape_cast %369 : vector<1x32x64xf32> to vector<32x64xf32>
    %cst_375 = arith.constant dense<0.000000e+00> : vector<1x64xf32>
    %371 = tpu.matmul %368, %370, %cst_375 {dimension_numbers = #tpu.dot_dimension_numbers<[1], [0], [0], [1], [0, 0, 1, 1], [], []>} : vector<1x32xf32>, vector<32x64xf32>, vector<1x64xf32> -> vector<1x64xf32>
    %372 = arith.addf %365, %371 : vector<1x64xf32>
    %c3_376 = arith.constant 3 : index
    %c0_377 = arith.constant 0 : index
    %c0_378 = arith.constant 0 : index
    %373 = vector.load %arg12[%c3_376, %c0_377, %c0_378] : memref<4x1x4xf32, #tpu.memory_space<vmem>>, vector<1x1x4xf32>
    %374 = vector.shape_cast %373 : vector<1x1x4xf32> to vector<1x4xf32>
    %cst_379 = arith.constant dense<0.000000e+00> : vector<1x32xf32>
    %375 = tpu.matmul %374, %350, %cst_379 {dimension_numbers = #tpu.dot_dimension_numbers<[1], [0], [0], [1], [0, 0, 1, 1], [], []>} : vector<1x4xf32>, vector<4x32xf32>, vector<1x32xf32> -> vector<1x32xf32>
    %c3_380 = arith.constant 3 : index
    %c0_381 = arith.constant 0 : index
    %c0_382 = arith.constant 0 : index
    %376 = vector.load %arg13[%c3_380, %c0_381, %c0_382] : memref<4x32x64xf32, #tpu.memory_space<vmem>>, vector<1x32x64xf32>
    %377 = vector.shape_cast %376 : vector<1x32x64xf32> to vector<32x64xf32>
    %cst_383 = arith.constant dense<0.000000e+00> : vector<1x64xf32>
    %378 = tpu.matmul %375, %377, %cst_383 {dimension_numbers = #tpu.dot_dimension_numbers<[1], [0], [0], [1], [0, 0, 1, 1], [], []>} : vector<1x32xf32>, vector<32x64xf32>, vector<1x64xf32> -> vector<1x64xf32>
    %379 = arith.addf %372, %378 : vector<1x64xf32>
    %c0_384 = arith.constant 0 : index
    %c0_385 = arith.constant 0 : index
    %380 = vector.load %arg14[%c0_384, %c0_385] : memref<4x64xf32, #tpu.memory_space<vmem>>, vector<1x64xf32>
    %c1_386 = arith.constant 1 : index
    %c0_387 = arith.constant 0 : index
    %381 = vector.load %arg14[%c1_386, %c0_387] : memref<4x64xf32, #tpu.memory_space<vmem>>, vector<1x64xf32>
    %c2_388 = arith.constant 2 : index
    %c0_389 = arith.constant 0 : index
    %382 = vector.load %arg14[%c2_388, %c0_389] : memref<4x64xf32, #tpu.memory_space<vmem>>, vector<1x64xf32>
    %c3_390 = arith.constant 3 : index
    %c0_391 = arith.constant 0 : index
    %383 = vector.load %arg14[%c3_390, %c0_391] : memref<4x64xf32, #tpu.memory_space<vmem>>, vector<1x64xf32>
    %384 = arith.addf %379, %380 : vector<1x64xf32>
    %cst_392 = arith.constant 0.000000e+00 : f32
    %385 = vector.broadcast %cst_392 : f32 to vector<1x64xf32>
    %386 = arith.cmpf oge, %384, %385 : vector<1x64xf32>
    %387 = arith.mulf %383, %384 : vector<1x64xf32>
    %388 = arith.select %386, %384, %387 : vector<1x64xi1>, vector<1x64xf32>
    %389 = arith.mulf %388, %381 : vector<1x64xf32>
    %390 = arith.addf %389, %382 : vector<1x64xf32>
    %cst_393 = arith.constant 0.000000e+00 : f32
    %391 = vector.broadcast %cst_393 : f32 to vector<1x128xf32>
    %c0_394 = arith.constant 0 : index
    %c0_395 = arith.constant 0 : index
    %c0_396 = arith.constant 0 : index
    %392 = vector.load %arg15[%c0_394, %c0_395, %c0_396] : memref<1x1x1xf32, #tpu.memory_space<vmem>>, vector<1x1x1xf32>
    %393 = vector.shape_cast %392 : vector<1x1x1xf32> to vector<1x1xf32>
    %394 = vector.broadcast %393 : vector<1x1xf32> to vector<1x64xf32>
    %395 = arith.mulf %394, %390 : vector<1x64xf32>
    %c0_397 = arith.constant 0 : index
    %c0_398 = arith.constant 0 : index
    %c0_399 = arith.constant 0 : index
    %396 = vector.load %arg16[%c0_397, %c0_398, %c0_399] : memref<1x64x128xf32, #tpu.memory_space<vmem>>, vector<1x64x128xf32>
    %397 = vector.shape_cast %396 : vector<1x64x128xf32> to vector<64x128xf32>
    %cst_400 = arith.constant dense<0.000000e+00> : vector<1x128xf32>
    %398 = tpu.matmul %395, %397, %cst_400 {dimension_numbers = #tpu.dot_dimension_numbers<[1], [0], [0], [1], [0, 0, 1, 1], [], []>} : vector<1x64xf32>, vector<64x128xf32>, vector<1x128xf32> -> vector<1x128xf32>
    %399 = arith.addf %391, %398 : vector<1x128xf32>
    %c0_401 = arith.constant 0 : index
    %c0_402 = arith.constant 0 : index
    %400 = vector.load %arg17[%c0_401, %c0_402] : memref<4x128xf32, #tpu.memory_space<vmem>>, vector<1x128xf32>
    %c1_403 = arith.constant 1 : index
    %c0_404 = arith.constant 0 : index
    %401 = vector.load %arg17[%c1_403, %c0_404] : memref<4x128xf32, #tpu.memory_space<vmem>>, vector<1x128xf32>
    %c2_405 = arith.constant 2 : index
    %c0_406 = arith.constant 0 : index
    %402 = vector.load %arg17[%c2_405, %c0_406] : memref<4x128xf32, #tpu.memory_space<vmem>>, vector<1x128xf32>
    %c3_407 = arith.constant 3 : index
    %c0_408 = arith.constant 0 : index
    %403 = vector.load %arg17[%c3_407, %c0_408] : memref<4x128xf32, #tpu.memory_space<vmem>>, vector<1x128xf32>
    %404 = arith.addf %399, %400 : vector<1x128xf32>
    %cst_409 = arith.constant 0.000000e+00 : f32
    %405 = vector.broadcast %cst_409 : f32 to vector<1x128xf32>
    %406 = arith.cmpf oge, %404, %405 : vector<1x128xf32>
    %407 = arith.mulf %403, %404 : vector<1x128xf32>
    %408 = arith.select %406, %404, %407 : vector<1x128xi1>, vector<1x128xf32>
    %409 = arith.mulf %408, %401 : vector<1x128xf32>
    %410 = arith.addf %409, %402 : vector<1x128xf32>
    %cst_410 = arith.constant dense<0.000000e+00> : vector<128xf32>
    %411 = vector.multi_reduction <add>, %410, %cst_410 [0] : vector<1x128xf32> to vector<128xf32>
    %412 = vector.shape_cast %411 : vector<128xf32> to vector<1x128xf32>
    %cst_411 = arith.constant 1.000000e+00 : f32
    %413 = vector.broadcast %cst_411 : f32 to vector<1x128xf32>
    %414 = arith.divf %412, %413 : vector<1x128xf32>
    %c0_412 = arith.constant 0 : index
    %c0_413 = arith.constant 0 : index
    %415 = vector.load %arg18[%c0_412, %c0_413] : memref<128x128xf32, #tpu.memory_space<vmem>>, vector<128x128xf32>
    %cst_414 = arith.constant dense<0.000000e+00> : vector<1x128xf32>
    %416 = tpu.matmul %414, %415, %cst_414 {dimension_numbers = #tpu.dot_dimension_numbers<[1], [0], [0], [1], [0, 0, 1, 1], [], []>} : vector<1x128xf32>, vector<128x128xf32>, vector<1x128xf32> -> vector<1x128xf32>
    %c0_415 = arith.constant 0 : index
    %c0_416 = arith.constant 0 : index
    %417 = vector.load %arg19[%c0_415, %c0_416] : memref<1x128xf32, #tpu.memory_space<vmem>>, vector<1x128xf32>
    %418 = arith.addf %416, %417 : vector<1x128xf32>
    %cst_417 = arith.constant 0.000000e+00 : f32
    %419 = vector.broadcast %cst_417 : f32 to vector<1x128xf32>
    %420 = arith.maximumf %418, %419 : vector<1x128xf32>
    %c0_418 = arith.constant 0 : index
    %c0_419 = arith.constant 0 : index
    %c0_420 = arith.constant 0 : index
    %421 = vector.load %arg2[%c0_418, %c0_419, %c0_420] : memref<1x1x8xf32, #tpu.memory_space<vmem>>, vector<1x1x8xf32>
    %422 = vector.shape_cast %421 : vector<1x1x8xf32> to vector<1x8xf32>
    %c0_421 = arith.constant 0 : index
    %c0_422 = arith.constant 0 : index
    %423 = vector.load %arg20[%c0_421, %c0_422] : memref<8x64xf32, #tpu.memory_space<vmem>>, vector<8x64xf32>
    %cst_423 = arith.constant dense<0.000000e+00> : vector<1x64xf32>
    %424 = tpu.matmul %422, %423, %cst_423 {dimension_numbers = #tpu.dot_dimension_numbers<[1], [0], [0], [1], [0, 0, 1, 1], [], []>} : vector<1x8xf32>, vector<8x64xf32>, vector<1x64xf32> -> vector<1x64xf32>
    %c0_424 = arith.constant 0 : index
    %c0_425 = arith.constant 0 : index
    %425 = vector.load %arg21[%c0_424, %c0_425] : memref<1x64xf32, #tpu.memory_space<vmem>>, vector<1x64xf32>
    %426 = arith.addf %424, %425 : vector<1x64xf32>
    %cst_426 = arith.constant 0.000000e+00 : f32
    %427 = vector.broadcast %cst_426 : f32 to vector<1x64xf32>
    %428 = arith.maximumf %426, %427 : vector<1x64xf32>
    %c0_427 = arith.constant 0 : index
    %c0_428 = arith.constant 0 : index
    %429 = vector.load %arg22[%c0_427, %c0_428] : memref<128x2xf32, #tpu.memory_space<vmem>>, vector<128x2xf32>
    %cst_429 = arith.constant dense<0.000000e+00> : vector<1x2xf32>
    %430 = tpu.matmul %420, %429, %cst_429 {dimension_numbers = #tpu.dot_dimension_numbers<[1], [0], [0], [1], [0, 0, 1, 1], [], []>} : vector<1x128xf32>, vector<128x2xf32>, vector<1x2xf32> -> vector<1x2xf32>
    %c0_430 = arith.constant 0 : index
    %c0_431 = arith.constant 0 : index
    %431 = vector.load %arg23[%c0_430, %c0_431] : memref<64x2xf32, #tpu.memory_space<vmem>>, vector<64x2xf32>
    %cst_432 = arith.constant dense<0.000000e+00> : vector<1x2xf32>
    %432 = tpu.matmul %428, %431, %cst_432 {dimension_numbers = #tpu.dot_dimension_numbers<[1], [0], [0], [1], [0, 0, 1, 1], [], []>} : vector<1x64xf32>, vector<64x2xf32>, vector<1x2xf32> -> vector<1x2xf32>
    %433 = arith.addf %430, %432 : vector<1x2xf32>
    %c0_433 = arith.constant 0 : index
    %c0_434 = arith.constant 0 : index
    %434 = vector.load %arg24[%c0_433, %c0_434] : memref<1x2xf32, #tpu.memory_space<vmem>>, vector<1x2xf32>
    %435 = arith.addf %433, %434 : vector<1x2xf32>
    %c0_435 = arith.constant 0 : index
    %c0_436 = arith.constant 0 : index
    %c0_437 = arith.constant 0 : index
    %436 = vector.load %arg25[%c0_435, %c0_436, %c0_437] : memref<1x1x2xf32, #tpu.memory_space<vmem>>, vector<1x1x2xf32>
    %437 = vector.shape_cast %436 : vector<1x1x2xf32> to vector<1x2xf32>
    %438 = vector.shape_cast %435 : vector<1x2xf32> to vector<1x1x2xf32>
    tpu.vector_store %arg25[%c0_435, %c0_436, %c0_437], %438 {strides = array<i32>} : memref<1x1x2xf32, #tpu.memory_space<vmem>>, vector<1x1x2xf32>,
    return
  }
  func.func @transform_0(%arg0: i32) -> (i32, i32, i32) {
    %c0_i32 = arith.constant 0 : i32
    %c0_i32_0 = arith.constant 0 : i32
    %c0_i32_1 = arith.constant 0 : i32
    return %arg0, %c0_i32, %c0_i32_0 : i32, i32, i32
  }
  func.func @transform_1(%arg0: i32) -> (i32, i32, i32) {
    %c0_i32 = arith.constant 0 : i32
    %c0_i32_0 = arith.constant 0 : i32
    %c0_i32_1 = arith.constant 0 : i32
    return %arg0, %c0_i32, %c0_i32_0 : i32, i32, i32
  }
  func.func @transform_2(%arg0: i32) -> (i32, i32, i32) {
    %c0_i32 = arith.constant 0 : i32
    %c0_i32_0 = arith.constant 0 : i32
    %c0_i32_1 = arith.constant 0 : i32
    %c0_i32_2 = arith.constant 0 : i32
    return %c0_i32, %c0_i32_0, %c0_i32_1 : i32, i32, i32
  }
  func.func @transform_3(%arg0: i32) -> (i32, i32, i32) {
    %c0_i32 = arith.constant 0 : i32
    %c0_i32_0 = arith.constant 0 : i32
    %c0_i32_1 = arith.constant 0 : i32
    %c0_i32_2 = arith.constant 0 : i32
    return %c0_i32, %c0_i32_0, %c0_i32_1 : i32, i32, i32
  }
  func.func @transform_4(%arg0: i32) -> (i32, i32) {
    %c0_i32 = arith.constant 0 : i32
    %c0_i32_0 = arith.constant 0 : i32
    %c0_i32_1 = arith.constant 0 : i32
    return %c0_i32, %c0_i32_0 : i32, i32
  }
  func.func @transform_5(%arg0: i32) -> (i32, i32, i32) {
    %c0_i32 = arith.constant 0 : i32
    %c0_i32_0 = arith.constant 0 : i32
    %c0_i32_1 = arith.constant 0 : i32
    %c0_i32_2 = arith.constant 0 : i32
    return %c0_i32, %c0_i32_0, %c0_i32_1 : i32, i32, i32
  }
  func.func @transform_6(%arg0: i32) -> (i32, i32, i32) {
    %c0_i32 = arith.constant 0 : i32
    %c0_i32_0 = arith.constant 0 : i32
    %c0_i32_1 = arith.constant 0 : i32
    %c0_i32_2 = arith.constant 0 : i32
    return %c0_i32, %c0_i32_0, %c0_i32_1 : i32, i32, i32
  }
  func.func @transform_7(%arg0: i32) -> (i32, i32) {
    %c0_i32 = arith.constant 0 : i32
    %c0_i32_0 = arith.constant 0 : i32
    %c0_i32_1 = arith.constant 0 : i32
    return %c0_i32, %c0_i32_0 : i32, i32
  }
  func.func @transform_8(%arg0: i32) -> (i32, i32, i32) {
    %c0_i32 = arith.constant 0 : i32
    %c0_i32_0 = arith.constant 0 : i32
    %c0_i32_1 = arith.constant 0 : i32
    %c0_i32_2 = arith.constant 0 : i32
    return %c0_i32, %c0_i32_0, %c0_i32_1 : i32, i32, i32
  }
  func.func @transform_9(%arg0: i32) -> (i32, i32, i32) {
    %c0_i32 = arith.constant 0 : i32
    %c0_i32_0 = arith.constant 0 : i32
    %c0_i32_1 = arith.constant 0 : i32
    %c0_i32_2 = arith.constant 0 : i32
    return %c0_i32, %c0_i32_0, %c0_i32_1 : i32, i32, i32
  }
  func.func @transform_10(%arg0: i32) -> (i32, i32) {
    %c0_i32 = arith.constant 0 : i32
    %c0_i32_0 = arith.constant 0 : i32
    %c0_i32_1 = arith.constant 0 : i32
    return %c0_i32, %c0_i32_0 : i32, i32
  }
  func.func @transform_11(%arg0: i32) -> (i32, i32, i32) {
    %c0_i32 = arith.constant 0 : i32
    %c0_i32_0 = arith.constant 0 : i32
    %c0_i32_1 = arith.constant 0 : i32
    %c0_i32_2 = arith.constant 0 : i32
    return %c0_i32, %c0_i32_0, %c0_i32_1 : i32, i32, i32
  }
  func.func @transform_12(%arg0: i32) -> (i32, i32, i32) {
    %c0_i32 = arith.constant 0 : i32
    %c0_i32_0 = arith.constant 0 : i32
    %c0_i32_1 = arith.constant 0 : i32
    %c0_i32_2 = arith.constant 0 : i32
    return %c0_i32, %c0_i32_0, %c0_i32_1 : i32, i32, i32
  }
  func.func @transform_13(%arg0: i32) -> (i32, i32) {
    %c0_i32 = arith.constant 0 : i32
    %c0_i32_0 = arith.constant 0 : i32
    %c0_i32_1 = arith.constant 0 : i32
    return %c0_i32, %c0_i32_0 : i32, i32
  }
  func.func @transform_14(%arg0: i32) -> (i32, i32, i32) {
    %c0_i32 = arith.constant 0 : i32
    %c0_i32_0 = arith.constant 0 : i32
    %c0_i32_1 = arith.constant 0 : i32
    %c0_i32_2 = arith.constant 0 : i32
    return %c0_i32, %c0_i32_0, %c0_i32_1 : i32, i32, i32
  }
  func.func @transform_15(%arg0: i32) -> (i32, i32, i32) {
    %c0_i32 = arith.constant 0 : i32
    %c0_i32_0 = arith.constant 0 : i32
    %c0_i32_1 = arith.constant 0 : i32
    %c0_i32_2 = arith.constant 0 : i32
    return %c0_i32, %c0_i32_0, %c0_i32_1 : i32, i32, i32
  }
  func.func @transform_16(%arg0: i32) -> (i32, i32) {
    %c0_i32 = arith.constant 0 : i32
    %c0_i32_0 = arith.constant 0 : i32
    %c0_i32_1 = arith.constant 0 : i32
    return %c0_i32, %c0_i32_0 : i32, i32
  }
  func.func @transform_17(%arg0: i32) -> (i32, i32) {
    %c0_i32 = arith.constant 0 : i32
    %c0_i32_0 = arith.constant 0 : i32
    %c0_i32_1 = arith.constant 0 : i32
    return %c0_i32, %c0_i32_0 : i32, i32
  }
  func.func @transform_18(%arg0: i32) -> (i32, i32) {
    %c0_i32 = arith.constant 0 : i32
    %c0_i32_0 = arith.constant 0 : i32
    %c0_i32_1 = arith.constant 0 : i32
    return %c0_i32, %c0_i32_0 : i32, i32
  }
  func.func @transform_19(%arg0: i32) -> (i32, i32) {
    %c0_i32 = arith.constant 0 : i32
    %c0_i32_0 = arith.constant 0 : i32
    %c0_i32_1 = arith.constant 0 : i32
    return %c0_i32, %c0_i32_0 : i32, i32
  }
  func.func @transform_20(%arg0: i32) -> (i32, i32) {
    %c0_i32 = arith.constant 0 : i32
    %c0_i32_0 = arith.constant 0 : i32
    %c0_i32_1 = arith.constant 0 : i32
    return %c0_i32, %c0_i32_0 : i32, i32
  }
  func.func @transform_21(%arg0: i32) -> (i32, i32) {
    %c0_i32 = arith.constant 0 : i32
    %c0_i32_0 = arith.constant 0 : i32
    %c0_i32_1 = arith.constant 0 : i32
    return %c0_i32, %c0_i32_0 : i32, i32
  }
  func.func @transform_22(%arg0: i32) -> (i32, i32) {
    %c0_i32 = arith.constant 0 : i32
    %c0_i32_0 = arith.constant 0 : i32
    %c0_i32_1 = arith.constant 0 : i32
    return %c0_i32, %c0_i32_0 : i32, i32
  }
  func.func @transform_23(%arg0: i32) -> (i32, i32) {
    %c0_i32 = arith.constant 0 : i32
    %c0_i32_0 = arith.constant 0 : i32
    %c0_i32_1 = arith.constant 0 : i32
    return %c0_i32, %c0_i32_0 : i32, i32
  }
  func.func @transform_24(%arg0: i32) -> (i32, i32, i32) {
    %c0_i32 = arith.constant 0 : i32
    %c0_i32_0 = arith.constant 0 : i32
    %c0_i32_1 = arith.constant 0 : i32
    return %arg0, %c0_i32, %c0_i32_0 : i32, i32, i32
  }
}

</mosaic_0001>

<bundles_post_ra>
// kernel: forward.1
= control target key start
LH: loop header
LB: loop body
LE: loop exit
PB: predicated region body
PF: predicated region fallthrough
CT: control target
= control target key end

     0   :  { %s18992_s0 = inlined_call_operand.vmem [shape: f32[2,256,4], index: 0, kind: input, shape index: {}]   ;;  %s18993_s1 = inlined_call_operand.hbm [shape: f32[2,1,8], index: 1, kind: input, shape index: {}]   ;;  %s18994_s2 = inlined_call_operand.hbm [shape: f32[25,64,256], index: 2, kind: input, shape index: {}]   ;;  %s18995_s3 = inlined_call_operand.vmem [shape: f32[25,4,8], index: 3, kind: input, shape index: {}]   ;;  %s18996_s4 = inlined_call_operand.vmem [shape: f32[4,8], index: 4, kind: input, shape index: {}]   ;;  %s18997_s5 = inlined_call_operand.hbm [shape: f32[9,16,64], index: 5, kind: input, shape index: {}]   ;;  %s18998_s6 = inlined_call_operand.vmem [shape: f32[9,8,16], index: 6, kind: input, shape index: {}]   ;;  %s18999_s7 = inlined_call_operand.vmem [shape: f32[4,16], index: 7, kind: input, shape index: {}]   ;;  %s19000_s8 = inlined_call_operand.hbm [shape: f32[9,4,16], index: 8, kind: input, shape index: {}]   ;;  %s19001_s9 = inlined_call_operand.vmem [shape: f32[9,16,32], index: 9, kind: input, shape index: {}]   ;;  %s19002_s10 = inlined_call_operand.vmem [shape: f32[4,32], index: 10, kind: input, shape index: {}]   ;;  %s19003_s11 = inlined_call_operand.hbm [shape: f32[4,1,4], index: 11, kind: input, shape index: {}]   ;;  %s19004_s12 = inlined_call_operand.vmem [shape: f32[4,32,64], index: 12, kind: input, shape index: {}]   ;;  %s19005_s13 = inlined_call_operand.vmem [shape: f32[4,64], index: 13, kind: input, shape index: {}]   ;;  %s19006_s14 = inlined_call_operand.<no memory space> [shape: f32[1,1,1], index: 14, kind: input, shape index: {}]   ;;  %s19007_s15 = inlined_call_operand.vmem [shape: f32[1,64,128], index: 15, kind: input, shape index: {}]   ;;  %s19008_s16 = inlined_call_operand.vmem [shape: f32[4,128], index: 16, kind: input, shape index: {}]   ;;  %s19009_s17 = inlined_call_operand.vmem [shape: f32[128,128], index: 17, kind: input, shape index: {}]   ;;  %s19010_s18 = inlined_call_operand.hbm [shape: f32[1,128], index: 18, kind: input, shape index: {}]   ;;  %s19011_s19 = inlined_call_operand.hbm [shape: f32[8,64], index: 19, kind: input, shape index: {}]   ;;  %s19012_s20 = inlined_call_operand.hbm [shape: f32[1,64], index: 20, kind: input, shape index: {}]   ;;  %s19013_s21 = inlined_call_operand.vmem [shape: f32[128,2], index: 21, kind: input, shape index: {}]   ;;  %s19014_s22 = inlined_call_operand.vmem [shape: f32[64,2], index: 22, kind: input, shape index: {}]   ;;  %s19015_s23 = inlined_call_operand.hbm [shape: f32[1,2], index: 23, kind: input, shape index: {}]   ;;  %s19016_s24 = inlined_call_operand.hbm [shape: f32[2,1,2], index: 24, kind: output, shape index: {}]  }
   0x1   :  { %19044 = sst [smem:[#allocation25_spill]] %s18992_s0  ;;  %v29_v0 = vstv %s19006_s14 }
   0x2   :  { %19045 = sst [smem:[#allocation26_spill]] %s18993_s1  ;;  %30 = vst [vmem:[#allocation2] sm:$0x1] %v29_v0 }
   0x3   :  { %19046 = sst [smem:[#allocation27_spill]] %s18994_s2 }
   0x4   :  { %19047 = sst [smem:[#allocation28_spill]] %s18995_s3 }
   0x5   :  { %19048 = sst [smem:[#allocation29_spill]] %s18996_s4 }
   0x6   :  { %19049 = sst [smem:[#allocation30_spill]] %s18997_s5 }
   0x7   :  { %19050 = sst [smem:[#allocation31_spill]] %s18998_s6 }
   0x8   :  { %19051 = sst [smem:[#allocation32_spill]] %s18999_s7 }
   0x9   :  { %19052 = sst [smem:[#allocation33_spill]] %s19000_s8 }
   0xa   :  { %19053 = sst [smem:[#allocation34_spill]] %s19001_s9 }
   0xb   :  { %19054 = sst [smem:[#allocation35_spill]] %s19002_s10 }
   0xc   :  { %19055 = sst [smem:[#allocation36_spill]] %s19003_s11 }
   0xd   :  { %19056 = sst [smem:[#allocation37_spill]] %s19004_s12 }
   0xe   :  { %19057 = sst [smem:[#allocation38_spill]] %s19005_s13 }
   0xf   :  { %19058 = sst [smem:[#allocation39_spill]] %s19007_s15 }
  0x10   :  { %19059 = sst [smem:[#allocation40_spill]] %s19008_s16 }
  0x11   :  { %19060 = sst [smem:[#allocation41_spill]] %s19009_s17 }
  0x12   :  { %19061 = sst [smem:[#allocation42_spill]] %s19010_s18 }
  0x13   :  { %19062 = sst [smem:[#allocation43_spill]] %s19012_s20 }
  0x14   :  { %19063 = sst [smem:[#allocation44_spill]] %s19013_s21 }
  0x15   :  { %19064 = sst [smem:[#allocation45_spill]] %s19014_s22 }
  0x16   :  { %19065 = sst [smem:[#allocation46_spill]] %s19016_s24 }
  0x17   :  { %31 = vsyncpa [#allocation4], 0 }
  0x18   :  { %33 = vsyncpa [#allocation4 + $0x1], 0 }
  0x19   :  { %34 = vsyncpa [#allocation7], 0 }
  0x1a   :  { %35 = vsyncpa [#allocation10], 0 }
  0x1b   :  { %36 = vsyncpa [#allocation13], 0 }
  0x1c   :  { %37 = vsyncpa [#allocation16], 0 }
  0x1d   :  { %38 = vsyncpa [#allocation5], 0 }
  0x1e   :  { %40 = vsyncpa [#allocation5 + $0x1], 0  ;;  %s16799_s27 = smov 0   ;;  %s16801_s28 = smov 0  }
  0x1f   :  { %s16803_s6 = smov 0   ;;  %s16805_s2 = smov 0  }
  0x20 LB: > { %s16650_s14 = smov [#allocation6]   ;;  %s16820_s0 = sadd.s32 4294967295, %s16648_s2   ;;  %s16648_s2 = sphi %s16805_s2, %s19113_s2   ;;  %s16644_s6 = sphi %s16803_s6, %s19112_s6   ;;  %s16640_s28 = sphi %s16801_s28, %s19111_s28   ;;  %s16636_s27 = sphi %s16799_s27, %s19110_s27  }
  0x21   : > { %s603_s29 = sshll.u32 %s16650_s14, 4  ;;  %p11732_p0 = scmp.ge.s32.totalorder %s16648_s2, 1  ;;  %s16825_s29 = int_to_ptr.vmem [resolvable:$true] %s603_s29 }
  0x22   : > { %p19033_p1 = scmp.eq.s32.totalorder %s16820_s0, 0  ;;  %p591_p2 = scmp.lt.s32.totalorder %s16648_s2, 3 }
  0x23   : > { %s16651_s30 = smov [#allocation9]   ;;  %s16652_s8 = smov [#allocation12]  }
  0x24   : > { %p16827_p3 = pnand %p11732_p0, %p591_p2  ;;  %s641_s3 = sshll.u32 %s16651_s30, 4  ;;  %s16840_s3 = int_to_ptr.vmem [resolvable:$true] %s641_s3 }
  0x25   : > { %s16842_s4 = sshll.u32 %s16652_s8, 4  ;;  %s19068_s26 = sld [smem:[#allocation27_spill]]  ;;  %s693_s4 = int_to_ptr.vmem [resolvable:$true] %s16842_s4 }
  0x26   : > { %s19066_s7 = scalar_select %p16827_p3, 1, 0 }
  0x27   : > { %p16209_p5 = pneg %p16827_p3 }
  0x29   : > { %p16836_p6 = pnand %p16209_p5, %p19033_p1 }
  0x2b   : > { %s16312_s14 = scalar_lea.hbm %s19068_s26, 51200  ;;  %p16852_p8 = pneg %p16836_p6 }
  0x2c   : > { %p16313_p7 = scmp.ne.s32.totalorder %s19068_s26, %s16312_s14  ;;  %p16319_p11 = scmp.lt.u32.totalorder %s16312_s14, %s19068_s26 }
  0x2e   : > { %p16315_p9 = pnand %p16852_p8, %p16313_p7 }
  0x30   : > { %p16316_p10 = pneg %p16315_p9 }
  0x32   : > { %p16321_p12 = pnand %p16319_p11, %p16316_p10 }
  0x34   : > { %16324 = shalt.err (!%p16321_p12)
}
  0x35   : > { %s16325_s21 = scalar_lea.vmem %s16825_s29, 51200  ;;  %p16333_p5 = scmp.lt.s32.totalorder %s16825_s29, %s16825_s29 }
  0x36   : > { %p16326_p13 = scmp.ne.s32.totalorder %s16825_s29, %s16325_s21  ;;  %p16334_p4 = scmp.lt.s32.totalorder %s16325_s21, %s16325_s21 }
  0x38   : > { %p16328_p0 = pnand %p16326_p13, %p16852_p8  ;;  %p16335_p7 = por %p16334_p4, %p16333_p5 }
  0x3a   : > { %p16329_p2 = pneg %p16328_p0 }
  0x3c   : > { %p16336_p9 = pnand %p16335_p7, %p16329_p2 }
  0x3e   : > { %16339 = shalt.err (!%p16336_p9)
}
  0x3f   : > { %s16653_s24 = smov 256   ;;  %s19035_s16 = smov 16  }
  0x40   : > { %16212 = dma.hbm_to_vmem [thread:$0]  (!%p16836_p6), %s19068_s26, 51200, %s16825_s29, [#allocation7], %s16653_s24, %s16653_s24, %s19035_s16  }
  0x41   : > { %s19070_s22 = sld [smem:[#allocation33_spill]] }
  0x47   : > { %s16340_s13 = scalar_lea.hbm %s19070_s22, 576 }
  0x48   : > { %p16341_p4 = scmp.ne.s32.totalorder %s19070_s22, %s16340_s13  ;;  %p16347_p12 = scmp.lt.u32.totalorder %s16340_s13, %s19070_s22 }
  0x4a   : > { %p16343_p10 = pnand %p16341_p4, %p16852_p8 }
  0x4c   : > { %p16344_p11 = pneg %p16343_p10 }
  0x4e   : > { %p16349_p13 = pnand %p16347_p12, %p16344_p11 }
  0x50   : > { %16352 = shalt.err (!%p16349_p13)
}
  0x51   : > { %s16353_s29 = scalar_lea.vmem %s16840_s3, 576  ;;  %p16361_p7 = scmp.lt.s32.totalorder %s16840_s3, %s16840_s3 }
  0x52   : > { %p16354_p0 = scmp.ne.s32.totalorder %s16840_s3, %s16353_s29  ;;  %p16362_p9 = scmp.lt.s32.totalorder %s16353_s29, %s16353_s29 }
  0x54   : > { %p16356_p2 = pnand %p16354_p0, %p16852_p8  ;;  %p16363_p4 = por %p16362_p9, %p16361_p7 }
  0x56   : > { %p16357_p5 = pneg %p16356_p2 }
  0x58   : > { %p16364_p10 = pnand %p16363_p4, %p16357_p5 }
  0x5a   : > { %16367 = shalt.err (!%p16364_p10)
}
  0x5b   : > { %s16655_s17 = smov 64   ;;  %s16656_s12 = smov 4  }
  0x5c   : > { %16218 = dma.hbm_to_vmem [thread:$0]  (!%p16836_p6), %s19070_s22, 576, %s16840_s3, [#allocation10], %s16655_s17, %s16655_s17, %s16656_s12  }
  0x5d   : > { %s19071_s18 = sld [smem:[#allocation42_spill]] }
  0x63   : > { %s16368_s5 = scalar_lea.hbm %s19071_s18, 16 }
  0x64   : > { %p16369_p11 = scmp.ne.s32.totalorder %s19071_s18, %s16368_s5  ;;  %p16375_p0 = scmp.lt.u32.totalorder %s16368_s5, %s19071_s18 }
  0x66   : > { %p16371_p12 = pnand %p16369_p11, %p16852_p8 }
  0x68   : > { %p16372_p13 = pneg %p16371_p12 }
  0x6a   : > { %p16377_p2 = pnand %p16375_p0, %p16372_p13 }
  0x6c   : > { %16380 = shalt.err (!%p16377_p2)
}
  0x6d   : > { %s16381_s13 = scalar_lea.vmem %s693_s4, 16  ;;  %s16388_s3 = scalar_lea.vmem %s693_s4, 32 }
  0x6e   : > { %p16382_p5 = scmp.ne.s32.totalorder %s693_s4, %s16381_s13  ;;  %p16389_p4 = scmp.lt.s32.totalorder %s693_s4, %s693_s4 }
  0x6f   : > { %p16390_p10 = scmp.lt.s32.totalorder %s16388_s3, %s16381_s13 }
  0x70   : > { %p16384_p7 = pnand %p16382_p5, %p16852_p8 }
  0x71   : > { %p16391_p1 = por %p16390_p10, %p16389_p4 }
  0x72   : > { %p16385_p9 = pneg %p16384_p7 }
  0x74   : > { %p16392_p3 = pnand %p16391_p1, %p16385_p9 }
  0x76   : > { %16395 = shalt.err (!%p16392_p3)
}
  0x77   : > { %16224 = dma.hbm_to_vmem [thread:$0]  (!%p16836_p6), %s19071_s18, 16, %s693_s4, [#allocation13]  }
  0x78   : > { %s16657_s15 = smov [#allocation15]   ;;  %s16658_s1 = smov [#allocation8]  }
  0x79   : > { %s714_s24 = sshll.u32 %s16657_s15, 4  ;;  %s622_s5 = sshll.u32 %s16658_s1, 4  ;;  %s715_s24 = int_to_ptr.vmem [resolvable:$true] %s714_s24  ;;  %s623_s5 = int_to_ptr.vmem [resolvable:$true] %s622_s5 }
  0x7a   : > { %s19072_s20 = sld [smem:[#allocation43_spill]] }
  0x80   : > { %s16396_s21 = scalar_lea.hbm %s19072_s20, 16 }
  0x81   : > { %p16397_p1 = scmp.ne.s32.totalorder %s19072_s20, %s16396_s21  ;;  %p16403_p12 = scmp.lt.u32.totalorder %s16396_s21, %s19072_s20 }
  0x83   : > { %p16399_p3 = pnand %p16397_p1, %p16852_p8 }
  0x85   : > { %p16400_p11 = pneg %p16399_p3 }
  0x87   : > { %p16405_p13 = pnand %p16403_p12, %p16400_p11 }
  0x89   : > { %16408 = shalt.err (!%p16405_p13)
}
  0x8a   : > { %s16409_s4 = scalar_lea.vmem %s715_s24, 16  ;;  %s16416_s12 = scalar_lea.vmem %s715_s24, 32 }
  0x8b   : > { %p16410_p0 = scmp.ne.s32.totalorder %s715_s24, %s16409_s4  ;;  %p16417_p7 = scmp.lt.s32.totalorder %s715_s24, %s715_s24 }
  0x8c   : > { %p16418_p9 = scmp.lt.s32.totalorder %s16416_s12, %s16409_s4 }
  0x8d   : > { %p16412_p2 = pnand %p16410_p0, %p16852_p8 }
  0x8e   : > { %p16419_p4 = por %p16418_p9, %p16417_p7 }
  0x8f   : > { %p16413_p5 = pneg %p16412_p2 }
  0x91   : > { %p16420_p10 = pnand %p16419_p4, %p16413_p5 }
  0x93   : > { %16423 = shalt.err (!%p16420_p10)
}
  0x94   : > { %16230 = dma.hbm_to_vmem [thread:$0]  (!%p16836_p6), %s19072_s20, 16, %s715_s24, [#allocation16]  }
  0x95   : > { %s19073_s21 = sld [smem:[#allocation30_spill]] }
  0x9b   : > { %s16424_s29 = scalar_lea.hbm %s19073_s21, 2304 }
  0x9c   : > { %p16425_p1 = scmp.ne.s32.totalorder %s19073_s21, %s16424_s29  ;;  %p16431_p12 = scmp.lt.u32.totalorder %s16424_s29, %s19073_s21 }
  0x9e   : > { %p16427_p3 = pnand %p16425_p1, %p16852_p8 }
  0xa0   : > { %p16428_p11 = pneg %p16427_p3 }
  0xa2   : > { %p16433_p13 = pnand %p16431_p12, %p16428_p11 }
  0xa4   : > { %16436 = shalt.err (!%p16433_p13)
}
  0xa5   : > { %s16437_s12 = scalar_lea.vmem %s623_s5, 2304  ;;  %p16445_p7 = scmp.lt.s32.totalorder %s623_s5, %s623_s5 }
  0xa6   : > { %p16438_p0 = scmp.ne.s32.totalorder %s623_s5, %s16437_s12  ;;  %p16446_p9 = scmp.lt.s32.totalorder %s16437_s12, %s16437_s12 }
  0xa8   : > { %p16440_p2 = pnand %p16438_p0, %p16852_p8  ;;  %p16447_p4 = por %p16446_p9, %p16445_p7 }
  0xaa   : > { %p16441_p5 = pneg %p16440_p2 }
  0xac   : > { %p16448_p10 = pnand %p16447_p4, %p16441_p5 }
  0xae   : > { %16451 = shalt.err (!%p16448_p10)
}
  0xaf   : > { %s16659_s24 = smov 128   ;;  %s16660_s15 = smov 8  }
  0xb0   : > { %16215 = dma.hbm_to_vmem [thread:$0]  (!%p16836_p6), %s19073_s21, 2304, %s623_s5, [#allocation7], %s16659_s24, %s16659_s24, %s16660_s15  }
  0xb1   : > { %s16661_s8 = smov [#allocation11]   ;;  %s19074_s11 = sld [smem:[#allocation36_spill]] }
  0xb2   : > { %s660_s29 = sshll.u32 %s16661_s8, 4  ;;  %s661_s29 = int_to_ptr.vmem [resolvable:$true] %s660_s29 }
  0xb7   : > { %s16452_s17 = scalar_lea.hbm %s19074_s11, 64 }
  0xb8   : > { %p16453_p1 = scmp.ne.s32.totalorder %s19074_s11, %s16452_s17  ;;  %p16459_p12 = scmp.lt.u32.totalorder %s16452_s17, %s19074_s11 }
  0xba   : > { %p16455_p3 = pnand %p16453_p1, %p16852_p8 }
  0xbc   : > { %p16456_p11 = pneg %p16455_p3 }
  0xbe   : > { %p16461_p13 = pnand %p16459_p12, %p16456_p11 }
  0xc0   : > { %16464 = shalt.err (!%p16461_p13)
}
  0xc1   : > { %s16465_s5 = scalar_lea.vmem %s661_s29, 64  ;;  %p16473_p7 = scmp.lt.s32.totalorder %s661_s29, %s661_s29 }
  0xc2   : > { %p16466_p0 = scmp.ne.s32.totalorder %s661_s29, %s16465_s5  ;;  %p16474_p9 = scmp.lt.s32.totalorder %s16465_s5, %s16465_s5 }
  0xc4   : > { %p16468_p2 = pnand %p16466_p0, %p16852_p8  ;;  %p16475_p4 = por %p16474_p9, %p16473_p7 }
  0xc6   : > { %p16469_p5 = pneg %p16468_p2 }
  0xc8   : > { %p16476_p10 = pnand %p16475_p4, %p16469_p5 }
  0xca   : > { %16479 = shalt.err (!%p16476_p10)
}
  0xcb   : > { %s16662_s24 = smov 1   ;;  %s19075_s15 = smov 16  }
  0xcc   : > { %16221 = dma.hbm_to_vmem [thread:$0]  (!%p16836_p6), %s19074_s11, 64, %s661_s29, [#allocation10], %s19075_s15, %s19075_s15, %s16662_s24  }
  0xcd   : > { %s16663_s1 = smov [#allocation14]   ;;  %s16664_s8 = smov [#allocation17]  }
  0xce   : > { %s703_s14 = sshll.u32 %s16663_s1, 4  ;;  %s731_s13 = sshll.u32 %s16664_s8, 4  ;;  %s704_s14 = int_to_ptr.vmem [resolvable:$true] %s703_s14  ;;  %s732_s13 = int_to_ptr.vmem [resolvable:$true] %s731_s13 }
  0xcf   : > { %s16480_s4 = scalar_lea.hbm %s19011_s19, 128 }
  0xd0   : > { %p16481_p1 = scmp.ne.s32.totalorder %s19011_s19, %s16480_s4  ;;  %p16487_p12 = scmp.lt.u32.totalorder %s16480_s4, %s19011_s19 }
  0xd2   : > { %p16483_p3 = pnand %p16481_p1, %p16852_p8 }
  0xd4   : > { %p16484_p11 = pneg %p16483_p3 }
  0xd6   : > { %p16489_p13 = pnand %p16487_p12, %p16484_p11 }
  0xd8   : > { %16492 = shalt.err (!%p16489_p13)
}
  0xd9   : > { %s16493_s29 = scalar_lea.vmem %s704_s14, 128  ;;  %p16501_p7 = scmp.lt.s32.totalorder %s704_s14, %s704_s14 }
  0xda   : > { %p16494_p0 = scmp.ne.s32.totalorder %s704_s14, %s16493_s29  ;;  %p16502_p9 = scmp.lt.s32.totalorder %s16493_s29, %s16493_s29 }
  0xdc   : > { %p16496_p2 = pnand %p16494_p0, %p16852_p8  ;;  %p16503_p4 = por %p16502_p9, %p16501_p7 }
  0xde   : > { %p16497_p5 = pneg %p16496_p2 }
  0xe0   : > { %p16504_p10 = pnand %p16503_p4, %p16497_p5 }
  0xe2   : > { %16507 = shalt.err (!%p16504_p10)
}
  0xe3   : > { %16227 = dma.hbm_to_vmem [thread:$0]  (!%p16836_p6), %s19011_s19, 128, %s704_s14, [#allocation13]  }
  0xe4   : > { %s16508_s1 = scalar_lea.hbm %s19015_s23, 16 }
  0xe5   : > { %p16509_p1 = scmp.ne.s32.totalorder %s19015_s23, %s16508_s1  ;;  %p16515_p12 = scmp.lt.u32.totalorder %s16508_s1, %s19015_s23 }
  0xe7   : > { %p16511_p3 = pnand %p16509_p1, %p16852_p8 }
  0xe9   : > { %p16512_p11 = pneg %p16511_p3 }
  0xeb   : > { %p16517_p13 = pnand %p16515_p12, %p16512_p11 }
  0xed   : > { %16520 = shalt.err (!%p16517_p13)
}
  0xee   : > { %s16521_s12 = scalar_lea.vmem %s732_s13, 16  ;;  %s16528_s14 = scalar_lea.vmem %s732_s13, 32 }
  0xef   : > { %p16522_p0 = scmp.ne.s32.totalorder %s732_s13, %s16521_s12  ;;  %p16529_p7 = scmp.lt.s32.totalorder %s732_s13, %s732_s13 }
  0xf0   : > { %p16530_p9 = scmp.lt.s32.totalorder %s16528_s14, %s16521_s12 }
  0xf1   : > { %p16524_p2 = pnand %p16522_p0, %p16852_p8 }
  0xf2   : > { %p16531_p4 = por %p16530_p9, %p16529_p7 }
  0xf3   : > { %p16525_p5 = pneg %p16524_p2 }
  0xf5   : > { %p16532_p10 = pnand %p16531_p4, %p16525_p5 }
  0xf7   : > { %16535 = shalt.err (!%p16532_p10)
}
  0xf8   : > { %16233 = dma.hbm_to_vmem [thread:$0]  (!%p16836_p6), %s19015_s23, 16, %s732_s13, [#allocation16]  }
  0xf9   : > { %s11731_s30 = sadd.s32 4294967294, %s16648_s2   ;;  %s17010_s25 = sadd.s32 1, %s16648_s2  }
  0xfa   : > { %s79_s29 = sadd.s32 1, %s16644_s6  ;;  %s76_s24 = ssub.s32 %s16648_s2, %s17010_s25 }
  0xfb   : > { %p86_p8 = scmp.ne.s32.totalorder %s16644_s6, %s16640_s28  ;;  %p77_p1 = scmp.eq.s32.totalorder %s76_s24, 0 }
  0xfc   : > { %p87_p3 = scmp.eq.s32.totalorder %s16648_s2, 0  ;;  %p92_p11 = scmp.ne.s32.totalorder %s16640_s28, %s16636_s27 }
  0xfd   : > { %p578_p12 = scmp.eq.s32.totalorder %s16820_s0, 1  ;;  %p19076_p0 = scmp.eq.s32.totalorder %s16820_s0, 0 }
  0xfe   : > { %s17022_s15 = scalar_select %p77_p1, %s16644_s6, %s79_s29  }
  0xff   : > { %p88_p13 = por %p87_p3, %p86_p8  ;;  %p17026_p2 = por %p19076_p0, %p92_p11 }
 0x100   : > { %p17030_p6 = por %p578_p12, %p86_p8  ;;  %p584_p5 = scmp.eq.s32.totalorder %s11731_s30, 1 }
 0x101   : > { %p16250_p7 = scmp.lt.s32.totalorder %s16648_s2, 2  ;;  %s750_s16 = sand.u32 1, %s16644_s6  }
 0x102   : > { %s19078_s13 = scalar_select %p17030_p6, 1, 0 }
 0x103   : > { %p17036_p9 = por %p584_p5, %p92_p11  ;;  %s11742_s8 = sshll.u32 %s16648_s2, 4 }
 0x104   : > { %s19080_s4 = sld [smem:[#allocation26_spill]]  ;;  %s753_s14 = scalar_lea.vmem [#allocation3], %s750_s16 }
 0x105   : > { %s19079_s1 = scalar_select %p17036_p9, 1, 0 }
 0x106   : > { %s760_s5 = sshll.u32 %s753_s14, 4  ;;  %p17048_p4 = pnand %p16250_p7, %p88_p13  ;;  %s17046_s5 = int_to_ptr.vmem [resolvable:$true] %s760_s5 }
 0x107   : > { %s751_s30 = scalar_lea.sflag [#allocation4], %s750_s16 }
 0x108   : > { %p16538_p8 = pneg %p17048_p4 }
 0x10a   : > { %s17044_s12 = scalar_lea.hbm %s19080_s4, %s11742_s8  ;;  %s16541_s3 = scalar_lea.hbm %s19080_s4, 32 }
 0x10b   : > { %s16536_s29 = scalar_lea.hbm %s17044_s12, 16  ;;  %p16542_p11 = scmp.lt.u32.totalorder %s17044_s12, %s19080_s4 }
 0x10c   : > { %p16537_p10 = scmp.ne.s32.totalorder %s17044_s12, %s16536_s29  ;;  %p16543_p12 = scmp.lt.u32.totalorder %s16541_s3, %s16536_s29 }
 0x10d   : > { %p16545_p0 = scmp.lt.u32.totalorder %s16536_s29, %s17044_s12 }
 0x10e   : > { %p16539_p1 = pnand %p16538_p8, %p16537_p10  ;;  %p16544_p13 = por %p16543_p12, %p16542_p11 }
 0x110   : > { %p16540_p3 = pneg %p16539_p1  ;;  %p16546_p5 = por %p16545_p0, %p16544_p13 }
 0x112   : > { %p16547_p7 = pnand %p16546_p5, %p16540_p3 }
 0x114   : > { %16550 = shalt.err (!%p16547_p7)
}
 0x115   : > { %s16551_s16 = scalar_lea.vmem %s17046_s5, 16  ;;  %s16665_s24 = smov [#allocation3]  }
 0x116   : > { %p16552_p10 = scmp.ne.s32.totalorder %s17046_s5, %s16551_s16  ;;  %s16556_s8 = sshll.u32 %s16665_s24, 4  ;;  %s16557_s8 = int_to_ptr.vmem [resolvable:$false] %s16556_s8 }
 0x117   : > { %s16558_s17 = scalar_lea.vmem %s16557_s8, 32  ;;  %p16559_p6 = scmp.lt.s32.totalorder %s17046_s5, %s16557_s8 }
 0x118   : > { %p16554_p1 = pnand %p16552_p10, %p16538_p8  ;;  %p16560_p11 = scmp.lt.s32.totalorder %s16558_s17, %s16551_s16 }
 0x11a   : > { %p16555_p9 = pneg %p16554_p1  ;;  %p16561_p12 = por %p16560_p11, %p16559_p6 }
 0x11c   : > { %p16562_p13 = pnand %p16561_p12, %p16555_p9 }
 0x11e   : > { %16565 = shalt.err (!%p16562_p13)
}
 0x11f   : > { %16237 = dma.hbm_to_vmem [thread:$0]  (!%p17048_p4), %s17044_s12, 16, %s17046_s5, %s751_s30  }
 0x120   : > { %p19082_p3 = scmp.ne.s32.totalorder %s19066_s7, 0 }
 0x121   : > { %s17080_s29 = sand.u32 (!%p19082_p3), 1, %s16640_s28  }
 0x122   : > { %769 = sbr.rel (%p19082_p3) target bundleno = 5212 (0x145c), region = 116  ;;  %s772_s3 = scalar_lea.sflag (!%p19082_p3), [#allocation4], %s17080_s29 }
 0x129   : > { %16611 = dma.done.wait (%p17026_p2), %s772_s3, 16  }
 0x12a   : > { %16613 = vsyncadd (%p17026_p2), %s772_s3, 4294967280  ;;  %p19083_p6 = scmp.eq.s32.totalorder %s16820_s0, 0 }
 0x12c   : > { %16615 = dma.done.wait (%p19083_p6), [#allocation7], 53504   ;;  %p19084_p9 = pmov %p19083_p6 }
 0x12d   : > { %p19085_p4 = pmov %p19083_p6 }
 0x12e   : > { %16617 = vsyncadd (%p19084_p9), [#allocation7], 4294913792 }
 0x12f   : > { %16619 = dma.done.wait (%p19085_p4), [#allocation10], 640   ;;  %p19086_p8 = pmov %p19085_p4 }
 0x130   : > { %p19087_p0 = pmov %p19085_p4 }
 0x131   : > { %16621 = vsyncadd (%p19086_p8), [#allocation10], 4294966656 }
 0x132   : > { %16623 = dma.done.wait (%p19087_p0), [#allocation13], 144   ;;  %p19088_p5 = pmov %p19087_p0 }
 0x133   : > { %p19089_p2 = pmov %p19087_p0 }
 0x134   : > { %16625 = vsyncadd (%p19088_p5), [#allocation13], 4294967152 }
 0x135   : > { %16627 = dma.done.wait (%p19089_p2), [#allocation16], 32   ;;  %p19090_p7 = pmov %p19087_p0 }
 0x136   : > { %p874_p10 = scmp.lt.s32.totalorder %s16820_s0, 1  ;;  %s19091_s18 = sld [smem:[#allocation25_spill]]  ;;  %v1035_v26 = vld [vmem:[#allocation6 + $0x88] sm:$0xff]  ;;  %v1034_v51 = vld [vmem:[#allocation6 + $0x80] sm:$0xff]  ;;  %v1037_v53 = vld [vmem:[#allocation6 + $0x98] sm:$0xff]  ;;  %vm1182_vm0 = vcmask 1043456  }
 0x137   : > { %16629 = vsyncadd (%p19090_p7), [#allocation16], 4294967264  ;;  %1114 = vmatprep.mubr.f32.mxu1 %v1035_v26  ;;  %v912_v31 = vld [vmem:[#allocation6 + $0x8] sm:$0xff]  ;;  %v911_v52 = vld [vmem:[#allocation6] sm:$0xff]  ;;  %s19092_s8 = sld [smem:[#allocation28_spill]]  ;;  %vm1157_vm1 = vcmask 31744  }
 0x138   : > { %s875_s7 = scalar_select %p874_p10, %s16820_s0, 1  ;;  %991 = vmatprep.mubr.f32.mxu0 %v912_v31  ;;  %v914_v54 = vld [vmem:[#allocation6 + $0x18] sm:$0xff]  ;;  %v1036_v55 = vld [vmem:[#allocation6 + $0x90] sm:$0xff]  ;;  %v1039_v57 = vld [vmem:[#allocation6 + $0xa8] sm:$0xff]  ;;  %vm7565_vm2 = vcmask 523264   ;;  %vm7734_vm11 = vcmask 64512  }
 0x139   : > { %v913_v56 = vld [vmem:[#allocation6 + $0x10] sm:$0xff]  ;;  %v916_v58 = vld [vmem:[#allocation6 + $0x28] sm:$0xff]  ;;  %v1038_v59 = vld [vmem:[#allocation6 + $0xa0] sm:$0xff]  ;;  %s19093_s17 = sld [smem:[#allocation29_spill]]  ;;  %s19094_s24 = sld [smem:[#allocation31_spill]]  ;;  %vm16667_vm12 = vmmov 0  }
 0x13a   : > { %s12123_s20 = sshll.u32 %s875_s7, 8  ;;  %v915_v60 = vld [vmem:[#allocation6 + $0x20] sm:$0xff]  ;;  %v1041_v61 = vld [vmem:[#allocation6 + $0xb8] sm:$0xff]  ;;  %v1040_v63 = vld [vmem:[#allocation6 + $0xb0] sm:$0xff]  ;;  %vm9113_vm15 = vcmask 130048   ;;  %s19096_s9 = sld [smem:[#allocation34_spill]] }
 0x13b   : > { %v918_v62 = vld [vmem:[#allocation6 + $0x38] sm:$0xff]  ;;  %v917_v0 = vld [vmem:[#allocation6 + $0x30] sm:$0xff]  ;;  %v1428_v31 = vld [vmem:[#allocation6 + $0x120] sm:$0xff]  ;;  %s19097_s10 = sld [smem:[#allocation35_spill]]  ;;  %s19098_s4 = sld [smem:[#allocation37_spill]] }
 0x13c   : > { %s17109_s30 = scalar_lea.vmem %s19091_s18, %s12123_s20  ;;  %v1427_v26 = vld [vmem:[#allocation6 + $0x118] sm:$0xff]  ;;  %s19095_s20 = sld [smem:[#allocation32_spill]] }
 0x13d   : > { %v895_v1 = vld [vmem:[%s17109_s30 + $0x80] sm:$0xff]  ;;  %v896_v2 = vld [vmem:[%s17109_s30 + $0x88] sm:$0xff]  ;;  %v897_v6 = vld [vmem:[%s17109_s30 + $0x90] sm:$0xff]  ;;  %s19100_s5 = sld [smem:[#allocation41_spill]]  ;;  %s19102_s7 = scalar_lea.vmem [#allocation3], %s17080_s29 }
 0x13e   : > { %v879_v3 = vld [vmem:[%s17109_s30] sm:$0xff]  ;;  %v17114_v4 = vpack.c.bf16 %v896_v2, %v895_v1  ;;  %v880_v5 = vld [vmem:[%s17109_s30 + $0x8] sm:$0xff]  ;;  %v898_v7 = vld [vmem:[%s17109_s30 + $0x98] sm:$0xff]  ;;  %s19104_s3 = sld [smem:[#allocation40_spill]]  ;;  %s19105_s18 = sld [smem:[#allocation44_spill]] }
 0x13f   : > { %v17119_v8 = vpack.c.bf16 %v880_v5, %v879_v3  ;;  %v17121_v9 = vpack.c.bf16 %v898_v7, %v897_v6  ;;  %v881_v10 = vld [vmem:[%s17109_s30 + $0x10] sm:$0xff]  ;;  %v882_v11 = vld [vmem:[%s17109_s30 + $0x18] sm:$0xff]  ;;  %v899_v12 = vld [vmem:[%s17109_s30 + $0xa0] sm:$0xff]  ;;  %s12120_s16 = sshll.u32 %s16820_s0, 4  ;;  %s873_s14 = scalar_lea.vmem [#allocation18], %s17080_s29 }
 0x140   : > { %14904 = vmatprep.subr.bf16.mxu1 %v17114_v4  ;;  %v900_v13 = vld [vmem:[%s17109_s30 + $0xa8] sm:$0xff]  ;;  %14872 = vmatprep.subr.bf16.mxu0 %v17114_v4  ;;  %v17130_v14 = vpack.c.bf16 %v882_v11, %v881_v10  ;;  %v883_v16 = vld [vmem:[%s17109_s30 + $0x20] sm:$0xff]  ;;  %v901_v18 = vld [vmem:[%s17109_s30 + $0xb0] sm:$0xff]  ;;  %p19107_p11 = scmp.ne.s32.totalorder %s19078_s13, 0  ;;  %s16670_s0 = smov [#allocation18]  }
 0x141   : > { %14906 = vmatpush3.bf16.msra.mxu1 %v17119_v8  ;;  %14874 = vmatpush3.bf16.msra.mxu0 %v17119_v8  ;;  %v17134_v15 = vpack.c.bf16 %v900_v13, %v899_v12  ;;  %v884_v17 = vld [vmem:[%s17109_s30 + $0x28] sm:$0xff]  ;;  %v902_v19 = vld [vmem:[%s17109_s30 + $0xb8] sm:$0xff]  ;;  %v885_v22 = vld [vmem:[%s17109_s30 + $0x30] sm:$0xff] }
 0x142   : > { %14908 = vmatprep.subr.bf16.mxu1 %v17121_v9  ;;  %14876 = vmatprep.subr.bf16.mxu0 %v17121_v9  ;;  %v17142_v20 = vpack.c.bf16 %v884_v17, %v883_v16  ;;  %v17146_v21 = vpack.c.bf16 %v902_v19, %v901_v18  ;;  %v886_v23 = vld [vmem:[%s17109_s30 + $0x38] sm:$0xff]  ;;  %v903_v24 = vld [vmem:[%s17109_s30 + $0xc0] sm:$0xff]  ;;  %v904_v25 = vld [vmem:[%s17109_s30 + $0xc8] sm:$0xff] }
 0x143   : > { %v17154_v27 = vpack.c.bf16 %v886_v23, %v885_v22  ;;  %v17158_v28 = vpack.c.bf16 %v904_v25, %v903_v24  ;;  %v887_v29 = vld [vmem:[%s17109_s30 + $0x40] sm:$0xff]  ;;  %v888_v30 = vld [vmem:[%s17109_s30 + $0x48] sm:$0xff]  ;;  %v905_v32 = vld [vmem:[%s17109_s30 + $0xd0] sm:$0xff] }
 0x144   : > { %v906_v33 = vld [vmem:[%s17109_s30 + $0xd8] sm:$0xff]  ;;  %v17166_v34 = vpack.c.bf16 %v888_v30, %v887_v29  ;;  %v889_v36 = vld [vmem:[%s17109_s30 + $0x50] sm:$0xff]  ;;  %v907_v38 = vld [vmem:[%s17109_s30 + $0xe0] sm:$0xff] }
 0x145   : > { %14910 = vmatpush3.bf16.msra.mxu1 %v17130_v14  ;;  %14878 = vmatpush3.bf16.msra.mxu0 %v17130_v14  ;;  %v17170_v35 = vpack.c.bf16 %v906_v33, %v905_v32  ;;  %v890_v37 = vld [vmem:[%s17109_s30 + $0x58] sm:$0xff]  ;;  %v908_v39 = vld [vmem:[%s17109_s30 + $0xe8] sm:$0xff]  ;;  %v891_v42 = vld [vmem:[%s17109_s30 + $0x60] sm:$0xff] }
 0x146   : > { %14912 = vmatprep.subr.bf16.mxu1 %v17134_v15  ;;  %14880 = vmatprep.subr.bf16.mxu0 %v17134_v15  ;;  %v17178_v40 = vpack.c.bf16 %v890_v37, %v889_v36  ;;  %v17182_v41 = vpack.c.bf16 %v908_v39, %v907_v38  ;;  %v892_v43 = vld [vmem:[%s17109_s30 + $0x68] sm:$0xff]  ;;  %v909_v44 = vld [vmem:[%s17109_s30 + $0xf0] sm:$0xff]  ;;  %v910_v45 = vld [vmem:[%s17109_s30 + $0xf8] sm:$0xff] }
 0x147   : > { %v17190_v46 = vpack.c.bf16 %v892_v43, %v891_v42  ;;  %v17194_v47 = vpack.c.bf16 %v910_v45, %v909_v44  ;;  %v893_v48 = vld [vmem:[%s17109_s30 + $0x70] sm:$0xff]  ;;  %v894_v49 = vld [vmem:[%s17109_s30 + $0x78] sm:$0xff]  ;;  %v1042_v3 = vld [vmem:[#allocation6 + $0xc0] sm:$0xff]  ;;  %s19099_s30 = sld [smem:[#allocation39_spill]] }
 0x148   : > { %v17200_v50 = vpack.c.bf16 %v894_v49, %v893_v48  ;;  %v1043_v1 = vld [vmem:[#allocation6 + $0xc8] sm:$0xff]  ;;  %v919_v5 = vld [vmem:[#allocation6 + $0x40] sm:$0xff]  ;;  %v1045_v6 = vld [vmem:[#allocation6 + $0xd8] sm:$0xff] }
 0x149   : > { %14914 = vmatpush3.bf16.msra.mxu1 %v17142_v20  ;;  %14882 = vmatpush3.bf16.msra.mxu0 %v17142_v20  ;;  %v920_v2 = vld [vmem:[#allocation6 + $0x48] sm:$0xff]  ;;  %v922_v7 = vld [vmem:[#allocation6 + $0x58] sm:$0xff]  ;;  %v1044_v10 = vld [vmem:[#allocation6 + $0xd0] sm:$0xff] }
 0x14a   : > { %14916 = vmatprep.subr.bf16.mxu1 %v17146_v21  ;;  %14884 = vmatprep.subr.bf16.mxu0 %v17146_v21  ;;  %v921_v11 = vld [vmem:[#allocation6 + $0x50] sm:$0xff]  ;;  %v1047_v12 = vld [vmem:[#allocation6 + $0xe8] sm:$0xff]  ;;  %v1046_v16 = vld [vmem:[#allocation6 + $0xe0] sm:$0xff] }
 0x14b   : > { %v924_v13 = vld [vmem:[#allocation6 + $0x68] sm:$0xff]  ;;  %v923_v17 = vld [vmem:[#allocation6 + $0x60] sm:$0xff]  ;;  %v1049_v18 = vld [vmem:[#allocation6 + $0xf8] sm:$0xff] }
 0x14c   : > { %v926_v19 = vld [vmem:[#allocation6 + $0x78] sm:$0xff]  ;;  %v1048_v22 = vld [vmem:[#allocation6 + $0xf0] sm:$0xff]  ;;  %v1425_v24 = vld [vmem:[#allocation6 + $0x108] sm:$0xff] }
 0x14d   : > { %14918 = vmatpush3.bf16.msra.mxu1 %v17154_v27  ;;  %14886 = vmatpush3.bf16.msra.mxu0 %v17154_v27  ;;  %v925_v23 = vld [vmem:[#allocation6 + $0x70] sm:$0xff]  ;;  %v1424_v25 = vld [vmem:[#allocation6 + $0x100] sm:$0xff]  ;;  %v1429_v30 = vld [vmem:[#allocation6 + $0x128] sm:$0xff] }
 0x14e   : > { %14920 = vmatprep.subr.bf16.mxu1 %v17158_v28  ;;  %14888 = vmatprep.subr.bf16.mxu0 %v17158_v28  ;;  %v1426_v29 = vld [vmem:[#allocation6 + $0x110] sm:$0xff]  ;;  %v1431_v32 = vld [vmem:[#allocation6 + $0x138] sm:$0xff]  ;;  %v1433_v36 = vld [vmem:[#allocation6 + $0x148] sm:$0xff] }
 0x14f   : > { %v1430_v33 = vld [vmem:[#allocation6 + $0x130] sm:$0xff]  ;;  %v1432_v37 = vld [vmem:[#allocation6 + $0x140] sm:$0xff]  ;;  %v1435_v38 = vld [vmem:[#allocation6 + $0x158] sm:$0xff] }
 0x150   : > { %v1434_v39 = vld [vmem:[#allocation6 + $0x150] sm:$0xff]  ;;  %v1437_v42 = vld [vmem:[#allocation6 + $0x168] sm:$0xff]  ;;  %v1436_v43 = vld [vmem:[#allocation6 + $0x160] sm:$0xff] }
 0x151   : > { %14922 = vmatpush3.bf16.msra.mxu1 %v17166_v34  ;;  %14890 = vmatpush3.bf16.msra.mxu0 %v17166_v34  ;;  %v1439_v44 = vld [vmem:[#allocation6 + $0x178] sm:$0xff]  ;;  %v1438_v45 = vld [vmem:[#allocation6 + $0x170] sm:$0xff]  ;;  %v1689_v48 = vld [vmem:[#allocation6 + $0x188] sm:$0xff] }
 0x152   : > { %14924 = vmatprep.subr.bf16.mxu1 %v17170_v35  ;;  %14892 = vmatprep.subr.bf16.mxu0 %v17170_v35  ;;  %v1688_v49 = vld [vmem:[#allocation6 + $0x180] sm:$0xff] }
 0x155   : > { %14926 = vmatpush3.bf16.msra.mxu1 %v17178_v40  ;;  %14894 = vmatpush3.bf16.msra.mxu0 %v17178_v40 }
 0x156   : > { %14928 = vmatprep.subr.bf16.mxu1 %v17182_v41  ;;  %14896 = vmatprep.subr.bf16.mxu0 %v17182_v41 }
 0x159   : > { %14930 = vmatpush3.bf16.msra.mxu1 %v17190_v46  ;;  %14898 = vmatpush3.bf16.msra.mxu0 %v17190_v46 }
 0x15a   : > { %14932 = vmatprep.subr.bf16.mxu1 %v17194_v47  ;;  %14900 = vmatprep.subr.bf16.mxu0 %v17194_v47 }
 0x15d   : > { %14934 = vmatpush3.bf16.msra.mxu1 %v17200_v50  ;;  %14902 = vmatpush3.bf16.msra.mxu0 %v17200_v50 }
 0x15e   : > { %14936 = vmatprep.subr.bf16.mxu1 %v17114_v4 }
 0x160   : > { %1115 = vmatmul.mubr.f32.vlgmr.msra.gmra.mrb[0].mxu1 %v1034_v51  ;;  %992 = vmatmul.mubr.f32.vlgmr.msra.gmra.mrb[0].mxu0 %v911_v52  ;;  %v1691_v51 = vld [vmem:[#allocation6 + $0x198] sm:$0xff]  ;;  %v1690_v52 = vld [vmem:[#allocation6 + $0x190] sm:$0xff] }
 0x161   : > { %14938 = vmatpush3.bf16.msra.mxu1 %v17119_v8  ;;  %1119 = vmatprep.mubr.f32.mxu1 %v1037_v53  ;;  %v1693_v53 = vld [vmem:[#allocation6 + $0x1a8] sm:$0xff] }
 0x162   : > { %14940 = vmatprep.subr.bf16.mxu1 %v17121_v9  ;;  %996 = vmatprep.mubr.f32.mxu0 %v914_v54  ;;  %v1692_v54 = vld [vmem:[#allocation6 + $0x1a0] sm:$0xff] }
 0x164   : > { %1120 = vmatmul.mubr.f32.gmra.mrb[2].mxu1 %v1036_v55  ;;  %997 = vmatmul.mubr.f32.gmra.mrb[2].mxu0 %v913_v56  ;;  %v1695_v55 = vld [vmem:[#allocation6 + $0x1b8] sm:$0xff]  ;;  %v1694_v56 = vld [vmem:[#allocation6 + $0x1b0] sm:$0xff] }
 0x165   : > { %14942 = vmatpush3.bf16.msra.mxu1 %v17130_v14  ;;  %1124 = vmatprep.mubr.f32.mxu1 %v1039_v57  ;;  %v1697_v57 = vld [vmem:[#allocation6 + $0x1c8] sm:$0xff] }
 0x166   : > { %14944 = vmatprep.subr.bf16.mxu1 %v17134_v15  ;;  %1001 = vmatprep.mubr.f32.mxu0 %v916_v58  ;;  %v1696_v58 = vld [vmem:[#allocation6 + $0x1c0] sm:$0xff] }
 0x168   : > { %1125 = vmatmul.mubr.f32.gmra.mrb[4].mxu1 %v1038_v59  ;;  %1002 = vmatmul.mubr.f32.gmra.mrb[4].mxu0 %v915_v60  ;;  %v1699_v59 = vld [vmem:[#allocation6 + $0x1d8] sm:$0xff]  ;;  %v1698_v60 = vld [vmem:[#allocation6 + $0x1d0] sm:$0xff] }
 0x169   : > { %14946 = vmatpush3.bf16.msra.mxu1 %v17142_v20  ;;  %1129 = vmatprep.mubr.f32.mxu1 %v1041_v61  ;;  %v1701_v61 = vld [vmem:[#allocation6 + $0x1e8] sm:$0xff] }
 0x16a   : > { %14948 = vmatprep.subr.bf16.mxu1 %v17146_v21  ;;  %1006 = vmatprep.mubr.f32.mxu0 %v918_v62  ;;  %v1700_v62 = vld [vmem:[#allocation6 + $0x1e0] sm:$0xff] }
 0x16c   : > { %1130 = vmatmul.mubr.f32.gmra.mrb[6].mxu1 %v1040_v63  ;;  %1007 = vmatmul.mubr.f32.gmra.mrb[6].mxu0 %v917_v0  ;;  %v1703_v63 = vld [vmem:[#allocation6 + $0x1f8] sm:$0xff]  ;;  %v11754_v0 = vld [vmem:[%s19092_s8 + $0x4] sm:$0xf] }
 0x16d   : > { %14950 = vmatpush3.bf16.msra.mxu1 %v17154_v27  ;;  %1134 = vmatprep.mubr.f32.mxu1 %v1043_v1  ;;  %v1702_v1 = vld [vmem:[#allocation6 + $0x1f0] sm:$0xff] }
 0x16e   : > { %14952 = vmatprep.subr.bf16.mxu1 %v17158_v28  ;;  %1011 = vmatprep.mubr.f32.mxu0 %v920_v2  ;;  %v1953_v2 = vld [vmem:[#allocation6 + $0x208] sm:$0xff] }
 0x16f   : > { %14002 = vmatprep.subr.msk.mxu0 %vm1182_vm0, %v11754_v0 }
 0x170   : > { %1135 = vmatmul.mubr.f32.gmra.mrb[8].mxu1 %v1042_v3  ;;  %1012 = vmatmul.mubr.f32.gmra.mrb[8].mxu0 %v919_v5  ;;  %v1952_v3 = vld [vmem:[#allocation6 + $0x200] sm:$0xff]  ;;  %v1955_v5 = vld [vmem:[#allocation6 + $0x218] sm:$0xff] }
 0x171   : > { %14954 = vmatpush3.bf16.msra.mxu1 %v17166_v34  ;;  %1139 = vmatprep.mubr.f32.mxu1 %v1045_v6  ;;  %v1954_v6 = vld [vmem:[#allocation6 + $0x210] sm:$0xff] }
 0x172   : > { %14956 = vmatprep.subr.bf16.mxu1 %v17170_v35  ;;  %1016 = vmatprep.mubr.f32.mxu0 %v922_v7  ;;  %v1957_v7 = vld [vmem:[#allocation6 + $0x228] sm:$0xff] }
 0x173   : > { %14003 = vmatpush3.msk.msra.mxu0 %vm1182_vm0, %v11754_v0 }
 0x174   : > { %1140 = vmatmul.mubr.f32.gmra.mrb[10].mxu1 %v1044_v10  ;;  %1017 = vmatmul.mubr.f32.gmra.mrb[10].mxu0 %v921_v11  ;;  %v1956_v10 = vld [vmem:[#allocation6 + $0x220] sm:$0xff]  ;;  %v1959_v11 = vld [vmem:[#allocation6 + $0x238] sm:$0xff] }
 0x175   : > { %14958 = vmatpush3.bf16.msra.mxu1 %v17178_v40  ;;  %1144 = vmatprep.mubr.f32.mxu1 %v1047_v12  ;;  %v1958_v12 = vld [vmem:[#allocation6 + $0x230] sm:$0xff] }
 0x176   : > { %14960 = vmatprep.subr.bf16.mxu1 %v17182_v41  ;;  %1021 = vmatprep.mubr.f32.mxu0 %v924_v13  ;;  %v1961_v13 = vld [vmem:[#allocation6 + $0x248] sm:$0xff] }
 0x178   : > { %1145 = vmatmul.mubr.f32.gmra.mrb[12].mxu1 %v1046_v16  ;;  %1022 = vmatmul.mubr.f32.gmra.mrb[12].mxu0 %v923_v17  ;;  %v1960_v16 = vld [vmem:[#allocation6 + $0x240] sm:$0xff]  ;;  %v1963_v17 = vld [vmem:[#allocation6 + $0x258] sm:$0xff] }
 0x179   : > { %14962 = vmatpush3.bf16.msra.mxu1 %v17190_v46  ;;  %1149 = vmatprep.mubr.f32.mxu1 %v1049_v18  ;;  %v1962_v18 = vld [vmem:[#allocation6 + $0x250] sm:$0xff] }
 0x17a   : > { %14964 = vmatprep.subr.bf16.mxu1 %v17194_v47  ;;  %1026 = vmatprep.mubr.f32.mxu0 %v926_v19  ;;  %v1965_v19 = vld [vmem:[#allocation6 + $0x268] sm:$0xff] }
 0x17c   : > { %1150 = vmatmul.mubr.f32.gmra.mrb[14].mxu1 %v1048_v22  ;;  %1027 = vmatmul.mubr.f32.gmra.mrb[14].mxu0 %v925_v23  ;;  %v17274_v22 = vld [vmem:[%s19092_s8] sm:$0xf] }
 0x17d   : > { %14966 = vmatpush3.bf16.msra.mxu1 %v17200_v50  ;;  %1504 = vmatprep.mubr.f32.mxu1 %v1425_v24  ;;  %v1964_v23 = vld [vmem:[#allocation6 + $0x260] sm:$0xff]  ;;  %v1967_v24 = vld [vmem:[#allocation6 + $0x278] sm:$0xff] }
 0x17e   : > { %14968 = vmatprep.subr.bf16.mxu1 %v17114_v4  ;;  %14016 = vmatprep.subr.msk.mxu0 %vm1182_vm0, %v17274_v22 }
 0x180   : > { %1505 = vmatmul.mubr.f32.vlgmr.msra.gmra.mrb[16].mxu1 %v1424_v25  ;;  %v1966_v25 = vld [vmem:[#allocation6 + $0x270] sm:$0xff] }
 0x181   : > { %14970 = vmatpush3.bf16.msra.mxu1 %v17119_v8  ;;  %1509 = vmatprep.mubr.f32.mxu1 %v1427_v26  ;;  %v2481_v26 = vld [vmem:[#allocation6 + $0x308] sm:$0xff] }
 0x182   : > { %14972 = vmatprep.subr.bf16.mxu1 %v17121_v9 }
 0x184   : > { %1510 = vmatmul.mubr.f32.gmra.mrb[18].mxu1 %v1426_v29  ;;  %v2480_v29 = vld [vmem:[#allocation6 + $0x300] sm:$0xff] }
 0x185   : > { %14974 = vmatpush3.bf16.msra.mxu1 %v17130_v14  ;;  %1514 = vmatprep.mubr.f32.mxu1 %v1429_v30  ;;  %v2483_v30 = vld [vmem:[#allocation6 + $0x318] sm:$0xff] }
 0x186   : > { %14976 = vmatprep.subr.bf16.mxu1 %v17134_v15 }
 0x188   : > { %1515 = vmatmul.mubr.f32.gmra.mrb[20].mxu1 %v1428_v31  ;;  %v2482_v31 = vld [vmem:[#allocation6 + $0x310] sm:$0xff] }
 0x189   : > { %14978 = vmatpush3.bf16.msra.mxu1 %v17142_v20  ;;  %1519 = vmatprep.mubr.f32.mxu1 %v1431_v32  ;;  %v2485_v32 = vld [vmem:[#allocation6 + $0x328] sm:$0xff] }
 0x18a   : > { %14980 = vmatprep.subr.bf16.mxu1 %v17146_v21 }
 0x18c   : > { %1520 = vmatmul.mubr.f32.gmra.mrb[22].mxu1 %v1430_v33  ;;  %v2484_v33 = vld [vmem:[#allocation6 + $0x320] sm:$0xff] }
 0x18d   : > { %14982 = vmatpush3.bf16.msra.mxu1 %v17154_v27  ;;  %1524 = vmatprep.mubr.f32.mxu1 %v1433_v36  ;;  %v2487_v36 = vld [vmem:[#allocation6 + $0x338] sm:$0xff] }
 0x18e   : > { %14984 = vmatprep.subr.bf16.mxu1 %v17158_v28 }
 0x190   : > { %1525 = vmatmul.mubr.f32.gmra.mrb[24].mxu1 %v1432_v37  ;;  %v2486_v37 = vld [vmem:[#allocation6 + $0x330] sm:$0xff] }
 0x191   : > { %14986 = vmatpush3.bf16.msra.mxu1 %v17166_v34  ;;  %1529 = vmatprep.mubr.f32.mxu1 %v1435_v38 }
 0x192   : > { %14988 = vmatprep.subr.bf16.mxu1 %v17170_v35 }
 0x194   : > { %1530 = vmatmul.mubr.f32.gmra.mrb[26].mxu1 %v1434_v39 }
 0x195   : > { %14990 = vmatpush3.bf16.msra.mxu1 %v17178_v40  ;;  %1534 = vmatprep.mubr.f32.mxu1 %v1437_v42 }
 0x196   : > { %14992 = vmatprep.subr.bf16.mxu1 %v17182_v41 }
 0x198   : > { %1535 = vmatmul.mubr.f32.gmra.mrb[28].mxu1 %v1436_v43 }
 0x199   : > { %14994 = vmatpush3.bf16.msra.mxu1 %v17190_v46  ;;  %1539 = vmatprep.mubr.f32.mxu1 %v1439_v44  ;;  %v2489_v44 = vld [vmem:[#allocation6 + $0x348] sm:$0xff] }
 0x19a   : > { %14996 = vmatprep.subr.bf16.mxu1 %v17194_v47 }
 0x19c   : > { %1540 = vmatmul.mubr.f32.gmra.mrb[30].mxu1 %v1438_v45  ;;  %v2488_v45 = vld [vmem:[#allocation6 + $0x340] sm:$0xff] }
 0x19d   : > { %14998 = vmatpush3.bf16.msra.mxu1 %v17200_v50  ;;  %1768 = vmatprep.mubr.f32.mxu1 %v1689_v48 }
 0x19e   : > { %15000 = vmatprep.subr.bf16.mxu1 %v17114_v4 }
 0x1a0   : > { %1769 = vmatmul.mubr.f32.vlgmr.msra.gmra.mrb[32].mxu1 %v1688_v49 }
 0x1a1   : > { %15002 = vmatpush3.bf16.msra.mxu1 %v17119_v8  ;;  %1773 = vmatprep.mubr.f32.mxu1 %v1691_v51 }
 0x1a2   : > { %15004 = vmatprep.subr.bf16.mxu1 %v17121_v9 }
 0x1a4   : > { %1774 = vmatmul.mubr.f32.gmra.mrb[34].mxu1 %v1690_v52 }
 0x1a5   : > { %15006 = vmatpush3.bf16.msra.mxu1 %v17130_v14  ;;  %1778 = vmatprep.mubr.f32.mxu1 %v1693_v53 }
 0x1a6   : > { %15008 = vmatprep.subr.bf16.mxu1 %v17134_v15 }
 0x1a8   : > { %1779 = vmatmul.mubr.f32.gmra.mrb[36].mxu1 %v1692_v54 }
 0x1a9   : > { %15010 = vmatpush3.bf16.msra.mxu1 %v17142_v20  ;;  %1783 = vmatprep.mubr.f32.mxu1 %v1695_v55  ;;  %v2491_v55 = vld [vmem:[#allocation6 + $0x358] sm:$0xff] }
 0x1aa   : > { %15012 = vmatprep.subr.bf16.mxu1 %v17146_v21 }
 0x1ac   : > { %1784 = vmatmul.mubr.f32.gmra.mrb[38].mxu1 %v1694_v56  ;;  %v2490_v56 = vld [vmem:[#allocation6 + $0x350] sm:$0xff] }
 0x1ad   : > { %15014 = vmatpush3.bf16.msra.mxu1 %v17154_v27  ;;  %1788 = vmatprep.mubr.f32.mxu1 %v1697_v57 }
 0x1ae   : > { %15016 = vmatprep.subr.bf16.mxu1 %v17158_v28 }
 0x1b0   : > { %1789 = vmatmul.mubr.f32.gmra.mrb[40].mxu1 %v1696_v58 }
 0x1b1   : > { %15018 = vmatpush3.bf16.msra.mxu1 %v17166_v34  ;;  %1793 = vmatprep.mubr.f32.mxu1 %v1699_v59  ;;  %v17302_v59 = vld [vmem:[%s19092_s8 + $0x8] sm:$0xf] }
 0x1b2   : > { %15020 = vmatprep.subr.bf16.mxu1 %v17170_v35 }
 0x1b4   : > { %1794 = vmatmul.mubr.f32.gmra.mrb[42].mxu1 %v1698_v60 }
 0x1b5   : > { %15022 = vmatpush3.bf16.msra.mxu1 %v17178_v40  ;;  %1798 = vmatprep.mubr.f32.mxu1 %v1701_v61 }
 0x1b6   : > { %15024 = vmatprep.subr.bf16.mxu1 %v17182_v41 }
 0x1b8   : > { %1799 = vmatmul.mubr.f32.gmra.mrb[44].mxu1 %v1700_v62  ;;  %v2493_v62 = vld [vmem:[#allocation6 + $0x368] sm:$0xff] }
 0x1b9   : > { %15026 = vmatpush3.bf16.msra.mxu1 %v17190_v46  ;;  %1803 = vmatprep.mubr.f32.mxu1 %v1703_v63 }
 0x1ba   : > { %15028 = vmatprep.subr.bf16.mxu1 %v17194_v47 }
 0x1bc   : > { %1804 = vmatmul.mubr.f32.gmra.mrb[46].mxu1 %v1702_v1  ;;  %v2492_v1 = vld [vmem:[#allocation6 + $0x360] sm:$0xff] }
 0x1bd   : > { %15030 = vmatpush3.bf16.msra.mxu1 %v17200_v50  ;;  %2032 = vmatprep.mubr.f32.mxu1 %v1953_v2 }
 0x1be   : > { %15064 = vmatprep.subr.bf16.mxu1 %v17114_v4 }
 0x1c0   : > { %2033 = vmatmul.mubr.f32.vlgmr.msra.gmra.mrb[48].mxu1 %v1952_v3 }
 0x1c1   : > { %2037 = vmatprep.mubr.f32.mxu1 %v1955_v5  ;;  %15066 = vmatpush3.bf16.msra.mxu1 %v17119_v8 }
 0x1c2   : > { %15068 = vmatprep.subr.bf16.mxu1 %v17121_v9 }
 0x1c4   : > { %2038 = vmatmul.mubr.f32.gmra.mrb[50].mxu1 %v1954_v6 }
 0x1c5   : > { %2042 = vmatprep.mubr.f32.mxu1 %v1957_v7  ;;  %15070 = vmatpush3.bf16.msra.mxu1 %v17130_v14  ;;  %v2495_v7 = vld [vmem:[#allocation6 + $0x378] sm:$0xff] }
 0x1c6   : > { %15072 = vmatprep.subr.bf16.mxu1 %v17134_v15 }
 0x1c8   : > { %2043 = vmatmul.mubr.f32.gmra.mrb[52].mxu1 %v1956_v10 }
 0x1c9   : > { %2047 = vmatprep.mubr.f32.mxu1 %v1959_v11  ;;  %15074 = vmatpush3.bf16.msra.mxu1 %v17142_v20 }
 0x1ca   : > { %15076 = vmatprep.subr.bf16.mxu1 %v17146_v21 }
 0x1cc   : > { %2048 = vmatmul.mubr.f32.gmra.mrb[54].mxu1 %v1958_v12  ;;  %v2494_v12 = vld [vmem:[#allocation6 + $0x370] sm:$0xff] }
 0x1cd   : > { %2052 = vmatprep.mubr.f32.mxu1 %v1961_v13  ;;  %15078 = vmatpush3.bf16.msra.mxu1 %v17154_v27 }
 0x1ce   : > { %15080 = vmatprep.subr.bf16.mxu1 %v17158_v28 }
 0x1d0   : > { %2053 = vmatmul.mubr.f32.gmra.mrb[56].mxu1 %v1960_v16 }
 0x1d1   : > { %2057 = vmatprep.mubr.f32.mxu1 %v1963_v17  ;;  %15082 = vmatpush3.bf16.msra.mxu1 %v17166_v34 }
 0x1d2   : > { %15084 = vmatprep.subr.bf16.mxu1 %v17170_v35 }
 0x1d4   : > { %2058 = vmatmul.mubr.f32.gmra.mrb[58].mxu1 %v1962_v18 }
 0x1d5   : > { %2062 = vmatprep.mubr.f32.mxu1 %v1965_v19  ;;  %15086 = vmatpush3.bf16.msra.mxu1 %v17178_v40  ;;  %v2745_v19 = vld [vmem:[#allocation6 + $0x388] sm:$0xff] }
 0x1d6   : > { %15088 = vmatprep.subr.bf16.mxu1 %v17182_v41 }
 0x1d8   : > { %2063 = vmatmul.mubr.f32.gmra.mrb[60].mxu1 %v1964_v23 }
 0x1d9   : > { %2067 = vmatprep.mubr.f32.mxu1 %v1967_v24  ;;  %15090 = vmatpush3.bf16.msra.mxu1 %v17190_v46  ;;  %v2744_v24 = vld [vmem:[#allocation6 + $0x380] sm:$0xff] }
 0x1da   : > { %15092 = vmatprep.subr.bf16.mxu1 %v17194_v47 }
 0x1dc   : > { %2068 = vmatmul.mubr.f32.gmra.mrb[62].mxu1 %v1966_v25 }
 0x1dd   : > { %15094 = vmatpush3.bf16.msra.mxu1 %v17200_v50  ;;  %2560 = vmatprep.mubr.f32.mxu1 %v2481_v26 }
 0x1de   : > { %15096 = vmatprep.subr.bf16.mxu1 %v17114_v4 }
 0x1e0   : > { %2561 = vmatmul.mubr.f32.vlgmr.msra.gmra.mrb[64].mxu1 %v2480_v29 }
 0x1e1   : > { %15098 = vmatpush3.bf16.msra.mxu1 %v17119_v8  ;;  %2565 = vmatprep.mubr.f32.mxu1 %v2483_v30 }
 0x1e2   : > { %15100 = vmatprep.subr.bf16.mxu1 %v17121_v9 }
 0x1e4   : > { %2566 = vmatmul.mubr.f32.gmra.mrb[66].mxu1 %v2482_v31  ;;  %v2747_v31 = vld [vmem:[#allocation6 + $0x398] sm:$0xff] }
 0x1e5   : > { %15102 = vmatpush3.bf16.msra.mxu1 %v17130_v14  ;;  %2570 = vmatprep.mubr.f32.mxu1 %v2485_v32 }
 0x1e6   : > { %15104 = vmatprep.subr.bf16.mxu1 %v17134_v15 }
 0x1e8   : > { %2571 = vmatmul.mubr.f32.gmra.mrb[68].mxu1 %v2484_v33 }
 0x1e9   : > { %15106 = vmatpush3.bf16.msra.mxu1 %v17142_v20  ;;  %2575 = vmatprep.mubr.f32.mxu1 %v2487_v36  ;;  %v2746_v36 = vld [vmem:[#allocation6 + $0x390] sm:$0xff] }
 0x1ea   : > { %15108 = vmatprep.subr.bf16.mxu1 %v17146_v21 }
 0x1ec   : > { %2576 = vmatmul.mubr.f32.gmra.mrb[70].mxu1 %v2486_v37 }
 0x1ed   : > { %15110 = vmatpush3.bf16.msra.mxu1 %v17154_v27  ;;  %2580 = vmatprep.mubr.f32.mxu1 %v2489_v44 }
 0x1ee   : > { %15112 = vmatprep.subr.bf16.mxu1 %v17158_v28 }
 0x1f0   : > { %2581 = vmatmul.mubr.f32.gmra.mrb[72].mxu1 %v2488_v45 }
 0x1f1   : > { %15114 = vmatpush3.bf16.msra.mxu1 %v17166_v34  ;;  %2585 = vmatprep.mubr.f32.mxu1 %v2491_v55  ;;  %v2751_v55 = vld [vmem:[#allocation6 + $0x3b8] sm:$0xff] }
 0x1f2   : > { %15116 = vmatprep.subr.bf16.mxu1 %v17170_v35 }
 0x1f4   : > { %2586 = vmatmul.mubr.f32.gmra.mrb[74].mxu1 %v2490_v56 }
 0x1f5   : > { %15118 = vmatpush3.bf16.msra.mxu1 %v17178_v40  ;;  %2590 = vmatprep.mubr.f32.mxu1 %v2493_v62 }
 0x1f6   : > { %15120 = vmatprep.subr.bf16.mxu1 %v17182_v41 }
 0x1f8   : > { %2591 = vmatmul.mubr.f32.gmra.mrb[76].mxu1 %v2492_v1 }
 0x1f9   : > { %15122 = vmatpush3.bf16.msra.mxu1 %v17190_v46  ;;  %2595 = vmatprep.mubr.f32.mxu1 %v2495_v7 }
 0x1fa   : > { %15124 = vmatprep.subr.bf16.mxu1 %v17194_v47 }
 0x1fc   : > { %2596 = vmatmul.mubr.f32.gmra.mrb[78].mxu1 %v2494_v12 }
 0x1fd   : > { %15126 = vmatpush3.bf16.msra.mxu1 %v17200_v50  ;;  %2824 = vmatprep.mubr.f32.mxu1 %v2745_v19 }
 0x1fe   : > { %15128 = vmatprep.subr.bf16.mxu1 %v17114_v4 }
 0x200   : > { %2825 = vmatmul.mubr.f32.vlgmr.msra.gmra.mrb[80].mxu1 %v2744_v24  ;;  %v3009_v24 = vld [vmem:[#allocation6 + $0x408] sm:$0xff] }
 0x201   : > { %15130 = vmatpush3.bf16.msra.mxu1 %v17119_v8  ;;  %2829 = vmatprep.mubr.f32.mxu1 %v2747_v31  ;;  %v17369_v31 = vld [vmem:[%s19092_s8 + $0x10] sm:$0xf] }
 0x202   : > { %15132 = vmatprep.subr.bf16.mxu1 %v17121_v9 }
 0x204   : > { %2830 = vmatmul.mubr.f32.gmra.mrb[82].mxu1 %v2746_v36  ;;  %v3010_v36 = vld [vmem:[#allocation6 + $0x410] sm:$0xff] }
 0x205   : > { %15134 = vmatpush3.bf16.msra.mxu1 %v17130_v14 }
 0x206   : > { %15136 = vmatprep.subr.bf16.mxu1 %v17134_v15 }
 0x209   : > { %15138 = vmatpush3.bf16.msra.mxu1 %v17142_v20 }
 0x20a   : > { %15140 = vmatprep.subr.bf16.mxu1 %v17146_v21 }
 0x20d   : > { %15142 = vmatpush3.bf16.msra.mxu1 %v17154_v27 }
 0x20e   : > { %15144 = vmatprep.subr.bf16.mxu1 %v17158_v28 }
 0x211   : > { %15146 = vmatpush3.bf16.msra.mxu1 %v17166_v34 }
 0x212   : > { %15148 = vmatprep.subr.bf16.mxu1 %v17170_v35 }
 0x215   : > { %15150 = vmatpush3.bf16.msra.mxu1 %v17178_v40 }
 0x216   : > { %15152 = vmatprep.subr.bf16.mxu1 %v17182_v41 }
 0x219   : > { %15154 = vmatpush3.bf16.msra.mxu1 %v17190_v46 }
 0x21a   : > { %15156 = vmatprep.subr.bf16.mxu1 %v17194_v47 }
 0x21d   : > { %15158 = vmatpush3.bf16.msra.mxu1 %v17200_v50 }
 0x21e   : > { %15160 = vmatprep.subr.bf16.mxu1 %v17114_v4 }
 0x233   : > { %v12212_v38 = vpop.f32.mrb[0].mxu1  ;;  %v12156_v39 = vpop.f32.mrb[0].mxu0 }
 0x234   : > { %v12213_v42 = vpop.f32.mrb[1].mxu1  ;;  %v12157_v43 = vpop.f32.mrb[1].mxu0 }
 0x235   : > { %v12214_v48 = vadd.f32 %v12213_v42, %v12212_v38  ;;  %v17292_v49 = vadd.f32 %v12157_v43, %v12156_v39  ;;  %v2749_v43 = vld [vmem:[#allocation6 + $0x3a8] sm:$0xff] }
 0x236   : > { %2834 = vmatprep.mubr.f32.mxu1 %v2749_v43  ;;  %v3012_v43 = vld [vmem:[#allocation6 + $0x420] sm:$0xff] }
 0x237   : > { %v12215_v51 = vpop.f32.mrb[2].mxu1  ;;  %14004 = vmatprep.mubr.msk.f32.mxu0 %vm1157_vm1, %v12214_v48  ;;  %v12159_v52 = vpop.f32.mrb[2].mxu0  ;;  %v2748_v48 = vld [vmem:[#allocation6 + $0x3a0] sm:$0xff] }
 0x238   : > { %v12216_v53 = vpop.f32.mrb[3].mxu1  ;;  %v12160_v54 = vpop.f32.mrb[3].mxu0  ;;  %2835 = vmatmul.mubr.f32.gmra.mrb[84].mxu1 %v2748_v48  ;;  %v3015_v48 = vld [vmem:[#allocation6 + $0x438] sm:$0xff] }
 0x239   : > { %v12217_v57 = vadd.f32 %v12216_v53, %v12215_v51  ;;  %v17297_v58 = vadd.f32 %v12160_v54, %v12159_v52  ;;  %2839 = vmatprep.mubr.f32.mxu1 %v2751_v55  ;;  %v3017_v55 = vld [vmem:[#allocation6 + $0x448] sm:$0xff] }
 0x23b   : > { %v12218_v60 = vpop.f32.mrb[4].mxu1  ;;  %14005 = vmatmul.mubr.msk.f32.vlgmr.msra.gmra.mrb[16].mxu0 %vm1157_vm1, %v12217_v57  ;;  %v12162_v61 = vpop.f32.mrb[4].mxu0 }
 0x23c   : > { %v12219_v63 = vpop.f32.mrb[5].mxu1  ;;  %v12163_v0 = vpop.f32.mrb[5].mxu0  ;;  %14017 = vmatpush3.msk.msra.mxu0 %vm1182_vm0, %v17274_v22 }
 0x23d   : > { %v12220_v2 = vadd.f32 %v12219_v63, %v12218_v60  ;;  %v17308_v3 = vadd.f32 %v12163_v0, %v12162_v61  ;;  %14030 = vmatprep.subr.msk.mxu0 %vm1182_vm0, %v17302_v59  ;;  %v2750_v60 = vld [vmem:[#allocation6 + $0x3b0] sm:$0xff]  ;;  %v2753_v0 = vld [vmem:[#allocation6 + $0x3c8] sm:$0xff] }
 0x23e   : > { %2840 = vmatmul.mubr.f32.gmra.mrb[86].mxu1 %v2750_v60 }
 0x23f   : > { %v12221_v5 = vpop.f32.mrb[6].mxu1  ;;  %14007 = vmatprep.mubr.msk.f32.mxu0 %vm1157_vm1, %v12220_v2  ;;  %v12165_v6 = vpop.f32.mrb[6].mxu0  ;;  %2844 = vmatprep.mubr.f32.mxu1 %v2753_v0  ;;  %v2752_v2 = vld [vmem:[#allocation6 + $0x3c0] sm:$0xff]  ;;  %v3018_v0 = vld [vmem:[#allocation6 + $0x450] sm:$0xff] }
 0x240   : > { %v12222_v10 = vpop.f32.mrb[7].mxu1  ;;  %v12166_v11 = vpop.f32.mrb[7].mxu0 }
 0x241   : > { %v12223_v13 = vadd.f32 %v12222_v10, %v12221_v5  ;;  %v17316_v16 = vadd.f32 %v12166_v11, %v12165_v6  ;;  %v11783_v6 = vld [vmem:[%s19092_s8 + $0xc] sm:$0xf]  ;;  %v2755_v10 = vld [vmem:[#allocation6 + $0x3d8] sm:$0xff]  ;;  %v2754_v11 = vld [vmem:[#allocation6 + $0x3d0] sm:$0xff] }
 0x242   : > { %2845 = vmatmul.mubr.f32.gmra.mrb[88].mxu1 %v2752_v2 }
 0x243   : > { %v12224_v17 = vpop.f32.mrb[8].mxu1  ;;  %14008 = vmatmul.mubr.msk.f32.gmra.mrb[18].mxu0 %vm1157_vm1, %v12223_v13  ;;  %v12168_v18 = vpop.f32.mrb[8].mxu0  ;;  %2849 = vmatprep.mubr.f32.mxu1 %v2755_v10  ;;  %v2757_v13 = vld [vmem:[#allocation6 + $0x3e8] sm:$0xff] }
 0x244   : > { %v12225_v22 = vpop.f32.mrb[9].mxu1  ;;  %v12169_v23 = vpop.f32.mrb[9].mxu0 }
 0x245   : > { %v12226_v25 = vadd.f32 %v12225_v22, %v12224_v17  ;;  %v17321_v26 = vadd.f32 %v12169_v23, %v12168_v18  ;;  %v2756_v17 = vld [vmem:[#allocation6 + $0x3e0] sm:$0xff] }
 0x246   : > { %2850 = vmatmul.mubr.f32.gmra.mrb[90].mxu1 %v2754_v11 }
 0x247   : > { %v12227_v29 = vpop.f32.mrb[10].mxu1  ;;  %14010 = vmatprep.mubr.msk.f32.mxu0 %vm1157_vm1, %v12226_v25  ;;  %v12171_v30 = vpop.f32.mrb[10].mxu0  ;;  %2854 = vmatprep.mubr.f32.mxu1 %v2757_v13  ;;  %v3022_v13 = vld [vmem:[#allocation6 + $0x470] sm:$0xff] }
 0x248   : > { %v12228_v32 = vpop.f32.mrb[11].mxu1  ;;  %v12172_v33 = vpop.f32.mrb[11].mxu0 }
 0x249   : > { %v12229_v37 = vadd.f32 %v12228_v32, %v12227_v29  ;;  %v17326_v38 = vadd.f32 %v12172_v33, %v12171_v30  ;;  %v3011_v32 = vld [vmem:[#allocation6 + $0x418] sm:$0xff] }
 0x24a   : > { %2855 = vmatmul.mubr.f32.gmra.mrb[92].mxu1 %v2756_v17 }
 0x24b   : > { %v12230_v39 = vpop.f32.mrb[12].mxu1  ;;  %14011 = vmatmul.mubr.msk.f32.gmra.mrb[20].mxu0 %vm1157_vm1, %v12229_v37  ;;  %v12174_v42 = vpop.f32.mrb[12].mxu0 }
 0x24c   : > { %v12231_v44 = vpop.f32.mrb[13].mxu1  ;;  %v12175_v45 = vpop.f32.mrb[13].mxu0 }
 0x24d   : > { %v12232_v51 = vadd.f32 %v12231_v44, %v12230_v39  ;;  %v12176_v52 = vadd.f32 %v12175_v45, %v12174_v42  ;;  %v3013_v39 = vld [vmem:[#allocation6 + $0x428] sm:$0xff] }
 0x24f   : > { %v12233_v53 = vpop.f32.mrb[14].mxu1  ;;  %14013 = vmatprep.mubr.msk.f32.mxu0 %vm1157_vm1, %v12232_v51  ;;  %v12177_v54 = vpop.f32.mrb[14].mxu0 }
 0x250   : > { %v12234_v56 = vpop.f32.mrb[15].mxu1  ;;  %v12178_v57 = vpop.f32.mrb[15].mxu0 }
 0x251   : > { %v12235_v61 = vadd.f32 %v12234_v56, %v12233_v53  ;;  %v12179_v62 = vadd.f32 %v12178_v57, %v12177_v54  ;;  %v3016_v57 = vld [vmem:[#allocation6 + $0x440] sm:$0xff] }
 0x253   : > { %14014 = vmatmul.mubr.msk.f32.gmra.mrb[22].mxu0 %vm1157_vm1, %v12235_v61  ;;  %v12286_v63 = vpop.f32.mrb[16].mxu1 }
 0x254   : > { %v12287_v1 = vpop.f32.mrb[17].mxu1  ;;  %14018 = vmatprep.mubr.msk.f32.mxu0 %vm1157_vm1, %v17292_v49 }
 0x255   : > { %v12288_v5 = vadd.f32 %v12287_v1, %v12286_v63 }
 0x257   : > { %14019 = vmatmul.mubr.msk.f32.vlgmr.msra.gmra.mrb[16].mxu0 %vm1157_vm1, %v17297_v58  ;;  %v12289_v7 = vpop.f32.mrb[18].mxu1 }
 0x258   : > { %v12290_v12 = vpop.f32.mrb[19].mxu1  ;;  %14021 = vmatprep.mubr.msk.f32.mxu0 %vm1157_vm1, %v17308_v3  ;;  %14031 = vmatpush3.msk.msra.mxu0 %vm1182_vm0, %v17302_v59  ;;  %v2759_v3 = vld [vmem:[#allocation6 + $0x3f8] sm:$0xff] }
 0x259   : > { %v12291_v49 = vadd.f32 %v12290_v12, %v12289_v7  ;;  %14044 = vmatprep.subr.msk.mxu0 %vm1182_vm0, %v11783_v6  ;;  %2859 = vmatprep.mubr.f32.mxu1 %v2759_v3  ;;  %v3020_v7 = vld [vmem:[#allocation6 + $0x460] sm:$0xff]  ;;  %v3023_v12 = vld [vmem:[#allocation6 + $0x478] sm:$0xff] }
 0x25a   : > { %v3272_v3 = vld [vmem:[#allocation6 + $0x480] sm:$0xff] }
 0x25b   : > { %14022 = vmatmul.mubr.msk.f32.gmra.mrb[18].mxu0 %vm1157_vm1, %v17316_v16  ;;  %v12292_v58 = vpop.f32.mrb[20].mxu1  ;;  %v2758_v16 = vld [vmem:[#allocation6 + $0x3f0] sm:$0xff] }
 0x25c   : > { %v12293_v18 = vpop.f32.mrb[21].mxu1  ;;  %14024 = vmatprep.mubr.msk.f32.mxu0 %vm1157_vm1, %v17321_v26  ;;  %2860 = vmatmul.mubr.f32.gmra.mrb[94].mxu1 %v2758_v16  ;;  %v3008_v26 = vld [vmem:[#allocation6 + $0x400] sm:$0xff]  ;;  %v3275_v16 = vld [vmem:[#allocation6 + $0x498] sm:$0xff] }
 0x25d   : > { %v12294_v59 = vadd.f32 %v12293_v18, %v12292_v58  ;;  %3088 = vmatprep.mubr.f32.mxu1 %v3009_v24  ;;  %v3273_v18 = vld [vmem:[#allocation6 + $0x488] sm:$0xff]  ;;  %v3274_v24 = vld [vmem:[#allocation6 + $0x490] sm:$0xff] }
 0x25f   : > { %14025 = vmatmul.mubr.msk.f32.gmra.mrb[20].mxu0 %vm1157_vm1, %v17326_v38  ;;  %v12295_v19 = vpop.f32.mrb[22].mxu1 }
 0x260   : > { %v12296_v22 = vpop.f32.mrb[23].mxu1  ;;  %14027 = vmatprep.mubr.msk.f32.mxu0 %vm1157_vm1, %v12176_v52  ;;  %3089 = vmatmul.mubr.f32.vlgmr.msra.gmra.mrb[96].mxu1 %v3008_v26  ;;  %v3014_v52 = vld [vmem:[#allocation6 + $0x430] sm:$0xff]  ;;  %v3277_v26 = vld [vmem:[#allocation6 + $0x4a8] sm:$0xff] }
 0x261   : > { %v12297_v23 = vadd.f32 %v12296_v22, %v12295_v19  ;;  %15162 = vmatpush3.bf16.msra.mxu1 %v17119_v8  ;;  %3093 = vmatprep.mubr.f32.mxu1 %v3011_v32 }
 0x262   : > { %15164 = vmatprep.subr.bf16.mxu1 %v17121_v9 }
 0x263   : > { %14028 = vmatmul.mubr.msk.f32.gmra.mrb[22].mxu0 %vm1157_vm1, %v12179_v62  ;;  %v12298_v25 = vpop.f32.mrb[24].mxu1  ;;  %v3019_v62 = vld [vmem:[#allocation6 + $0x458] sm:$0xff] }
 0x264   : > { %v12299_v29 = vpop.f32.mrb[25].mxu1  ;;  %14032 = vmatprep.mubr.msk.f32.mxu0 %vm1157_vm1, %v12288_v5  ;;  %3094 = vmatmul.mubr.f32.gmra.mrb[98].mxu1 %v3010_v36  ;;  %v3021_v5 = vld [vmem:[#allocation6 + $0x468] sm:$0xff] }
 0x265   : > { %v12300_v30 = vadd.f32 %v12299_v29, %v12298_v25  ;;  %15166 = vmatpush3.bf16.msra.mxu1 %v17130_v14  ;;  %3098 = vmatprep.mubr.f32.mxu1 %v3013_v39 }
 0x266   : > { %15168 = vmatprep.subr.bf16.mxu1 %v17134_v15 }
 0x267   : > { %v12301_v33 = vpop.f32.mrb[26].mxu1  ;;  %14033 = vmatmul.mubr.msk.f32.vlgmr.msra.gmra.mrb[16].mxu0 %vm1157_vm1, %v12291_v49 }
 0x268   : > { %v12302_v37 = vpop.f32.mrb[27].mxu1  ;;  %14035 = vmatprep.mubr.msk.f32.mxu0 %vm1157_vm1, %v12294_v59  ;;  %14045 = vmatpush3.msk.msra.mxu0 %vm1182_vm0, %v11783_v6 }
 0x269   : > { %v12303_v38 = vadd.f32 %v12302_v37, %v12301_v33  ;;  %14058 = vmatprep.subr.msk.mxu0 %vm1182_vm0, %v17369_v31  ;;  %3099 = vmatmul.mubr.f32.gmra.mrb[100].mxu1 %v3012_v43  ;;  %v3279_v33 = vld [vmem:[#allocation6 + $0x4b8] sm:$0xff] }
 0x26a   : > { %15170 = vmatpush3.bf16.msra.mxu1 %v17142_v20  ;;  %3103 = vmatprep.mubr.f32.mxu1 %v3015_v48 }
 0x26b   : > { %v12304_v42 = vpop.f32.mrb[28].mxu1  ;;  %14036 = vmatmul.mubr.msk.f32.gmra.mrb[18].mxu0 %vm1157_vm1, %v12297_v23  ;;  %15172 = vmatprep.subr.bf16.mxu1 %v17146_v21 }
 0x26c   : > { %v12305_v44 = vpop.f32.mrb[29].mxu1  ;;  %14038 = vmatprep.mubr.msk.f32.mxu0 %vm1157_vm1, %v12300_v30 }
 0x26d   : > { %v12306_v45 = vadd.f32 %v12305_v44, %v12304_v42  ;;  %3104 = vmatmul.mubr.f32.gmra.mrb[102].mxu1 %v3014_v52  ;;  %v3281_v42 = vld [vmem:[#allocation6 + $0x4c8] sm:$0xff] }
 0x26e   : > { %15174 = vmatpush3.bf16.msra.mxu1 %v17154_v27  ;;  %3108 = vmatprep.mubr.f32.mxu1 %v3017_v55 }
 0x26f   : > { %v12307_v51 = vpop.f32.mrb[30].mxu1  ;;  %14039 = vmatmul.mubr.msk.f32.gmra.mrb[20].mxu0 %vm1157_vm1, %v12303_v38  ;;  %15176 = vmatprep.subr.bf16.mxu1 %v17158_v28  ;;  %v3278_v38 = vld [vmem:[#allocation6 + $0x4b0] sm:$0xff] }
 0x270   : > { %v12308_v53 = vpop.f32.mrb[31].mxu1  ;;  %14041 = vmatprep.mubr.msk.f32.mxu0 %vm1157_vm1, %v12306_v45  ;;  %v3280_v45 = vld [vmem:[#allocation6 + $0x4c0] sm:$0xff] }
 0x271   : > { %v12309_v54 = vadd.f32 %v12308_v53, %v12307_v51  ;;  %3109 = vmatmul.mubr.f32.gmra.mrb[104].mxu1 %v3016_v57  ;;  %v3283_v51 = vld [vmem:[#allocation6 + $0x4d8] sm:$0xff] }
 0x272   : > { %15178 = vmatpush3.bf16.msra.mxu1 %v17166_v34  ;;  %3113 = vmatprep.mubr.f32.mxu1 %v3019_v62 }
 0x273   : > { %14042 = vmatmul.mubr.msk.f32.gmra.mrb[22].mxu0 %vm1157_vm1, %v12309_v54  ;;  %v12351_v56 = vpop.f32.mrb[32].mxu1  ;;  %15180 = vmatprep.subr.bf16.mxu1 %v17170_v35  ;;  %v3282_v54 = vld [vmem:[#allocation6 + $0x4d0] sm:$0xff] }
 0x274   : > { %v12352_v60 = vpop.f32.mrb[33].mxu1 }
 0x275   : > { %v12353_v61 = vadd.f32 %v12352_v60, %v12351_v56  ;;  %3114 = vmatmul.mubr.f32.gmra.mrb[106].mxu1 %v3018_v0  ;;  %v3285_v56 = vld [vmem:[#allocation6 + $0x4e8] sm:$0xff] }
 0x276   : > { %15182 = vmatpush3.bf16.msra.mxu1 %v17178_v40  ;;  %3118 = vmatprep.mubr.f32.mxu1 %v3021_v5 }
 0x277   : > { %v12354_v63 = vpop.f32.mrb[34].mxu1  ;;  %14046 = vmatprep.mubr.msk.f32.mxu0 %vm1157_vm1, %v12353_v61  ;;  %15184 = vmatprep.subr.bf16.mxu1 %v17182_v41  ;;  %v3284_v61 = vld [vmem:[#allocation6 + $0x4e0] sm:$0xff] }
 0x278   : > { %v12355_v1 = vpop.f32.mrb[35].mxu1 }
 0x279   : > { %v12356_v2 = vadd.f32 %v12355_v1, %v12354_v63  ;;  %3119 = vmatmul.mubr.f32.gmra.mrb[108].mxu1 %v3020_v7  ;;  %v3287_v63 = vld [vmem:[#allocation6 + $0x4f8] sm:$0xff] }
 0x27a   : > { %15186 = vmatpush3.bf16.msra.mxu1 %v17190_v46  ;;  %3123 = vmatprep.mubr.f32.mxu1 %v3023_v12 }
 0x27b   : > { %v12357_v6 = vpop.f32.mrb[36].mxu1  ;;  %14047 = vmatmul.mubr.msk.f32.vlgmr.msra.gmra.mrb[16].mxu0 %vm1157_vm1, %v12356_v2  ;;  %15188 = vmatprep.subr.bf16.mxu1 %v17194_v47  ;;  %v3286_v2 = vld [vmem:[#allocation6 + $0x4f0] sm:$0xff] }
 0x27c   : > { %v12358_v10 = vpop.f32.mrb[37].mxu1  ;;  %14059 = vmatpush3.msk.msra.mxu0 %vm1182_vm0, %v17369_v31  ;;  %v3276_v31 = vld [vmem:[#allocation6 + $0x4a0] sm:$0xff] }
 0x27d   : > { %v12359_v11 = vadd.f32 %v12358_v10, %v12357_v6  ;;  %15032 = vmatprep.subr.bf16.mxu0 %v17114_v4  ;;  %3124 = vmatmul.mubr.f32.gmra.mrb[110].mxu1 %v3022_v13 }
 0x27e   : > { %15190 = vmatpush3.bf16.msra.mxu1 %v17200_v50  ;;  %3352 = vmatprep.mubr.f32.mxu1 %v3273_v18 }
 0x27f   : > { %v12360_v49 = vpop.f32.mrb[38].mxu1  ;;  %14049 = vmatprep.mubr.msk.f32.mxu0 %vm1157_vm1, %v12359_v11  ;;  %15224 = vmatprep.subr.bf16.mxu1 %v17114_v4 }
 0x280   : > { %v12361_v58 = vpop.f32.mrb[39].mxu1 }
 0x281   : > { %v12362_v17 = vadd.f32 %v12361_v58, %v12360_v49  ;;  %3353 = vmatmul.mubr.f32.vlgmr.msra.gmra.mrb[112].mxu1 %v3272_v3 }
 0x282   : > { %3357 = vmatprep.mubr.f32.mxu1 %v3275_v16  ;;  %15226 = vmatpush3.bf16.msra.mxu1 %v17119_v8  ;;  %v2217_v16 = vld [vmem:[#allocation6 + $0x288] sm:$0xff] }
 0x283   : > { %v12363_v59 = vpop.f32.mrb[40].mxu1  ;;  %14050 = vmatmul.mubr.msk.f32.gmra.mrb[18].mxu0 %vm1157_vm1, %v12362_v17  ;;  %15228 = vmatprep.subr.bf16.mxu1 %v17121_v9 }
 0x284   : > { %v12364_v19 = vpop.f32.mrb[41].mxu1 }
 0x285   : > { %v12365_v22 = vadd.f32 %v12364_v19, %v12363_v59  ;;  %3358 = vmatmul.mubr.f32.gmra.mrb[114].mxu1 %v3274_v24  ;;  %v2219_v24 = vld [vmem:[#allocation6 + $0x298] sm:$0xff] }
 0x286   : > { %3362 = vmatprep.mubr.f32.mxu1 %v3277_v26  ;;  %15230 = vmatpush3.bf16.msra.mxu1 %v17130_v14  ;;  %v2221_v26 = vld [vmem:[#allocation6 + $0x2a8] sm:$0xff] }
 0x287   : > { %v12366_v23 = vpop.f32.mrb[42].mxu1  ;;  %14052 = vmatprep.mubr.msk.f32.mxu0 %vm1157_vm1, %v12365_v22  ;;  %15232 = vmatprep.subr.bf16.mxu1 %v17134_v15  ;;  %v11803_v22 = vld [vmem:[%s19092_s8 + $0x14] sm:$0xf] }
 0x288   : > { %v12367_v25 = vpop.f32.mrb[43].mxu1 }
 0x289   : > { %v12368_v29 = vadd.f32 %v12367_v25, %v12366_v23  ;;  %3363 = vmatmul.mubr.f32.gmra.mrb[116].mxu1 %v3276_v31  ;;  %v2216_v23 = vld [vmem:[#allocation6 + $0x280] sm:$0xff]  ;;  %v2218_v25 = vld [vmem:[#allocation6 + $0x290] sm:$0xff] }
 0x28a   : > { %3367 = vmatprep.mubr.f32.mxu1 %v3279_v33  ;;  %15234 = vmatpush3.bf16.msra.mxu1 %v17142_v20  ;;  %v2222_v31 = vld [vmem:[#allocation6 + $0x2b0] sm:$0xff]  ;;  %v2224_v33 = vld [vmem:[#allocation6 + $0x2c0] sm:$0xff] }
 0x28b   : > { %v12369_v30 = vpop.f32.mrb[44].mxu1  ;;  %14053 = vmatmul.mubr.msk.f32.gmra.mrb[20].mxu0 %vm1157_vm1, %v12368_v29  ;;  %15236 = vmatprep.subr.bf16.mxu1 %v17146_v21  ;;  %v2220_v29 = vld [vmem:[#allocation6 + $0x2a0] sm:$0xff] }
 0x28c   : > { %v12370_v32 = vpop.f32.mrb[45].mxu1 }
 0x28d   : > { %v12371_v36 = vadd.f32 %v12370_v32, %v12369_v30  ;;  %3368 = vmatmul.mubr.f32.gmra.mrb[118].mxu1 %v3278_v38  ;;  %v2223_v30 = vld [vmem:[#allocation6 + $0x2b8] sm:$0xff]  ;;  %v2225_v32 = vld [vmem:[#allocation6 + $0x2c8] sm:$0xff] }
 0x28e   : > { %3372 = vmatprep.mubr.f32.mxu1 %v3281_v42  ;;  %15238 = vmatpush3.bf16.msra.mxu1 %v17154_v27  ;;  %v2229_v38 = vld [vmem:[#allocation6 + $0x2e8] sm:$0xff]  ;;  %v2231_v42 = vld [vmem:[#allocation6 + $0x2f8] sm:$0xff] }
 0x28f   : > { %v12372_v37 = vpop.f32.mrb[46].mxu1  ;;  %14055 = vmatprep.mubr.msk.f32.mxu0 %vm1157_vm1, %v12371_v36  ;;  %15240 = vmatprep.subr.bf16.mxu1 %v17158_v28  ;;  %v2227_v36 = vld [vmem:[#allocation6 + $0x2d8] sm:$0xff] }
 0x290   : > { %v12373_v39 = vpop.f32.mrb[47].mxu1 }
 0x291   : > { %v12374_v43 = vadd.f32 %v12373_v39, %v12372_v37  ;;  %3373 = vmatmul.mubr.f32.gmra.mrb[120].mxu1 %v3280_v45  ;;  %v2226_v37 = vld [vmem:[#allocation6 + $0x2d0] sm:$0xff]  ;;  %v2228_v39 = vld [vmem:[#allocation6 + $0x2e0] sm:$0xff] }
 0x292   : > { %3377 = vmatprep.mubr.f32.mxu1 %v3283_v51  ;;  %15242 = vmatpush3.bf16.msra.mxu1 %v17166_v34 }
 0x293   : > { %14056 = vmatmul.mubr.msk.f32.gmra.mrb[22].mxu0 %vm1157_vm1, %v12374_v43  ;;  %v12416_v44 = vpop.f32.mrb[48].mxu1  ;;  %15244 = vmatprep.subr.bf16.mxu1 %v17170_v35  ;;  %v2230_v43 = vld [vmem:[#allocation6 + $0x2f0] sm:$0xff] }
 0x294   : > { %v12417_v48 = vpop.f32.mrb[49].mxu1 }
 0x295   : > { %v12418_v52 = vadd.f32 %v12417_v48, %v12416_v44  ;;  %3378 = vmatmul.mubr.f32.gmra.mrb[122].mxu1 %v3282_v54 }
 0x296   : > { %3382 = vmatprep.mubr.f32.mxu1 %v3285_v56  ;;  %15246 = vmatpush3.bf16.msra.mxu1 %v17178_v40 }
 0x297   : > { %v12419_v53 = vpop.f32.mrb[50].mxu1  ;;  %14060 = vmatprep.mubr.msk.f32.mxu0 %vm1157_vm1, %v12418_v52  ;;  %15248 = vmatprep.subr.bf16.mxu1 %v17182_v41 }
 0x298   : > { %v12420_v55 = vpop.f32.mrb[51].mxu1 }
 0x299   : > { %v12421_v57 = vadd.f32 %v12420_v55, %v12419_v53  ;;  %3383 = vmatmul.mubr.f32.gmra.mrb[124].mxu1 %v3284_v61 }
 0x29a   : > { %3387 = vmatprep.mubr.f32.mxu1 %v3287_v63  ;;  %15250 = vmatpush3.bf16.msra.mxu1 %v17190_v46 }
 0x29b   : > { %14061 = vmatmul.mubr.msk.f32.vlgmr.msra.gmra.mrb[16].mxu0 %vm1157_vm1, %v12421_v57  ;;  %v12422_v60 = vpop.f32.mrb[52].mxu1  ;;  %15252 = vmatprep.subr.bf16.mxu1 %v17194_v47 }
 0x29c   : > { %15034 = vmatpush3.bf16.msra.mxu0 %v17119_v8  ;;  %v12423_v62 = vpop.f32.mrb[53].mxu1 }
 0x29d   : > { %v12424_v0 = vadd.f32 %v12423_v62, %v12422_v60  ;;  %15036 = vmatprep.subr.bf16.mxu0 %v17121_v9  ;;  %3388 = vmatmul.mubr.f32.gmra.mrb[126].mxu1 %v3286_v2 }
 0x29e   : > { %15254 = vmatpush3.bf16.msra.mxu1 %v17200_v50 }
 0x29f   : > { %v12425_v1 = vpop.f32.mrb[54].mxu1  ;;  %14063 = vmatprep.mubr.msk.f32.mxu0 %vm1157_vm1, %v12424_v0  ;;  %15256 = vmatprep.subr.bf16.mxu1 %v17114_v4 }
 0x2a0   : > { %15038 = vmatpush3.bf16.msra.mxu0 %v17130_v14  ;;  %v12426_v5 = vpop.f32.mrb[55].mxu1 }
 0x2a1   : > { %v12427_v6 = vadd.f32 %v12426_v5, %v12425_v1  ;;  %15040 = vmatprep.subr.bf16.mxu0 %v17134_v15 }
 0x2a3   : > { %v12428_v7 = vpop.f32.mrb[56].mxu1  ;;  %14064 = vmatmul.mubr.msk.f32.gmra.mrb[18].mxu0 %vm1157_vm1, %v12427_v6 }
 0x2a4   : > { %15042 = vmatpush3.bf16.msra.mxu0 %v17142_v20  ;;  %v12429_v10 = vpop.f32.mrb[57].mxu1 }
 0x2a5   : > { %v12430_v11 = vadd.f32 %v12429_v10, %v12428_v7  ;;  %15044 = vmatprep.subr.bf16.mxu0 %v17146_v21 }
 0x2a7   : > { %v12431_v12 = vpop.f32.mrb[58].mxu1  ;;  %14066 = vmatprep.mubr.msk.f32.mxu0 %vm1157_vm1, %v12430_v11 }
 0x2a8   : > { %15046 = vmatpush3.bf16.msra.mxu0 %v17154_v27  ;;  %v12432_v49 = vpop.f32.mrb[59].mxu1 }
 0x2a9   : > { %v12433_v13 = vadd.f32 %v12432_v49, %v12431_v12  ;;  %15048 = vmatprep.subr.bf16.mxu0 %v17158_v28 }
 0x2ab   : > { %v12434_v58 = vpop.f32.mrb[60].mxu1  ;;  %14067 = vmatmul.mubr.msk.f32.gmra.mrb[20].mxu0 %vm1157_vm1, %v12433_v13 }
 0x2ac   : > { %15050 = vmatpush3.bf16.msra.mxu0 %v17166_v34  ;;  %v12435_v17 = vpop.f32.mrb[61].mxu1 }
 0x2ad   : > { %v12436_v18 = vadd.f32 %v12435_v17, %v12434_v58  ;;  %15052 = vmatprep.subr.bf16.mxu0 %v17170_v35 }
 0x2af   : > { %v12437_v59 = vpop.f32.mrb[62].mxu1  ;;  %14069 = vmatprep.mubr.msk.f32.mxu0 %vm1157_vm1, %v12436_v18 }
 0x2b0   : > { %15054 = vmatpush3.bf16.msra.mxu0 %v17178_v40  ;;  %v12438_v3 = vpop.f32.mrb[63].mxu1 }
 0x2b1   : > { %v12439_v19 = vadd.f32 %v12438_v3, %v12437_v59  ;;  %15056 = vmatprep.subr.bf16.mxu0 %v17182_v41 }
 0x2b3   : > { %14070 = vmatmul.mubr.msk.f32.gmra.mrb[22].mxu0 %vm1157_vm1, %v12439_v19  ;;  %v12546_v44 = vpop.f32.mrb[64].mxu1 }
 0x2b4   : > { %15058 = vmatpush3.bf16.msra.mxu0 %v17190_v46  ;;  %2296 = vmatprep.mubr.f32.mxu0 %v2217_v16  ;;  %v12547_v45 = vpop.f32.mrb[65].mxu1 }
 0x2b5   : > { %15060 = vmatprep.subr.bf16.mxu0 %v17194_v47  ;;  %v17452_v48 = vadd.f32 %v12547_v45, %v12546_v44 }
 0x2b7   : > { %v12549_v51 = vpop.f32.mrb[66].mxu1 }
 0x2b8   : > { %15062 = vmatpush3.bf16.msra.mxu0 %v17200_v50  ;;  %v12550_v52 = vpop.f32.mrb[67].mxu1 }
 0x2b9   : > { %14072 = vmatprep.subr.msk.mxu0 %vm1182_vm0, %v11803_v22  ;;  %v17454_v53 = vadd.f32 %v12550_v52, %v12549_v51 }
 0x2bb   : > { %2297 = vmatmul.mubr.f32.vlgmr.msra.gmra.mrb[24].mxu0 %v2216_v23  ;;  %v12552_v54 = vpop.f32.mrb[68].mxu1  ;;  %v17477_v23 = vld [vmem:[%s19092_s8 + $0x18] sm:$0xf] }
 0x2bc   : > { %2301 = vmatprep.mubr.f32.mxu0 %v2219_v24  ;;  %14073 = vmatpush3.msk.msra.mxu0 %vm1182_vm0, %v11803_v22  ;;  %v12553_v55 = vpop.f32.mrb[69].mxu1 }
 0x2bd   : > { %v17456_v56 = vadd.f32 %v12553_v55, %v12552_v54  ;;  %14086 = vmatprep.subr.msk.mxu0 %vm1182_vm0, %v17477_v23 }
 0x2bf   : > { %2302 = vmatmul.mubr.f32.gmra.mrb[26].mxu0 %v2218_v25  ;;  %v12555_v57 = vpop.f32.mrb[70].mxu1 }
 0x2c0   : > { %2306 = vmatprep.mubr.f32.mxu0 %v2221_v26  ;;  %v12556_v60 = vpop.f32.mrb[71].mxu1 }
 0x2c1   : > { %v17458_v61 = vadd.f32 %v12556_v60, %v12555_v57 }
 0x2c3   : > { %2307 = vmatmul.mubr.f32.gmra.mrb[28].mxu0 %v2220_v29  ;;  %v12558_v62 = vpop.f32.mrb[72].mxu1 }
 0x2c4   : > { %2311 = vmatprep.mubr.f32.mxu0 %v2223_v30  ;;  %v12559_v63 = vpop.f32.mrb[73].mxu1 }
 0x2c5   : > { %v17460_v0 = vadd.f32 %v12559_v63, %v12558_v62 }
 0x2c7   : > { %2312 = vmatmul.mubr.f32.gmra.mrb[30].mxu0 %v2222_v31  ;;  %v12561_v1 = vpop.f32.mrb[74].mxu1 }
 0x2c8   : > { %2316 = vmatprep.mubr.f32.mxu0 %v2225_v32  ;;  %v12562_v2 = vpop.f32.mrb[75].mxu1 }
 0x2c9   : > { %v17462_v5 = vadd.f32 %v12562_v2, %v12561_v1 }
 0x2cb   : > { %2317 = vmatmul.mubr.f32.gmra.mrb[32].mxu0 %v2224_v33  ;;  %v12564_v6 = vpop.f32.mrb[76].mxu1 }
 0x2cc   : > { %2321 = vmatprep.mubr.f32.mxu0 %v2227_v36  ;;  %v12565_v7 = vpop.f32.mrb[77].mxu1 }
 0x2cd   : > { %v17464_v10 = vadd.f32 %v12565_v7, %v12564_v6 }
 0x2cf   : > { %2322 = vmatmul.mubr.f32.gmra.mrb[34].mxu0 %v2226_v37  ;;  %v12567_v11 = vpop.f32.mrb[78].mxu1 }
 0x2d0   : > { %2326 = vmatprep.mubr.f32.mxu0 %v2229_v38  ;;  %v12568_v12 = vpop.f32.mrb[79].mxu1 }
 0x2d1   : > { %v17466_v49 = vadd.f32 %v12568_v12, %v12567_v11 }
 0x2d3   : > { %2327 = vmatmul.mubr.f32.gmra.mrb[36].mxu0 %v2228_v39  ;;  %v12611_v13 = vpop.f32.mrb[80].mxu1 }
 0x2d4   : > { %2331 = vmatprep.mubr.f32.mxu0 %v2231_v42  ;;  %v12612_v58 = vpop.f32.mrb[81].mxu1 }
 0x2d5   : > { %v17468_v17 = vadd.f32 %v12612_v58, %v12611_v13 }
 0x2d7   : > { %2332 = vmatmul.mubr.f32.gmra.mrb[38].mxu0 %v2230_v43  ;;  %v12614_v18 = vpop.f32.mrb[82].mxu1 }
 0x2d8   : > { %v12615_v59 = vpop.f32.mrb[83].mxu1 }
 0x2d9   : > { %v17470_v3 = vadd.f32 %v12615_v59, %v12614_v18 }
 0x30b   : > { %v12617_v19 = vpop.f32.mrb[84].mxu1 }
 0x30c   : > { %v12618_v16 = vpop.f32.mrb[85].mxu1 }
 0x30d   : > { %v17472_v22 = vadd.f32 %v12618_v16, %v12617_v19 }
 0x311   : > { %v12620_v24 = vpop.f32.mrb[86].mxu1 }
 0x312   : > { %v12621_v25 = vpop.f32.mrb[87].mxu1 }
 0x313   : > { %v17481_v26 = vadd.f32 %v12621_v25, %v12620_v24 }
 0x315   : > { %v12623_v29 = vpop.f32.mrb[88].mxu1 }
 0x316   : > { %v12624_v30 = vpop.f32.mrb[89].mxu1 }
 0x317   : > { %v17483_v31 = vadd.f32 %v12624_v30, %v12623_v29 }
 0x319   : > { %v12626_v32 = vpop.f32.mrb[90].mxu1 }
 0x31a   : > { %v12627_v33 = vpop.f32.mrb[91].mxu1 }
 0x31b   : > { %v17485_v36 = vadd.f32 %v12627_v33, %v12626_v32 }
 0x31d   : > { %v12629_v37 = vpop.f32.mrb[92].mxu1 }
 0x31e   : > { %v12630_v38 = vpop.f32.mrb[93].mxu1 }
 0x31f   : > { %v17487_v39 = vadd.f32 %v12630_v38, %v12629_v37 }
 0x32f   : > { %v12632_v42 = vpop.f32.mrb[94].mxu1 }
 0x330   : > { %v12633_v43 = vpop.f32.mrb[95].mxu1 }
 0x331   : > { %v17489_v44 = vadd.f32 %v12633_v43, %v12632_v42 }
 0x333   : > { %v12676_v45 = vpop.f32.mrb[96].mxu1 }
 0x334   : > { %v12677_v51 = vpop.f32.mrb[97].mxu1 }
 0x335   : > { %v17491_v52 = vadd.f32 %v12677_v51, %v12676_v45 }
 0x337   : > { %v12679_v54 = vpop.f32.mrb[98].mxu1 }
 0x338   : > { %v12680_v55 = vpop.f32.mrb[99].mxu1 }
 0x339   : > { %v17493_v57 = vadd.f32 %v12680_v55, %v12679_v54 }
 0x33c   : > { %v12682_v60 = vpop.f32.mrb[100].mxu1 }
 0x33d   : > { %v12683_v62 = vpop.f32.mrb[101].mxu1 }
 0x33e   : > { %v17495_v63 = vadd.f32 %v12683_v62, %v12682_v60  ;;  %v3801_v62 = vld [vmem:[#allocation6 + $0x588] sm:$0xff] }
 0x33f   : > { %3880 = vmatprep.mubr.f32.mxu1 %v3801_v62 }
 0x340   : > { %v12685_v1 = vpop.f32.mrb[102].mxu1 }
 0x341   : > { %v12686_v2 = vpop.f32.mrb[103].mxu1 }
 0x342   : > { %v17497_v6 = vadd.f32 %v12686_v2, %v12685_v1  ;;  %v3800_v2 = vld [vmem:[#allocation6 + $0x580] sm:$0xff] }
 0x343   : > { %3881 = vmatmul.mubr.f32.vlgmr.msra.gmra.mrb[128].mxu1 %v3800_v2  ;;  %v3808_v2 = vld [vmem:[#allocation6 + $0x5c0] sm:$0xff] }
 0x344   : > { %v12688_v7 = vpop.f32.mrb[104].mxu1  ;;  %15258 = vmatpush3.bf16.msra.mxu1 %v17119_v8 }
 0x345   : > { %v12689_v11 = vpop.f32.mrb[105].mxu1  ;;  %15260 = vmatprep.subr.bf16.mxu1 %v17121_v9 }
 0x346   : > { %v17499_v12 = vadd.f32 %v12689_v11, %v12688_v7 }
 0x348   : > { %v12691_v13 = vpop.f32.mrb[106].mxu1  ;;  %15262 = vmatpush3.bf16.msra.mxu1 %v17130_v14 }
 0x349   : > { %v12692_v58 = vpop.f32.mrb[107].mxu1  ;;  %15264 = vmatprep.subr.bf16.mxu1 %v17134_v15 }
 0x34a   : > { %v17501_v18 = vadd.f32 %v12692_v58, %v12691_v13  ;;  %v3803_v13 = vld [vmem:[#allocation6 + $0x598] sm:$0xff] }
 0x34b   : > { %3885 = vmatprep.mubr.f32.mxu1 %v3803_v13  ;;  %v3810_v13 = vld [vmem:[#allocation6 + $0x5d0] sm:$0xff] }
 0x34c   : > { %v12694_v59 = vpop.f32.mrb[108].mxu1  ;;  %15266 = vmatpush3.bf16.msra.mxu1 %v17142_v20 }
 0x34d   : > { %v12695_v19 = vpop.f32.mrb[109].mxu1  ;;  %15268 = vmatprep.subr.bf16.mxu1 %v17146_v21 }
 0x34e   : > { %v17503_v16 = vadd.f32 %v12695_v19, %v12694_v59  ;;  %v3802_v59 = vld [vmem:[#allocation6 + $0x590] sm:$0xff] }
 0x34f   : > { %3886 = vmatmul.mubr.f32.gmra.mrb[130].mxu1 %v3802_v59  ;;  %v3812_v59 = vld [vmem:[#allocation6 + $0x5e0] sm:$0xff] }
 0x350   : > { %v12697_v24 = vpop.f32.mrb[110].mxu1  ;;  %15270 = vmatpush3.bf16.msra.mxu1 %v17154_v27 }
 0x351   : > { %v12698_v25 = vpop.f32.mrb[111].mxu1  ;;  %15272 = vmatprep.subr.bf16.mxu1 %v17158_v28 }
 0x352   : > { %v17505_v29 = vadd.f32 %v12698_v25, %v12697_v24  ;;  %v3805_v25 = vld [vmem:[#allocation6 + $0x5a8] sm:$0xff] }
 0x353   : > { %3890 = vmatprep.mubr.f32.mxu1 %v3805_v25  ;;  %v3814_v25 = vld [vmem:[#allocation6 + $0x5f0] sm:$0xff] }
 0x354   : > { %v12741_v30 = vpop.f32.mrb[112].mxu1  ;;  %15274 = vmatpush3.bf16.msra.mxu1 %v17166_v34 }
 0x355   : > { %v12742_v32 = vpop.f32.mrb[113].mxu1  ;;  %15276 = vmatprep.subr.bf16.mxu1 %v17170_v35 }
 0x356   : > { %v17507_v33 = vadd.f32 %v12742_v32, %v12741_v30  ;;  %v3804_v32 = vld [vmem:[#allocation6 + $0x5a0] sm:$0xff] }
 0x357   : > { %3891 = vmatmul.mubr.f32.gmra.mrb[132].mxu1 %v3804_v32  ;;  %v4064_v32 = vld [vmem:[#allocation6 + $0x600] sm:$0xff] }
 0x358   : > { %v12744_v37 = vpop.f32.mrb[114].mxu1  ;;  %15278 = vmatpush3.bf16.msra.mxu1 %v17178_v40 }
 0x359   : > { %v12745_v38 = vpop.f32.mrb[115].mxu1  ;;  %15280 = vmatprep.subr.bf16.mxu1 %v17182_v41 }
 0x35a   : > { %v17509_v42 = vadd.f32 %v12745_v38, %v12744_v37 }
 0x35c   : > { %v12747_v43 = vpop.f32.mrb[116].mxu1  ;;  %15282 = vmatpush3.bf16.msra.mxu1 %v17190_v46 }
 0x35d   : > { %v12748_v45 = vpop.f32.mrb[117].mxu1  ;;  %15284 = vmatprep.subr.bf16.mxu1 %v17194_v47 }
 0x35e   : > { %v17511_v51 = vadd.f32 %v12748_v45, %v12747_v43  ;;  %v3807_v43 = vld [vmem:[#allocation6 + $0x5b8] sm:$0xff] }
 0x35f   : > { %3895 = vmatprep.mubr.f32.mxu1 %v3807_v43  ;;  %v4067_v43 = vld [vmem:[#allocation6 + $0x618] sm:$0xff] }
 0x360   : > { %v12750_v54 = vpop.f32.mrb[118].mxu1  ;;  %15286 = vmatpush3.bf16.msra.mxu1 %v17200_v50 }
 0x361   : > { %v12751_v55 = vpop.f32.mrb[119].mxu1  ;;  %15288 = vmatprep.subr.bf16.mxu1 %v17114_v4 }
 0x362   : > { %v17513_v60 = vadd.f32 %v12751_v55, %v12750_v54  ;;  %v3806_v54 = vld [vmem:[#allocation6 + $0x5b0] sm:$0xff] }
 0x363   : > { %3896 = vmatmul.mubr.f32.gmra.mrb[134].mxu1 %v3806_v54  ;;  %v4066_v54 = vld [vmem:[#allocation6 + $0x610] sm:$0xff] }
 0x364   : > { %v12753_v1 = vpop.f32.mrb[120].mxu1 }
 0x365   : > { %v12754_v7 = vpop.f32.mrb[121].mxu1 }
 0x366   : > { %v17515_v11 = vadd.f32 %v12754_v7, %v12753_v1  ;;  %v3809_v1 = vld [vmem:[#allocation6 + $0x5c8] sm:$0xff]  ;;  %v3811_v7 = vld [vmem:[#allocation6 + $0x5d8] sm:$0xff] }
 0x367   : > { %3900 = vmatprep.mubr.f32.mxu1 %v3809_v1 }
 0x368   : > { %v12756_v58 = vpop.f32.mrb[122].mxu1  ;;  %3901 = vmatmul.mubr.f32.gmra.mrb[136].mxu1 %v3808_v2  ;;  %v4069_v2 = vld [vmem:[#allocation6 + $0x628] sm:$0xff] }
 0x369   : > { %v12757_v19 = vpop.f32.mrb[123].mxu1  ;;  %3905 = vmatprep.mubr.f32.mxu1 %v3811_v7 }
 0x36a   : > { %v17519_v24 = vadd.f32 %v12757_v19, %v12756_v58  ;;  %v3813_v58 = vld [vmem:[#allocation6 + $0x5e8] sm:$0xff]  ;;  %v3815_v19 = vld [vmem:[#allocation6 + $0x5f8] sm:$0xff] }
 0x36c   : > { %v12759_v30 = vpop.f32.mrb[124].mxu1  ;;  %3906 = vmatmul.mubr.f32.gmra.mrb[138].mxu1 %v3810_v13  ;;  %v4068_v13 = vld [vmem:[#allocation6 + $0x620] sm:$0xff] }
 0x36d   : > { %v12760_v37 = vpop.f32.mrb[125].mxu1  ;;  %3910 = vmatprep.mubr.f32.mxu1 %v3813_v58 }
 0x36e   : > { %v17523_v38 = vadd.f32 %v12760_v37, %v12759_v30  ;;  %v4065_v30 = vld [vmem:[#allocation6 + $0x608] sm:$0xff] }
 0x370   : > { %v12762_v45 = vpop.f32.mrb[126].mxu1  ;;  %3911 = vmatmul.mubr.f32.gmra.mrb[140].mxu1 %v3812_v59  ;;  %v17547_v59 = vld [vmem:[%s19092_s8 + $0x1c] sm:$0xf] }
 0x371   : > { %v12763_v55 = vpop.f32.mrb[127].mxu1  ;;  %3915 = vmatprep.mubr.f32.mxu1 %v3815_v19 }
 0x372   : > { %v17527_v62 = vadd.f32 %v12763_v55, %v12762_v45 }
 0x374   : > { %3916 = vmatmul.mubr.f32.gmra.mrb[142].mxu1 %v3814_v25  ;;  %v4071_v25 = vld [vmem:[#allocation6 + $0x638] sm:$0xff] }
 0x375   : > { %4144 = vmatprep.mubr.f32.mxu1 %v4065_v30 }
 0x378   : > { %4145 = vmatmul.mubr.f32.vlgmr.msra.gmra.mrb[144].mxu1 %v4064_v32  ;;  %v4070_v32 = vld [vmem:[#allocation6 + $0x630] sm:$0xff] }
 0x379   : > { %15290 = vmatpush3.bf16.msra.mxu1 %v17119_v8  ;;  %4149 = vmatprep.mubr.f32.mxu1 %v4067_v43 }
 0x37a   : > { %15292 = vmatprep.subr.bf16.mxu1 %v17121_v9 }
 0x37c   : > { %4150 = vmatmul.mubr.f32.gmra.mrb[146].mxu1 %v4066_v54 }
 0x37d   : > { %15294 = vmatpush3.bf16.msra.mxu1 %v17130_v14  ;;  %4154 = vmatprep.mubr.f32.mxu1 %v4069_v2  ;;  %v4075_v2 = vld [vmem:[#allocation6 + $0x658] sm:$0xff] }
 0x37e   : > { %15296 = vmatprep.subr.bf16.mxu1 %v17134_v15 }
 0x380   : > { %4155 = vmatmul.mubr.f32.gmra.mrb[148].mxu1 %v4068_v13 }
 0x381   : > { %15298 = vmatpush3.bf16.msra.mxu1 %v17142_v20  ;;  %4159 = vmatprep.mubr.f32.mxu1 %v4071_v25 }
 0x382   : > { %15300 = vmatprep.subr.bf16.mxu1 %v17146_v21 }
 0x384   : > { %4160 = vmatmul.mubr.f32.gmra.mrb[150].mxu1 %v4070_v32 }
 0x385   : > { %15302 = vmatpush3.bf16.msra.mxu1 %v17154_v27 }
 0x386   : > { %15304 = vmatprep.subr.bf16.mxu1 %v17158_v28 }
 0x389   : > { %15306 = vmatpush3.bf16.msra.mxu1 %v17166_v34 }
 0x38a   : > { %15308 = vmatprep.subr.bf16.mxu1 %v17170_v35 }
 0x38d   : > { %15310 = vmatpush3.bf16.msra.mxu1 %v17178_v40 }
 0x38e   : > { %v12481_v37 = vpop.f32.mrb[24].mxu0  ;;  %15312 = vmatprep.subr.bf16.mxu1 %v17182_v41 }
 0x38f   : > { %v12482_v45 = vpop.f32.mrb[25].mxu0 }
 0x390   : > { %v12483_v55 = vadd.f32 %v12482_v45, %v12481_v37  ;;  %v4073_v45 = vld [vmem:[#allocation6 + $0x648] sm:$0xff] }
 0x391   : > { %4164 = vmatprep.mubr.f32.mxu1 %v4073_v45  ;;  %15314 = vmatpush3.bf16.msra.mxu1 %v17190_v46 }
 0x392   : > { %v12484_v1 = vpop.f32.mrb[26].mxu0  ;;  %14074 = vmatprep.mubr.msk.f32.mxu0 %vm1157_vm1, %v12483_v55  ;;  %v4072_v55 = vld [vmem:[#allocation6 + $0x640] sm:$0xff]  ;;  %15316 = vmatprep.subr.bf16.mxu1 %v17194_v47 }
 0x393   : > { %v12485_v7 = vpop.f32.mrb[27].mxu0  ;;  %4165 = vmatmul.mubr.f32.gmra.mrb[152].mxu1 %v4072_v55 }
 0x394   : > { %v12486_v58 = vadd.f32 %v12485_v7, %v12484_v1  ;;  %v4074_v7 = vld [vmem:[#allocation6 + $0x650] sm:$0xff]  ;;  %4169 = vmatprep.mubr.f32.mxu1 %v4075_v2 }
 0x395   : > { %15318 = vmatpush3.bf16.msra.mxu1 %v17200_v50 }
 0x396   : > { %v12487_v19 = vpop.f32.mrb[28].mxu0  ;;  %14075 = vmatmul.mubr.msk.f32.vlgmr.msra.gmra.mrb[16].mxu0 %vm1157_vm1, %v12486_v58  ;;  %15320 = vmatprep.subr.bf16.mxu1 %v17114_v4 }
 0x397   : > { %v12488_v30 = vpop.f32.mrb[29].mxu0  ;;  %14087 = vmatpush3.msk.msra.mxu0 %vm1182_vm0, %v17477_v23  ;;  %4170 = vmatmul.mubr.f32.gmra.mrb[154].mxu1 %v4074_v7  ;;  %v4328_v7 = vld [vmem:[#allocation6 + $0x680] sm:$0xff] }
 0x398   : > { %v12489_v37 = vadd.f32 %v12488_v30, %v12487_v19  ;;  %14100 = vmatprep.subr.msk.mxu0 %vm1182_vm0, %v17547_v59  ;;  %v4077_v19 = vld [vmem:[#allocation6 + $0x668] sm:$0xff]  ;;  %v4076_v30 = vld [vmem:[#allocation6 + $0x660] sm:$0xff] }
 0x399   : > { %4174 = vmatprep.mubr.f32.mxu1 %v4077_v19  ;;  %v4331_v19 = vld [vmem:[#allocation6 + $0x698] sm:$0xff] }
 0x39a   : > { %v12490_v43 = vpop.f32.mrb[30].mxu0  ;;  %14077 = vmatprep.mubr.msk.f32.mxu0 %vm1157_vm1, %v12489_v37 }
 0x39b   : > { %v12491_v54 = vpop.f32.mrb[31].mxu0  ;;  %4175 = vmatmul.mubr.f32.gmra.mrb[156].mxu1 %v4076_v30  ;;  %v11833_v30 = vld [vmem:[%s19092_s8 + $0x20] sm:$0xf] }
 0x39c   : > { %v12492_v23 = vadd.f32 %v12491_v54, %v12490_v43  ;;  %v4079_v43 = vld [vmem:[#allocation6 + $0x678] sm:$0xff]  ;;  %v4078_v54 = vld [vmem:[#allocation6 + $0x670] sm:$0xff] }
 0x39d   : > { %4179 = vmatprep.mubr.f32.mxu1 %v4079_v43  ;;  %v4592_v43 = vld [vmem:[#allocation6 + $0x700] sm:$0xff] }
 0x39e   : > { %v12493_v1 = vpop.f32.mrb[32].mxu0  ;;  %14078 = vmatmul.mubr.msk.f32.gmra.mrb[18].mxu0 %vm1157_vm1, %v12492_v23 }
 0x39f   : > { %v12494_v13 = vpop.f32.mrb[33].mxu0  ;;  %4180 = vmatmul.mubr.f32.gmra.mrb[158].mxu1 %v4078_v54  ;;  %v3542_v54 = vld [vmem:[#allocation6 + $0x530] sm:$0xff] }
 0x3a0   : > { %v12495_v58 = vadd.f32 %v12494_v13, %v12493_v1  ;;  %v4329_v1 = vld [vmem:[#allocation6 + $0x688] sm:$0xff] }
 0x3a1   : > { %4408 = vmatprep.mubr.f32.mxu1 %v4329_v1  ;;  %v3547_v1 = vld [vmem:[#allocation6 + $0x558] sm:$0xff] }
 0x3a2   : > { %v12496_v25 = vpop.f32.mrb[34].mxu0  ;;  %14080 = vmatprep.mubr.msk.f32.mxu0 %vm1157_vm1, %v12495_v58 }
 0x3a3   : > { %v12497_v32 = vpop.f32.mrb[35].mxu0  ;;  %4409 = vmatmul.mubr.f32.vlgmr.msra.gmra.mrb[160].mxu1 %v4328_v7  ;;  %v3549_v7 = vld [vmem:[#allocation6 + $0x568] sm:$0xff] }
 0x3a4   : > { %v12498_v37 = vadd.f32 %v12497_v32, %v12496_v25  ;;  %15322 = vmatpush3.bf16.msra.mxu1 %v17119_v8  ;;  %v4330_v25 = vld [vmem:[#allocation6 + $0x690] sm:$0xff]  ;;  %4413 = vmatprep.mubr.f32.mxu1 %v4331_v19  ;;  %v4333_v32 = vld [vmem:[#allocation6 + $0x6a8] sm:$0xff] }
 0x3a5   : > { %15324 = vmatprep.subr.bf16.mxu1 %v17121_v9  ;;  %v3550_v19 = vld [vmem:[#allocation6 + $0x570] sm:$0xff] }
 0x3a6   : > { %v12499_v45 = vpop.f32.mrb[36].mxu0  ;;  %14081 = vmatmul.mubr.msk.f32.gmra.mrb[20].mxu0 %vm1157_vm1, %v12498_v37  ;;  %v4332_v37 = vld [vmem:[#allocation6 + $0x6a0] sm:$0xff] }
 0x3a7   : > { %v12500_v55 = vpop.f32.mrb[37].mxu0  ;;  %4414 = vmatmul.mubr.f32.gmra.mrb[162].mxu1 %v4330_v25 }
 0x3a8   : > { %v12501_v23 = vadd.f32 %v12500_v55, %v12499_v45  ;;  %15326 = vmatpush3.bf16.msra.mxu1 %v17130_v14  ;;  %4418 = vmatprep.mubr.f32.mxu1 %v4333_v32  ;;  %v3543_v45 = vld [vmem:[#allocation6 + $0x538] sm:$0xff]  ;;  %v3545_v55 = vld [vmem:[#allocation6 + $0x548] sm:$0xff] }
 0x3a9   : > { %15328 = vmatprep.subr.bf16.mxu1 %v17134_v15 }
 0x3aa   : > { %v12502_v2 = vpop.f32.mrb[38].mxu0  ;;  %14083 = vmatprep.mubr.msk.f32.mxu0 %vm1157_vm1, %v12501_v23  ;;  %v3544_v23 = vld [vmem:[#allocation6 + $0x540] sm:$0xff] }
 0x3ab   : > { %v12503_v13 = vpop.f32.mrb[39].mxu0  ;;  %4419 = vmatmul.mubr.f32.gmra.mrb[164].mxu1 %v4332_v37 }
 0x3ac   : > { %v12504_v58 = vadd.f32 %v12503_v13, %v12502_v2  ;;  %15330 = vmatpush3.bf16.msra.mxu1 %v17142_v20  ;;  %v3546_v2 = vld [vmem:[#allocation6 + $0x550] sm:$0xff]  ;;  %v3548_v13 = vld [vmem:[#allocation6 + $0x560] sm:$0xff] }
 0x3ad   : > { %15332 = vmatprep.subr.bf16.mxu1 %v17146_v21 }
 0x3ae   : > { %14084 = vmatmul.mubr.msk.f32.gmra.mrb[22].mxu0 %vm1157_vm1, %v12504_v58  ;;  %v3551_v58 = vld [vmem:[#allocation6 + $0x578] sm:$0xff] }
 0x3af   : > { %14088 = vmatprep.mubr.msk.f32.mxu0 %vm1157_vm1, %v17452_v48  ;;  %v4335_v48 = vld [vmem:[#allocation6 + $0x6b8] sm:$0xff] }
 0x3b0   : > { %4423 = vmatprep.mubr.f32.mxu1 %v4335_v48  ;;  %15334 = vmatpush3.bf16.msra.mxu1 %v17154_v27 }
 0x3b1   : > { %15336 = vmatprep.subr.bf16.mxu1 %v17158_v28 }
 0x3b2   : > { %14089 = vmatmul.mubr.msk.f32.vlgmr.msra.gmra.mrb[16].mxu0 %vm1157_vm1, %v17454_v53  ;;  %v4334_v53 = vld [vmem:[#allocation6 + $0x6b0] sm:$0xff] }
 0x3b3   : > { %14091 = vmatprep.mubr.msk.f32.mxu0 %vm1157_vm1, %v17456_v56  ;;  %14101 = vmatpush3.msk.msra.mxu0 %vm1182_vm0, %v17547_v59  ;;  %v4337_v56 = vld [vmem:[#allocation6 + $0x6c8] sm:$0xff]  ;;  %v4336_v59 = vld [vmem:[#allocation6 + $0x6c0] sm:$0xff] }
 0x3b4   : > { %14114 = vmatprep.subr.msk.mxu0 %vm1182_vm0, %v11833_v30  ;;  %4424 = vmatmul.mubr.f32.gmra.mrb[166].mxu1 %v4334_v53 }
 0x3b5   : > { %4428 = vmatprep.mubr.f32.mxu1 %v4337_v56  ;;  %15338 = vmatpush3.bf16.msra.mxu1 %v17166_v34 }
 0x3b6   : > { %14092 = vmatmul.mubr.msk.f32.gmra.mrb[18].mxu0 %vm1157_vm1, %v17458_v61  ;;  %v4339_v61 = vld [vmem:[#allocation6 + $0x6d8] sm:$0xff]  ;;  %15340 = vmatprep.subr.bf16.mxu1 %v17170_v35 }
 0x3b7   : > { %14094 = vmatprep.mubr.msk.f32.mxu0 %vm1157_vm1, %v17460_v0  ;;  %v4338_v0 = vld [vmem:[#allocation6 + $0x6d0] sm:$0xff] }
 0x3b8   : > { %4429 = vmatmul.mubr.f32.gmra.mrb[168].mxu1 %v4336_v59 }
 0x3b9   : > { %4433 = vmatprep.mubr.f32.mxu1 %v4339_v61  ;;  %15342 = vmatpush3.bf16.msra.mxu1 %v17178_v40 }
 0x3ba   : > { %14095 = vmatmul.mubr.msk.f32.gmra.mrb[20].mxu0 %vm1157_vm1, %v17462_v5  ;;  %v11843_v5 = vld [vmem:[%s19092_s8 + $0x24] sm:$0xf]  ;;  %15344 = vmatprep.subr.bf16.mxu1 %v17182_v41 }
 0x3bb   : > { %14097 = vmatprep.mubr.msk.f32.mxu0 %vm1157_vm1, %v17464_v10  ;;  %v4341_v10 = vld [vmem:[#allocation6 + $0x6e8] sm:$0xff] }
 0x3bc   : > { %4434 = vmatmul.mubr.f32.gmra.mrb[170].mxu1 %v4338_v0 }
 0x3bd   : > { %4438 = vmatprep.mubr.f32.mxu1 %v4341_v10  ;;  %15346 = vmatpush3.bf16.msra.mxu1 %v17190_v46 }
 0x3be   : > { %14098 = vmatmul.mubr.msk.f32.gmra.mrb[22].mxu0 %vm1157_vm1, %v17466_v49  ;;  %v4340_v49 = vld [vmem:[#allocation6 + $0x6e0] sm:$0xff]  ;;  %15348 = vmatprep.subr.bf16.mxu1 %v17194_v47 }
 0x3bf   : > { %14102 = vmatprep.mubr.msk.f32.mxu0 %vm1157_vm1, %v17468_v17  ;;  %v4343_v17 = vld [vmem:[#allocation6 + $0x6f8] sm:$0xff] }
 0x3c0   : > { %4439 = vmatmul.mubr.f32.gmra.mrb[172].mxu1 %v4340_v49 }
 0x3c1   : > { %4443 = vmatprep.mubr.f32.mxu1 %v4343_v17  ;;  %15350 = vmatpush3.bf16.msra.mxu1 %v17200_v50 }
 0x3c2   : > { %14103 = vmatmul.mubr.msk.f32.vlgmr.msra.gmra.mrb[16].mxu0 %vm1157_vm1, %v17470_v3  ;;  %v4342_v3 = vld [vmem:[#allocation6 + $0x6f0] sm:$0xff]  ;;  %15384 = vmatprep.subr.bf16.mxu1 %v17114_v4 }
 0x3c3   : > { %14105 = vmatprep.mubr.msk.f32.mxu0 %vm1157_vm1, %v17472_v22  ;;  %14115 = vmatpush3.msk.msra.mxu0 %vm1182_vm0, %v11833_v30  ;;  %v4593_v22 = vld [vmem:[#allocation6 + $0x708] sm:$0xff] }
 0x3c4   : > { %14128 = vmatprep.subr.msk.mxu0 %vm1182_vm0, %v11843_v5  ;;  %4444 = vmatmul.mubr.f32.gmra.mrb[174].mxu1 %v4342_v3 }
 0x3c5   : > { %4672 = vmatprep.mubr.f32.mxu1 %v4593_v22 }
 0x3c6   : > { %14106 = vmatmul.mubr.msk.f32.gmra.mrb[18].mxu0 %vm1157_vm1, %v17481_v26  ;;  %v4595_v26 = vld [vmem:[#allocation6 + $0x718] sm:$0xff] }
 0x3c7   : > { %14108 = vmatprep.mubr.msk.f32.mxu0 %vm1157_vm1, %v17483_v31  ;;  %v4594_v31 = vld [vmem:[#allocation6 + $0x710] sm:$0xff] }
 0x3c8   : > { %4673 = vmatmul.mubr.f32.vlgmr.msra.gmra.mrb[176].mxu1 %v4592_v43 }
 0x3c9   : > { %4677 = vmatprep.mubr.f32.mxu1 %v4595_v26  ;;  %15386 = vmatpush3.bf16.msra.mxu1 %v17119_v8 }
 0x3ca   : > { %14109 = vmatmul.mubr.msk.f32.gmra.mrb[20].mxu0 %vm1157_vm1, %v17485_v36  ;;  %v4597_v36 = vld [vmem:[#allocation6 + $0x728] sm:$0xff]  ;;  %15388 = vmatprep.subr.bf16.mxu1 %v17121_v9 }
 0x3cb   : > { %14111 = vmatprep.mubr.msk.f32.mxu0 %vm1157_vm1, %v17487_v39  ;;  %v4596_v39 = vld [vmem:[#allocation6 + $0x720] sm:$0xff] }
 0x3cc   : > { %4678 = vmatmul.mubr.f32.gmra.mrb[178].mxu1 %v4594_v31 }
 0x3cd   : > { %4682 = vmatprep.mubr.f32.mxu1 %v4597_v36  ;;  %15390 = vmatpush3.bf16.msra.mxu1 %v17130_v14 }
 0x3ce   : > { %14112 = vmatmul.mubr.msk.f32.gmra.mrb[22].mxu0 %vm1157_vm1, %v17489_v44  ;;  %v4599_v44 = vld [vmem:[#allocation6 + $0x738] sm:$0xff]  ;;  %15392 = vmatprep.subr.bf16.mxu1 %v17134_v15 }
 0x3cf   : > { %14116 = vmatprep.mubr.msk.f32.mxu0 %vm1157_vm1, %v17491_v52  ;;  %v4598_v52 = vld [vmem:[#allocation6 + $0x730] sm:$0xff] }
 0x3d0   : > { %4683 = vmatmul.mubr.f32.gmra.mrb[180].mxu1 %v4596_v39 }
 0x3d1   : > { %4687 = vmatprep.mubr.f32.mxu1 %v4599_v44  ;;  %15394 = vmatpush3.bf16.msra.mxu1 %v17142_v20 }
 0x3d2   : > { %14117 = vmatmul.mubr.msk.f32.vlgmr.msra.gmra.mrb[16].mxu0 %vm1157_vm1, %v17493_v57  ;;  %v4601_v57 = vld [vmem:[#allocation6 + $0x748] sm:$0xff]  ;;  %15396 = vmatprep.subr.bf16.mxu1 %v17146_v21 }
 0x3d3   : > { %14119 = vmatprep.mubr.msk.f32.mxu0 %vm1157_vm1, %v17495_v63  ;;  %14129 = vmatpush3.msk.msra.mxu0 %vm1182_vm0, %v11843_v5  ;;  %v4600_v63 = vld [vmem:[#allocation6 + $0x740] sm:$0xff] }
 0x3d4   : > { %15192 = vmatprep.subr.bf16.mxu0 %v17114_v4  ;;  %4688 = vmatmul.mubr.f32.gmra.mrb[182].mxu1 %v4598_v52 }
 0x3d5   : > { %4692 = vmatprep.mubr.f32.mxu1 %v4601_v57  ;;  %15398 = vmatpush3.bf16.msra.mxu1 %v17154_v27 }
 0x3d6   : > { %14120 = vmatmul.mubr.msk.f32.gmra.mrb[18].mxu0 %vm1157_vm1, %v17497_v6  ;;  %v4603_v6 = vld [vmem:[#allocation6 + $0x758] sm:$0xff]  ;;  %15400 = vmatprep.subr.bf16.mxu1 %v17158_v28 }
 0x3d7   : > { %14122 = vmatprep.mubr.msk.f32.mxu0 %vm1157_vm1, %v17499_v12  ;;  %v4602_v12 = vld [vmem:[#allocation6 + $0x750] sm:$0xff] }
 0x3d8   : > { %4693 = vmatmul.mubr.f32.gmra.mrb[184].mxu1 %v4600_v63 }
 0x3d9   : > { %4697 = vmatprep.mubr.f32.mxu1 %v4603_v6  ;;  %15402 = vmatpush3.bf16.msra.mxu1 %v17166_v34 }
 0x3da   : > { %14123 = vmatmul.mubr.msk.f32.gmra.mrb[20].mxu0 %vm1157_vm1, %v17501_v18  ;;  %v4605_v18 = vld [vmem:[#allocation6 + $0x768] sm:$0xff]  ;;  %15404 = vmatprep.subr.bf16.mxu1 %v17170_v35 }
 0x3db   : > { %14125 = vmatprep.mubr.msk.f32.mxu0 %vm1157_vm1, %v17503_v16  ;;  %v4604_v16 = vld [vmem:[#allocation6 + $0x760] sm:$0xff] }
 0x3dc   : > { %4698 = vmatmul.mubr.f32.gmra.mrb[186].mxu1 %v4602_v12 }
 0x3dd   : > { %4702 = vmatprep.mubr.f32.mxu1 %v4605_v18  ;;  %15406 = vmatpush3.bf16.msra.mxu1 %v17178_v40 }
 0x3de   : > { %14126 = vmatmul.mubr.msk.f32.gmra.mrb[22].mxu0 %vm1157_vm1, %v17505_v29  ;;  %v4607_v29 = vld [vmem:[#allocation6 + $0x778] sm:$0xff]  ;;  %15408 = vmatprep.subr.bf16.mxu1 %v17182_v41 }
 0x3df   : > { %14130 = vmatprep.mubr.msk.f32.mxu0 %vm1157_vm1, %v17507_v33  ;;  %v4606_v33 = vld [vmem:[#allocation6 + $0x770] sm:$0xff] }
 0x3e0   : > { %4703 = vmatmul.mubr.f32.gmra.mrb[188].mxu1 %v4604_v16 }
 0x3e1   : > { %4707 = vmatprep.mubr.f32.mxu1 %v4607_v29  ;;  %15410 = vmatpush3.bf16.msra.mxu1 %v17190_v46 }
 0x3e2   : > { %14131 = vmatmul.mubr.msk.f32.vlgmr.msra.gmra.mrb[16].mxu0 %vm1157_vm1, %v17509_v42  ;;  %15412 = vmatprep.subr.bf16.mxu1 %v17194_v47  ;;  %v3537_v42 = vld [vmem:[#allocation6 + $0x508] sm:$0xff] }
 0x3e3   : > { %15194 = vmatpush3.bf16.msra.mxu0 %v17119_v8  ;;  %14133 = vmatprep.mubr.msk.f32.mxu0 %vm1157_vm1, %v17511_v51  ;;  %v11853_v51 = vld [vmem:[%s19092_s8 + $0x28] sm:$0xf] }
 0x3e4   : > { %15196 = vmatprep.subr.bf16.mxu0 %v17121_v9  ;;  %4708 = vmatmul.mubr.f32.gmra.mrb[190].mxu1 %v4606_v33 }
 0x3e5   : > { %15414 = vmatpush3.bf16.msra.mxu1 %v17200_v50 }
 0x3e6   : > { %14134 = vmatmul.mubr.msk.f32.gmra.mrb[18].mxu0 %vm1157_vm1, %v17513_v60  ;;  %15416 = vmatprep.subr.bf16.mxu1 %v17114_v4  ;;  %v3536_v60 = vld [vmem:[#allocation6 + $0x500] sm:$0xff] }
 0x3e7   : > { %15198 = vmatpush3.bf16.msra.mxu0 %v17130_v14  ;;  %14136 = vmatprep.mubr.msk.f32.mxu0 %vm1157_vm1, %v17515_v11  ;;  %v3539_v11 = vld [vmem:[#allocation6 + $0x518] sm:$0xff] }
 0x3e8   : > { %15200 = vmatprep.subr.bf16.mxu0 %v17134_v15 }
 0x3ea   : > { %14137 = vmatmul.mubr.msk.f32.gmra.mrb[20].mxu0 %vm1157_vm1, %v17519_v24  ;;  %v3538_v24 = vld [vmem:[#allocation6 + $0x510] sm:$0xff] }
 0x3eb   : > { %15202 = vmatpush3.bf16.msra.mxu0 %v17142_v20  ;;  %14139 = vmatprep.mubr.msk.f32.mxu0 %vm1157_vm1, %v17523_v38  ;;  %v3541_v38 = vld [vmem:[#allocation6 + $0x528] sm:$0xff] }
 0x3ec   : > { %15204 = vmatprep.subr.bf16.mxu0 %v17146_v21 }
 0x3ee   : > { %14140 = vmatmul.mubr.msk.f32.gmra.mrb[22].mxu0 %vm1157_vm1, %v17527_v62  ;;  %v3540_v62 = vld [vmem:[#allocation6 + $0x520] sm:$0xff] }
 0x3ef   : > { %15206 = vmatpush3.bf16.msra.mxu0 %v17154_v27  ;;  %3616 = vmatprep.mubr.f32.mxu0 %v3537_v42 }
 0x3f0   : > { %15208 = vmatprep.subr.bf16.mxu0 %v17158_v28 }
 0x3f3   : > { %15210 = vmatpush3.bf16.msra.mxu0 %v17166_v34 }
 0x3f4   : > { %15212 = vmatprep.subr.bf16.mxu0 %v17170_v35 }
 0x3f7   : > { %15214 = vmatpush3.bf16.msra.mxu0 %v17178_v40 }
 0x3f8   : > { %15216 = vmatprep.subr.bf16.mxu0 %v17182_v41 }
 0x3fb   : > { %15218 = vmatpush3.bf16.msra.mxu0 %v17190_v46 }
 0x3fc   : > { %15220 = vmatprep.subr.bf16.mxu0 %v17194_v47 }
 0x3ff   : > { %15222 = vmatpush3.bf16.msra.mxu0 %v17200_v50 }
 0x400   : > { %14142 = vmatprep.subr.msk.mxu0 %vm1182_vm0, %v11853_v51 }
 0x402   : > { %3617 = vmatmul.mubr.f32.vlgmr.msra.gmra.mrb[40].mxu0 %v3536_v60  ;;  %v17726_v60 = vld [vmem:[%s19092_s8 + $0x2c] sm:$0xf] }
 0x403   : > { %3621 = vmatprep.mubr.f32.mxu0 %v3539_v11  ;;  %14143 = vmatpush3.msk.msra.mxu0 %vm1182_vm0, %v11853_v51 }
 0x404   : > { %14156 = vmatprep.subr.msk.mxu0 %vm1182_vm0, %v17726_v60 }
 0x406   : > { %3622 = vmatmul.mubr.f32.gmra.mrb[42].mxu0 %v3538_v24 }
 0x407   : > { %3626 = vmatprep.mubr.f32.mxu0 %v3541_v38 }
 0x40a   : > { %3627 = vmatmul.mubr.f32.gmra.mrb[44].mxu0 %v3540_v62 }
 0x40b   : > { %3631 = vmatprep.mubr.f32.mxu0 %v3543_v45 }
 0x40e   : > { %3632 = vmatmul.mubr.f32.gmra.mrb[46].mxu0 %v3542_v54 }
 0x40f   : > { %3636 = vmatprep.mubr.f32.mxu0 %v3545_v55 }
 0x412   : > { %3637 = vmatmul.mubr.f32.gmra.mrb[48].mxu0 %v3544_v23 }
 0x413   : > { %3641 = vmatprep.mubr.f32.mxu0 %v3547_v1 }
 0x416   : > { %3642 = vmatmul.mubr.f32.gmra.mrb[50].mxu0 %v3546_v2  ;;  %v12871_v25 = vpop.f32.mrb[128].mxu1 }
 0x417   : > { %3646 = vmatprep.mubr.f32.mxu0 %v3549_v7  ;;  %v12872_v30 = vpop.f32.mrb[129].mxu1 }
 0x418   : > { %v17701_v32 = vadd.f32 %v12872_v30, %v12871_v25 }
 0x41a   : > { %3647 = vmatmul.mubr.f32.gmra.mrb[52].mxu0 %v3548_v13 }
 0x41b   : > { %3651 = vmatprep.mubr.f32.mxu0 %v3551_v58 }
 0x41e   : > { %3652 = vmatmul.mubr.f32.gmra.mrb[54].mxu0 %v3550_v19 }
 0x422   : > { %v12874_v37 = vpop.f32.mrb[130].mxu1 }
 0x423   : > { %v12875_v48 = vpop.f32.mrb[131].mxu1 }
 0x424   : > { %v17703_v53 = vadd.f32 %v12875_v48, %v12874_v37 }
 0x42a   : > { %v12877_v56 = vpop.f32.mrb[132].mxu1 }
 0x42b   : > { %v12878_v59 = vpop.f32.mrb[133].mxu1 }
 0x42c   : > { %v17705_v61 = vadd.f32 %v12878_v59, %v12877_v56 }
 0x436   : > { %v12880_v0 = vpop.f32.mrb[134].mxu1 }
 0x437   : > { %v12881_v5 = vpop.f32.mrb[135].mxu1 }
 0x438   : > { %v17707_v10 = vadd.f32 %v12881_v5, %v12880_v0 }
 0x43b   : > { %v12883_v49 = vpop.f32.mrb[136].mxu1 }
 0x43c   : > { %v12884_v17 = vpop.f32.mrb[137].mxu1 }
 0x43d   : > { %v17709_v3 = vadd.f32 %v12884_v17, %v12883_v49 }
 0x43f   : > { %v12886_v22 = vpop.f32.mrb[138].mxu1 }
 0x440   : > { %v12887_v43 = vpop.f32.mrb[139].mxu1 }
 0x441   : > { %v17711_v26 = vadd.f32 %v12887_v43, %v12886_v22 }
 0x443   : > { %v12889_v31 = vpop.f32.mrb[140].mxu1 }
 0x444   : > { %v12890_v36 = vpop.f32.mrb[141].mxu1 }
 0x445   : > { %v17713_v39 = vadd.f32 %v12890_v36, %v12889_v31 }
 0x447   : > { %v12892_v44 = vpop.f32.mrb[142].mxu1 }
 0x448   : > { %v12893_v52 = vpop.f32.mrb[143].mxu1 }
 0x449   : > { %v17715_v57 = vadd.f32 %v12893_v52, %v12892_v44 }
 0x44b   : > { %v12936_v63 = vpop.f32.mrb[144].mxu1 }
 0x44c   : > { %v12937_v6 = vpop.f32.mrb[145].mxu1 }
 0x44d   : > { %v17717_v12 = vadd.f32 %v12937_v6, %v12936_v63 }
 0x44f   : > { %v12939_v18 = vpop.f32.mrb[146].mxu1 }
 0x450   : > { %v12940_v16 = vpop.f32.mrb[147].mxu1 }
 0x451   : > { %v17719_v29 = vadd.f32 %v12940_v16, %v12939_v18 }
 0x453   : > { %v12942_v33 = vpop.f32.mrb[148].mxu1 }
 0x454   : > { %v12943_v42 = vpop.f32.mrb[149].mxu1 }
 0x455   : > { %v17721_v51 = vadd.f32 %v12943_v42, %v12942_v33 }
 0x457   : > { %v12945_v11 = vpop.f32.mrb[150].mxu1 }
 0x458   : > { %v12946_v24 = vpop.f32.mrb[151].mxu1 }
 0x459   : > { %v17730_v38 = vadd.f32 %v12946_v24, %v12945_v11 }
 0x466   : > { %v12948_v62 = vpop.f32.mrb[152].mxu1 }
 0x467   : > { %v12949_v45 = vpop.f32.mrb[153].mxu1 }
 0x468   : > { %v17732_v54 = vadd.f32 %v12949_v45, %v12948_v62 }
 0x46a   : > { %v12951_v55 = vpop.f32.mrb[154].mxu1 }
 0x46b   : > { %v12952_v23 = vpop.f32.mrb[155].mxu1 }
 0x46c   : > { %v17734_v1 = vadd.f32 %v12952_v23, %v12951_v55 }
 0x46e   : > { %v12954_v2 = vpop.f32.mrb[156].mxu1 }
 0x46f   : > { %v12955_v7 = vpop.f32.mrb[157].mxu1 }
 0x470   : > { %v17736_v13 = vadd.f32 %v12955_v7, %v12954_v2 }
 0x472   : > { %v12957_v58 = vpop.f32.mrb[158].mxu1 }
 0x473   : > { %v12958_v19 = vpop.f32.mrb[159].mxu1 }
 0x474   : > { %v17738_v25 = vadd.f32 %v12958_v19, %v12957_v58 }
 0x476   : > { %v13001_v30 = vpop.f32.mrb[160].mxu1 }
 0x477   : > { %v13002_v37 = vpop.f32.mrb[161].mxu1 }
 0x478   : > { %v17740_v48 = vadd.f32 %v13002_v37, %v13001_v30 }
 0x47a   : > { %v13004_v56 = vpop.f32.mrb[162].mxu1 }
 0x47b   : > { %v13005_v59 = vpop.f32.mrb[163].mxu1 }
 0x47c   : > { %v17742_v0 = vadd.f32 %v13005_v59, %v13004_v56 }
 0x47e   : > { %v13007_v5 = vpop.f32.mrb[164].mxu1 }
 0x47f   : > { %v13008_v49 = vpop.f32.mrb[165].mxu1 }
 0x480   : > { %v17744_v17 = vadd.f32 %v13008_v49, %v13007_v5  ;;  %v5121_v49 = vld [vmem:[#allocation6 + $0x808] sm:$0xff] }
 0x481   : > { %5200 = vmatprep.mubr.f32.mxu1 %v5121_v49 }
 0x487   : > { %v13010_v22 = vpop.f32.mrb[166].mxu1 }
 0x488   : > { %v13011_v43 = vpop.f32.mrb[167].mxu1 }
 0x489   : > { %v17746_v31 = vadd.f32 %v13011_v43, %v13010_v22  ;;  %v5120_v43 = vld [vmem:[#allocation6 + $0x800] sm:$0xff] }
 0x48a   : > { %5201 = vmatmul.mubr.f32.vlgmr.msra.gmra.mrb[192].mxu1 %v5120_v43  ;;  %v5128_v43 = vld [vmem:[#allocation6 + $0x840] sm:$0xff] }
 0x48b   : > { %v13013_v36 = vpop.f32.mrb[168].mxu1  ;;  %15418 = vmatpush3.bf16.msra.mxu1 %v17119_v8 }
 0x48c   : > { %v13014_v44 = vpop.f32.mrb[169].mxu1  ;;  %15420 = vmatprep.subr.bf16.mxu1 %v17121_v9 }
 0x48d   : > { %v17748_v52 = vadd.f32 %v13014_v44, %v13013_v36 }
 0x48f   : > { %v13016_v63 = vpop.f32.mrb[170].mxu1  ;;  %15422 = vmatpush3.bf16.msra.mxu1 %v17130_v14 }
 0x490   : > { %v13017_v6 = vpop.f32.mrb[171].mxu1  ;;  %15424 = vmatprep.subr.bf16.mxu1 %v17134_v15 }
 0x491   : > { %v17750_v18 = vadd.f32 %v13017_v6, %v13016_v63  ;;  %v5123_v63 = vld [vmem:[#allocation6 + $0x818] sm:$0xff] }
 0x492   : > { %5205 = vmatprep.mubr.f32.mxu1 %v5123_v63  ;;  %v5130_v63 = vld [vmem:[#allocation6 + $0x850] sm:$0xff] }
 0x493   : > { %v13019_v16 = vpop.f32.mrb[172].mxu1  ;;  %15426 = vmatpush3.bf16.msra.mxu1 %v17142_v20 }
 0x494   : > { %v13020_v33 = vpop.f32.mrb[173].mxu1  ;;  %15428 = vmatprep.subr.bf16.mxu1 %v17146_v21 }
 0x495   : > { %v17752_v42 = vadd.f32 %v13020_v33, %v13019_v16  ;;  %v5122_v16 = vld [vmem:[#allocation6 + $0x810] sm:$0xff] }
 0x496   : > { %5206 = vmatmul.mubr.f32.gmra.mrb[194].mxu1 %v5122_v16  ;;  %v5132_v16 = vld [vmem:[#allocation6 + $0x860] sm:$0xff] }
 0x497   : > { %v13022_v11 = vpop.f32.mrb[174].mxu1  ;;  %15430 = vmatpush3.bf16.msra.mxu1 %v17154_v27 }
 0x498   : > { %v13023_v24 = vpop.f32.mrb[175].mxu1  ;;  %15432 = vmatprep.subr.bf16.mxu1 %v17158_v28 }
 0x499   : > { %v17754_v62 = vadd.f32 %v13023_v24, %v13022_v11  ;;  %v5125_v24 = vld [vmem:[#allocation6 + $0x828] sm:$0xff] }
 0x49a   : > { %5210 = vmatprep.mubr.f32.mxu1 %v5125_v24  ;;  %v5134_v24 = vld [vmem:[#allocation6 + $0x870] sm:$0xff] }
 0x49b   : > { %v13066_v45 = vpop.f32.mrb[176].mxu1  ;;  %15434 = vmatpush3.bf16.msra.mxu1 %v17166_v34 }
 0x49c   : > { %v13067_v55 = vpop.f32.mrb[177].mxu1  ;;  %15436 = vmatprep.subr.bf16.mxu1 %v17170_v35 }
 0x49d   : > { %v17756_v23 = vadd.f32 %v13067_v55, %v13066_v45  ;;  %v5124_v55 = vld [vmem:[#allocation6 + $0x820] sm:$0xff] }
 0x49e   : > { %5211 = vmatmul.mubr.f32.gmra.mrb[196].mxu1 %v5124_v55  ;;  %v5384_v55 = vld [vmem:[#allocation6 + $0x880] sm:$0xff] }
 0x49f   : > { %v13069_v2 = vpop.f32.mrb[178].mxu1  ;;  %15438 = vmatpush3.bf16.msra.mxu1 %v17178_v40 }
 0x4a0   : > { %v13070_v7 = vpop.f32.mrb[179].mxu1  ;;  %15440 = vmatprep.subr.bf16.mxu1 %v17182_v41 }
 0x4a1   : > { %v17758_v58 = vadd.f32 %v13070_v7, %v13069_v2 }
 0x4a3   : > { %v13072_v19 = vpop.f32.mrb[180].mxu1  ;;  %15442 = vmatpush3.bf16.msra.mxu1 %v17190_v46 }
 0x4a4   : > { %v13073_v30 = vpop.f32.mrb[181].mxu1  ;;  %15444 = vmatprep.subr.bf16.mxu1 %v17194_v47 }
 0x4a5   : > { %v17760_v37 = vadd.f32 %v13073_v30, %v13072_v19  ;;  %v5127_v19 = vld [vmem:[#allocation6 + $0x838] sm:$0xff] }
 0x4a6   : > { %5215 = vmatprep.mubr.f32.mxu1 %v5127_v19  ;;  %v5387_v19 = vld [vmem:[#allocation6 + $0x898] sm:$0xff] }
 0x4a7   : > { %v13075_v56 = vpop.f32.mrb[182].mxu1  ;;  %15446 = vmatpush3.bf16.msra.mxu1 %v17200_v50 }
 0x4a8   : > { %v13076_v59 = vpop.f32.mrb[183].mxu1  ;;  %15448 = vmatprep.subr.bf16.mxu1 %v17114_v4 }
 0x4a9   : > { %v17762_v5 = vadd.f32 %v13076_v59, %v13075_v56  ;;  %v5126_v56 = vld [vmem:[#allocation6 + $0x830] sm:$0xff] }
 0x4aa   : > { %5216 = vmatmul.mubr.f32.gmra.mrb[198].mxu1 %v5126_v56  ;;  %v5386_v56 = vld [vmem:[#allocation6 + $0x890] sm:$0xff] }
 0x4ab   : > { %v13078_v22 = vpop.f32.mrb[184].mxu1 }
 0x4ac   : > { %v13079_v36 = vpop.f32.mrb[185].mxu1 }
 0x4ad   : > { %v17764_v44 = vadd.f32 %v13079_v36, %v13078_v22  ;;  %v5129_v22 = vld [vmem:[#allocation6 + $0x848] sm:$0xff]  ;;  %v5131_v36 = vld [vmem:[#allocation6 + $0x858] sm:$0xff] }
 0x4ae   : > { %5220 = vmatprep.mubr.f32.mxu1 %v5129_v22 }
 0x4af   : > { %v13081_v6 = vpop.f32.mrb[186].mxu1  ;;  %5221 = vmatmul.mubr.f32.gmra.mrb[200].mxu1 %v5128_v43  ;;  %v5389_v43 = vld [vmem:[#allocation6 + $0x8a8] sm:$0xff] }
 0x4b0   : > { %v13082_v33 = vpop.f32.mrb[187].mxu1  ;;  %5225 = vmatprep.mubr.f32.mxu1 %v5131_v36 }
 0x4b1   : > { %v17768_v11 = vadd.f32 %v13082_v33, %v13081_v6  ;;  %v5133_v6 = vld [vmem:[#allocation6 + $0x868] sm:$0xff]  ;;  %v5135_v33 = vld [vmem:[#allocation6 + $0x878] sm:$0xff] }
 0x4b3   : > { %v13084_v45 = vpop.f32.mrb[188].mxu1  ;;  %5226 = vmatmul.mubr.f32.gmra.mrb[202].mxu1 %v5130_v63  ;;  %v5388_v63 = vld [vmem:[#allocation6 + $0x8a0] sm:$0xff] }
 0x4b4   : > { %v13085_v2 = vpop.f32.mrb[189].mxu1  ;;  %5230 = vmatprep.mubr.f32.mxu1 %v5133_v6 }
 0x4b5   : > { %v17772_v7 = vadd.f32 %v13085_v2, %v13084_v45  ;;  %v5385_v45 = vld [vmem:[#allocation6 + $0x888] sm:$0xff] }
 0x4b7   : > { %v13087_v30 = vpop.f32.mrb[190].mxu1  ;;  %5231 = vmatmul.mubr.f32.gmra.mrb[204].mxu1 %v5132_v16  ;;  %v17796_v16 = vld [vmem:[%s19092_s8 + $0x30] sm:$0xf] }
 0x4b8   : > { %v13088_v59 = vpop.f32.mrb[191].mxu1  ;;  %5235 = vmatprep.mubr.f32.mxu1 %v5135_v33 }
 0x4b9   : > { %v17776_v49 = vadd.f32 %v13088_v59, %v13087_v30 }
 0x4bb   : > { %5236 = vmatmul.mubr.f32.gmra.mrb[206].mxu1 %v5134_v24  ;;  %v5391_v24 = vld [vmem:[#allocation6 + $0x8b8] sm:$0xff] }
 0x4bc   : > { %5464 = vmatprep.mubr.f32.mxu1 %v5385_v45 }
 0x4bf   : > { %5465 = vmatmul.mubr.f32.vlgmr.msra.gmra.mrb[208].mxu1 %v5384_v55  ;;  %v5390_v55 = vld [vmem:[#allocation6 + $0x8b0] sm:$0xff] }
 0x4c0   : > { %15450 = vmatpush3.bf16.msra.mxu1 %v17119_v8  ;;  %5469 = vmatprep.mubr.f32.mxu1 %v5387_v19 }
 0x4c1   : > { %15452 = vmatprep.subr.bf16.mxu1 %v17121_v9 }
 0x4c3   : > { %5470 = vmatmul.mubr.f32.gmra.mrb[210].mxu1 %v5386_v56 }
 0x4c4   : > { %15454 = vmatpush3.bf16.msra.mxu1 %v17130_v14  ;;  %5474 = vmatprep.mubr.f32.mxu1 %v5389_v43  ;;  %v5395_v43 = vld [vmem:[#allocation6 + $0x8d8] sm:$0xff] }
 0x4c5   : > { %15456 = vmatprep.subr.bf16.mxu1 %v17134_v15 }
 0x4c7   : > { %5475 = vmatmul.mubr.f32.gmra.mrb[212].mxu1 %v5388_v63 }
 0x4c8   : > { %15458 = vmatpush3.bf16.msra.mxu1 %v17142_v20  ;;  %5479 = vmatprep.mubr.f32.mxu1 %v5391_v24 }
 0x4c9   : > { %15460 = vmatprep.subr.bf16.mxu1 %v17146_v21 }
 0x4cb   : > { %5480 = vmatmul.mubr.f32.gmra.mrb[214].mxu1 %v5390_v55 }
 0x4cc   : > { %15462 = vmatpush3.bf16.msra.mxu1 %v17154_v27 }
 0x4cd   : > { %15464 = vmatprep.subr.bf16.mxu1 %v17158_v28 }
 0x4d0   : > { %15466 = vmatpush3.bf16.msra.mxu1 %v17166_v34 }
 0x4d1   : > { %15468 = vmatprep.subr.bf16.mxu1 %v17170_v35 }
 0x4d4   : > { %15470 = vmatpush3.bf16.msra.mxu1 %v17178_v40 }
 0x4d5   : > { %v12806_v2 = vpop.f32.mrb[40].mxu0  ;;  %15472 = vmatprep.subr.bf16.mxu1 %v17182_v41 }
 0x4d6   : > { %v12807_v30 = vpop.f32.mrb[41].mxu0 }
 0x4d7   : > { %v12808_v59 = vadd.f32 %v12807_v30, %v12806_v2  ;;  %v5393_v30 = vld [vmem:[#allocation6 + $0x8c8] sm:$0xff] }
 0x4d8   : > { %5484 = vmatprep.mubr.f32.mxu1 %v5393_v30  ;;  %15474 = vmatpush3.bf16.msra.mxu1 %v17190_v46 }
 0x4d9   : > { %v12809_v22 = vpop.f32.mrb[42].mxu0  ;;  %14144 = vmatprep.mubr.msk.f32.mxu0 %vm1157_vm1, %v12808_v59  ;;  %v5392_v59 = vld [vmem:[#allocation6 + $0x8c0] sm:$0xff]  ;;  %15476 = vmatprep.subr.bf16.mxu1 %v17194_v47 }
 0x4da   : > { %v12810_v36 = vpop.f32.mrb[43].mxu0  ;;  %5485 = vmatmul.mubr.f32.gmra.mrb[216].mxu1 %v5392_v59 }
 0x4db   : > { %v12811_v6 = vadd.f32 %v12810_v36, %v12809_v22  ;;  %v5394_v36 = vld [vmem:[#allocation6 + $0x8d0] sm:$0xff]  ;;  %5489 = vmatprep.mubr.f32.mxu1 %v5395_v43 }
 0x4dc   : > { %15478 = vmatpush3.bf16.msra.mxu1 %v17200_v50 }
 0x4dd   : > { %v12812_v33 = vpop.f32.mrb[44].mxu0  ;;  %14145 = vmatmul.mubr.msk.f32.vlgmr.msra.gmra.mrb[16].mxu0 %vm1157_vm1, %v12811_v6  ;;  %15480 = vmatprep.subr.bf16.mxu1 %v17114_v4 }
 0x4de   : > { %v12813_v45 = vpop.f32.mrb[45].mxu0  ;;  %14157 = vmatpush3.msk.msra.mxu0 %vm1182_vm0, %v17726_v60  ;;  %5490 = vmatmul.mubr.f32.gmra.mrb[218].mxu1 %v5394_v36  ;;  %v5648_v36 = vld [vmem:[#allocation6 + $0x900] sm:$0xff] }
 0x4df   : > { %v12814_v2 = vadd.f32 %v12813_v45, %v12812_v33  ;;  %14170 = vmatprep.subr.msk.mxu0 %vm1182_vm0, %v17796_v16  ;;  %v5397_v33 = vld [vmem:[#allocation6 + $0x8e8] sm:$0xff]  ;;  %v5396_v45 = vld [vmem:[#allocation6 + $0x8e0] sm:$0xff] }
 0x4e0   : > { %5494 = vmatprep.mubr.f32.mxu1 %v5397_v33  ;;  %v5651_v33 = vld [vmem:[#allocation6 + $0x918] sm:$0xff] }
 0x4e1   : > { %v12815_v19 = vpop.f32.mrb[46].mxu0  ;;  %14147 = vmatprep.mubr.msk.f32.mxu0 %vm1157_vm1, %v12814_v2 }
 0x4e2   : > { %v12816_v56 = vpop.f32.mrb[47].mxu0  ;;  %5495 = vmatmul.mubr.f32.gmra.mrb[220].mxu1 %v5396_v45  ;;  %v11883_v45 = vld [vmem:[%s19092_s8 + $0x34] sm:$0xf] }
 0x4e3   : > { %v12817_v60 = vadd.f32 %v12816_v56, %v12815_v19  ;;  %v5399_v19 = vld [vmem:[#allocation6 + $0x8f8] sm:$0xff]  ;;  %v5398_v56 = vld [vmem:[#allocation6 + $0x8f0] sm:$0xff] }
 0x4e4   : > { %5499 = vmatprep.mubr.f32.mxu1 %v5399_v19  ;;  %v5912_v19 = vld [vmem:[#allocation6 + $0x980] sm:$0xff] }
 0x4e5   : > { %v12818_v22 = vpop.f32.mrb[48].mxu0  ;;  %14148 = vmatmul.mubr.msk.f32.gmra.mrb[18].mxu0 %vm1157_vm1, %v12817_v60 }
 0x4e6   : > { %v12819_v63 = vpop.f32.mrb[49].mxu0  ;;  %5500 = vmatmul.mubr.f32.gmra.mrb[222].mxu1 %v5398_v56  ;;  %v4862_v56 = vld [vmem:[#allocation6 + $0x7b0] sm:$0xff] }
 0x4e7   : > { %v12820_v6 = vadd.f32 %v12819_v63, %v12818_v22  ;;  %v5649_v22 = vld [vmem:[#allocation6 + $0x908] sm:$0xff] }
 0x4e8   : > { %5728 = vmatprep.mubr.f32.mxu1 %v5649_v22  ;;  %v4867_v22 = vld [vmem:[#allocation6 + $0x7d8] sm:$0xff] }
 0x4e9   : > { %v12821_v24 = vpop.f32.mrb[50].mxu0  ;;  %14150 = vmatprep.mubr.msk.f32.mxu0 %vm1157_vm1, %v12820_v6 }
 0x4ea   : > { %v12822_v55 = vpop.f32.mrb[51].mxu0  ;;  %5729 = vmatmul.mubr.f32.vlgmr.msra.gmra.mrb[224].mxu1 %v5648_v36  ;;  %v4869_v36 = vld [vmem:[#allocation6 + $0x7e8] sm:$0xff] }
 0x4eb   : > { %v12823_v2 = vadd.f32 %v12822_v55, %v12821_v24  ;;  %15482 = vmatpush3.bf16.msra.mxu1 %v17119_v8  ;;  %v5650_v24 = vld [vmem:[#allocation6 + $0x910] sm:$0xff]  ;;  %5733 = vmatprep.mubr.f32.mxu1 %v5651_v33  ;;  %v5653_v55 = vld [vmem:[#allocation6 + $0x928] sm:$0xff] }
 0x4ec   : > { %15484 = vmatprep.subr.bf16.mxu1 %v17121_v9  ;;  %v4870_v33 = vld [vmem:[#allocation6 + $0x7f0] sm:$0xff] }
 0x4ed   : > { %v12824_v30 = vpop.f32.mrb[52].mxu0  ;;  %14151 = vmatmul.mubr.msk.f32.gmra.mrb[20].mxu0 %vm1157_vm1, %v12823_v2  ;;  %v5652_v2 = vld [vmem:[#allocation6 + $0x920] sm:$0xff] }
 0x4ee   : > { %v12825_v59 = vpop.f32.mrb[53].mxu0  ;;  %5734 = vmatmul.mubr.f32.gmra.mrb[226].mxu1 %v5650_v24 }
 0x4ef   : > { %v12826_v60 = vadd.f32 %v12825_v59, %v12824_v30  ;;  %15486 = vmatpush3.bf16.msra.mxu1 %v17130_v14  ;;  %5738 = vmatprep.mubr.f32.mxu1 %v5653_v55  ;;  %v4863_v30 = vld [vmem:[#allocation6 + $0x7b8] sm:$0xff]  ;;  %v4865_v59 = vld [vmem:[#allocation6 + $0x7c8] sm:$0xff] }
 0x4f0   : > { %15488 = vmatprep.subr.bf16.mxu1 %v17134_v15 }
 0x4f1   : > { %v12827_v43 = vpop.f32.mrb[54].mxu0  ;;  %14153 = vmatprep.mubr.msk.f32.mxu0 %vm1157_vm1, %v12826_v60  ;;  %v4864_v60 = vld [vmem:[#allocation6 + $0x7c0] sm:$0xff] }
 0x4f2   : > { %v12828_v63 = vpop.f32.mrb[55].mxu0  ;;  %5739 = vmatmul.mubr.f32.gmra.mrb[228].mxu1 %v5652_v2 }
 0x4f3   : > { %v12829_v6 = vadd.f32 %v12828_v63, %v12827_v43  ;;  %15490 = vmatpush3.bf16.msra.mxu1 %v17142_v20  ;;  %v4866_v43 = vld [vmem:[#allocation6 + $0x7d0] sm:$0xff]  ;;  %v4868_v63 = vld [vmem:[#allocation6 + $0x7e0] sm:$0xff] }
 0x4f4   : > { %15492 = vmatprep.subr.bf16.mxu1 %v17146_v21 }
 0x4f5   : > { %14154 = vmatmul.mubr.msk.f32.gmra.mrb[22].mxu0 %vm1157_vm1, %v12829_v6  ;;  %v4871_v6 = vld [vmem:[#allocation6 + $0x7f8] sm:$0xff] }
 0x4f6   : > { %14158 = vmatprep.mubr.msk.f32.mxu0 %vm1157_vm1, %v17701_v32  ;;  %v5655_v32 = vld [vmem:[#allocation6 + $0x938] sm:$0xff] }
 0x4f7   : > { %5743 = vmatprep.mubr.f32.mxu1 %v5655_v32  ;;  %15494 = vmatpush3.bf16.msra.mxu1 %v17154_v27 }
 0x4f8   : > { %15496 = vmatprep.subr.bf16.mxu1 %v17158_v28 }
 0x4f9   : > { %14159 = vmatmul.mubr.msk.f32.vlgmr.msra.gmra.mrb[16].mxu0 %vm1157_vm1, %v17703_v53  ;;  %v5654_v53 = vld [vmem:[#allocation6 + $0x930] sm:$0xff] }
 0x4fa   : > { %14161 = vmatprep.mubr.msk.f32.mxu0 %vm1157_vm1, %v17705_v61  ;;  %14171 = vmatpush3.msk.msra.mxu0 %vm1182_vm0, %v17796_v16  ;;  %v5657_v61 = vld [vmem:[#allocation6 + $0x948] sm:$0xff]  ;;  %v5656_v16 = vld [vmem:[#allocation6 + $0x940] sm:$0xff] }
 0x4fb   : > { %14184 = vmatprep.subr.msk.mxu0 %vm1182_vm0, %v11883_v45  ;;  %5744 = vmatmul.mubr.f32.gmra.mrb[230].mxu1 %v5654_v53 }
 0x4fc   : > { %5748 = vmatprep.mubr.f32.mxu1 %v5657_v61  ;;  %15498 = vmatpush3.bf16.msra.mxu1 %v17166_v34 }
 0x4fd   : > { %14162 = vmatmul.mubr.msk.f32.gmra.mrb[18].mxu0 %vm1157_vm1, %v17707_v10  ;;  %v5659_v10 = vld [vmem:[#allocation6 + $0x958] sm:$0xff]  ;;  %15500 = vmatprep.subr.bf16.mxu1 %v17170_v35 }
 0x4fe   : > { %14164 = vmatprep.mubr.msk.f32.mxu0 %vm1157_vm1, %v17709_v3  ;;  %v5658_v3 = vld [vmem:[#allocation6 + $0x950] sm:$0xff] }
 0x4ff   : > { %5749 = vmatmul.mubr.f32.gmra.mrb[232].mxu1 %v5656_v16 }
 0x500   : > { %5753 = vmatprep.mubr.f32.mxu1 %v5659_v10  ;;  %15502 = vmatpush3.bf16.msra.mxu1 %v17178_v40 }
 0x501   : > { %14165 = vmatmul.mubr.msk.f32.gmra.mrb[20].mxu0 %vm1157_vm1, %v17711_v26  ;;  %v11893_v26 = vld [vmem:[%s19092_s8 + $0x38] sm:$0xf]  ;;  %15504 = vmatprep.subr.bf16.mxu1 %v17182_v41 }
 0x502   : > { %14167 = vmatprep.mubr.msk.f32.mxu0 %vm1157_vm1, %v17713_v39  ;;  %v5661_v39 = vld [vmem:[#allocation6 + $0x968] sm:$0xff] }
 0x503   : > { %5754 = vmatmul.mubr.f32.gmra.mrb[234].mxu1 %v5658_v3 }
 0x504   : > { %5758 = vmatprep.mubr.f32.mxu1 %v5661_v39  ;;  %15506 = vmatpush3.bf16.msra.mxu1 %v17190_v46 }
 0x505   : > { %14168 = vmatmul.mubr.msk.f32.gmra.mrb[22].mxu0 %vm1157_vm1, %v17715_v57  ;;  %v5660_v57 = vld [vmem:[#allocation6 + $0x960] sm:$0xff]  ;;  %15508 = vmatprep.subr.bf16.mxu1 %v17194_v47 }
 0x506   : > { %14172 = vmatprep.mubr.msk.f32.mxu0 %vm1157_vm1, %v17717_v12  ;;  %v5663_v12 = vld [vmem:[#allocation6 + $0x978] sm:$0xff] }
 0x507   : > { %5759 = vmatmul.mubr.f32.gmra.mrb[236].mxu1 %v5660_v57 }
 0x508   : > { %5763 = vmatprep.mubr.f32.mxu1 %v5663_v12  ;;  %15510 = vmatpush3.bf16.msra.mxu1 %v17200_v50 }
 0x509   : > { %14173 = vmatmul.mubr.msk.f32.vlgmr.msra.gmra.mrb[16].mxu0 %vm1157_vm1, %v17719_v29  ;;  %v5662_v29 = vld [vmem:[#allocation6 + $0x970] sm:$0xff]  ;;  %15544 = vmatprep.subr.bf16.mxu1 %v17114_v4 }
 0x50a   : > { %14175 = vmatprep.mubr.msk.f32.mxu0 %vm1157_vm1, %v17721_v51  ;;  %14185 = vmatpush3.msk.msra.mxu0 %vm1182_vm0, %v11883_v45  ;;  %v5913_v51 = vld [vmem:[#allocation6 + $0x988] sm:$0xff] }
 0x50b   : > { %14198 = vmatprep.subr.msk.mxu0 %vm1182_vm0, %v11893_v26  ;;  %5764 = vmatmul.mubr.f32.gmra.mrb[238].mxu1 %v5662_v29 }
 0x50c   : > { %5992 = vmatprep.mubr.f32.mxu1 %v5913_v51 }
 0x50d   : > { %14176 = vmatmul.mubr.msk.f32.gmra.mrb[18].mxu0 %vm1157_vm1, %v17730_v38  ;;  %v5915_v38 = vld [vmem:[#allocation6 + $0x998] sm:$0xff] }
 0x50e   : > { %14178 = vmatprep.mubr.msk.f32.mxu0 %vm1157_vm1, %v17732_v54  ;;  %v5914_v54 = vld [vmem:[#allocation6 + $0x990] sm:$0xff] }
 0x50f   : > { %5993 = vmatmul.mubr.f32.vlgmr.msra.gmra.mrb[240].mxu1 %v5912_v19 }
 0x510   : > { %5997 = vmatprep.mubr.f32.mxu1 %v5915_v38  ;;  %15546 = vmatpush3.bf16.msra.mxu1 %v17119_v8 }
 0x511   : > { %14179 = vmatmul.mubr.msk.f32.gmra.mrb[20].mxu0 %vm1157_vm1, %v17734_v1  ;;  %v5917_v1 = vld [vmem:[#allocation6 + $0x9a8] sm:$0xff]  ;;  %15548 = vmatprep.subr.bf16.mxu1 %v17121_v9 }
 0x512   : > { %14181 = vmatprep.mubr.msk.f32.mxu0 %vm1157_vm1, %v17736_v13  ;;  %v5916_v13 = vld [vmem:[#allocation6 + $0x9a0] sm:$0xff] }
 0x513   : > { %5998 = vmatmul.mubr.f32.gmra.mrb[242].mxu1 %v5914_v54 }
 0x514   : > { %6002 = vmatprep.mubr.f32.mxu1 %v5917_v1  ;;  %15550 = vmatpush3.bf16.msra.mxu1 %v17130_v14 }
 0x515   : > { %14182 = vmatmul.mubr.msk.f32.gmra.mrb[22].mxu0 %vm1157_vm1, %v17738_v25  ;;  %v5919_v25 = vld [vmem:[#allocation6 + $0x9b8] sm:$0xff]  ;;  %15552 = vmatprep.subr.bf16.mxu1 %v17134_v15 }
 0x516   : > { %14186 = vmatprep.mubr.msk.f32.mxu0 %vm1157_vm1, %v17740_v48  ;;  %v5918_v48 = vld [vmem:[#allocation6 + $0x9b0] sm:$0xff] }
 0x517   : > { %6003 = vmatmul.mubr.f32.gmra.mrb[244].mxu1 %v5916_v13 }
 0x518   : > { %6007 = vmatprep.mubr.f32.mxu1 %v5919_v25  ;;  %15554 = vmatpush3.bf16.msra.mxu1 %v17142_v20 }
 0x519   : > { %14187 = vmatmul.mubr.msk.f32.vlgmr.msra.gmra.mrb[16].mxu0 %vm1157_vm1, %v17742_v0  ;;  %v5921_v0 = vld [vmem:[#allocation6 + $0x9c8] sm:$0xff]  ;;  %15556 = vmatprep.subr.bf16.mxu1 %v17146_v21 }
 0x51a   : > { %14189 = vmatprep.mubr.msk.f32.mxu0 %vm1157_vm1, %v17744_v17  ;;  %14199 = vmatpush3.msk.msra.mxu0 %vm1182_vm0, %v11893_v26  ;;  %v5920_v17 = vld [vmem:[#allocation6 + $0x9c0] sm:$0xff] }
 0x51b   : > { %15352 = vmatprep.subr.bf16.mxu0 %v17114_v4  ;;  %6008 = vmatmul.mubr.f32.gmra.mrb[246].mxu1 %v5918_v48 }
 0x51c   : > { %6012 = vmatprep.mubr.f32.mxu1 %v5921_v0  ;;  %15558 = vmatpush3.bf16.msra.mxu1 %v17154_v27 }
 0x51d   : > { %14190 = vmatmul.mubr.msk.f32.gmra.mrb[18].mxu0 %vm1157_vm1, %v17746_v31  ;;  %v5923_v31 = vld [vmem:[#allocation6 + $0x9d8] sm:$0xff]  ;;  %15560 = vmatprep.subr.bf16.mxu1 %v17158_v28 }
 0x51e   : > { %14192 = vmatprep.mubr.msk.f32.mxu0 %vm1157_vm1, %v17748_v52  ;;  %v5922_v52 = vld [vmem:[#allocation6 + $0x9d0] sm:$0xff] }
 0x51f   : > { %6013 = vmatmul.mubr.f32.gmra.mrb[248].mxu1 %v5920_v17 }
 0x520   : > { %6017 = vmatprep.mubr.f32.mxu1 %v5923_v31  ;;  %15562 = vmatpush3.bf16.msra.mxu1 %v17166_v34 }
 0x521   : > { %14193 = vmatmul.mubr.msk.f32.gmra.mrb[20].mxu0 %vm1157_vm1, %v17750_v18  ;;  %v5925_v18 = vld [vmem:[#allocation6 + $0x9e8] sm:$0xff]  ;;  %15564 = vmatprep.subr.bf16.mxu1 %v17170_v35 }
 0x522   : > { %14195 = vmatprep.mubr.msk.f32.mxu0 %vm1157_vm1, %v17752_v42  ;;  %v5924_v42 = vld [vmem:[#allocation6 + $0x9e0] sm:$0xff] }
 0x523   : > { %6018 = vmatmul.mubr.f32.gmra.mrb[250].mxu1 %v5922_v52 }
 0x524   : > { %6022 = vmatprep.mubr.f32.mxu1 %v5925_v18  ;;  %15566 = vmatpush3.bf16.msra.mxu1 %v17178_v40 }
 0x525   : > { %14196 = vmatmul.mubr.msk.f32.gmra.mrb[22].mxu0 %vm1157_vm1, %v17754_v62  ;;  %v5927_v62 = vld [vmem:[#allocation6 + $0x9f8] sm:$0xff]  ;;  %15568 = vmatprep.subr.bf16.mxu1 %v17182_v41 }
 0x526   : > { %14200 = vmatprep.mubr.msk.f32.mxu0 %vm1157_vm1, %v17756_v23  ;;  %v5926_v23 = vld [vmem:[#allocation6 + $0x9f0] sm:$0xff] }
 0x527   : > { %6023 = vmatmul.mubr.f32.gmra.mrb[252].mxu1 %v5924_v42 }
 0x528   : > { %6027 = vmatprep.mubr.f32.mxu1 %v5927_v62  ;;  %15570 = vmatpush3.bf16.msra.mxu1 %v17190_v46 }
 0x529   : > { %14201 = vmatmul.mubr.msk.f32.vlgmr.msra.gmra.mrb[16].mxu0 %vm1157_vm1, %v17758_v58  ;;  %15572 = vmatprep.subr.bf16.mxu1 %v17194_v47  ;;  %v4857_v58 = vld [vmem:[#allocation6 + $0x788] sm:$0xff] }
 0x52a   : > { %15354 = vmatpush3.bf16.msra.mxu0 %v17119_v8  ;;  %14203 = vmatprep.mubr.msk.f32.mxu0 %vm1157_vm1, %v17760_v37  ;;  %v11903_v37 = vld [vmem:[%s19092_s8 + $0x3c] sm:$0xf] }
 0x52b   : > { %15356 = vmatprep.subr.bf16.mxu0 %v17121_v9  ;;  %6028 = vmatmul.mubr.f32.gmra.mrb[254].mxu1 %v5926_v23 }
 0x52c   : > { %15574 = vmatpush3.bf16.msra.mxu1 %v17200_v50 }
 0x52d   : > { %14204 = vmatmul.mubr.msk.f32.gmra.mrb[18].mxu0 %vm1157_vm1, %v17762_v5  ;;  %15576 = vmatprep.subr.bf16.mxu1 %v17114_v4  ;;  %v4856_v5 = vld [vmem:[#allocation6 + $0x780] sm:$0xff] }
 0x52e   : > { %15358 = vmatpush3.bf16.msra.mxu0 %v17130_v14  ;;  %14206 = vmatprep.mubr.msk.f32.mxu0 %vm1157_vm1, %v17764_v44  ;;  %v4859_v44 = vld [vmem:[#allocation6 + $0x798] sm:$0xff] }
 0x52f   : > { %15360 = vmatprep.subr.bf16.mxu0 %v17134_v15 }
 0x531   : > { %14207 = vmatmul.mubr.msk.f32.gmra.mrb[20].mxu0 %vm1157_vm1, %v17768_v11  ;;  %v4858_v11 = vld [vmem:[#allocation6 + $0x790] sm:$0xff] }
 0x532   : > { %15362 = vmatpush3.bf16.msra.mxu0 %v17142_v20  ;;  %14209 = vmatprep.mubr.msk.f32.mxu0 %vm1157_vm1, %v17772_v7  ;;  %v4861_v7 = vld [vmem:[#allocation6 + $0x7a8] sm:$0xff] }
 0x533   : > { %15364 = vmatprep.subr.bf16.mxu0 %v17146_v21 }
 0x535   : > { %14210 = vmatmul.mubr.msk.f32.gmra.mrb[22].mxu0 %vm1157_vm1, %v17776_v49  ;;  %v4860_v49 = vld [vmem:[#allocation6 + $0x7a0] sm:$0xff] }
 0x536   : > { %15366 = vmatpush3.bf16.msra.mxu0 %v17154_v27  ;;  %4936 = vmatprep.mubr.f32.mxu0 %v4857_v58 }
 0x537   : > { %15368 = vmatprep.subr.bf16.mxu0 %v17158_v28 }
 0x53a   : > { %15370 = vmatpush3.bf16.msra.mxu0 %v17166_v34 }
 0x53b   : > { %15372 = vmatprep.subr.bf16.mxu0 %v17170_v35 }
 0x53e   : > { %15374 = vmatpush3.bf16.msra.mxu0 %v17178_v40 }
 0x53f   : > { %15376 = vmatprep.subr.bf16.mxu0 %v17182_v41 }
 0x542   : > { %15378 = vmatpush3.bf16.msra.mxu0 %v17190_v46 }
 0x543   : > { %15380 = vmatprep.subr.bf16.mxu0 %v17194_v47 }
 0x546   : > { %15382 = vmatpush3.bf16.msra.mxu0 %v17200_v50 }
 0x547   : > { %14212 = vmatprep.subr.msk.mxu0 %vm1182_vm0, %v11903_v37 }
 0x549   : > { %4937 = vmatmul.mubr.f32.vlgmr.msra.gmra.mrb[56].mxu0 %v4856_v5  ;;  %v17975_v5 = vld [vmem:[%s19092_s8 + $0x40] sm:$0xf] }
 0x54a   : > { %4941 = vmatprep.mubr.f32.mxu0 %v4859_v44  ;;  %14213 = vmatpush3.msk.msra.mxu0 %vm1182_vm0, %v11903_v37 }
 0x54b   : > { %14226 = vmatprep.subr.msk.mxu0 %vm1182_vm0, %v17975_v5 }
 0x54d   : > { %4942 = vmatmul.mubr.f32.gmra.mrb[58].mxu0 %v4858_v11 }
 0x54e   : > { %4946 = vmatprep.mubr.f32.mxu0 %v4861_v7 }
 0x551   : > { %4947 = vmatmul.mubr.f32.gmra.mrb[60].mxu0 %v4860_v49 }
 0x552   : > { %4951 = vmatprep.mubr.f32.mxu0 %v4863_v30 }
 0x555   : > { %4952 = vmatmul.mubr.f32.gmra.mrb[62].mxu0 %v4862_v56 }
 0x556   : > { %4956 = vmatprep.mubr.f32.mxu0 %v4865_v59 }
 0x559   : > { %4957 = vmatmul.mubr.f32.gmra.mrb[64].mxu0 %v4864_v60 }
 0x55a   : > { %4961 = vmatprep.mubr.f32.mxu0 %v4867_v22 }
 0x55d   : > { %4962 = vmatmul.mubr.f32.gmra.mrb[66].mxu0 %v4866_v43  ;;  %v13196_v24 = vpop.f32.mrb[192].mxu1 }
 0x55e   : > { %4966 = vmatprep.mubr.f32.mxu0 %v4869_v36  ;;  %v13197_v45 = vpop.f32.mrb[193].mxu1 }
 0x55f   : > { %v17950_v55 = vadd.f32 %v13197_v45, %v13196_v24 }
 0x561   : > { %4967 = vmatmul.mubr.f32.gmra.mrb[68].mxu0 %v4868_v63 }
 0x562   : > { %4971 = vmatprep.mubr.f32.mxu0 %v4871_v6 }
 0x565   : > { %4972 = vmatmul.mubr.f32.gmra.mrb[70].mxu0 %v4870_v33 }
 0x569   : > { %v13199_v2 = vpop.f32.mrb[194].mxu1 }
 0x56a   : > { %v13200_v32 = vpop.f32.mrb[195].mxu1 }
 0x56b   : > { %v17952_v53 = vadd.f32 %v13200_v32, %v13199_v2 }
 0x571   : > { %v13202_v61 = vpop.f32.mrb[196].mxu1 }
 0x572   : > { %v13203_v16 = vpop.f32.mrb[197].mxu1 }
 0x573   : > { %v17954_v10 = vadd.f32 %v13203_v16, %v13202_v61 }
 0x57d   : > { %v13205_v3 = vpop.f32.mrb[198].mxu1 }
 0x57e   : > { %v13206_v26 = vpop.f32.mrb[199].mxu1 }
 0x57f   : > { %v17956_v39 = vadd.f32 %v13206_v26, %v13205_v3 }
 0x582   : > { %v13208_v57 = vpop.f32.mrb[200].mxu1 }
 0x583   : > { %v13209_v12 = vpop.f32.mrb[201].mxu1 }
 0x584   : > { %v17958_v29 = vadd.f32 %v13209_v12, %v13208_v57 }
 0x586   : > { %v13211_v51 = vpop.f32.mrb[202].mxu1 }
 0x587   : > { %v13212_v19 = vpop.f32.mrb[203].mxu1 }
 0x588   : > { %v17960_v38 = vadd.f32 %v13212_v19, %v13211_v51 }
 0x58a   : > { %v13214_v54 = vpop.f32.mrb[204].mxu1 }
 0x58b   : > { %v13215_v1 = vpop.f32.mrb[205].mxu1 }
 0x58c   : > { %v17962_v13 = vadd.f32 %v13215_v1, %v13214_v54 }
 0x58e   : > { %v13217_v25 = vpop.f32.mrb[206].mxu1 }
 0x58f   : > { %v13218_v48 = vpop.f32.mrb[207].mxu1 }
 0x590   : > { %v17964_v0 = vadd.f32 %v13218_v48, %v13217_v25 }
 0x592   : > { %v13261_v17 = vpop.f32.mrb[208].mxu1 }
 0x593   : > { %v13262_v31 = vpop.f32.mrb[209].mxu1 }
 0x594   : > { %v17966_v52 = vadd.f32 %v13262_v31, %v13261_v17 }
 0x596   : > { %v13264_v18 = vpop.f32.mrb[210].mxu1 }
 0x597   : > { %v13265_v42 = vpop.f32.mrb[211].mxu1 }
 0x598   : > { %v17968_v62 = vadd.f32 %v13265_v42, %v13264_v18 }
 0x59a   : > { %v13267_v23 = vpop.f32.mrb[212].mxu1 }
 0x59b   : > { %v13268_v58 = vpop.f32.mrb[213].mxu1 }
 0x59c   : > { %v17970_v37 = vadd.f32 %v13268_v58, %v13267_v23 }
 0x59e   : > { %v13270_v44 = vpop.f32.mrb[214].mxu1 }
 0x59f   : > { %v13271_v11 = vpop.f32.mrb[215].mxu1 }
 0x5a0   : > { %v17979_v7 = vadd.f32 %v13271_v11, %v13270_v44 }
 0x5ad   : > { %v13273_v49 = vpop.f32.mrb[216].mxu1 }
 0x5ae   : > { %v13274_v30 = vpop.f32.mrb[217].mxu1 }
 0x5af   : > { %v17981_v56 = vadd.f32 %v13274_v30, %v13273_v49 }
 0x5b1   : > { %v13276_v59 = vpop.f32.mrb[218].mxu1 }
 0x5b2   : > { %v13277_v60 = vpop.f32.mrb[219].mxu1 }
 0x5b3   : > { %v17983_v22 = vadd.f32 %v13277_v60, %v13276_v59 }
 0x5b5   : > { %v13279_v43 = vpop.f32.mrb[220].mxu1 }
 0x5b6   : > { %v13280_v36 = vpop.f32.mrb[221].mxu1 }
 0x5b7   : > { %v17985_v63 = vadd.f32 %v13280_v36, %v13279_v43 }
 0x5b9   : > { %v13282_v6 = vpop.f32.mrb[222].mxu1 }
 0x5ba   : > { %v13283_v33 = vpop.f32.mrb[223].mxu1 }
 0x5bb   : > { %v17987_v24 = vadd.f32 %v13283_v33, %v13282_v6  ;;  %v6441_v6 = vld [vmem:[#allocation6 + $0xa88] sm:$0xff] }
 0x5bc   : > { %6520 = vmatprep.mubr.f32.mxu1 %v6441_v6 }
 0x5bd   : > { %v13326_v45 = vpop.f32.mrb[224].mxu1 }
 0x5be   : > { %v13327_v2 = vpop.f32.mrb[225].mxu1 }
 0x5bf   : > { %v17989_v32 = vadd.f32 %v13327_v2, %v13326_v45  ;;  %v6440_v45 = vld [vmem:[#allocation6 + $0xa80] sm:$0xff]  ;;  %v6443_v2 = vld [vmem:[#allocation6 + $0xa98] sm:$0xff] }
 0x5c0   : > { %6521 = vmatmul.mubr.f32.vlgmr.msra.gmra.mrb[0].mxu1 %v6440_v45  ;;  %v6451_v45 = vld [vmem:[#allocation6 + $0xad8] sm:$0xff] }
 0x5c1   : > { %v13329_v61 = vpop.f32.mrb[226].mxu1  ;;  %15578 = vmatpush3.bf16.msra.mxu1 %v17119_v8  ;;  %6525 = vmatprep.mubr.f32.mxu1 %v6443_v2 }
 0x5c2   : > { %v13330_v16 = vpop.f32.mrb[227].mxu1  ;;  %15580 = vmatprep.subr.bf16.mxu1 %v17121_v9 }
 0x5c3   : > { %v17991_v3 = vadd.f32 %v13330_v16, %v13329_v61  ;;  %v6442_v16 = vld [vmem:[#allocation6 + $0xa90] sm:$0xff] }
 0x5c4   : > { %6526 = vmatmul.mubr.f32.gmra.mrb[2].mxu1 %v6442_v16 }
 0x5c5   : > { %v13332_v26 = vpop.f32.mrb[228].mxu1  ;;  %15582 = vmatpush3.bf16.msra.mxu1 %v17130_v14 }
 0x5c6   : > { %v13333_v57 = vpop.f32.mrb[229].mxu1  ;;  %15584 = vmatprep.subr.bf16.mxu1 %v17134_v15 }
 0x5c7   : > { %v17993_v12 = vadd.f32 %v13333_v57, %v13332_v26 }
 0x5c9   : > { %15586 = vmatpush3.bf16.msra.mxu1 %v17142_v20 }
 0x5ca   : > { %15588 = vmatprep.subr.bf16.mxu1 %v17146_v21 }
 0x5cd   : > { %15590 = vmatpush3.bf16.msra.mxu1 %v17154_v27 }
 0x5ce   : > { %v13335_v51 = vpop.f32.mrb[230].mxu1  ;;  %15592 = vmatprep.subr.bf16.mxu1 %v17158_v28 }
 0x5cf   : > { %v13336_v19 = vpop.f32.mrb[231].mxu1 }
 0x5d0   : > { %v17995_v54 = vadd.f32 %v13336_v19, %v13335_v51  ;;  %v6445_v51 = vld [vmem:[#allocation6 + $0xaa8] sm:$0xff] }
 0x5d1   : > { %6530 = vmatprep.mubr.f32.mxu1 %v6445_v51  ;;  %15594 = vmatpush3.bf16.msra.mxu1 %v17166_v34  ;;  %v6453_v51 = vld [vmem:[#allocation6 + $0xae8] sm:$0xff] }
 0x5d2   : > { %v13338_v1 = vpop.f32.mrb[232].mxu1  ;;  %15596 = vmatprep.subr.bf16.mxu1 %v17170_v35 }
 0x5d3   : > { %v13339_v25 = vpop.f32.mrb[233].mxu1 }
 0x5d4   : > { %v17997_v48 = vadd.f32 %v13339_v25, %v13338_v1  ;;  %v6444_v1 = vld [vmem:[#allocation6 + $0xaa0] sm:$0xff] }
 0x5d5   : > { %6531 = vmatmul.mubr.f32.gmra.mrb[4].mxu1 %v6444_v1  ;;  %v6452_v1 = vld [vmem:[#allocation6 + $0xae0] sm:$0xff] }
 0x5d6   : > { %v13341_v17 = vpop.f32.mrb[234].mxu1  ;;  %15598 = vmatpush3.bf16.msra.mxu1 %v17178_v40 }
 0x5d7   : > { %v13342_v31 = vpop.f32.mrb[235].mxu1  ;;  %15600 = vmatprep.subr.bf16.mxu1 %v17182_v41 }
 0x5d8   : > { %v17999_v18 = vadd.f32 %v13342_v31, %v13341_v17  ;;  %v6447_v31 = vld [vmem:[#allocation6 + $0xab8] sm:$0xff] }
 0x5d9   : > { %6535 = vmatprep.mubr.f32.mxu1 %v6447_v31 }
 0x5da   : > { %v13344_v42 = vpop.f32.mrb[236].mxu1  ;;  %15602 = vmatpush3.bf16.msra.mxu1 %v17190_v46 }
 0x5db   : > { %v13345_v23 = vpop.f32.mrb[237].mxu1  ;;  %15604 = vmatprep.subr.bf16.mxu1 %v17194_v47 }
 0x5dc   : > { %v18001_v58 = vadd.f32 %v13345_v23, %v13344_v42  ;;  %v6446_v23 = vld [vmem:[#allocation6 + $0xab0] sm:$0xff] }
 0x5dd   : > { %6536 = vmatmul.mubr.f32.gmra.mrb[6].mxu1 %v6446_v23  ;;  %v6454_v23 = vld [vmem:[#allocation6 + $0xaf0] sm:$0xff] }
 0x5de   : > { %v13347_v44 = vpop.f32.mrb[238].mxu1  ;;  %15606 = vmatpush3.bf16.msra.mxu1 %v17200_v50 }
 0x5df   : > { %v13348_v11 = vpop.f32.mrb[239].mxu1  ;;  %15608 = vmatprep.subr.bf16.mxu1 %v17114_v4 }
 0x5e0   : > { %v18003_v49 = vadd.f32 %v13348_v11, %v13347_v44 }
 0x5e2   : > { %v13391_v30 = vpop.f32.mrb[240].mxu1 }
 0x5e3   : > { %v13392_v59 = vpop.f32.mrb[241].mxu1 }
 0x5e4   : > { %v18005_v60 = vadd.f32 %v13392_v59, %v13391_v30  ;;  %v6449_v30 = vld [vmem:[#allocation6 + $0xac8] sm:$0xff] }
 0x5e5   : > { %6540 = vmatprep.mubr.f32.mxu1 %v6449_v30  ;;  %v6704_v30 = vld [vmem:[#allocation6 + $0xb00] sm:$0xff] }
 0x5e6   : > { %v13394_v43 = vpop.f32.mrb[242].mxu1 }
 0x5e7   : > { %v13395_v36 = vpop.f32.mrb[243].mxu1 }
 0x5e8   : > { %v18007_v33 = vadd.f32 %v13395_v36, %v13394_v43  ;;  %v6448_v43 = vld [vmem:[#allocation6 + $0xac0] sm:$0xff] }
 0x5e9   : > { %6541 = vmatmul.mubr.f32.gmra.mrb[8].mxu1 %v6448_v43  ;;  %v6706_v43 = vld [vmem:[#allocation6 + $0xb10] sm:$0xff] }
 0x5ea   : > { %v13397_v61 = vpop.f32.mrb[244].mxu1  ;;  %6545 = vmatprep.mubr.f32.mxu1 %v6451_v45  ;;  %v6708_v45 = vld [vmem:[#allocation6 + $0xb20] sm:$0xff] }
 0x5eb   : > { %v13398_v26 = vpop.f32.mrb[245].mxu1 }
 0x5ec   : > { %v18011_v57 = vadd.f32 %v13398_v26, %v13397_v61  ;;  %v6450_v61 = vld [vmem:[#allocation6 + $0xad0] sm:$0xff] }
 0x5ed   : > { %6546 = vmatmul.mubr.f32.gmra.mrb[10].mxu1 %v6450_v61  ;;  %v6710_v61 = vld [vmem:[#allocation6 + $0xb30] sm:$0xff] }
 0x5ee   : > { %v13400_v19 = vpop.f32.mrb[246].mxu1  ;;  %6550 = vmatprep.mubr.f32.mxu1 %v6453_v51  ;;  %v6713_v51 = vld [vmem:[#allocation6 + $0xb48] sm:$0xff] }
 0x5ef   : > { %v13401_v25 = vpop.f32.mrb[247].mxu1 }
 0x5f0   : > { %v18015_v17 = vadd.f32 %v13401_v25, %v13400_v19 }
 0x5f1   : > { %6551 = vmatmul.mubr.f32.gmra.mrb[12].mxu1 %v6452_v1  ;;  %v6712_v1 = vld [vmem:[#allocation6 + $0xb40] sm:$0xff] }
 0x5f2   : > { %v13403_v42 = vpop.f32.mrb[248].mxu1 }
 0x5f3   : > { %v13404_v44 = vpop.f32.mrb[249].mxu1 }
 0x5f4   : > { %v18019_v11 = vadd.f32 %v13404_v44, %v13403_v42  ;;  %v6455_v42 = vld [vmem:[#allocation6 + $0xaf8] sm:$0xff]  ;;  %v6705_v44 = vld [vmem:[#allocation6 + $0xb08] sm:$0xff] }
 0x5f5   : > { %6555 = vmatprep.mubr.f32.mxu1 %v6455_v42 }
 0x5f6   : > { %v13406_v59 = vpop.f32.mrb[250].mxu1  ;;  %6556 = vmatmul.mubr.f32.gmra.mrb[14].mxu1 %v6454_v23  ;;  %v6715_v23 = vld [vmem:[#allocation6 + $0xb58] sm:$0xff] }
 0x5f7   : > { %v13407_v36 = vpop.f32.mrb[251].mxu1  ;;  %6784 = vmatprep.mubr.f32.mxu1 %v6705_v44 }
 0x5f8   : > { %v18023_v6 = vadd.f32 %v13407_v36, %v13406_v59  ;;  %v6707_v59 = vld [vmem:[#allocation6 + $0xb18] sm:$0xff]  ;;  %v6709_v36 = vld [vmem:[#allocation6 + $0xb28] sm:$0xff] }
 0x5fa   : > { %v13409_v2 = vpop.f32.mrb[252].mxu1  ;;  %6785 = vmatmul.mubr.f32.vlgmr.msra.gmra.mrb[16].mxu1 %v6704_v30  ;;  %v6714_v30 = vld [vmem:[#allocation6 + $0xb50] sm:$0xff] }
 0x5fb   : > { %v13410_v16 = vpop.f32.mrb[253].mxu1  ;;  %15610 = vmatpush3.bf16.msra.mxu1 %v17119_v8  ;;  %6789 = vmatprep.mubr.f32.mxu1 %v6707_v59 }
 0x5fc   : > { %v18027_v26 = vadd.f32 %v13410_v16, %v13409_v2  ;;  %15612 = vmatprep.subr.bf16.mxu1 %v17121_v9  ;;  %v6711_v2 = vld [vmem:[#allocation6 + $0xb38] sm:$0xff] }
 0x5fe   : > { %v13412_v19 = vpop.f32.mrb[254].mxu1  ;;  %6790 = vmatmul.mubr.f32.gmra.mrb[18].mxu1 %v6706_v43  ;;  %v18051_v43 = vld [vmem:[%s19092_s8 + $0x44] sm:$0xf] }
 0x5ff   : > { %v13413_v25 = vpop.f32.mrb[255].mxu1  ;;  %15614 = vmatpush3.bf16.msra.mxu1 %v17130_v14  ;;  %6794 = vmatprep.mubr.f32.mxu1 %v6709_v36 }
 0x600   : > { %v18031_v31 = vadd.f32 %v13413_v25, %v13412_v19  ;;  %15616 = vmatprep.subr.bf16.mxu1 %v17134_v15 }
 0x602   : > { %6795 = vmatmul.mubr.f32.gmra.mrb[20].mxu1 %v6708_v45  ;;  %v6717_v45 = vld [vmem:[#allocation6 + $0xb68] sm:$0xff] }
 0x603   : > { %15618 = vmatpush3.bf16.msra.mxu1 %v17142_v20  ;;  %6799 = vmatprep.mubr.f32.mxu1 %v6711_v2 }
 0x604   : > { %15620 = vmatprep.subr.bf16.mxu1 %v17146_v21 }
 0x606   : > { %6800 = vmatmul.mubr.f32.gmra.mrb[22].mxu1 %v6710_v61  ;;  %v6716_v61 = vld [vmem:[#allocation6 + $0xb60] sm:$0xff] }
 0x607   : > { %15622 = vmatpush3.bf16.msra.mxu1 %v17154_v27  ;;  %6804 = vmatprep.mubr.f32.mxu1 %v6713_v51 }
 0x608   : > { %15624 = vmatprep.subr.bf16.mxu1 %v17158_v28 }
 0x60a   : > { %6805 = vmatmul.mubr.f32.gmra.mrb[24].mxu1 %v6712_v1 }
 0x60b   : > { %15626 = vmatpush3.bf16.msra.mxu1 %v17166_v34  ;;  %6809 = vmatprep.mubr.f32.mxu1 %v6715_v23  ;;  %v6969_v23 = vld [vmem:[#allocation6 + $0xb88] sm:$0xff] }
 0x60c   : > { %15628 = vmatprep.subr.bf16.mxu1 %v17170_v35 }
 0x60e   : > { %6810 = vmatmul.mubr.f32.gmra.mrb[26].mxu1 %v6714_v30 }
 0x60f   : > { %15630 = vmatpush3.bf16.msra.mxu1 %v17178_v40  ;;  %6814 = vmatprep.mubr.f32.mxu1 %v6717_v45 }
 0x610   : > { %15632 = vmatprep.subr.bf16.mxu1 %v17182_v41 }
 0x612   : > { %6815 = vmatmul.mubr.f32.gmra.mrb[28].mxu1 %v6716_v61 }
 0x613   : > { %15634 = vmatpush3.bf16.msra.mxu1 %v17190_v46 }
 0x614   : > { %15636 = vmatprep.subr.bf16.mxu1 %v17194_v47 }
 0x617   : > { %15638 = vmatpush3.bf16.msra.mxu1 %v17200_v50 }
 0x618   : > { %15640 = vmatprep.subr.bf16.mxu1 %v17114_v4 }
 0x61c   : > { %v13131_v16 = vpop.f32.mrb[56].mxu0 }
 0x61d   : > { %v13132_v19 = vpop.f32.mrb[57].mxu0 }
 0x61e   : > { %v13133_v25 = vadd.f32 %v13132_v19, %v13131_v16  ;;  %v6719_v19 = vld [vmem:[#allocation6 + $0xb78] sm:$0xff] }
 0x61f   : > { %6819 = vmatprep.mubr.f32.mxu1 %v6719_v19 }
 0x620   : > { %v13134_v42 = vpop.f32.mrb[58].mxu0  ;;  %14214 = vmatprep.mubr.msk.f32.mxu0 %vm1157_vm1, %v13133_v25  ;;  %v6718_v25 = vld [vmem:[#allocation6 + $0xb70] sm:$0xff] }
 0x621   : > { %v13135_v44 = vpop.f32.mrb[59].mxu0  ;;  %6820 = vmatmul.mubr.f32.gmra.mrb[30].mxu1 %v6718_v25 }
 0x622   : > { %v13136_v59 = vadd.f32 %v13135_v44, %v13134_v42  ;;  %v6968_v44 = vld [vmem:[#allocation6 + $0xb80] sm:$0xff]  ;;  %7048 = vmatprep.mubr.f32.mxu1 %v6969_v23 }
 0x624   : > { %v13137_v36 = vpop.f32.mrb[60].mxu0  ;;  %14215 = vmatmul.mubr.msk.f32.vlgmr.msra.gmra.mrb[16].mxu0 %vm1157_vm1, %v13136_v59 }
 0x625   : > { %v13138_v2 = vpop.f32.mrb[61].mxu0  ;;  %14227 = vmatpush3.msk.msra.mxu0 %vm1182_vm0, %v17975_v5  ;;  %7049 = vmatmul.mubr.f32.vlgmr.msra.gmra.mrb[32].mxu1 %v6968_v44  ;;  %v6974_v44 = vld [vmem:[#allocation6 + $0xbb0] sm:$0xff] }
 0x626   : > { %v13139_v16 = vadd.f32 %v13138_v2, %v13137_v36  ;;  %14240 = vmatprep.subr.msk.mxu0 %vm1182_vm0, %v18051_v43  ;;  %v6971_v36 = vld [vmem:[#allocation6 + $0xb98] sm:$0xff]  ;;  %15642 = vmatpush3.bf16.msra.mxu1 %v17119_v8  ;;  %v6970_v2 = vld [vmem:[#allocation6 + $0xb90] sm:$0xff] }
 0x627   : > { %7053 = vmatprep.mubr.f32.mxu1 %v6971_v36  ;;  %15644 = vmatprep.subr.bf16.mxu1 %v17121_v9  ;;  %v6977_v36 = vld [vmem:[#allocation6 + $0xbc8] sm:$0xff] }
 0x628   : > { %v13140_v51 = vpop.f32.mrb[62].mxu0  ;;  %14217 = vmatprep.mubr.msk.f32.mxu0 %vm1157_vm1, %v13139_v16 }
 0x629   : > { %v13141_v1 = vpop.f32.mrb[63].mxu0  ;;  %7054 = vmatmul.mubr.f32.gmra.mrb[34].mxu1 %v6970_v2  ;;  %v11933_v2 = vld [vmem:[%s19092_s8 + $0x48] sm:$0xf] }
 0x62a   : > { %v13142_v5 = vadd.f32 %v13141_v1, %v13140_v51  ;;  %v6973_v51 = vld [vmem:[#allocation6 + $0xba8] sm:$0xff]  ;;  %15646 = vmatpush3.bf16.msra.mxu1 %v17130_v14  ;;  %v6972_v1 = vld [vmem:[#allocation6 + $0xba0] sm:$0xff] }
 0x62b   : > { %7058 = vmatprep.mubr.f32.mxu1 %v6973_v51  ;;  %15648 = vmatprep.subr.bf16.mxu1 %v17134_v15  ;;  %v7234_v51 = vld [vmem:[#allocation6 + $0xc10] sm:$0xff] }
 0x62c   : > { %v13143_v42 = vpop.f32.mrb[64].mxu0  ;;  %14218 = vmatmul.mubr.msk.f32.gmra.mrb[18].mxu0 %vm1157_vm1, %v13142_v5 }
 0x62d   : > { %v13144_v30 = vpop.f32.mrb[65].mxu0  ;;  %7059 = vmatmul.mubr.f32.gmra.mrb[36].mxu1 %v6972_v1 }
 0x62e   : > { %v13145_v59 = vadd.f32 %v13144_v30, %v13143_v42  ;;  %v6975_v42 = vld [vmem:[#allocation6 + $0xbb8] sm:$0xff]  ;;  %15650 = vmatpush3.bf16.msra.mxu1 %v17142_v20 }
 0x62f   : > { %7063 = vmatprep.mubr.f32.mxu1 %v6975_v42  ;;  %15652 = vmatprep.subr.bf16.mxu1 %v17146_v21 }
 0x630   : > { %v13146_v45 = vpop.f32.mrb[66].mxu0  ;;  %14220 = vmatprep.mubr.msk.f32.mxu0 %vm1157_vm1, %v13145_v59 }
 0x631   : > { %v13147_v61 = vpop.f32.mrb[67].mxu0  ;;  %7064 = vmatmul.mubr.f32.gmra.mrb[38].mxu1 %v6974_v44 }
 0x632   : > { %v13148_v16 = vadd.f32 %v13147_v61, %v13146_v45  ;;  %15654 = vmatpush3.bf16.msra.mxu1 %v17154_v27  ;;  %v6976_v45 = vld [vmem:[#allocation6 + $0xbc0] sm:$0xff]  ;;  %7068 = vmatprep.mubr.f32.mxu1 %v6977_v36  ;;  %v6979_v61 = vld [vmem:[#allocation6 + $0xbd8] sm:$0xff] }
 0x633   : > { %15656 = vmatprep.subr.bf16.mxu1 %v17158_v28 }
 0x634   : > { %v13149_v19 = vpop.f32.mrb[68].mxu0  ;;  %14221 = vmatmul.mubr.msk.f32.gmra.mrb[20].mxu0 %vm1157_vm1, %v13148_v16  ;;  %v6978_v16 = vld [vmem:[#allocation6 + $0xbd0] sm:$0xff] }
 0x635   : > { %v13150_v25 = vpop.f32.mrb[69].mxu0  ;;  %7069 = vmatmul.mubr.f32.gmra.mrb[40].mxu1 %v6976_v45 }
 0x636   : > { %v13151_v5 = vadd.f32 %v13150_v25, %v13149_v19  ;;  %15658 = vmatpush3.bf16.msra.mxu1 %v17166_v34  ;;  %7073 = vmatprep.mubr.f32.mxu1 %v6979_v61  ;;  %v7241_v19 = vld [vmem:[#allocation6 + $0xc48] sm:$0xff] }
 0x637   : > { %15660 = vmatprep.subr.bf16.mxu1 %v17170_v35 }
 0x638   : > { %v13152_v23 = vpop.f32.mrb[70].mxu0  ;;  %14223 = vmatprep.mubr.msk.f32.mxu0 %vm1157_vm1, %v13151_v5 }
 0x639   : > { %v13153_v30 = vpop.f32.mrb[71].mxu0  ;;  %7074 = vmatmul.mubr.f32.gmra.mrb[42].mxu1 %v6978_v16 }
 0x63a   : > { %v13154_v59 = vadd.f32 %v13153_v30, %v13152_v23  ;;  %15662 = vmatpush3.bf16.msra.mxu1 %v17178_v40 }
 0x63b   : > { %15664 = vmatprep.subr.bf16.mxu1 %v17182_v41 }
 0x63c   : > { %14224 = vmatmul.mubr.msk.f32.gmra.mrb[22].mxu0 %vm1157_vm1, %v13154_v59 }
 0x63d   : > { %14228 = vmatprep.mubr.msk.f32.mxu0 %vm1157_vm1, %v17950_v55  ;;  %v6981_v55 = vld [vmem:[#allocation6 + $0xbe8] sm:$0xff] }
 0x63e   : > { %7078 = vmatprep.mubr.f32.mxu1 %v6981_v55  ;;  %15666 = vmatpush3.bf16.msra.mxu1 %v17190_v46 }
 0x63f   : > { %15668 = vmatprep.subr.bf16.mxu1 %v17194_v47 }
 0x640   : > { %14229 = vmatmul.mubr.msk.f32.vlgmr.msra.gmra.mrb[16].mxu0 %vm1157_vm1, %v17952_v53  ;;  %v6980_v53 = vld [vmem:[#allocation6 + $0xbe0] sm:$0xff] }
 0x641   : > { %14231 = vmatprep.mubr.msk.f32.mxu0 %vm1157_vm1, %v17954_v10  ;;  %14241 = vmatpush3.msk.msra.mxu0 %vm1182_vm0, %v18051_v43  ;;  %v6983_v10 = vld [vmem:[#allocation6 + $0xbf8] sm:$0xff]  ;;  %v6982_v43 = vld [vmem:[#allocation6 + $0xbf0] sm:$0xff] }
 0x642   : > { %14254 = vmatprep.subr.msk.mxu0 %vm1182_vm0, %v11933_v2  ;;  %7079 = vmatmul.mubr.f32.gmra.mrb[44].mxu1 %v6980_v53 }
 0x643   : > { %7083 = vmatprep.mubr.f32.mxu1 %v6983_v10  ;;  %15670 = vmatpush3.bf16.msra.mxu1 %v17200_v50 }
 0x644   : > { %14232 = vmatmul.mubr.msk.f32.gmra.mrb[18].mxu0 %vm1157_vm1, %v17956_v39  ;;  %v7233_v39 = vld [vmem:[#allocation6 + $0xc08] sm:$0xff] }
 0x645   : > { %14234 = vmatprep.mubr.msk.f32.mxu0 %vm1157_vm1, %v17958_v29  ;;  %v7232_v29 = vld [vmem:[#allocation6 + $0xc00] sm:$0xff] }
 0x646   : > { %7084 = vmatmul.mubr.f32.gmra.mrb[46].mxu1 %v6982_v43 }
 0x647   : > { %7312 = vmatprep.mubr.f32.mxu1 %v7233_v39 }
 0x648   : > { %14235 = vmatmul.mubr.msk.f32.gmra.mrb[20].mxu0 %vm1157_vm1, %v17960_v38  ;;  %v7235_v38 = vld [vmem:[#allocation6 + $0xc18] sm:$0xff] }
 0x649   : > { %14237 = vmatprep.mubr.msk.f32.mxu0 %vm1157_vm1, %v17962_v13  ;;  %v11943_v13 = vld [vmem:[%s19092_s8 + $0x4c] sm:$0xf] }
 0x64a   : > { %7313 = vmatmul.mubr.f32.vlgmr.msra.gmra.mrb[48].mxu1 %v7232_v29 }
 0x64b   : > { %7317 = vmatprep.mubr.f32.mxu1 %v7235_v38 }
 0x64c   : > { %14238 = vmatmul.mubr.msk.f32.gmra.mrb[22].mxu0 %vm1157_vm1, %v17964_v0  ;;  %v7237_v0 = vld [vmem:[#allocation6 + $0xc28] sm:$0xff] }
 0x64d   : > { %14242 = vmatprep.mubr.msk.f32.mxu0 %vm1157_vm1, %v17966_v52  ;;  %v7236_v52 = vld [vmem:[#allocation6 + $0xc20] sm:$0xff] }
 0x64e   : > { %7318 = vmatmul.mubr.f32.gmra.mrb[50].mxu1 %v7234_v51 }
 0x64f   : > { %7322 = vmatprep.mubr.f32.mxu1 %v7237_v0 }
 0x650   : > { %14243 = vmatmul.mubr.msk.f32.vlgmr.msra.gmra.mrb[16].mxu0 %vm1157_vm1, %v17968_v62  ;;  %v7239_v62 = vld [vmem:[#allocation6 + $0xc38] sm:$0xff] }
 0x651   : > { %14245 = vmatprep.mubr.msk.f32.mxu0 %vm1157_vm1, %v17970_v37  ;;  %14255 = vmatpush3.msk.msra.mxu0 %vm1182_vm0, %v11933_v2  ;;  %v7238_v37 = vld [vmem:[#allocation6 + $0xc30] sm:$0xff] }
 0x652   : > { %14268 = vmatprep.subr.msk.mxu0 %vm1182_vm0, %v11943_v13  ;;  %7323 = vmatmul.mubr.f32.gmra.mrb[52].mxu1 %v7236_v52 }
 0x653   : > { %7327 = vmatprep.mubr.f32.mxu1 %v7239_v62 }
 0x654   : > { %14246 = vmatmul.mubr.msk.f32.gmra.mrb[18].mxu0 %vm1157_vm1, %v17979_v7  ;;  %v7240_v7 = vld [vmem:[#allocation6 + $0xc40] sm:$0xff] }
 0x655   : > { %14248 = vmatprep.mubr.msk.f32.mxu0 %vm1157_vm1, %v17981_v56  ;;  %v7243_v56 = vld [vmem:[#allocation6 + $0xc58] sm:$0xff] }
 0x656   : > { %7328 = vmatmul.mubr.f32.gmra.mrb[54].mxu1 %v7238_v37 }
 0x657   : > { %7332 = vmatprep.mubr.f32.mxu1 %v7241_v19 }
 0x658   : > { %14249 = vmatmul.mubr.msk.f32.gmra.mrb[20].mxu0 %vm1157_vm1, %v17983_v22  ;;  %v7242_v22 = vld [vmem:[#allocation6 + $0xc50] sm:$0xff] }
 0x659   : > { %14251 = vmatprep.mubr.msk.f32.mxu0 %vm1157_vm1, %v17985_v63  ;;  %v7245_v63 = vld [vmem:[#allocation6 + $0xc68] sm:$0xff] }
 0x65a   : > { %7333 = vmatmul.mubr.f32.gmra.mrb[56].mxu1 %v7240_v7 }
 0x65b   : > { %7337 = vmatprep.mubr.f32.mxu1 %v7243_v56 }
 0x65c   : > { %14252 = vmatmul.mubr.msk.f32.gmra.mrb[22].mxu0 %vm1157_vm1, %v17987_v24  ;;  %v7244_v24 = vld [vmem:[#allocation6 + $0xc60] sm:$0xff] }
 0x65d   : > { %14256 = vmatprep.mubr.msk.f32.mxu0 %vm1157_vm1, %v17989_v32  ;;  %v7247_v32 = vld [vmem:[#allocation6 + $0xc78] sm:$0xff] }
 0x65e   : > { %7338 = vmatmul.mubr.f32.gmra.mrb[58].mxu1 %v7242_v22  ;;  %v18213_v22 = vld [vmem:[%s19092_s8 + $0x54] sm:$0xf] }
 0x65f   : > { %7342 = vmatprep.mubr.f32.mxu1 %v7245_v63 }
 0x660   : > { %14257 = vmatmul.mubr.msk.f32.vlgmr.msra.gmra.mrb[16].mxu0 %vm1157_vm1, %v17991_v3  ;;  %v7246_v3 = vld [vmem:[#allocation6 + $0xc70] sm:$0xff] }
 0x661   : > { %14259 = vmatprep.mubr.msk.f32.mxu0 %vm1157_vm1, %v17993_v12  ;;  %14269 = vmatpush3.msk.msra.mxu0 %vm1182_vm0, %v11943_v13  ;;  %v6190_v12 = vld [vmem:[#allocation6 + $0xa70] sm:$0xff] }
 0x662   : > { %15512 = vmatprep.subr.bf16.mxu0 %v17114_v4  ;;  %7343 = vmatmul.mubr.f32.gmra.mrb[60].mxu1 %v7244_v24  ;;  %v6177_v4 = vld [vmem:[#allocation6 + $0xa08] sm:$0xff] }
 0x663   : > { %7347 = vmatprep.mubr.f32.mxu1 %v7247_v32 }
 0x664   : > { %14260 = vmatmul.mubr.msk.f32.gmra.mrb[18].mxu0 %vm1157_vm1, %v17995_v54 }
 0x665   : > { %14262 = vmatprep.mubr.msk.f32.mxu0 %vm1157_vm1, %v17997_v48 }
 0x666   : > { %7348 = vmatmul.mubr.f32.gmra.mrb[62].mxu1 %v7246_v3 }
 0x668   : > { %14263 = vmatmul.mubr.msk.f32.gmra.mrb[20].mxu0 %vm1157_vm1, %v17999_v18 }
 0x669   : > { %14265 = vmatprep.mubr.msk.f32.mxu0 %vm1157_vm1, %v18001_v58 }
 0x66c   : > { %14266 = vmatmul.mubr.msk.f32.gmra.mrb[22].mxu0 %vm1157_vm1, %v18003_v49 }
 0x66d   : > { %14270 = vmatprep.mubr.msk.f32.mxu0 %vm1157_vm1, %v18005_v60 }
 0x670   : > { %14271 = vmatmul.mubr.msk.f32.vlgmr.msra.gmra.mrb[16].mxu0 %vm1157_vm1, %v18007_v33 }
 0x671   : > { %15514 = vmatpush3.bf16.msra.mxu0 %v17119_v8  ;;  %14273 = vmatprep.mubr.msk.f32.mxu0 %vm1157_vm1, %v18011_v57  ;;  %v11953_v8 = vld [vmem:[%s19092_s8 + $0x50] sm:$0xf] }
 0x672   : > { %15516 = vmatprep.subr.bf16.mxu0 %v17121_v9  ;;  %v6176_v9 = vld [vmem:[#allocation6 + $0xa00] sm:$0xff] }
 0x674   : > { %14274 = vmatmul.mubr.msk.f32.gmra.mrb[18].mxu0 %vm1157_vm1, %v18015_v17 }
 0x675   : > { %15518 = vmatpush3.bf16.msra.mxu0 %v17130_v14  ;;  %14276 = vmatprep.mubr.msk.f32.mxu0 %vm1157_vm1, %v18019_v11  ;;  %v6179_v14 = vld [vmem:[#allocation6 + $0xa18] sm:$0xff] }
 0x676   : > { %15520 = vmatprep.subr.bf16.mxu0 %v17134_v15  ;;  %v6178_v15 = vld [vmem:[#allocation6 + $0xa10] sm:$0xff] }
 0x678   : > { %14277 = vmatmul.mubr.msk.f32.gmra.mrb[20].mxu0 %vm1157_vm1, %v18023_v6 }
 0x679   : > { %15522 = vmatpush3.bf16.msra.mxu0 %v17142_v20  ;;  %14279 = vmatprep.mubr.msk.f32.mxu0 %vm1157_vm1, %v18027_v26  ;;  %v6181_v20 = vld [vmem:[#allocation6 + $0xa28] sm:$0xff] }
 0x67a   : > { %15524 = vmatprep.subr.bf16.mxu0 %v17146_v21  ;;  %v6180_v21 = vld [vmem:[#allocation6 + $0xa20] sm:$0xff] }
 0x67c   : > { %14280 = vmatmul.mubr.msk.f32.gmra.mrb[22].mxu0 %vm1157_vm1, %v18031_v31 }
 0x67d   : > { %15526 = vmatpush3.bf16.msra.mxu0 %v17154_v27  ;;  %6256 = vmatprep.mubr.f32.mxu0 %v6177_v4  ;;  %v6183_v27 = vld [vmem:[#allocation6 + $0xa38] sm:$0xff] }
 0x67e   : > { %15528 = vmatprep.subr.bf16.mxu0 %v17158_v28  ;;  %v6182_v28 = vld [vmem:[#allocation6 + $0xa30] sm:$0xff] }
 0x681   : > { %15530 = vmatpush3.bf16.msra.mxu0 %v17166_v34  ;;  %v6185_v34 = vld [vmem:[#allocation6 + $0xa48] sm:$0xff] }
 0x682   : > { %15532 = vmatprep.subr.bf16.mxu0 %v17170_v35  ;;  %v6184_v35 = vld [vmem:[#allocation6 + $0xa40] sm:$0xff] }
 0x685   : > { %15534 = vmatpush3.bf16.msra.mxu0 %v17178_v40  ;;  %v6187_v40 = vld [vmem:[#allocation6 + $0xa58] sm:$0xff] }
 0x686   : > { %15536 = vmatprep.subr.bf16.mxu0 %v17182_v41  ;;  %v6186_v41 = vld [vmem:[#allocation6 + $0xa50] sm:$0xff] }
 0x689   : > { %15538 = vmatpush3.bf16.msra.mxu0 %v17190_v46  ;;  %v6189_v46 = vld [vmem:[#allocation6 + $0xa68] sm:$0xff] }
 0x68a   : > { %15540 = vmatprep.subr.bf16.mxu0 %v17194_v47  ;;  %v6188_v47 = vld [vmem:[#allocation6 + $0xa60] sm:$0xff] }
 0x68d   : > { %15542 = vmatpush3.bf16.msra.mxu0 %v17200_v50  ;;  %v6191_v50 = vld [vmem:[#allocation6 + $0xa78] sm:$0xff] }
 0x68e   : > { %14282 = vmatprep.subr.msk.mxu0 %vm1182_vm0, %v11953_v8 }
 0x690   : > { %6257 = vmatmul.mubr.f32.vlgmr.msra.gmra.mrb[72].mxu0 %v6176_v9 }
 0x691   : > { %6261 = vmatprep.mubr.f32.mxu0 %v6179_v14  ;;  %14283 = vmatpush3.msk.msra.mxu0 %vm1182_vm0, %v11953_v8 }
 0x692   : > { %14296 = vmatprep.subr.msk.mxu0 %vm1182_vm0, %v18213_v22 }
 0x693   : > { %v13521_v54 = vpop.f32.mrb[0].mxu1 }
 0x694   : > { %6262 = vmatmul.mubr.f32.gmra.mrb[74].mxu0 %v6178_v15  ;;  %v13522_v48 = vpop.f32.mrb[1].mxu1 }
 0x695   : > { %6266 = vmatprep.mubr.f32.mxu0 %v6181_v20  ;;  %v18182_v18 = vadd.f32 %v13522_v48, %v13521_v54 }
 0x697   : > { %v13524_v58 = vpop.f32.mrb[2].mxu1 }
 0x698   : > { %6267 = vmatmul.mubr.f32.gmra.mrb[76].mxu0 %v6180_v21  ;;  %v13525_v49 = vpop.f32.mrb[3].mxu1 }
 0x699   : > { %6271 = vmatprep.mubr.f32.mxu0 %v6183_v27  ;;  %v18184_v60 = vadd.f32 %v13525_v49, %v13524_v58 }
 0x69c   : > { %6272 = vmatmul.mubr.f32.gmra.mrb[78].mxu0 %v6182_v28 }
 0x69d   : > { %6276 = vmatprep.mubr.f32.mxu0 %v6185_v34 }
 0x6a0   : > { %6277 = vmatmul.mubr.f32.gmra.mrb[80].mxu0 %v6184_v35 }
 0x6a1   : > { %6281 = vmatprep.mubr.f32.mxu0 %v6187_v40 }
 0x6a4   : > { %6282 = vmatmul.mubr.f32.gmra.mrb[82].mxu0 %v6186_v41 }
 0x6a5   : > { %6286 = vmatprep.mubr.f32.mxu0 %v6189_v46 }
 0x6a8   : > { %6287 = vmatmul.mubr.f32.gmra.mrb[84].mxu0 %v6188_v47  ;;  %v13527_v33 = vpop.f32.mrb[4].mxu1 }
 0x6a9   : > { %6291 = vmatprep.mubr.f32.mxu0 %v6191_v50  ;;  %v13528_v57 = vpop.f32.mrb[5].mxu1 }
 0x6aa   : > { %v18186_v17 = vadd.f32 %v13528_v57, %v13527_v33 }
 0x6ac   : > { %6292 = vmatmul.mubr.f32.gmra.mrb[86].mxu0 %v6190_v12 }
 0x6b0   : > { %v13530_v11 = vpop.f32.mrb[6].mxu1 }
 0x6b1   : > { %v13531_v6 = vpop.f32.mrb[7].mxu1 }
 0x6b2   : > { %v18188_v26 = vadd.f32 %v13531_v6, %v13530_v11 }
 0x6bc   : > { %v13533_v31 = vpop.f32.mrb[8].mxu1 }
 0x6bd   : > { %v13534_v1 = vpop.f32.mrb[9].mxu1 }
 0x6be   : > { %v18190_v25 = vadd.f32 %v13534_v1, %v13533_v31 }
 0x6c0   : > { %v13536_v5 = vpop.f32.mrb[10].mxu1 }
 0x6c1   : > { %v13537_v42 = vpop.f32.mrb[11].mxu1 }
 0x6c2   : > { %v18192_v23 = vadd.f32 %v13537_v42, %v13536_v5 }
 0x6c4   : > { %v13539_v44 = vpop.f32.mrb[12].mxu1 }
 0x6c5   : > { %v13540_v30 = vpop.f32.mrb[13].mxu1 }
 0x6c6   : > { %v18194_v59 = vadd.f32 %v13540_v30, %v13539_v44 }
 0x6c9   : > { %v13542_v36 = vpop.f32.mrb[14].mxu1 }
 0x6ca   : > { %v13543_v45 = vpop.f32.mrb[15].mxu1 }
 0x6cb   : > { %v18196_v2 = vadd.f32 %v13543_v45, %v13542_v36 }
 0x6cd   : > { %v13586_v61 = vpop.f32.mrb[16].mxu1 }
 0x6ce   : > { %v13587_v16 = vpop.f32.mrb[17].mxu1 }
 0x6cf   : > { %v18198_v55 = vadd.f32 %v13587_v16, %v13586_v61 }
 0x6d1   : > { %v13589_v53 = vpop.f32.mrb[18].mxu1 }
 0x6d2   : > { %v13590_v10 = vpop.f32.mrb[19].mxu1 }
 0x6d3   : > { %v18200_v43 = vadd.f32 %v13590_v10, %v13589_v53 }
 0x6d5   : > { %v13592_v39 = vpop.f32.mrb[20].mxu1 }
 0x6d6   : > { %v13593_v29 = vpop.f32.mrb[21].mxu1 }
 0x6d7   : > { %v18202_v38 = vadd.f32 %v13593_v29, %v13592_v39 }
 0x6d9   : > { %v13595_v13 = vpop.f32.mrb[22].mxu1 }
 0x6da   : > { %v13596_v51 = vpop.f32.mrb[23].mxu1 }
 0x6db   : > { %v18204_v0 = vadd.f32 %v13596_v51, %v13595_v13 }
 0x6dd   : > { %v13598_v52 = vpop.f32.mrb[24].mxu1 }
 0x6de   : > { %v13599_v62 = vpop.f32.mrb[25].mxu1 }
 0x6df   : > { %v18206_v37 = vadd.f32 %v13599_v62, %v13598_v52 }
 0x6e1   : > { %v13601_v19 = vpop.f32.mrb[26].mxu1 }
 0x6e2   : > { %v13602_v7 = vpop.f32.mrb[27].mxu1 }
 0x6e3   : > { %v18208_v56 = vadd.f32 %v13602_v7, %v13601_v19 }
 0x6e5   : > { %v13604_v63 = vpop.f32.mrb[28].mxu1 }
 0x6e6   : > { %v13605_v24 = vpop.f32.mrb[29].mxu1 }
 0x6e7   : > { %v18217_v32 = vadd.f32 %v13605_v24, %v13604_v63 }
 0x6f4   : > { %v13607_v3 = vpop.f32.mrb[30].mxu1 }
 0x6f5   : > { %v13608_v4 = vpop.f32.mrb[31].mxu1 }
 0x6f6   : > { %v18219_v8 = vadd.f32 %v13608_v4, %v13607_v3 }
 0x6f8   : > { %v13651_v9 = vpop.f32.mrb[32].mxu1 }
 0x6f9   : > { %v13652_v14 = vpop.f32.mrb[33].mxu1 }
 0x6fa   : > { %v18221_v15 = vadd.f32 %v13652_v14, %v13651_v9 }
 0x6fc   : > { %v13654_v20 = vpop.f32.mrb[34].mxu1 }
 0x6fd   : > { %v13655_v21 = vpop.f32.mrb[35].mxu1 }
 0x6fe   : > { %v18223_v27 = vadd.f32 %v13655_v21, %v13654_v20 }
 0x700   : > { %v13657_v28 = vpop.f32.mrb[36].mxu1 }
 0x701   : > { %v13658_v34 = vpop.f32.mrb[37].mxu1 }
 0x702   : > { %v18225_v35 = vadd.f32 %v13658_v34, %v13657_v28 }
 0x704   : > { %v13660_v40 = vpop.f32.mrb[38].mxu1 }
 0x705   : > { %v13661_v41 = vpop.f32.mrb[39].mxu1 }
 0x706   : > { %v18227_v46 = vadd.f32 %v13661_v41, %v13660_v40  ;;  %v11973_v41 = vld [vmem:[%s19092_s8 + $0x58] sm:$0xf] }
 0x708   : > { %v13663_v47 = vpop.f32.mrb[40].mxu1 }
 0x709   : > { %v13664_v50 = vpop.f32.mrb[41].mxu1 }
 0x70a   : > { %v18229_v12 = vadd.f32 %v13664_v50, %v13663_v47 }
 0x70c   : > { %v13666_v54 = vpop.f32.mrb[42].mxu1 }
 0x70d   : > { %v13667_v48 = vpop.f32.mrb[43].mxu1 }
 0x70e   : > { %v18231_v58 = vadd.f32 %v13667_v48, %v13666_v54 }
 0x715   : > { %v13669_v49 = vpop.f32.mrb[44].mxu1 }
 0x716   : > { %v13670_v33 = vpop.f32.mrb[45].mxu1 }
 0x717   : > { %v18233_v57 = vadd.f32 %v13670_v33, %v13669_v49 }
 0x719   : > { %v13672_v11 = vpop.f32.mrb[46].mxu1 }
 0x71a   : > { %v13673_v6 = vpop.f32.mrb[47].mxu1 }
 0x71b   : > { %v18235_v31 = vadd.f32 %v13673_v6, %v13672_v11 }
 0x71d   : > { %v13716_v1 = vpop.f32.mrb[48].mxu1 }
 0x71e   : > { %v13717_v5 = vpop.f32.mrb[49].mxu1 }
 0x71f   : > { %v18237_v42 = vadd.f32 %v13717_v5, %v13716_v1 }
 0x721   : > { %v13719_v44 = vpop.f32.mrb[50].mxu1 }
 0x722   : > { %v13720_v30 = vpop.f32.mrb[51].mxu1 }
 0x723   : > { %v18239_v36 = vadd.f32 %v13720_v30, %v13719_v44 }
 0x725   : > { %v13722_v45 = vpop.f32.mrb[52].mxu1 }
 0x726   : > { %v13723_v61 = vpop.f32.mrb[53].mxu1 }
 0x727   : > { %v18241_v16 = vadd.f32 %v13723_v61, %v13722_v45 }
 0x729   : > { %v13725_v53 = vpop.f32.mrb[54].mxu1 }
 0x72a   : > { %v13726_v10 = vpop.f32.mrb[55].mxu1 }
 0x72b   : > { %v18243_v39 = vadd.f32 %v13726_v10, %v13725_v53 }
 0x72d   : > { %v13728_v29 = vpop.f32.mrb[56].mxu1 }
 0x72e   : > { %v13729_v13 = vpop.f32.mrb[57].mxu1 }
 0x72f   : > { %v18245_v51 = vadd.f32 %v13729_v13, %v13728_v29  ;;  %v11983_v13 = vld [vmem:[%s19092_s8 + $0x5c] sm:$0xf] }
 0x731   : > { %v13731_v52 = vpop.f32.mrb[58].mxu1 }
 0x732   : > { %v13732_v62 = vpop.f32.mrb[59].mxu1 }
 0x733   : > { %v18247_v19 = vadd.f32 %v13732_v62, %v13731_v52 }
 0x735   : > { %v13734_v7 = vpop.f32.mrb[60].mxu1 }
 0x736   : > { %v13735_v63 = vpop.f32.mrb[61].mxu1 }
 0x737   : > { %v18249_v24 = vadd.f32 %v13735_v63, %v13734_v7 }
 0x739   : > { %v13737_v3 = vpop.f32.mrb[62].mxu1 }
 0x73a   : > { %v13738_v4 = vpop.f32.mrb[63].mxu1 }
 0x73b   : > { %v18251_v9 = vadd.f32 %v13738_v4, %v13737_v3 }
 0x763   : > { %v13456_v14 = vpop.f32.mrb[72].mxu0 }
 0x764   : > { %v13457_v20 = vpop.f32.mrb[73].mxu0 }
 0x765   : > { %v13458_v21 = vadd.f32 %v13457_v20, %v13456_v14 }
 0x767   : > { %v13459_v28 = vpop.f32.mrb[74].mxu0  ;;  %14284 = vmatprep.mubr.msk.f32.mxu0 %vm1157_vm1, %v13458_v21 }
 0x768   : > { %v13460_v34 = vpop.f32.mrb[75].mxu0 }
 0x769   : > { %v13461_v40 = vadd.f32 %v13460_v34, %v13459_v28 }
 0x76b   : > { %v13462_v47 = vpop.f32.mrb[76].mxu0  ;;  %14285 = vmatmul.mubr.msk.f32.vlgmr.msra.gmra.mrb[16].mxu0 %vm1157_vm1, %v13461_v40 }
 0x76c   : > { %v13463_v50 = vpop.f32.mrb[77].mxu0  ;;  %14297 = vmatpush3.msk.msra.mxu0 %vm1182_vm0, %v18213_v22 }
 0x76d   : > { %v13464_v54 = vadd.f32 %v13463_v50, %v13462_v47  ;;  %14310 = vmatprep.subr.msk.mxu0 %vm1182_vm0, %v11973_v41 }
 0x76f   : > { %v13465_v48 = vpop.f32.mrb[78].mxu0  ;;  %14287 = vmatprep.mubr.msk.f32.mxu0 %vm1157_vm1, %v13464_v54 }
 0x770   : > { %v13466_v49 = vpop.f32.mrb[79].mxu0 }
 0x771   : > { %v13467_v33 = vadd.f32 %v13466_v49, %v13465_v48 }
 0x773   : > { %v13468_v11 = vpop.f32.mrb[80].mxu0  ;;  %14288 = vmatmul.mubr.msk.f32.gmra.mrb[18].mxu0 %vm1157_vm1, %v13467_v33 }
 0x774   : > { %v13469_v6 = vpop.f32.mrb[81].mxu0 }
 0x775   : > { %v13470_v1 = vadd.f32 %v13469_v6, %v13468_v11 }
 0x777   : > { %v13471_v5 = vpop.f32.mrb[82].mxu0  ;;  %14290 = vmatprep.mubr.msk.f32.mxu0 %vm1157_vm1, %v13470_v1 }
 0x778   : > { %v13472_v44 = vpop.f32.mrb[83].mxu0 }
 0x779   : > { %v13473_v30 = vadd.f32 %v13472_v44, %v13471_v5 }
 0x77b   : > { %v13474_v45 = vpop.f32.mrb[84].mxu0  ;;  %14291 = vmatmul.mubr.msk.f32.gmra.mrb[20].mxu0 %vm1157_vm1, %v13473_v30 }
 0x77c   : > { %v13475_v22 = vpop.f32.mrb[85].mxu0 }
 0x77d   : > { %v13476_v61 = vadd.f32 %v13475_v22, %v13474_v45  ;;  %v7564_v22 = vld [vmem:[#allocation8 + $0x8] sm:$0xff] }
 0x77f   : > { %v13477_v53 = vpop.f32.mrb[86].mxu0  ;;  %14293 = vmatprep.mubr.msk.f32.mxu0 %vm1157_vm1, %v13476_v61  ;;  %v7649_v61 = vld [vmem:[#allocation8 + $0x10] sm:$0xff] }
 0x780   : > { %v13478_v10 = vpop.f32.mrb[87].mxu0 }
 0x781   : > { %v13479_v29 = vadd.f32 %v13478_v10, %v13477_v53  ;;  %v7650_v53 = vld [vmem:[#allocation8 + $0x18] sm:$0xff]  ;;  %v7898_v10 = vld [vmem:[#allocation8 + $0x20] sm:$0xff] }
 0x783   : > { %14294 = vmatmul.mubr.msk.f32.gmra.mrb[22].mxu0 %vm1157_vm1, %v13479_v29  ;;  %v7899_v29 = vld [vmem:[#allocation8 + $0x28] sm:$0xff] }
 0x784   : > { %14298 = vmatprep.mubr.msk.f32.mxu0 %vm1157_vm1, %v18182_v18  ;;  %v11993_v18 = vld [vmem:[%s19092_s8 + $0x60] sm:$0xf]  ;;  %s19101_s8 = sld [smem:[#allocation38_spill]] }
 0x787   : > { %14299 = vmatmul.mubr.msk.f32.vlgmr.msra.gmra.mrb[16].mxu0 %vm1157_vm1, %v18184_v60  ;;  %v7563_v60 = vld [vmem:[#allocation8] sm:$0xff] }
 0x788   : > { %14301 = vmatprep.mubr.msk.f32.mxu0 %vm1157_vm1, %v18186_v17  ;;  %14311 = vmatpush3.msk.msra.mxu0 %vm1182_vm0, %v11973_v41  ;;  %v12003_v17 = vld [vmem:[%s19093_s17] ss:$0 sm:$0xff] }
 0x789   : > { %14324 = vmatprep.subr.msk.mxu0 %vm1182_vm0, %v11983_v13 }
 0x78b   : > { %14302 = vmatmul.mubr.msk.f32.gmra.mrb[18].mxu0 %vm1157_vm1, %v18188_v26 }
 0x78c   : > { %14304 = vmatprep.mubr.msk.f32.mxu0 %vm1157_vm1, %v18190_v25  ;;  %v12004_v25 = vld [vmem:[%s19093_s17 + $0x3] ss:$0 sm:$0xff] }
 0x78f   : > { %14305 = vmatmul.mubr.msk.f32.gmra.mrb[20].mxu0 %vm1157_vm1, %v18192_v23 }
 0x790   : > { %14307 = vmatprep.mubr.msk.f32.mxu0 %vm1157_vm1, %v18194_v59 }
 0x793   : > { %14308 = vmatmul.mubr.msk.f32.gmra.mrb[22].mxu0 %vm1157_vm1, %v18196_v2 }
 0x794   : > { %14312 = vmatprep.mubr.msk.f32.mxu0 %vm1157_vm1, %v18198_v55  ;;  %v12005_v55 = vld [vmem:[%s19093_s17 + $0x1] ss:$0 sm:$0xff] }
 0x797   : > { %14313 = vmatmul.mubr.msk.f32.vlgmr.msra.gmra.mrb[16].mxu0 %vm1157_vm1, %v18200_v43 }
 0x798   : > { %14315 = vmatprep.mubr.msk.f32.mxu0 %vm1157_vm1, %v18202_v38  ;;  %14325 = vmatpush3.msk.msra.mxu0 %vm1182_vm0, %v11983_v13  ;;  %v8067_v13 = vld [vmem:[#allocation8 + $0x30] sm:$0xff] }
 0x799   : > { %14338 = vmatprep.subr.msk.mxu0 %vm1182_vm0, %v11993_v18 }
 0x79b   : > { %14316 = vmatmul.mubr.msk.f32.gmra.mrb[18].mxu0 %vm1157_vm1, %v18204_v0 }
 0x79c   : > { %14318 = vmatprep.mubr.msk.f32.mxu0 %vm1157_vm1, %v18206_v37  ;;  %v12006_v37 = vld [vmem:[%s19093_s17 + $0x2] ss:$0 sm:$0xff] }
 0x79f   : > { %14319 = vmatmul.mubr.msk.f32.gmra.mrb[20].mxu0 %vm1157_vm1, %v18208_v56 }
 0x7a0   : > { %14321 = vmatprep.mubr.msk.f32.mxu0 %vm1157_vm1, %v18217_v32 }
 0x7a3   : > { %14322 = vmatmul.mubr.msk.f32.gmra.mrb[22].mxu0 %vm1157_vm1, %v18219_v8 }
 0x7a4   : > { %14326 = vmatprep.mubr.msk.f32.mxu0 %vm1157_vm1, %v18221_v15 }
 0x7a7   : > { %14327 = vmatmul.mubr.msk.f32.vlgmr.msra.gmra.mrb[16].mxu0 %vm1157_vm1, %v18223_v27 }
 0x7a8   : > { %14329 = vmatprep.mubr.msk.f32.mxu0 %vm1157_vm1, %v18225_v35  ;;  %14339 = vmatpush3.msk.msra.mxu0 %vm1182_vm0, %v11993_v18  ;;  %v8068_v18 = vld [vmem:[#allocation8 + $0x38] sm:$0xff] }
 0x7ab   : > { %14330 = vmatmul.mubr.msk.f32.gmra.mrb[18].mxu0 %vm1157_vm1, %v18227_v46 }
 0x7ac   : > { %14332 = vmatprep.mubr.msk.f32.mxu0 %vm1157_vm1, %v18229_v12 }
 0x7af   : > { %14333 = vmatmul.mubr.msk.f32.gmra.mrb[20].mxu0 %vm1157_vm1, %v18231_v58 }
 0x7b0   : > { %14335 = vmatprep.mubr.msk.f32.mxu0 %vm1157_vm1, %v18233_v57 }
 0x7b3   : > { %14336 = vmatmul.mubr.msk.f32.gmra.mrb[22].mxu0 %vm1157_vm1, %v18235_v31 }
 0x7b4   : > { %14340 = vmatprep.mubr.msk.f32.mxu0 %vm1157_vm1, %v18237_v42 }
 0x7b7   : > { %14341 = vmatmul.mubr.msk.f32.vlgmr.msra.gmra.mrb[16].mxu0 %vm1157_vm1, %v18239_v36 }
 0x7b8   : > { %14343 = vmatprep.mubr.msk.f32.mxu0 %vm1157_vm1, %v18241_v16 }
 0x7bb   : > { %14344 = vmatmul.mubr.msk.f32.gmra.mrb[18].mxu0 %vm1157_vm1, %v18243_v39 }
 0x7bc   : > { %14346 = vmatprep.mubr.msk.f32.mxu0 %vm1157_vm1, %v18245_v51 }
 0x7bf   : > { %14347 = vmatmul.mubr.msk.f32.gmra.mrb[20].mxu0 %vm1157_vm1, %v18247_v19 }
 0x7c0   : > { %14349 = vmatprep.mubr.msk.f32.mxu0 %vm1157_vm1, %v18249_v24 }
 0x7c3   : > { %14350 = vmatmul.mubr.msk.f32.gmra.mrb[22].mxu0 %vm1157_vm1, %v18251_v9 }
 0x7c4   : > { %14368 = vmatprep.mubr.msk.f32.mxu0 %vm7565_vm2, %v7563_v60  ;;  %v8236_v60 = vld [vmem:[#allocation8 + $0x40] sm:$0xff] }
 0x88a   : > { %v14342_v26 = vpop.f32.mrb[16].mxu0 }
 0x88b   : > { %v7504_v23 = vadd.f32 %v14342_v26, %v12003_v17  ;;  %v7448_v59 = vpop.f32.mrb[17].mxu0  ;;  %v8405_v26 = vld [vmem:[#allocation8 + $0x50] sm:$0xff] }
 0x88c   : > { %v7503_v2 = vadd.f32 %v12003_v17, %v7448_v59  ;;  %v7647_v59 = vld [vmem:[%s19094_s24] sm:$0xff] }
 0x88d   : > { %vm7512_vm3 = vcmp.ge.f32.partialorder %v7504_v23, 0.0  ;;  %v7524_v43 = vmul.f32 %v12004_v25, %v7504_v23 }
 0x88e   : > { %vm7511_vm4 = vcmp.ge.f32.partialorder %v7503_v2, 0.0  ;;  %v7523_v38 = vmul.f32 %v12004_v25, %v7503_v2  ;;  %v14345_v0 = vpop.f32.mrb[18].mxu0 }
 0x88f   : > { %v7532_v56 = vsel %vm7512_vm3, %v7504_v23, %v7524_v43  ;;  %v7506_v32 = vadd.f32 %v14345_v0, %v12003_v17  ;;  %v7458_v8 = vpop.f32.mrb[19].mxu0  ;;  %v12011_v23 = vld [vmem:[%s19094_s24 + $0x8] sm:$0xff] }
 0x890   : > { %v7544_v15 = vmul.f32 %v12005_v55, %v7532_v56  ;;  %v7531_v27 = vsel %vm7511_vm4, %v7503_v2, %v7523_v38  ;;  %v7505_v35 = vadd.f32 %v12003_v17, %v7458_v8  ;;  %14390 = vmatprep.subr.mxu1 %v12011_v23  ;;  %v8743_v2 = vld [vmem:[#allocation8 + $0x70] sm:$0xff]  ;;  %vm10664_vm4 = vcmask 261120  }
 0x891   : > { %v7543_v46 = vmul.f32 %v12005_v55, %v7531_v27  ;;  %vm7514_vm5 = vcmp.ge.f32.partialorder %v7506_v32, 0.0  ;;  %v7526_v12 = vmul.f32 %v12004_v25, %v7506_v32  ;;  %14391 = vmatpush3.msra.mxu1 %v12011_v23  ;;  %v12018_v56 = vld [vmem:[%s19094_s24 + $0x10] sm:$0xff]  ;;  %v12028_v27 = vld [vmem:[%s19094_s24 + $0x20] sm:$0xff]  ;;  %v9414_v23 = vld [vmem:[#allocation9 + $0x8] sm:$0xf] }
 0x892   : > { %v7556_v58 = vadd.f32 %v12006_v37, %v7544_v15  ;;  %vm7513_vm6 = vcmp.ge.f32.partialorder %v7505_v35, 0.0  ;;  %v7525_v57 = vmul.f32 %v12004_v25, %v7505_v35  ;;  %v14348_v31 = vpop.f32.mrb[20].mxu0  ;;  %14395 = vmatprep.subr.mxu1 %v7647_v59 }
 0x893   : > { %v7555_v42 = vadd.f32 %v12006_v37, %v7543_v46  ;;  %v7534_v36 = vsel %vm7514_vm5, %v7506_v32, %v7526_v12  ;;  %v7508_v16 = vadd.f32 %v14348_v31, %v12003_v17  ;;  %v7468_v39 = vpop.f32.mrb[21].mxu0  ;;  %v12023_v32 = vld [vmem:[%s19094_s24 + $0x18] sm:$0xff]  ;;  %v12033_v12 = vld [vmem:[%s19094_s24 + $0x28] sm:$0xff] }
 0x894   : > { %v7546_v51 = vmul.f32 %v12005_v55, %v7534_v36  ;;  %v7533_v52 = vsel %vm7513_vm6, %v7505_v35, %v7525_v57  ;;  %v7507_v62 = vadd.f32 %v12003_v17, %v7468_v39  ;;  %v8574_v36 = vld [vmem:[#allocation8 + $0x60] sm:$0xff]  ;;  %v12038_v39 = vld [vmem:[%s19094_s24 + $0x30] sm:$0xff] }
 0x895   : > { %v18355_v19 = vpack.c.bf16 %v7556_v58, %v7555_v42  ;;  %v7545_v7 = vmul.f32 %v12005_v55, %v7533_v52  ;;  %vm7516_vm7 = vcmp.ge.f32.partialorder %v7508_v16, 0.0  ;;  %v7528_v63 = vmul.f32 %v12004_v25, %v7508_v16 }
 0x896   : > { %v7558_v24 = vadd.f32 %v12006_v37, %v7546_v51  ;;  %vm7515_vm8 = vcmp.ge.f32.partialorder %v7507_v62, 0.0  ;;  %v7527_v3 = vmul.f32 %v12004_v25, %v7507_v62  ;;  %v14351_v4 = vpop.f32.mrb[22].mxu0  ;;  %v12043_v51 = vld [vmem:[%s19094_s24 + $0x38] sm:$0xff] }
 0x897   : > { %v7557_v9 = vadd.f32 %v12006_v37, %v7545_v7  ;;  %v7536_v14 = vsel %vm7516_vm7, %v7508_v16, %v7528_v63  ;;  %v7510_v20 = vadd.f32 %v14351_v4, %v12003_v17  ;;  %v7478_v21 = vpop.f32.mrb[23].mxu0  ;;  %15672 = vmatprep.subr.bf16.mxu0 %v18355_v19  ;;  %v8575_v16 = vld [vmem:[#allocation8 + $0x68] sm:$0xff] }
 0x898   : > { %v7548_v28 = vmul.f32 %v12005_v55, %v7536_v14  ;;  %v7535_v34 = vsel %vm7515_vm8, %v7507_v62, %v7527_v3  ;;  %v7509_v40 = vadd.f32 %v12003_v17, %v7478_v21  ;;  %15674 = vmatpush3.bf16.msra.mxu0 %v18355_v19  ;;  %v8237_v17 = vld [vmem:[#allocation8 + $0x48] sm:$0xff]  ;;  %v16666_v14 = vmov 0.0|0.0   ;;  %v12051_v21 = vld [vmem:[%s19095_s20] ss:$0 sm:$0xff] }
 0x899   : > { %v18359_v41 = vpack.c.bf16 %v7558_v24, %v7557_v9  ;;  %v7547_v47 = vmul.f32 %v12005_v55, %v7535_v34  ;;  %vm7518_vm9 = vcmp.ge.f32.partialorder %v7510_v20, 0.0  ;;  %v7530_v50 = vmul.f32 %v12004_v25, %v7510_v20  ;;  %v8912_v24 = vld [vmem:[#allocation8 + $0x80] sm:$0xff]  ;;  %v8913_v3 = vld [vmem:[#allocation8 + $0x88] sm:$0xff] }
 0x89a   : > { %v7560_v54 = vadd.f32 %v12006_v37, %v7548_v28  ;;  %vm7517_vm10 = vcmp.ge.f32.partialorder %v7509_v40, 0.0  ;;  %v7529_v48 = vmul.f32 %v12004_v25, %v7509_v40  ;;  %v8406_v25 = vld [vmem:[#allocation8 + $0x58] sm:$0xff]  ;;  %v12052_v34 = vld [vmem:[%s19095_s20 + $0x3] ss:$0 sm:$0xff] }
 0x89b   : > { %v7559_v49 = vadd.f32 %v12006_v37, %v7547_v47  ;;  %v7538_v33 = vsel %vm7518_vm9, %v7510_v20, %v7530_v50  ;;  %15676 = vmatprep.subr.bf16.mxu0 %v18359_v41  ;;  %v16668_v20 = vmov 0.0   ;;  %v12053_v50 = vld [vmem:[%s19095_s20 + $0x1] ss:$0 sm:$0xff] }
 0x89c   : > { %v7550_v11 = vmul.f32 %v12005_v55, %v7538_v33  ;;  %v7537_v6 = vsel %vm7517_vm10, %v7509_v40, %v7529_v48  ;;  %15678 = vmatpush3.bf16.msra.mxu0 %v18359_v41 }
 0x89d   : > { %v18363_v1 = vpack.c.bf16 %v7560_v54, %v7559_v49  ;;  %v7549_v5 = vmul.f32 %v12005_v55, %v7537_v6  ;;  %v8744_v55 = vld [vmem:[#allocation8 + $0x78] sm:$0xff] }
 0x89e   : > { %v7562_v44 = vadd.f32 %v12006_v37, %v7550_v11  ;;  %v12054_v49 = vld [vmem:[%s19095_s20 + $0x2] ss:$0 sm:$0xff] }
 0x89f   : > { %v7561_v30 = vadd.f32 %v12006_v37, %v7549_v5  ;;  %15680 = vmatprep.subr.bf16.mxu0 %v18363_v1 }
 0x8a0   : > { %15682 = vmatpush3.bf16.msra.mxu0 %v18363_v1 }
 0x8a1   : > { %v18367_v45 = vpack.c.bf16 %v7562_v44, %v7561_v30 }
 0x8a3   : > { %15684 = vmatprep.subr.bf16.mxu0 %v18367_v45 }
 0x8a4   : > { %15686 = vmatpush3.bf16.msra.mxu0 %v18367_v45 }
 0x8a5   : > { %15688 = vmatprep.subr.bf16.mxu0 %v18355_v19 }
 0x8a7   : > { %14369 = vmatmul.mubr.msk.f32.vlgmr.msra.gmra.mrb[88].mxu0 %vm7565_vm2, %v7564_v22  ;;  %v9190_v22 = vld [vmem:[#allocation9 + $0x4] sm:$0xf] }
 0x8a8   : > { %15690 = vmatpush3.bf16.msra.mxu0 %v18355_v19  ;;  %14387 = vmatprep.mubr.msk.f32.mxu0 %vm7565_vm2, %v7649_v61  ;;  %v12057_v61 = vld [vmem:[%s19096_s9 + $0x10] sm:$0xff] }
 0x8a9   : > { %15692 = vmatprep.subr.bf16.mxu0 %v18359_v41 }
 0x8ac   : > { %15694 = vmatpush3.bf16.msra.mxu0 %v18359_v41 }
 0x8ad   : > { %15696 = vmatprep.subr.bf16.mxu0 %v18363_v1 }
 0x8b0   : > { %15698 = vmatpush3.bf16.msra.mxu0 %v18363_v1 }
 0x8b1   : > { %15700 = vmatprep.subr.bf16.mxu0 %v18367_v45 }
 0x8b4   : > { %15702 = vmatpush3.bf16.msra.mxu0 %v18367_v45 }
 0x8b5   : > { %15704 = vmatprep.subr.bf16.mxu0 %v18355_v19 }
 0x8b7   : > { %14388 = vmatmul.mubr.msk.f32.vlgmr.msra.gmra.mrb[90].mxu0 %vm7565_vm2, %v7650_v53  ;;  %v12058_v53 = vld [vmem:[%s19096_s9 + $0x18] sm:$0xff] }
 0x8b8   : > { %15706 = vmatpush3.bf16.msra.mxu0 %v18355_v19  ;;  %14416 = vmatprep.mubr.msk.f32.mxu0 %vm7565_vm2, %v7898_v10  ;;  %v15822_v10 = vpack.c.bf16 %v12058_v53, %v12057_v61 }
 0x8b9   : > { %15708 = vmatprep.subr.bf16.mxu0 %v18359_v41 }
 0x8bc   : > { %15710 = vmatpush3.bf16.msra.mxu0 %v18359_v41 }
 0x8bd   : > { %15712 = vmatprep.subr.bf16.mxu0 %v18363_v1 }
 0x8c0   : > { %15714 = vmatpush3.bf16.msra.mxu0 %v18363_v1 }
 0x8c1   : > { %15716 = vmatprep.subr.bf16.mxu0 %v18367_v45 }
 0x8c4   : > { %15718 = vmatpush3.bf16.msra.mxu0 %v18367_v45 }
 0x8c5   : > { %15720 = vmatprep.subr.bf16.mxu0 %v18355_v19 }
 0x8c7   : > { %14417 = vmatmul.mubr.msk.f32.vlgmr.msra.gmra.mrb[92].mxu0 %vm7565_vm2, %v7899_v29  ;;  %v9187_v29 = vld [vmem:[%s19096_s9] sm:$0xff] }
 0x8c8   : > { %15722 = vmatpush3.bf16.msra.mxu0 %v18355_v19  ;;  %14440 = vmatprep.mubr.msk.f32.mxu0 %vm7565_vm2, %v8067_v13  ;;  %v9188_v13 = vld [vmem:[%s19096_s9 + $0x8] sm:$0xff] }
 0x8c9   : > { %15724 = vmatprep.subr.bf16.mxu0 %v18359_v41 }
 0x8cc   : > { %15726 = vmatpush3.bf16.msra.mxu0 %v18359_v41 }
 0x8cd   : > { %15728 = vmatprep.subr.bf16.mxu0 %v18363_v1 }
 0x8d0   : > { %15730 = vmatpush3.bf16.msra.mxu0 %v18363_v1 }
 0x8d1   : > { %15732 = vmatprep.subr.bf16.mxu0 %v18367_v45 }
 0x8d4   : > { %15734 = vmatpush3.bf16.msra.mxu0 %v18367_v45 }
 0x8d5   : > { %15736 = vmatprep.subr.bf16.mxu0 %v18355_v19 }
 0x8d7   : > { %14441 = vmatmul.mubr.msk.f32.vlgmr.msra.gmra.mrb[94].mxu0 %vm7565_vm2, %v8068_v18 }
 0x8d8   : > { %15738 = vmatpush3.bf16.msra.mxu0 %v18355_v19  ;;  %14464 = vmatprep.mubr.msk.f32.mxu0 %vm7565_vm2, %v8236_v60 }
 0x8d9   : > { %15740 = vmatprep.subr.bf16.mxu0 %v18359_v41 }
 0x8dc   : > { %15742 = vmatpush3.bf16.msra.mxu0 %v18359_v41 }
 0x8dd   : > { %15744 = vmatprep.subr.bf16.mxu0 %v18363_v1 }
 0x8e0   : > { %15746 = vmatpush3.bf16.msra.mxu0 %v18363_v1 }
 0x8e1   : > { %15748 = vmatprep.subr.bf16.mxu0 %v18367_v45 }
 0x8e4   : > { %15750 = vmatpush3.bf16.msra.mxu0 %v18367_v45 }
 0x8e5   : > { %15752 = vmatprep.subr.bf16.mxu0 %v18355_v19 }
 0x8e7   : > { %14465 = vmatmul.mubr.msk.f32.vlgmr.msra.gmra.mrb[96].mxu0 %vm7565_vm2, %v8237_v17  ;;  %v15825_v17 = vpack.c.bf16 %v9188_v13, %v9187_v29 }
 0x8e8   : > { %15754 = vmatpush3.bf16.msra.mxu0 %v18355_v19  ;;  %14488 = vmatprep.mubr.msk.f32.mxu0 %vm7565_vm2, %v8405_v26 }
 0x8e9   : > { %15756 = vmatprep.subr.bf16.mxu0 %v18359_v41 }
 0x8ec   : > { %15758 = vmatpush3.bf16.msra.mxu0 %v18359_v41 }
 0x8ed   : > { %15760 = vmatprep.subr.bf16.mxu0 %v18363_v1 }
 0x8f0   : > { %15762 = vmatpush3.bf16.msra.mxu0 %v18363_v1 }
 0x8f1   : > { %15764 = vmatprep.subr.bf16.mxu0 %v18367_v45 }
 0x8f4   : > { %15766 = vmatpush3.bf16.msra.mxu0 %v18367_v45 }
 0x8f5   : > { %15784 = vmatprep.subr.bf16.mxu0 %v18355_v19 }
 0x8f7   : > { %14489 = vmatmul.mubr.msk.f32.vlgmr.msra.gmra.mrb[98].mxu0 %vm7565_vm2, %v8406_v25 }
 0x8f8   : > { %15786 = vmatpush3.bf16.msra.mxu0 %v18355_v19  ;;  %14536 = vmatprep.mubr.msk.f32.mxu0 %vm7565_vm2, %v8743_v2  ;;  %v9718_v2 = vld [vmem:[#allocation9 + $0x10] sm:$0xf] }
 0x8f9   : > { %15788 = vmatprep.subr.bf16.mxu0 %v18359_v41 }
 0x8fc   : > { %15790 = vmatpush3.bf16.msra.mxu0 %v18359_v41 }
 0x8fd   : > { %15792 = vmatprep.subr.bf16.mxu0 %v18363_v1 }
 0x900   : > { %15794 = vmatpush3.bf16.msra.mxu0 %v18363_v1 }
 0x901   : > { %15796 = vmatprep.subr.bf16.mxu0 %v18367_v45 }
 0x904   : > { %15798 = vmatpush3.bf16.msra.mxu0 %v18367_v45 }
 0x905   : > { %15815 = vmatprep.subr.bf16.mxu0 %v16666_v14 }
 0x907   : > { %14537 = vmatmul.mubr.msk.f32.vlgmr.msra.gmra.mrb[100].mxu0 %vm7565_vm2, %v8744_v55  ;;  %v9870_v55 = vld [vmem:[#allocation9 + $0x14] sm:$0xf] }
 0x908   : > { %14572 = vmatprep.mubr.msk.f32.mxu0 %vm16667_vm12, %v16668_v20 }
 0x97a   : > { %v14370_v43 = vpop.f32.mrb[88].mxu0 }
 0x97b   : > { %v7638_v38 = vpop.f32.mrb[89].mxu0 }
 0x98a   : > { %v14389_v0 = vpop.f32.mrb[90].mxu0 }
 0x98b   : > { %v7723_v37 = vpop.f32.mrb[91].mxu0 }
 0x98c   : > { %14392 = vmatprep.mubr.msk.f32.mxu1 %vm7734_vm11, %v7723_v37  ;;  %v12062_v37 = vld [vmem:[%s19096_s9 + $0x20] sm:$0xff] }
 0x98d   : > { %14393 = vmatmul.mubr.msk.f32.vlgmr.msra.gmra.mrb[64].mxu1 %vm7734_vm11, %v14389_v0  ;;  %v10326_v0 = vld [vmem:[#allocation9 + $0x20] sm:$0xf] }
 0x98e   : > { %14397 = vmatprep.mubr.msk.f32.mxu1 %vm7734_vm11, %v7638_v38  ;;  %14396 = vmatpush3.msra.mxu1 %v7647_v59  ;;  %v9566_v59 = vld [vmem:[#allocation9 + $0xc] sm:$0xf]  ;;  %v10174_v38 = vld [vmem:[#allocation9 + $0x1c] sm:$0xf] }
 0x98f   : > { %14419 = vmatprep.subr.mxu1 %v12018_v56 }
 0x995   : > { %14398 = vmatmul.mubr.msk.f32.vlgmr.msra.gmra.mrb[64].mxu1 %vm7734_vm11, %v14370_v43  ;;  %v10022_v43 = vld [vmem:[#allocation9 + $0x18] sm:$0xf] }
 0x996   : > { %14420 = vmatpush3.msra.mxu1 %v12018_v56  ;;  %v12063_v56 = vld [vmem:[%s19096_s9 + $0x28] sm:$0xff] }
 0x997   : > { %14443 = vmatprep.subr.mxu1 %v12023_v32 }
 0x99a   : > { %v14418_v8 = vpop.f32.mrb[92].mxu0 }
 0x99b   : > { %v7972_v15 = vpop.f32.mrb[93].mxu0 }
 0x99c   : > { %14421 = vmatprep.mubr.msk.f32.mxu1 %vm7734_vm11, %v7972_v15 }
 0x99d   : > { %14422 = vmatmul.mubr.msk.f32.vlgmr.msra.gmra.mrb[64].mxu1 %vm7734_vm11, %v14418_v8 }
 0x99e   : > { %14444 = vmatpush3.msra.mxu1 %v12023_v32  ;;  %v15831_v32 = vpack.c.bf16 %v12063_v56, %v12062_v37  ;;  %v12090_v37 = vld [vmem:[%s19097_s10 + $0x3] ss:$0 sm:$0xff] }
 0x99f   : > { %14467 = vmatprep.subr.mxu1 %v12028_v27 }
 0x9aa   : > { %v14442_v35 = vpop.f32.mrb[94].mxu0 }
 0x9ab   : > { %v8141_v46 = vpop.f32.mrb[95].mxu0 }
 0x9ac   : > { %14445 = vmatprep.mubr.msk.f32.mxu1 %vm7734_vm11, %v8141_v46 }
 0x9ad   : > { %14446 = vmatmul.mubr.msk.f32.vlgmr.msra.gmra.mrb[64].mxu1 %vm7734_vm11, %v14442_v35  ;;  %v12067_v35 = vld [vmem:[%s19096_s9 + $0x38] sm:$0xff] }
 0x9ae   : > { %14468 = vmatpush3.msra.mxu1 %v12028_v27  ;;  %v12066_v27 = vld [vmem:[%s19096_s9 + $0x30] sm:$0xff] }
 0x9af   : > { %14491 = vmatprep.subr.mxu1 %v12033_v12 }
 0x9ba   : > { %v14466_v58 = vpop.f32.mrb[96].mxu0 }
 0x9bb   : > { %v8310_v57 = vpop.f32.mrb[97].mxu0 }
 0x9bc   : > { %14469 = vmatprep.mubr.msk.f32.mxu1 %vm7734_vm11, %v8310_v57  ;;  %v15837_v57 = vpack.c.bf16 %v12067_v35, %v12066_v27  ;;  %v12097_v35 = vld [vmem:[%s19098_s4 + $0x20] sm:$0xff] }
 0x9bd   : > { %14470 = vmatmul.mubr.msk.f32.vlgmr.msra.gmra.mrb[64].mxu1 %vm7734_vm11, %v14466_v58 }
 0x9be   : > { %14492 = vmatpush3.msra.mxu1 %v12033_v12 }
 0x9bf   : > { %15768 = vmatprep.subr.bf16.mxu1 %v18355_v19 }
 0x9ca   : > { %v14490_v31 = vpop.f32.mrb[98].mxu0 }
 0x9cb   : > { %v8479_v42 = vpop.f32.mrb[99].mxu0 }
 0x9cc   : > { %14493 = vmatprep.mubr.msk.f32.mxu1 %vm7734_vm11, %v8479_v42  ;;  %v12071_v42 = vld [vmem:[%s19096_s9 + $0x48] sm:$0xff] }
 0x9cd   : > { %14494 = vmatmul.mubr.msk.f32.vlgmr.msra.gmra.mrb[64].mxu1 %vm7734_vm11, %v14490_v31  ;;  %v12070_v31 = vld [vmem:[%s19096_s9 + $0x40] sm:$0xff] }
 0x9ce   : > { %15770 = vmatpush3.bf16.msra.mxu1 %v18355_v19  ;;  %14512 = vmatprep.mubr.msk.f32.mxu1 %vm7565_vm2, %v8574_v36 }
 0x9cf   : > { %15772 = vmatprep.subr.bf16.mxu1 %v18359_v41 }
 0x9d2   : > { %15774 = vmatpush3.bf16.msra.mxu1 %v18359_v41 }
 0x9d3   : > { %15776 = vmatprep.subr.bf16.mxu1 %v18363_v1 }
 0x9d6   : > { %15778 = vmatpush3.bf16.msra.mxu1 %v18363_v1 }
 0x9d7   : > { %15780 = vmatprep.subr.bf16.mxu1 %v18367_v45 }
 0x9da   : > { %15782 = vmatpush3.bf16.msra.mxu1 %v18367_v45  ;;  %v14538_v52 = vpop.f32.mrb[100].mxu0 }
 0x9db   : > { %14515 = vmatprep.subr.mxu1 %v12038_v39  ;;  %v8817_v62 = vpop.f32.mrb[101].mxu0 }
 0x9dd   : > { %14513 = vmatmul.mubr.msk.f32.vlgmr.msra.gmra.mrb[66].mxu1 %vm7565_vm2, %v8575_v16 }
 0x9de   : > { %14516 = vmatpush3.msra.mxu1 %v12038_v39  ;;  %v15843_v39 = vpack.c.bf16 %v12071_v42, %v12070_v31  ;;  %v10585_v42 = vld [vmem:[#allocation11 + $0x1] sm:$0x1] }
 0x9df   : > { %14539 = vmatprep.subr.mxu1 %v12043_v51 }
 0xab0   : > { %v14514_v7 = vpop.f32.mrb[66].mxu1 }
 0xab1   : > { %v8648_v63 = vpop.f32.mrb[67].mxu1 }
 0xab2   : > { %14517 = vmatprep.mubr.msk.f32.mxu1 %vm7734_vm11, %v8648_v63 }
 0xab3   : > { %14518 = vmatmul.mubr.msk.f32.vlgmr.msra.gmra.mrb[64].mxu1 %vm7734_vm11, %v14514_v7 }
 0xab4   : > { %14540 = vmatpush3.msra.mxu1 %v12043_v51  ;;  %14541 = vmatprep.mubr.msk.f32.mxu1 %vm7734_vm11, %v8817_v62  ;;  %v12074_v51 = vld [vmem:[%s19096_s9 + $0x50] sm:$0xff] }
 0xab5   : > { %15800 = vmatprep.subr.bf16.mxu1 %v18355_v19 }
 0xabb   : > { %14542 = vmatmul.mubr.msk.f32.vlgmr.msra.gmra.mrb[64].mxu1 %vm7734_vm11, %v14538_v52  ;;  %v12075_v52 = vld [vmem:[%s19096_s9 + $0x58] sm:$0xff] }
 0xabc   : > { %15802 = vmatpush3.bf16.msra.mxu1 %v18355_v19  ;;  %14560 = vmatprep.mubr.msk.f32.mxu1 %vm7565_vm2, %v8912_v24  ;;  %v12048_v19 = vld [vmem:[%s19094_s24 + $0x40] sm:$0xff]  ;;  %v15849_v63 = vpack.c.bf16 %v12075_v52, %v12074_v51  ;;  %v12099_v51 = vld [vmem:[%s19098_s4 + $0x30] sm:$0xff]  ;;  %v12100_v52 = vld [vmem:[%s19098_s4 + $0x38] sm:$0xff] }
 0xabd   : > { %15804 = vmatprep.subr.bf16.mxu1 %v18359_v41  ;;  %v12078_v24 = vld [vmem:[%s19096_s9 + $0x60] sm:$0xff] }
 0xac0   : > { %15806 = vmatpush3.bf16.msra.mxu1 %v18359_v41 }
 0xac1   : > { %15808 = vmatprep.subr.bf16.mxu1 %v18363_v1 }
 0xac4   : > { %15810 = vmatpush3.bf16.msra.mxu1 %v18363_v1 }
 0xac5   : > { %15812 = vmatprep.subr.bf16.mxu1 %v18367_v45 }
 0xac8   : > { %15814 = vmatpush3.bf16.msra.mxu1 %v18367_v45  ;;  %v9112_v45 = vld [vmem:[#allocation9] sm:$0xf] }
 0xac9   : > { %14563 = vmatprep.subr.mxu1 %v12048_v19 }
 0xacb   : > { %14561 = vmatmul.mubr.msk.f32.vlgmr.msra.gmra.mrb[68].mxu1 %vm7565_vm2, %v8913_v3  ;;  %v12079_v3 = vld [vmem:[%s19096_s9 + $0x68] sm:$0xff] }
 0xacc   : > { %14564 = vmatpush3.msra.mxu1 %v12048_v19 }
 0xacd   : > { %15830 = vmatprep.subr.bf16.mxu1 %v16666_v14 }
 0xb9e   : > { %v14562_v4 = vpop.f32.mrb[68].mxu1 }
 0xb9f   : > { %v8986_v9 = vpop.f32.mrb[69].mxu1 }
 0xba0   : > { %14565 = vmatprep.mubr.msk.f32.mxu1 %vm7734_vm11, %v8986_v9  ;;  %v15855_v9 = vpack.c.bf16 %v12079_v3, %v12078_v24  ;;  %v12105_v3 = vld [vmem:[%s19098_s4 + $0x40] sm:$0xff] }
 0xba1   : > { %14566 = vmatmul.mubr.msk.f32.vlgmr.msra.gmra.mrb[64].mxu1 %vm7734_vm11, %v14562_v4 }
 0xba2   : > { %14607 = vmatprep.mubr.msk.f32.mxu1 %vm16667_vm12, %v16668_v20  ;;  %15832 = vmatpush3.bf16.msra.mxu1 %v15831_v32  ;;  %v12091_v32 = vld [vmem:[%s19097_s10 + $0x1] ss:$0 sm:$0xff] }
 0xba3   : > { %15836 = vmatprep.subr.bf16.mxu1 %v16666_v14 }
 0xc74   : > { %v14567_v28 = vpop.f32.mrb[64].mxu1 }
 0xc75   : > { %v9089_v40 = vadd.f32 %v14567_v28, %v12051_v21  ;;  %v9069_v41 = vpop.f32.mrb[65].mxu1  ;;  %v12083_v28 = vld [vmem:[%s19096_s9 + $0x78] sm:$0xff] }
 0xc76   : > { %v9088_v47 = vadd.f32 %v12051_v21, %v9069_v41  ;;  %v12082_v21 = vld [vmem:[%s19096_s9 + $0x70] sm:$0xff] }
 0xc77   : > { %vm9091_vm13 = vcmp.ge.f32.partialorder %v9089_v40, 0.0  ;;  %v9097_v54 = vmul.f32 %v12052_v34, %v9089_v40  ;;  %v15861_v41 = vpack.c.bf16 %v12083_v28, %v12082_v21 }
 0xc78   : > { %vm9090_vm14 = vcmp.ge.f32.partialorder %v9088_v47, 0.0  ;;  %v9096_v48 = vmul.f32 %v12052_v34, %v9088_v47 }
 0xc79   : > { %v9099_v33 = vsel %vm9091_vm13, %v9089_v40, %v9097_v54 }
 0xc7a   : > { %v9105_v11 = vmul.f32 %v12053_v50, %v9099_v33  ;;  %v9098_v6 = vsel %vm9090_vm14, %v9088_v47, %v9096_v48  ;;  %v12086_v47 = vld [vmem:[%s19096_s9 + $0x80] sm:$0xff] }
 0xc7b   : > { %v9104_v1 = vmul.f32 %v12053_v50, %v9098_v6  ;;  %v12087_v50 = vld [vmem:[%s19096_s9 + $0x88] sm:$0xff]  ;;  %s11568_s9 = scalar_lea.sflag [#allocation5], %s17080_s29 }
 0xc7c   : > { %v9111_v5 = vadd.f32 %v12054_v49, %v9105_v11 }
 0xc7d   : > { %v9110_v44 = vadd.f32 %v12054_v49, %v9104_v1  ;;  %v15867_v49 = vpack.c.bf16 %v12087_v50, %v12086_v47  ;;  %v12107_v47 = vld [vmem:[%s19098_s4 + $0x50] sm:$0xff]  ;;  %v12108_v50 = vld [vmem:[%s19098_s4 + $0x58] sm:$0xff] }
 0xc7f   : > { %v15816_v30 = vpack.c.bf16 %v9111_v5, %v9110_v44 }
 0xc81   : > { %15817 = vmatpush3.bf16.msra.mxu0 %v15816_v30 }
 0xc82   : > { %15818 = vmatprep.subr.bf16.mxu0 %v16666_v14 }
 0xc84   : > { %14573 = vmatmul.mubr.msk.f32.vlgmr.msra.gmra.mrb[102].mxu0 %vm9113_vm15, %v9112_v45 }
 0xc85   : > { %15820 = vmatpush3.bf16.msra.mxu0 %v15816_v30  ;;  %14579 = vmatprep.mubr.msk.f32.mxu0 %vm16667_vm12, %v16668_v20 }
 0xc86   : > { %15821 = vmatprep.subr.bf16.mxu0 %v16666_v14 }
 0xc88   : > { %14580 = vmatmul.mubr.msk.f32.vlgmr.msra.gmra.mrb[104].mxu0 %vm9113_vm15, %v9190_v22 }
 0xc89   : > { %14586 = vmatprep.mubr.msk.f32.mxu0 %vm16667_vm12, %v16668_v20  ;;  %15823 = vmatpush3.bf16.msra.mxu0 %v15822_v10 }
 0xc8a   : > { %15824 = vmatprep.subr.bf16.mxu0 %v16666_v14 }
 0xd57   : > { %v9183_v18 = vpop.f32.mrb[102].mxu0 }
 0xd58   : > { %v14574_v60 = vpop.f32.mrb[103].mxu0 }
 0xd5b   : > { %v9260_v26 = vpop.f32.mrb[104].mxu0 }
 0xd5c   : > { %v14581_v25 = vpop.f32.mrb[105].mxu0  ;;  %14587 = vmatmul.mubr.msk.f32.vlgmr.msra.gmra.mrb[106].mxu0 %vm9113_vm15, %v9260_v26 }
 0xd5d   : > { %15826 = vmatpush3.bf16.msra.mxu0 %v15825_v17  ;;  %14593 = vmatprep.mubr.msk.f32.mxu0 %vm16667_vm12, %v16668_v20 }
 0xd5e   : > { %15827 = vmatprep.subr.bf16.mxu0 %v16666_v14 }
 0xd60   : > { %14594 = vmatmul.mubr.msk.f32.vlgmr.msra.gmra.mrb[108].mxu0 %vm9113_vm15, %v9183_v18 }
 0xd61   : > { %15829 = vmatpush3.bf16.msra.mxu0 %v15816_v30  ;;  %14600 = vmatprep.mubr.msk.f32.mxu0 %vm16667_vm12, %v16668_v20 }
 0xd62   : > { %15833 = vmatprep.subr.bf16.mxu0 %v16666_v14 }
 0xd64   : > { %14601 = vmatmul.mubr.msk.f32.vlgmr.msra.gmra.mrb[110].mxu0 %vm9113_vm15, %v9414_v23 }
 0xd65   : > { %15835 = vmatpush3.bf16.msra.mxu0 %v15816_v30  ;;  %14614 = vmatprep.mubr.msk.f32.mxu0 %vm16667_vm12, %v16668_v20 }
 0xd66   : > { %15839 = vmatprep.subr.bf16.mxu0 %v16666_v14 }
 0xd68   : > { %14615 = vmatmul.mubr.msk.f32.vlgmr.msra.gmra.mrb[112].mxu0 %vm9113_vm15, %v9566_v59 }
 0xd69   : > { %15841 = vmatpush3.bf16.msra.mxu0 %v15816_v30  ;;  %14628 = vmatprep.mubr.msk.f32.mxu0 %vm16667_vm12, %v16668_v20 }
 0xd6a   : > { %15845 = vmatprep.subr.bf16.mxu0 %v16666_v14 }
 0xd6c   : > { %14629 = vmatmul.mubr.msk.f32.vlgmr.msra.gmra.mrb[114].mxu0 %vm9113_vm15, %v9718_v2 }
 0xd6d   : > { %15847 = vmatpush3.bf16.msra.mxu0 %v15816_v30  ;;  %14642 = vmatprep.mubr.msk.f32.mxu0 %vm16667_vm12, %v16668_v20 }
 0xd6e   : > { %15851 = vmatprep.subr.bf16.mxu0 %v16666_v14 }
 0xd70   : > { %14643 = vmatmul.mubr.msk.f32.vlgmr.msra.gmra.mrb[116].mxu0 %vm9113_vm15, %v9870_v55 }
 0xd71   : > { %15853 = vmatpush3.bf16.msra.mxu0 %v15816_v30  ;;  %14656 = vmatprep.mubr.msk.f32.mxu0 %vm16667_vm12, %v16668_v20 }
 0xd72   : > { %15857 = vmatprep.subr.bf16.mxu0 %v16666_v14 }
 0xd74   : > { %14657 = vmatmul.mubr.msk.f32.vlgmr.msra.gmra.mrb[118].mxu0 %vm9113_vm15, %v10022_v43  ;;  %v12089_v43 = vld [vmem:[%s19097_s10] ss:$0 sm:$0xff] }
 0xd75   : > { %15859 = vmatpush3.bf16.msra.mxu0 %v15816_v30  ;;  %14670 = vmatprep.mubr.msk.f32.mxu0 %vm16667_vm12, %v16668_v20 }
 0xd76   : > { %15863 = vmatprep.subr.bf16.mxu0 %v16666_v14 }
 0xd78   : > { %14671 = vmatmul.mubr.msk.f32.vlgmr.msra.gmra.mrb[120].mxu0 %vm9113_vm15, %v10174_v38 }
 0xd79   : > { %15865 = vmatpush3.bf16.msra.mxu0 %v15816_v30  ;;  %14684 = vmatprep.mubr.msk.f32.mxu0 %vm16667_vm12, %v16668_v20 }
 0xd7a   : > { %14694 = vmatprep.subr.mxu0 %v16668_v20 }
 0xd7c   : > { %14685 = vmatmul.mubr.msk.f32.vlgmr.msra.gmra.mrb[122].mxu0 %vm9113_vm15, %v10326_v0 }
 0xd7d   : > { %14696 = vmatprep.mubr.msk.f32.mxu0 %vm16667_vm12, %v16668_v20 }
 0xe2f   : > { %v9336_v8 = vpop.f32.mrb[106].mxu0 }
 0xe30   : > { %v14588_v15 = vpop.f32.mrb[107].mxu0 }
 0xe31   : > { %v12092_v15 = vld [vmem:[%s19097_s10 + $0x2] ss:$0 sm:$0xff]  ;;  %s19106_s10 = sld [smem:[#allocation46_spill]] }
 0xe33   : > { %v9409_v46 = vpop.f32.mrb[108].mxu0 }
 0xe34   : > { %v9410_v12 = vadd.f32 %v9409_v46, %v9336_v8  ;;  %v14595_v58 = vpop.f32.mrb[109].mxu0 }
 0xe35   : > { %v10580_v58 = vld [vmem:[%s19098_s4] sm:$0xff] }
 0xe37   : > { %v9484_v36 = vpop.f32.mrb[110].mxu0  ;;  %s18948_s11 = scalar_lea.hbm %s19106_s10, %s12120_s16 }
 0xe38   : > { %v14602_v16 = vpop.f32.mrb[111].mxu0  ;;  %14608 = vmatmul.mubr.msk.f32.vlgmr.msra.gmra.mrb[70].mxu1 %vm9113_vm15, %v9484_v36  ;;  %v10503_v36 = vld [vmem:[#allocation11] sm:$0x1] }
 0xe39   : > { %15838 = vmatpush3.bf16.msra.mxu1 %v15837_v57  ;;  %14621 = vmatprep.mubr.msk.f32.mxu1 %vm16667_vm12, %v16668_v20  ;;  %v10581_v57 = vld [vmem:[%s19098_s4 + $0x8] sm:$0xff] }
 0xe3a   : > { %15842 = vmatprep.subr.bf16.mxu1 %v16666_v14 }
 0xe3b   : > { %v9636_v62 = vpop.f32.mrb[112].mxu0 }
 0xe3c   : > { %v14616_v7 = vpop.f32.mrb[113].mxu0  ;;  %14622 = vmatmul.mubr.msk.f32.vlgmr.msra.gmra.mrb[72].mxu1 %vm9113_vm15, %v9636_v62  ;;  %v15873_v62 = vpack.c.bf16 %v12100_v52, %v12099_v51  ;;  %v11241_v51 = vld [vmem:[%s19100_s5 + $0x50] sm:$0xff]  ;;  %v11242_v52 = vld [vmem:[%s19100_s5 + $0x58] sm:$0xff] }
 0xe3d   : > { %15844 = vmatpush3.bf16.msra.mxu1 %v15843_v39  ;;  %14635 = vmatprep.mubr.msk.f32.mxu1 %vm16667_vm12, %v16668_v20  ;;  %v15876_v39 = vpack.c.bf16 %v10581_v57, %v10580_v58  ;;  %v10582_v7 = vld [vmem:[%s19098_s4 + $0x10] sm:$0xff] }
 0xe3e   : > { %15848 = vmatprep.subr.bf16.mxu1 %v16666_v14  ;;  %v11237_v57 = vld [vmem:[%s19100_s5 + $0x30] sm:$0xff] }
 0xe3f   : > { %v9788_v19 = vpop.f32.mrb[114].mxu0 }
 0xe40   : > { %v14630_v4 = vpop.f32.mrb[115].mxu0  ;;  %14636 = vmatmul.mubr.msk.f32.vlgmr.msra.gmra.mrb[74].mxu1 %vm9113_vm15, %v9788_v19  ;;  %v12106_v19 = vld [vmem:[%s19098_s4 + $0x48] sm:$0xff] }
 0xe41   : > { %15850 = vmatpush3.bf16.msra.mxu1 %v15849_v63  ;;  %14649 = vmatprep.mubr.msk.f32.mxu1 %vm16667_vm12, %v16668_v20  ;;  %v10583_v63 = vld [vmem:[%s19098_s4 + $0x18] sm:$0xff]  ;;  %v15882_v4 = vpack.c.bf16 %v12106_v19, %v12105_v3 }
 0xe42   : > { %15854 = vmatprep.subr.bf16.mxu1 %v16666_v14  ;;  %v15879_v24 = vpack.c.bf16 %v10583_v63, %v10582_v7  ;;  %v11135_v63 = vlaneseq }
 0xe43   : > { %v9940_v34 = vpop.f32.mrb[116].mxu0 }
 0xe44   : > { %v14644_v40 = vpop.f32.mrb[117].mxu0  ;;  %14650 = vmatmul.mubr.msk.f32.vlgmr.msra.gmra.mrb[76].mxu1 %vm9113_vm15, %v9940_v34 }
 0xe45   : > { %15856 = vmatpush3.bf16.msra.mxu1 %v15855_v9  ;;  %14663 = vmatprep.mubr.msk.f32.mxu1 %vm16667_vm12, %v16668_v20  ;;  %v10812_v40 = vld [vmem:[#allocation11 + $0x2] sm:$0x1] }
 0xe46   : > { %15860 = vmatprep.subr.bf16.mxu1 %v16666_v14 }
 0xe47   : > { %v10092_v54 = vpop.f32.mrb[118].mxu0 }
 0xe48   : > { %v14658_v48 = vpop.f32.mrb[119].mxu0  ;;  %14664 = vmatmul.mubr.msk.f32.vlgmr.msra.gmra.mrb[78].mxu1 %vm9113_vm15, %v10092_v54  ;;  %v12112_v54 = vld [vmem:[%s19098_s4 + $0x60] sm:$0xff] }
 0xe49   : > { %15862 = vmatpush3.bf16.msra.mxu1 %v15861_v41  ;;  %14677 = vmatprep.mubr.msk.f32.mxu1 %vm16667_vm12, %v16668_v20  ;;  %v10966_v41 = vld [vmem:[#allocation11 + $0x3] sm:$0x1]  ;;  %v15885_v48 = vpack.c.bf16 %v12108_v50, %v12107_v47 }
 0xe4a   : > { %15866 = vmatprep.subr.bf16.mxu1 %v16666_v14 }
 0xe4b   : > { %v10244_v33 = vpop.f32.mrb[120].mxu0 }
 0xe4c   : > { %v14672_v11 = vpop.f32.mrb[121].mxu0  ;;  %14678 = vmatmul.mubr.msk.f32.vlgmr.msra.gmra.mrb[80].mxu1 %vm9113_vm15, %v10244_v33 }
 0xe4d   : > { %15868 = vmatpush3.bf16.msra.mxu1 %v15867_v49  ;;  %14691 = vmatprep.mubr.msk.f32.mxu1 %vm16667_vm12, %v16668_v20  ;;  %v12113_v49 = vld [vmem:[%s19098_s4 + $0x68] sm:$0xff]  ;;  %v12114_v11 = vld [vmem:[%s19098_s4 + $0x70] sm:$0xff] }
 0xe4e   : > { %14699 = vmatprep.subr.mxu1 %v16668_v20  ;;  %v15888_v33 = vpack.c.bf16 %v12113_v49, %v12112_v54  ;;  %v11120_v54 = vld [vmem:[%s19101_s8 + $0x1] sm:$0x1]  ;;  %v11121_v49 = vld [vmem:[%s19101_s8 + $0x2] sm:$0x1] }
 0xe4f   : > { %v10396_v6 = vpop.f32.mrb[122].mxu0 }
 0xe50   : > { %v14686_v1 = vpop.f32.mrb[123].mxu0  ;;  %14692 = vmatmul.mubr.msk.f32.vlgmr.msra.gmra.mrb[82].mxu1 %vm9113_vm15, %v10396_v6  ;;  %v12115_v6 = vld [vmem:[%s19098_s4 + $0x78] sm:$0xff] }
 0xe51   : > { %14701 = vmatprep.mubr.msk.f32.mxu1 %vm16667_vm12, %v16668_v20  ;;  %v15891_v1 = vpack.c.bf16 %v12115_v6, %v12114_v11 }
 0xf0b   : > { %v9560_v5 = vpop.f32.mrb[70].mxu1 }
 0xf0c   : > { %v9564_v44 = vadd.f32 %v9560_v5, %v9410_v12  ;;  %v14609_v30 = vpop.f32.mrb[71].mxu1  ;;  %v12098_v12 = vld [vmem:[%s19098_s4 + $0x28] sm:$0xff]  ;;  %v11129_v5 = vld [vmem:[#allocation2] sm:$0x1] }
 0xf0d   : > { %v15870_v16 = vpack.c.bf16 %v12098_v12, %v12097_v35  ;;  %v11236_v12 = vld [vmem:[%s19100_s5 + $0x28] sm:$0xff] }
 0xf0f   : > { %v9712_v45 = vpop.f32.mrb[72].mxu1 }
 0xf10   : > { %v9716_v22 = vadd.f32 %v9712_v45, %v9564_v44  ;;  %v14623_v61 = vpop.f32.mrb[73].mxu1  ;;  %v16669_v44 = vmov 0  }
 0xf11   : > { %16311 = vset.pattern.permute.xlu0 %v16669_v44  ;;  %v11319_v44 = vld [vmem:[%s19102_s7] sm:$0x1]  ;;  %s11580_s7 = sshll.u32 %s873_s14, 4  ;;  %s18950_s7 = int_to_ptr.vmem [resolvable:$true] %s11580_s7 }
 0xf12   : > { %11132 = vperm.xlu0 %16311, %v11129_v5   ;;  %v11320_v5 = vld [vmem:[#allocation14] sm:$0xff] }
 0xf13   : > { %v9864_v53 = vpop.f32.mrb[74].mxu1 }
 0xf14   : > { %v9868_v10 = vadd.f32 %v9864_v53, %v9716_v22  ;;  %v14637_v29 = vpop.f32.mrb[75].mxu1 }
 0xf17   : > { %v10016_v13 = vpop.f32.mrb[76].mxu1 }
 0xf18   : > { %v10020_v18 = vadd.f32 %v10016_v13, %v9868_v10  ;;  %v14651_v60 = vpop.f32.mrb[77].mxu1 }
 0xf19   : > { %v11140_v60 = vld [vmem:[%s19099_s30] sm:$0xff] }
 0xf1b   : > { %v10168_v17 = vpop.f32.mrb[78].mxu1 }
 0xf1c   : > { %v10172_v26 = vadd.f32 %v10168_v17, %v10020_v18  ;;  %v14665_v25 = vpop.f32.mrb[79].mxu1  ;;  %v11141_v17 = vld [vmem:[%s19099_s30 + $0x8] sm:$0xff] }
 0xf1d   : > { %v11142_v25 = vld [vmem:[%s19099_s30 + $0x10] sm:$0xff] }
 0xf1f   : > { %v10320_v23 = vpop.f32.mrb[80].mxu1 }
 0xf20   : > { %v10324_v59 = vadd.f32 %v10320_v23, %v10172_v26  ;;  %v14679_v2 = vpop.f32.mrb[81].mxu1  ;;  %v15894_v26 = vpack.c.bf16 %v11141_v17, %v11140_v60  ;;  %v11143_v23 = vld [vmem:[%s19099_s30 + $0x18] sm:$0xff] }
 0xf21   : > { %v11144_v2 = vld [vmem:[%s19099_s30 + $0x20] sm:$0xff] }
 0xf23   : > { %v10472_v55 = vpop.f32.mrb[82].mxu1 }
 0xf24   : > { %v10476_v38 = vadd.f32 %v10472_v55, %v10324_v59  ;;  %v14693_v0 = vpop.f32.mrb[83].mxu1  ;;  %v15897_v59 = vpack.c.bf16 %v11143_v23, %v11142_v25  ;;  %v11145_v55 = vld [vmem:[%s19099_s30 + $0x28] sm:$0xff] }
 0xf25   : > { %v11147_v0 = vld [vmem:[%s19099_s30 + $0x38] sm:$0xff] }
 0xf26   : > { %v10485_v56 = vadd.f32 %v12089_v43, %v10476_v38  ;;  %v15900_v43 = vpack.c.bf16 %v11145_v55, %v11144_v2  ;;  %v11146_v38 = vld [vmem:[%s19099_s30 + $0x30] sm:$0xff] }
 0xf28   : > { %vm10486_vm3 = vcmp.ge.f32.partialorder %v10485_v56, 0.0  ;;  %v10491_v8 = vmul.f32 %v12090_v37, %v10485_v56  ;;  %v15903_v37 = vpack.c.bf16 %v11147_v0, %v11146_v38  ;;  %v11148_v38 = vld [vmem:[%s19104_s3] sm:$0x1]  ;;  %v11151_v0 = vld [vmem:[%s19104_s3 + $0x3] sm:$0x1] }
 0xf2a   : > { %v10492_v27 = vsel %vm10486_vm3, %v10485_v56, %v10491_v8  ;;  %v11231_v56 = vld [vmem:[%s19100_s5] sm:$0xff] }
 0xf2b   : > { %v10497_v46 = vmul.f32 %v12091_v32, %v10492_v27  ;;  %v11232_v32 = vld [vmem:[%s19100_s5 + $0x8] sm:$0xff]  ;;  %v11234_v27 = vld [vmem:[%s19100_s5 + $0x18] sm:$0xff] }
 0xf2c   : > { %v15906_v8 = vpack.c.bf16 %v11232_v32, %v11231_v56 }
 0xf2d   : > { %v10502_v31 = vadd.f32 %v12092_v15, %v10497_v46  ;;  %v11233_v15 = vld [vmem:[%s19100_s5 + $0x10] sm:$0xff]  ;;  %v11235_v46 = vld [vmem:[%s19100_s5 + $0x20] sm:$0xff] }
 0xf2e   : > { %v15909_v35 = vpack.c.bf16 %v11234_v27, %v11233_v15  ;;  %v15912_v58 = vpack.c.bf16 %v11236_v12, %v11235_v46  ;;  %v11149_v15 = vld [vmem:[%s19104_s3 + $0x1] sm:$0x1]  ;;  %v11397_v46 = vld [vmem:[%s19105_s18 + $0x8] sm:$0xff] }
 0xf2f   : > { %14695 = vmatpush3.msk.msra.mxu0 %vm1182_vm0, %v10502_v31  ;;  %14700 = vmatpush3.msk.msra.mxu1 %vm1182_vm0, %v10502_v31 }
 0xf30   : > { %14702 = vmatmul.mubr.msk.f32.vlgmr.msra.gmra.mrb[84].mxu1 %vm1157_vm1, %v10585_v42  ;;  %14697 = vmatmul.mubr.msk.f32.vlgmr.msra.gmra.mrb[124].mxu0 %vm1157_vm1, %v10503_v36  ;;  %v11239_v36 = vld [vmem:[%s19100_s5 + $0x40] sm:$0xff] }
 0xf31   : > { %15869 = vmatprep.subr.bf16.mxu0 %v16666_v14  ;;  %15875 = vmatprep.subr.bf16.mxu1 %v16666_v14 }
 0xf32   : > { %15871 = vmatpush3.bf16.msra.mxu0 %v15870_v16  ;;  %15877 = vmatpush3.bf16.msra.mxu1 %v15876_v39  ;;  %v11240_v16 = vld [vmem:[%s19100_s5 + $0x48] sm:$0xff] }
 0xf33   : > { %15872 = vmatprep.subr.bf16.mxu0 %v16666_v14  ;;  %14712 = vmatprep.mubr.msk.f32.mxu0 %vm16667_vm12, %v16668_v20  ;;  %v15918_v39 = vpack.c.bf16 %v11240_v16, %v11239_v36 }
 0xf34   : > { %15878 = vmatprep.subr.bf16.mxu1 %v16666_v14  ;;  %14723 = vmatprep.mubr.msk.f32.mxu1 %vm16667_vm12, %v16668_v20 }
 0xf36   : > { %15874 = vmatpush3.bf16.msra.mxu0 %v15873_v62  ;;  %15880 = vmatpush3.bf16.msra.mxu1 %v15879_v24  ;;  %v15921_v62 = vpack.c.bf16 %v11242_v52, %v11241_v51  ;;  %v11398_v51 = vld [vmem:[%s19105_s18 + $0x10] sm:$0xff]  ;;  %v11399_v52 = vld [vmem:[%s19105_s18 + $0x18] sm:$0xff] }
 0xf37   : > { %14726 = vmatprep.subr.mxu0 %v16668_v20  ;;  %15881 = vmatprep.subr.bf16.mxu1 %v16666_v14 }
 0xf91   : > { %v11133_v50 = vpop.permute.xlu0 %11132 }
0x1003   : > { %v10655_v9 = vpop.f32.mrb[84].mxu1  ;;  %v10576_v21 = vpop.f32.mrb[124].mxu0 }
0x1004   : > { %14713 = vmatmul.mubr.msk.f32.vlgmr.msra.gmra.mrb[126].mxu0 %vm10664_vm4, %v10655_v9  ;;  %v14703_v28 = vpop.f32.mrb[85].mxu1  ;;  %14724 = vmatmul.mubr.msk.f32.vlgmr.msra.gmra.mrb[86].mxu1 %vm10664_vm4, %v10576_v21  ;;  %v14698_v34 = vpop.f32.mrb[125].mxu0  ;;  %v11136_v9 = vshrl.u32 %v11135_v63, 7  ;;  %v11400_v63 = vld [vmem:[%s19105_s18 + $0x20] sm:$0xff] }
0x1005   : > { %14727 = vmatpush3.msk.msra.mxu0 %vm1182_vm0, %v10502_v31  ;;  %14728 = vmatprep.mubr.msk.f32.mxu0 %vm16667_vm12, %v16668_v20  ;;  %v11122_v34 = vld [vmem:[%s19101_s8 + $0x3] sm:$0x1] }
0x1006   : > { %14742 = vmatprep.subr.mxu0 %v16668_v20  ;;  %15883 = vmatpush3.bf16.msra.mxu1 %v15882_v4  ;;  %v11119_v4 = vld [vmem:[%s19101_s8] sm:$0x1]  ;;  %s19103_s8 = sld [smem:[#allocation45_spill]] }
0x1007   : > { %15884 = vmatprep.subr.bf16.mxu1 %v16666_v14  ;;  %14739 = vmatprep.mubr.msk.f32.mxu1 %vm16667_vm12, %v16668_v20 }
0x1008   : > { %14729 = vmatmul.mubr.msk.f32.vlgmr.msra.gmra.mrb[128].mxu0 %vm1157_vm1, %v10812_v40 }
0x1009   : > { %14743 = vmatpush3.msk.msra.mxu0 %vm1182_vm0, %v10502_v31  ;;  %14744 = vmatprep.mubr.msk.f32.mxu0 %vm16667_vm12, %v16668_v20  ;;  %v11238_v31 = vld [vmem:[%s19100_s5 + $0x38] sm:$0xff] }
0x100a   : > { %15887 = vmatprep.subr.bf16.mxu0 %v16666_v14  ;;  %15886 = vmatpush3.bf16.msra.mxu1 %v15885_v48  ;;  %v15915_v42 = vpack.c.bf16 %v11238_v31, %v11237_v57  ;;  %v11150_v57 = vld [vmem:[%s19104_s3 + $0x2] sm:$0x1]  ;;  %s16566_s3 = scalar_lea.vmem %s18950_s7, 16 }
0x100b   : > { %15893 = vmatprep.subr.bf16.mxu1 %v16666_v14  ;;  %p16567_p1 = scmp.ne.s32.totalorder %s18950_s7, %s16566_s3 }
0x100c   : > { %14745 = vmatmul.mubr.msk.f32.vlgmr.msra.gmra.mrb[130].mxu0 %vm1157_vm1, %v10966_v41  ;;  %v11137_v41 = vsub.s32 0, %v11136_v9  ;;  %v11415_v17 = vld [vmem:[%s19103_s8 + $0x18] sm:$0xff]  ;;  %v11416_v25 = vld [vmem:[%s19103_s8 + $0x20] sm:$0xff]  ;;  %v11417_v23 = vld [vmem:[%s19103_s8 + $0x28] sm:$0xff] }
0x100d   : > { %14755 = vmatprep.mubr.msk.f32.mxu0 %vm16667_vm12, %v16668_v20  ;;  %15889 = vmatpush3.bf16.msra.mxu0 %v15888_v33  ;;  %v11418_v2 = vld [vmem:[%s19103_s8 + $0x30] sm:$0xff]  ;;  %v11419_v55 = vld [vmem:[%s19103_s8 + $0x38] sm:$0xff]  ;;  %p16568_p12 = pnand %p16567_p1, %p19107_p11 }
0x100e   : > { %15890 = vmatprep.subr.bf16.mxu0 %v16666_v14  ;;  %v11138_v11 = vrot.slane %v11133_v50, %v11137_v41  ;;  %v11409_v50 = vld [vmem:[%s19105_s18 + $0x68] sm:$0xff] }
0x100f   : > { %p16569_p13 = pneg %p16568_p12 }
0x1011   : > { %15892 = vmatpush3.bf16.msra.mxu0 %v15891_v1 }
0x1012   : > { %15905 = vmatprep.subr.bf16.mxu0 %v16666_v14 }
0x10d7   : > { %v10734_v30 = vpop.f32.mrb[126].mxu0  ;;  %v10807_v45 = vpop.f32.mrb[86].mxu1 }
0x10d8   : > { %v14714_v22 = vpop.f32.mrb[127].mxu0  ;;  %v10808_v61 = vadd.f32 %v10807_v45, %v10734_v30  ;;  %v14725_v53 = vpop.f32.mrb[87].mxu1  ;;  %v11243_v30 = vld [vmem:[%s19100_s5 + $0x60] sm:$0xff]  ;;  %v11244_v45 = vld [vmem:[%s19100_s5 + $0x68] sm:$0xff] }
0x10d9   : > { %v15924_v22 = vpack.c.bf16 %v11244_v45, %v11243_v30  ;;  %v11246_v53 = vld [vmem:[%s19100_s5 + $0x78] sm:$0xff] }
0x10db   : > { %v10882_v10 = vpop.f32.mrb[128].mxu0 }
0x10dc   : > { %14740 = vmatmul.mubr.msk.f32.vlgmr.msra.gmra.mrb[88].mxu1 %vm10664_vm4, %v10882_v10  ;;  %v14730_v29 = vpop.f32.mrb[129].mxu0 }
0x10dd   : > { %14774 = vmatprep.mubr.msk.f32.mxu1 %vm16667_vm12, %v16668_v20  ;;  %15895 = vmatpush3.bf16.msra.mxu1 %v15894_v26  ;;  %v11412_v29 = vld [vmem:[%s19103_s8] sm:$0xff] }
0x10de   : > { %15896 = vmatprep.subr.bf16.mxu1 %v16666_v14 }
0x10df   : > { %v11036_v13 = vpop.f32.mrb[130].mxu0 }
0x10e0   : > { %14756 = vmatmul.mubr.msk.f32.vlgmr.msra.gmra.mrb[132].mxu0 %vm10664_vm4, %v11036_v13  ;;  %v14746_v18 = vpop.f32.mrb[131].mxu0  ;;  %v11413_v13 = vld [vmem:[%s19103_s8 + $0x8] sm:$0xff] }
0x10e1   : > { %14809 = vmatprep.mubr.msk.f32.mxu0 %vm16667_vm12, %v16668_v20  ;;  %15898 = vmatpush3.bf16.msra.mxu1 %v15897_v59  ;;  %v11414_v18 = vld [vmem:[%s19103_s8 + $0x10] sm:$0xff]  ;;  %v15930_v60 = vpack.c.bf16 %v11413_v13, %v11412_v29  ;;  %v15936_v59 = vpack.c.bf16 %v11417_v23, %v11416_v25 }
0x10e2   : > { %15899 = vmatprep.subr.bf16.mxu1 %v16666_v14  ;;  %15907 = vmatpush3.bf16.msra.mxu0 %v15906_v8  ;;  %v15933_v26 = vpack.c.bf16 %v11415_v17, %v11414_v18  ;;  %v11321_v8 = vld [vmem:[#allocation15] sm:$0x1] }
0x10e3   : > { %15908 = vmatprep.subr.bf16.mxu0 %v16666_v14 }
0x10e5   : > { %15901 = vmatpush3.bf16.msra.mxu1 %v15900_v43  ;;  %v15939_v43 = vpack.c.bf16 %v11419_v55, %v11418_v2 }
0x10e6   : > { %15902 = vmatprep.subr.bf16.mxu1 %v16666_v14  ;;  %15910 = vmatpush3.bf16.msra.mxu0 %v15909_v35  ;;  %v11396_v35 = vld [vmem:[%s19105_s18] sm:$0xff] }
0x10e7   : > { %15911 = vmatprep.subr.bf16.mxu0 %v16666_v14  ;;  %v15942_v16 = vpack.c.bf16 %v11397_v46, %v11396_v35 }
0x10e9   : > { %15904 = vmatpush3.bf16.msra.mxu1 %v15903_v37 }
0x10ea   : > { %14812 = vmatprep.subr.mxu1 %v16668_v20  ;;  %15913 = vmatpush3.bf16.msra.mxu0 %v15912_v58 }
0x10eb   : > { %15914 = vmatprep.subr.bf16.mxu0 %v16666_v14 }
0x10ee   : > { %15916 = vmatpush3.bf16.msra.mxu0 %v15915_v42 }
0x10ef   : > { %15917 = vmatprep.subr.bf16.mxu0 %v16666_v14 }
0x10f2   : > { %15919 = vmatpush3.bf16.msra.mxu0 %v15918_v39 }
0x10f3   : > { %15920 = vmatprep.subr.bf16.mxu0 %v16666_v14 }
0x10f6   : > { %15922 = vmatpush3.bf16.msra.mxu0 %v15921_v62 }
0x10f7   : > { %15923 = vmatprep.subr.bf16.mxu0 %v16666_v14 }
0x10fa   : > { %15925 = vmatpush3.bf16.msra.mxu0 %v15924_v22  ;;  %v11563_v22 = vld [vmem:[#allocation17] sm:$0x1] }
0x10fb   : > { %15926 = vmatprep.subr.bf16.mxu0 %v16666_v14 }
0x11af   : > { %v10960_v7 = vpop.f32.mrb[88].mxu1 }
0x11b0   : > { %v10964_v24 = vadd.f32 %v10960_v7, %v10808_v61  ;;  %v14741_v3 = vpop.f32.mrb[89].mxu1  ;;  %v11245_v61 = vld [vmem:[%s19100_s5 + $0x70] sm:$0xff]  ;;  %v15945_v7 = vpack.c.bf16 %v11399_v52, %v11398_v51  ;;  %s16570_s5 = sshll.u32 %s16670_s0, 4  ;;  %s16571_s5 = int_to_ptr.vmem [resolvable:$false] %s16570_s5 }
0x11b1   : > { %v15927_v10 = vpack.c.bf16 %v11246_v53, %v11245_v61  ;;  %s16572_s8 = scalar_lea.vmem %s16571_s5, 32  ;;  %p16573_p3 = scmp.lt.s32.totalorder %s18950_s7, %s16571_s5 }
0x11b2   : > { %p16574_p6 = scmp.lt.s32.totalorder %s16572_s8, %s16566_s3 }
0x11b3   : > { %v11114_v19 = vpop.f32.mrb[132].mxu0  ;;  %15928 = vmatpush3.bf16.msra.mxu0 %v15927_v10 }
0x11b4   : > { %v11118_v21 = vadd.f32 %v11114_v19, %v10964_v24  ;;  %v14757_v28 = vpop.f32.mrb[133].mxu0  ;;  %v11401_v24 = vld [vmem:[%s19105_s18 + $0x28] sm:$0xff]  ;;  %v11402_v19 = vld [vmem:[%s19105_s18 + $0x30] sm:$0xff]  ;;  %p16575_p9 = por %p16574_p6, %p16573_p3 }
0x11b5   : > { %v15948_v3 = vpack.c.bf16 %v11401_v24, %v11400_v63 }
0x11b6   : > { %v11123_v40 = vadd.f32 %v11119_v4, %v11118_v21  ;;  %v11403_v4 = vld [vmem:[%s19105_s18 + $0x38] sm:$0xff]  ;;  %v11405_v21 = vld [vmem:[%s19105_s18 + $0x48] sm:$0xff]  ;;  %p16576_p4 = pnand %p16575_p9, %p16569_p13 }
0x11b7   : > { %v15951_v9 = vpack.c.bf16 %v11403_v4, %v11402_v19 }
0x11b8   : > { %vm11124_vm0 = vcmp.ge.f32.partialorder %v11123_v40, 0.0  ;;  %v11125_v47 = vmul.f32 %v11123_v40, %v11122_v34  ;;  %v11406_v34 = vld [vmem:[%s19105_s18 + $0x50] sm:$0xff] }
0x11ba   : > { %v11126_v48 = vsel %vm11124_vm0, %v11123_v40, %v11125_v47  ;;  %v11407_v40 = vld [vmem:[%s19105_s18 + $0x58] sm:$0xff]  ;;  %v11408_v47 = vld [vmem:[%s19105_s18 + $0x60] sm:$0xff] }
0x11bb   : > { %v11127_v33 = vmul.f32 %v11126_v48, %v11120_v54  ;;  %v15957_v41 = vpack.c.bf16 %v11407_v40, %v11406_v34  ;;  %v15960_v54 = vpack.c.bf16 %v11409_v50, %v11408_v47  ;;  %v11410_v48 = vld [vmem:[%s19105_s18 + $0x70] sm:$0xff] }
0x11bd   : > { %v11128_v6 = vadd.f32 %v11127_v33, %v11121_v49  ;;  %v11411_v49 = vld [vmem:[%s19105_s18 + $0x78] sm:$0xff] }
0x11be   : > { %v15963_v33 = vpack.c.bf16 %v11411_v49, %v11410_v48 }
0x11bf   : > { %v11139_v1 = vmul.f32 %v11138_v11, %v11128_v6  ;;  %v11247_v11 = vld [vmem:[#allocation12] sm:$0x1] }
0x11c1   : > { %14775 = vmatmul.mubr.msk.f32.vlgmr.msra.gmra.mrb[90].mxu1 %vm7565_vm2, %v11139_v1 }
0x11c2   : > { %14813 = vmatpush3.msra.mxu1 %v11320_v5  ;;  %14814 = vmatprep.mubr.msk.f32.mxu1 %vm16667_vm12, %v16668_v20 }
0x11c3   : > { %15929 = vmatprep.subr.bf16.mxu1 %v16666_v14 }
0x11c5   : > { %14815 = vmatmul.mubr.msk.f32.vlgmr.msra.gmra.mrb[92].mxu1 %vm7734_vm11, %v11319_v44 }
0x11c6   : > { %14833 = vmatprep.mubr.msk.f32.mxu1 %vm16667_vm12, %v16668_v20  ;;  %15931 = vmatpush3.bf16.msra.mxu1 %v15930_v60 }
0x11c7   : > { %15932 = vmatprep.subr.bf16.mxu1 %v16666_v14 }
0x11ca   : > { %15934 = vmatpush3.bf16.msra.mxu1 %v15933_v26 }
0x11cb   : > { %15935 = vmatprep.subr.bf16.mxu1 %v16666_v14 }
0x11ce   : > { %15937 = vmatpush3.bf16.msra.mxu1 %v15936_v59 }
0x11cf   : > { %15938 = vmatprep.subr.bf16.mxu1 %v16666_v14 }
0x11d2   : > { %15940 = vmatpush3.bf16.msra.mxu1 %v15939_v43 }
0x11d3   : > { %15941 = vmatprep.subr.bf16.mxu1 %v16666_v14 }
0x1294   : > { %v11221_v37 = vpop.f32.mrb[90].mxu1 }
0x1295   : > { %v11222_v56 = vadd.f32 %v11221_v37, %v11148_v38  ;;  %v14776_v32 = vpop.f32.mrb[91].mxu1 }
0x1297   : > { %vm11225_vm1 = vcmp.ge.f32.partialorder %v11222_v56, 0.0  ;;  %v11226_v27 = vmul.f32 %v11222_v56, %v11151_v0 }
0x1298   : > { %v11391_v12 = vpop.f32.mrb[92].mxu1 }
0x1299   : > { %v11227_v58 = vsel %vm11225_vm1, %v11222_v56, %v11226_v27  ;;  %v11392_v31 = vadd.f32 %v11391_v12, %v11321_v8  ;;  %v14816_v42 = vpop.f32.mrb[93].mxu1 }
0x129a   : > { %v11228_v36 = vmul.f32 %v11227_v58, %v11149_v15 }
0x129b   : > { %v11395_v39 = vmax.f32 %v11392_v31, 0.0 }
0x129c   : > { %v11229_v62 = vadd.f32 %v11228_v36, %v11150_v57 }
0x129d   : > { %14834 = vmatmul.mubr.msk.f32.vlgmr.msra.gmra.mrb[94].mxu1 %vm7565_vm2, %v11395_v39  ;;  %vm11565_vm2 = vcmask 8192  }
0x129e   : > { %14810 = vmatmul.mubr.f32.vlgmr.msra.gmra.mrb[134].mxu0 %v11229_v62  ;;  %15943 = vmatpush3.bf16.msra.mxu1 %v15942_v16 }
0x129f   : > { %15944 = vmatprep.subr.bf16.mxu1 %v16666_v14  ;;  %14868 = vmatprep.mubr.msk.f32.mxu1 %vm16667_vm12, %v16668_v20  ;;  %v11404_v20 = vld [vmem:[%s19105_s18 + $0x40] sm:$0xff] }
0x12a0   : > { %v15954_v28 = vpack.c.bf16 %v11405_v21, %v11404_v20 }
0x12a2   : > { %15946 = vmatpush3.bf16.msra.mxu1 %v15945_v7 }
0x12a3   : > { %15947 = vmatprep.subr.bf16.mxu1 %v16666_v14 }
0x12a6   : > { %15949 = vmatpush3.bf16.msra.mxu1 %v15948_v3 }
0x12a7   : > { %15950 = vmatprep.subr.bf16.mxu1 %v16666_v14 }
0x12aa   : > { %15952 = vmatpush3.bf16.msra.mxu1 %v15951_v9 }
0x12ab   : > { %15953 = vmatprep.subr.bf16.mxu1 %v16666_v14 }
0x12ae   : > { %15955 = vmatpush3.bf16.msra.mxu1 %v15954_v28 }
0x12af   : > { %15956 = vmatprep.subr.bf16.mxu1 %v16666_v14 }
0x12b2   : > { %15958 = vmatpush3.bf16.msra.mxu1 %v15957_v41 }
0x12b3   : > { %15959 = vmatprep.subr.bf16.mxu1 %v16666_v14 }
0x12b6   : > { %15961 = vmatpush3.bf16.msra.mxu1 %v15960_v54 }
0x12b7   : > { %15962 = vmatprep.subr.bf16.mxu1 %v16666_v14 }
0x12ba   : > { %15964 = vmatpush3.bf16.msra.mxu1 %v15963_v33 }
0x1370   : > { %v11489_v6 = vpop.f32.mrb[94].mxu1 }
0x1371   : > { %v11314_v1 = vpop.f32.mrb[134].mxu0  ;;  %v14835_v5 = vpop.f32.mrb[95].mxu1 }
0x1372   : > { %v11315_v44 = vadd.f32 %v11314_v1, %v11247_v11  ;;  %v14811_v30 = vpop.f32.mrb[135].mxu0 }
0x1374   : > { %v11318_v45 = vmax.f32 %v11315_v44, 0.0 }
0x1376   : > { %14869 = vmatmul.mubr.f32.vlgmr.msra.gmra.mrb[96].mxu1 %v11318_v45 }
0x1449   : > { %v11559_v14 = vpop.f32.mrb[96].mxu1 }
0x144a   : > { %v11560_v61 = vadd.f32 %v11559_v14, %v11489_v6  ;;  %v14870_v53 = vpop.f32.mrb[97].mxu1 }
0x144c   : > { %v11564_v10 = vadd.f32 %v11563_v22, %v11560_v61 }
0x144e   : > { %11566 = vst.msk [vmem:[%s873_s14] sm:$0x1] %vm11565_vm2, %v11564_v10 }
0x144f   : > { %16579 = shalt.err (!%p16576_p4)
}
0x1450   : > { %s16580_s29 = scalar_lea.hbm %s18948_s11, 16  ;;  %s16584_s4 = scalar_lea.hbm %s19106_s10, 32 }
0x1451   : > { %p16581_p8 = scmp.ne.s32.totalorder %s18948_s11, %s16580_s29  ;;  %p16585_p2 = scmp.lt.u32.totalorder %s18948_s11, %s19106_s10 }
0x1452   : > { %p16586_p7 = scmp.lt.u32.totalorder %s16584_s4, %s16580_s29  ;;  %p16588_p1 = scmp.lt.u32.totalorder %s16580_s29, %s18948_s11 }
0x1453   : > { %p16582_p0 = pnand %p16581_p8, %p19107_p11 }
0x1454   : > { %p16587_p10 = por %p16586_p7, %p16585_p2 }
0x1455   : > { %p16583_p5 = pneg %p16582_p0 }
0x1456   : > { %p16589_p12 = por %p16588_p1, %p16587_p10 }
0x1458   : > { %p16590_p13 = pnand %p16589_p12, %p16583_p5 }
0x145a   : > { %16593 = shalt.err (!%p16590_p13)
}
0x145b   : > { %16207 = dma.vmem_to_hbm [thread:$0]  (%p19107_p11), %s18950_s7, 16, %s18948_s11, %s11568_s9  }
0x145c PF: > { %s11592_s8 = sand.u32 1, %s16636_s27   ;;  %p19108_p3 = scmp.ne.s32.totalorder %s19079_s1, 0 }
0x145d   : > { %p19109_p6 = scmp.ge.s32.totalorder %s16648_s2, 2  ;;  %s11593_s3 = scalar_lea.sflag [#allocation5], %s11592_s8 }
0x145f   : > { %p16239_p9 = pnand %p19109_p6, %p19108_p3 }
0x1461   : > { %16631 = dma.done.wait (!%p16239_p9), %s11593_s3, 16  }
0x1462   : > { %16633 = vsyncadd (!%p16239_p9), %s11593_s3, 4294967280  ;;  %p43_p4 = scmp.ge.s32.totalorder %s17010_s25, 4   ;;  %s19110_s27 = smov %s16640_s28 }
0x1463   : > { %s19111_s28 = smov %s16644_s6  ;;  %s19112_s6 = smov %s17022_s15 }
0x1464   : > { %s19113_s2 = smov %s17010_s25  ;;  %45 = sbr.rel (!%p43_p4) target bundleno = 32 (0x20), region = 282 }
0x146b   :  { %11597 = vsyncpa [#allocation4], 1 }
0x146c   :  { %11599 = vsyncpa [#allocation4 + $0x1], 1 }
0x146d   :  { %11600 = vsyncpa [#allocation7], 1 }
0x146e   :  { %11601 = vsyncpa [#allocation10], 1 }
0x146f   :  { %11602 = vsyncpa [#allocation13], 1 }
0x1470   :  { %11603 = vsyncpa [#allocation16], 1 }
0x1471   :  { %11604 = vsyncpa [#allocation5], 1 }
0x1472   :  { %11606 = vsyncpa [#allocation5 + $0x1], 1 }

</bundles_post_ra>
